<compile_context>
chip_gen: v7x
topology: tpu7x:2x2x1
jax: 0.10.0
libtpu: 0.0.40
codegen_flags: <defaults>
</compile_context>

<pallas_src>
import functools

import jax
import jax.numpy as jnp
from jax.experimental import pallas as pl
from jax.experimental.pallas import tpu as pltpu

EPS = 1e-5
NEG = -1e30  # stands in for -inf in the attention mask fill


def _layernorm(x, g, b):
    mu = jnp.mean(x, axis=-1, keepdims=True)
    xc = x - mu
    var = jnp.mean(xc * xc, axis=-1, keepdims=True)
    return xc * jax.lax.rsqrt(var + EPS) * g + b


def _shift_rows(y, shift):
    """out[t] = y[t - shift], zero-filled outside [0, T).  Static shift."""
    if shift == 0:
        return y
    T = y.shape[0]
    rolled = pltpu.roll(y, shift % T, axis=0)            # rolled[t] = y[(t - shift) mod T]
    rows = jax.lax.broadcasted_iota(jnp.int32, (T, 1), 0)
    keep = rows >= shift if shift > 0 else rows < T + shift
    return jnp.where(keep, rolled, 0.0)


# --------------------------------------------------------------------------
# Fused whole-decoder kernel.  grid = (n_layer, B)   (layer outer)
# --------------------------------------------------------------------------
def decoder_kernel(lens_ref,                       # scalar prefetch (SMEM)
                   x_ref, pos_ref,                 # activations / pos table
                   wqkv_ref, bqkv_ref, wo_ref, g1_ref, bt1_ref,        # attention
                   w1_ref, bc1_ref, w2_ref, bc2_ref, g2_ref, bt2_ref,  # conv FF
                   o_ref,                          # output
                   act_ref,                        # VMEM scratch (B, T, D) f32
                   *, n_head, d_head, kernel_size, mm_dtype):
    l = pl.program_id(0)             # layer (carry axis, outer -> weights DMA'd once)
    b = pl.program_id(1)             # batch (inner)
    n_layer = pl.num_programs(0)

    T, D = x_ref.shape[1], x_ref.shape[2]
    hd = n_head * d_head
    K = kernel_size
    pad = K // 2
    seqlen = lens_ref[b]

    # Small masks; jnp.where / mul broadcast them (O(T) iota+cmp, not O(T*D)/O(T^2)).
    row_ids = jax.lax.broadcasted_iota(jnp.int32, (T, 1), 0)
    row_mask = (row_ids < seqlen).astype(jnp.float32)                     # (T, 1)
    key_valid = jax.lax.broadcasted_iota(jnp.int32, (1, T), 1) < seqlen   # (1, T)

    # Layer 0: initialize the VMEM-resident activation with inp + pos_emb * mask.
    @pl.when(l == 0)
    def _():
        act_ref[b] = (x_ref[0] + pos_ref[0] * row_mask).astype(jnp.float32)

    x = act_ref[b]                                                        # (T, D) f32

    # ---------------- Multi-head attention (post-lnorm) ----------------
    scale = 1.0 / (d_head ** 0.5)
    qkv = jnp.dot(x.astype(mm_dtype), wqkv_ref[0],
                  preferred_element_type=jnp.float32) + bqkv_ref[0]       # (T, 3*hd) f32

    heads = []
    for h in range(n_head):      # static unroll; fine for small n_head (<= ~4)
        q = (qkv[:, h * d_head:(h + 1) * d_head] * scale).astype(mm_dtype)
        k = qkv[:, hd + h * d_head: hd + (h + 1) * d_head].astype(mm_dtype)
        v = qkv[:, 2 * hd + h * d_head: 2 * hd + (h + 1) * d_head].astype(mm_dtype)
        s = jax.lax.dot_general(q, k, (((1,), (1,)), ((), ())),
                                preferred_element_type=jnp.float32)       # (T, T)
        s = jnp.where(key_valid, s, NEG)
        p = jnp.exp(s - jnp.max(s, axis=-1, keepdims=True))
        denom = jnp.sum(p, axis=-1, keepdims=True)                        # (T, 1)
        o_h = jnp.dot(p.astype(mm_dtype), v, preferred_element_type=jnp.float32)
        heads.append(o_h * pl.reciprocal(denom, approx=True))             # (T, Dh)
    attn_vec = heads[0] if n_head == 1 else jnp.concatenate(heads, axis=-1)

    # Single hd-deep output projection (better MXU utilization than per-head folds).
    attn_out = jnp.dot(attn_vec.astype(mm_dtype), wo_ref[0],
                       preferred_element_type=jnp.float32)                # (T, D)
    y = _layernorm(x + attn_out, g1_ref[0], bt1_ref[0]) * row_mask

    # ---------------- PositionwiseConvFF (conv -> relu -> conv) --------
    # conv1 (im2col): shift the SMALL (T, D) operand, lane-aligned concat,
    # one (T, K*D) @ (K*D, d_inner) matmul (taps fused, single weight push).
    ycat = jnp.concatenate([_shift_rows(y, pad - j) for j in range(K)],
                           axis=-1).astype(mm_dtype)                      # (T, K*D)
    h1 = jnp.dot(ycat, w1_ref[0], preferred_element_type=jnp.float32) + bc1_ref[0]
    h1 = jnp.maximum(h1, 0.0)                                             # ReLU

    # conv2: one (T, d_inner) @ (d_inner, K*D) matmul; shift the small (T, D)
    # output column blocks and sum.
    z = jnp.dot(h1.astype(mm_dtype), w2_ref[0],
                preferred_element_type=jnp.float32)                       # (T, K*D)
    core = bc2_ref[0]
    for j in range(K):
        core = core + _shift_rows(z[:, j * D:(j + 1) * D], pad - j)

    out = _layernorm(y + core, g2_ref[0], bt2_ref[0]) * row_mask

    act_ref[b] = out                                   # carry to the next layer

    @pl.when(l == n_layer - 1)
    def _():
        o_ref[0] = out.astype(o_ref.dtype)


# --------------------------------------------------------------------------
# Wrapper
# --------------------------------------------------------------------------
def positional_embedding(T, d_model, dtype=jnp.float32):
    pos = jnp.arange(T, dtype=dtype)
    inv_freq = 1.0 / (10000.0 ** (jnp.arange(0.0, d_model, 2.0, dtype=dtype) / d_model))
    sinusoid = pos[:, None] * inv_freq[None, :]
    return jnp.concatenate([jnp.sin(sinusoid), jnp.cos(sinusoid)], axis=1)[None]  # (1,T,D)


def _vmem_limit_bytes(T, D, hd, d_inner, K, B, act_bytes, w_bytes):
    weights = (D * 3 * hd + hd * D + K * D * d_inner + d_inner * K * D) * w_bytes
    streamed = 2 * weights                      # double-buffered weight stream
    streamed += 2 * 2 * T * D * act_bytes       # x + pos_emb blocks (double-buffered)
    streamed += 2 * T * D * act_bytes           # output block
    resident = B * T * D * 4                    # layer-carry activation scratch
    temps = (T * 3 * hd + 2 * T * T + T * hd + 2 * T * K * D
             + 2 * T * d_inner + 6 * T * D) * 4
    est = int(1.5 * (streamed + resident + temps))
    # Floor above the 16/32 MiB scoped defaults, cap at v7x's 64 MiB physical VMEM.
    return int(min(max(est, 32 * 1024 * 1024), 64 * 1024 * 1024))


def fft_decoder(x, seq_lens, params, *, n_head, d_head, kernel_size,
                matmul_dtype=jnp.bfloat16):
    """bf16 matmul/weight path by default; LN/softmax/exp stay f32."""
    B, T, D = x.shape
    hd = n_head * d_head
    L = params["w_qkv"].shape[0]
    d_inner = params["w1"].shape[3]
    K = kernel_size

    # Weight stream in the MXU dtype (halves HBM DMA bytes + VMEM double buffers).
    # In production these would be stored pre-cast / pre-laid-out in HBM.
    w_qkv = params["w_qkv"].astype(matmul_dtype)                            # (L, D, 3*hd)
    w_o = params["w_o"].astype(matmul_dtype)                                # (L, hd, D)
    w1 = params["w1"].reshape(L, K * D, d_inner).astype(matmul_dtype)       # taps stacked on rows
    w2 = jnp.transpose(params["w2"], (0, 2, 1, 3)).reshape(
        L, d_inner, K * D).astype(matmul_dtype)                             # taps stacked on cols

    pos = positional_embedding(T, D, jnp.float32).astype(x.dtype)           # (1, T, D)

    kern = functools.partial(decoder_kernel, n_head=n_head, d_head=d_head,
                             kernel_size=K, mm_dtype=matmul_dtype)

    vmem_limit = _vmem_limit_bytes(T, D, hd, d_inner, K, B,
                                   jnp.dtype(x.dtype).itemsize,
                                   jnp.dtype(matmul_dtype).itemsize)

    out = pl.pallas_call(
        kern,
        out_shape=jax.ShapeDtypeStruct((B, T, D), x.dtype),
        grid_spec=pltpu.PrefetchScalarGridSpec(
            num_scalar_prefetch=1,
            grid=(L, B),
            in_specs=[
                # x is consumed only at l == 0; pin its block to 0 afterwards so
                # it is not re-streamed from HBM every layer.
                pl.BlockSpec((1, T, D),
                             lambda l, b, lens: (jnp.where(l == 0, b, 0), 0, 0)),   # x
                pl.BlockSpec((1, T, D), lambda l, b, lens: (0, 0, 0)),               # pos_emb
                pl.BlockSpec((1, D, 3 * hd), lambda l, b, lens: (l, 0, 0)),          # w_qkv
                pl.BlockSpec((1, 1, 3 * hd), lambda l, b, lens: (l, 0, 0)),          # b_qkv
                pl.BlockSpec((1, hd, D), lambda l, b, lens: (l, 0, 0)),              # w_o
                pl.BlockSpec((1, 1, D), lambda l, b, lens: (l, 0, 0)),               # ln1_g
                pl.BlockSpec((1, 1, D), lambda l, b, lens: (l, 0, 0)),               # ln1_b
                pl.BlockSpec((1, K * D, d_inner), lambda l, b, lens: (l, 0, 0)),     # w1 (taps fused)
                pl.BlockSpec((1, 1, d_inner), lambda l, b, lens: (l, 0, 0)),         # b1
                pl.BlockSpec((1, d_inner, K * D), lambda l, b, lens: (l, 0, 0)),     # w2 (taps fused)
                pl.BlockSpec((1, 1, D), lambda l, b, lens: (l, 0, 0)),               # b2
                pl.BlockSpec((1, 1, D), lambda l, b, lens: (l, 0, 0)),               # ln2_g
                pl.BlockSpec((1, 1, D), lambda l, b, lens: (l, 0, 0)),               # ln2_b
            ],
            # Output is produced only on the last layer; keep its block pinned at 0
            # until then so each batch element is written back to HBM exactly once.
            out_specs=pl.BlockSpec(
                (1, T, D), lambda l, b, lens: (jnp.where(l == L - 1, b, 0), 0, 0)),
            scratch_shapes=[pltpu.VMEM((B, T, D), jnp.float32)],
        ),
        compiler_params=pltpu.CompilerParams(
            dimension_semantics=("arbitrary", "arbitrary"),
            vmem_limit_bytes=vmem_limit),
    )(seq_lens.astype(jnp.int32), x, pos,
      w_qkv, params["b_qkv"], w_o, params["ln1_g"], params["ln1_b"],
      w1, params["b1"], w2, params["b2"], params["ln2_g"], params["ln2_b"])

    mask = (jnp.arange(T)[None, :] < seq_lens[:, None]).astype(x.dtype)[:, :, None]
    return out, mask


# --------------------------------------------------------------------------
# Pure-JAX reference (mirrors PyTorch semantics, same matmul dtype) for self-check
# --------------------------------------------------------------------------
def ref_decoder(x, seq_lens, params, *, n_head, d_head, kernel_size,
                matmul_dtype=jnp.bfloat16):
    B, T, D = x.shape
    hd = n_head * d_head
    K = kernel_size
    pad = K // 2
    L = params["w_qkv"].shape[0]
    md = matmul_dtype
    scale = 1.0 / (d_head ** 0.5)

    def mm(a, w):
        return jax.lax.dot_general(a.astype(md), w.astype(md),
                                   (((a.ndim - 1,), (0,)), ((), ())),
                                   preferred_element_type=jnp.float32)

    mask = (jnp.arange(T)[None, :] < seq_lens[:, None]).astype(jnp.float32)[:, :, None]
    x = x + positional_embedding(T, D, jnp.float32) * mask
    for l in range(L):
        qkv = mm(x, params["w_qkv"][l]) + params["b_qkv"][l, 0]
        q = (qkv[..., :hd] * scale).reshape(B, T, n_head, d_head)
        k = qkv[..., hd:2 * hd].reshape(B, T, n_head, d_head)
        v = qkv[..., 2 * hd:].reshape(B, T, n_head, d_head)
        s = jnp.einsum("bqhd,bkhd->bhqk", q.astype(md), k.astype(md),
                       preferred_element_type=jnp.float32)
        s = jnp.where(mask[:, None, None, :, 0] > 0, s, NEG)
        p = jax.nn.softmax(s, axis=-1)
        av = jnp.einsum("bhqk,bkhd->bqhd", p.astype(md), v.astype(md),
                        preferred_element_type=jnp.float32).reshape(B, T, hd)
        x = _layernorm(x + mm(av, params["w_o"][l]),
                       params["ln1_g"][l, 0], params["ln1_b"][l, 0]) * mask
        xp = jnp.pad(x, ((0, 0), (pad, pad), (0, 0)))
        h = sum(mm(xp[:, j:j + T], params["w1"][l, j])
                for j in range(K)) + params["b1"][l, 0]
        h = jnp.maximum(h, 0.0)
        hp = jnp.pad(h, ((0, 0), (pad, pad), (0, 0)))
        c = sum(mm(hp[:, j:j + T], params["w2"][l, j])
                for j in range(K)) + params["b2"][l, 0]
        x = _layernorm(x + c, params["ln2_g"][l, 0], params["ln2_b"][l, 0]) * mask
    return x, mask


# --------------------------------------------------------------------------
# Deterministic parameter init (synthetic, not a checkpoint load)
# --------------------------------------------------------------------------
def init_params(key, n_layer, D, H, Dh, Dinner, K):
    def nrm(k, shape):
        return 0.05 * jax.random.normal(k, shape, jnp.float32)
    ks = jax.random.split(key, 6)
    return dict(
        w_qkv=nrm(ks[0], (n_layer, D, 3 * H * Dh)),
        b_qkv=nrm(ks[1], (n_layer, 1, 3 * H * Dh)),
        w_o=nrm(ks[2], (n_layer, H * Dh, D)),
        ln1_g=jnp.ones((n_layer, 1, D), jnp.float32),
        ln1_b=jnp.zeros((n_layer, 1, D), jnp.float32),
        # conv weights laid out per-tap: (L, K, C_in, C_out)
        w1=nrm(ks[3], (n_layer, K, D, Dinner)),
        b1=nrm(ks[4], (n_layer, 1, Dinner)),
        w2=nrm(ks[5], (n_layer, K, Dinner, D)),
        b2=jnp.zeros((n_layer, 1, D), jnp.float32),
        ln2_g=jnp.ones((n_layer, 1, D), jnp.float32),
        ln2_b=jnp.zeros((n_layer, 1, D), jnp.float32),
    )


if __name__ == "__main__":
    # Small but lane-friendly config: T and every feature dim are multiples of
    # 128, and d_head = 128 keeps every per-head Q/K/V slice 128-lane aligned.
    B, T, D = 2, 128, 256
    H, Dh, Dinner, K, n_layer = 2, 128, 512, 3, 2

    key = jax.random.PRNGKey(0)
    kx, kp = jax.random.split(key)
    x = jax.random.normal(kx, (B, T, D), jnp.float32)
    seq_lens = jnp.array([T, T - 35], jnp.int32)   # max(lens) == T, matching torch
    params = init_params(kp, n_layer, D, H, Dh, Dinner, K)

    out, mask = fft_decoder(x, seq_lens, params, n_head=H, d_head=Dh,
                            kernel_size=K, matmul_dtype=jnp.bfloat16)
    out = jax.block_until_ready(out)

    ref, _ = ref_decoder(x, seq_lens, params, n_head=H, d_head=Dh,
                         kernel_size=K, matmul_dtype=jnp.bfloat16)
    if not jnp.allclose(out, ref, atol=2e-2, rtol=2e-2):
        err = jnp.max(jnp.abs(out - ref))
        raise AssertionError(f"Pallas output does not match JAX reference (max err {err})")

    print("KERNEL_OK")
</pallas_src>

<mosaic_0001>
module attributes {stable_mosaic.version = 11 : i64} {
  func.func @decoder_kernel(%arg0: i32, %arg1: i32, %arg2: memref<2xi32, #tpu.memory_space<smem>>, %arg3: memref<1x128x256xf32, #tpu.memory_space<vmem>>, %arg4: memref<1x128x256xf32, #tpu.memory_space<vmem>>, %arg5: memref<1x256x768xbf16, #tpu.memory_space<vmem>>, %arg6: memref<1x1x768xf32, #tpu.memory_space<vmem>>, %arg7: memref<1x256x256xbf16, #tpu.memory_space<vmem>>, %arg8: memref<1x1x256xf32, #tpu.memory_space<vmem>>, %arg9: memref<1x1x256xf32, #tpu.memory_space<vmem>>, %arg10: memref<1x768x512xbf16, #tpu.memory_space<vmem>>, %arg11: memref<1x1x512xf32, #tpu.memory_space<vmem>>, %arg12: memref<1x512x768xbf16, #tpu.memory_space<vmem>>, %arg13: memref<1x1x256xf32, #tpu.memory_space<vmem>>, %arg14: memref<1x1x256xf32, #tpu.memory_space<vmem>>, %arg15: memref<1x1x256xf32, #tpu.memory_space<vmem>>, %arg16: memref<1x128x256xf32, #tpu.memory_space<vmem>>, %arg17: memref<2x128x256xf32, #tpu.memory_space<vmem>>) attributes {dimension_semantics = [#tpu.dimension_semantics<arbitrary>, #tpu.dimension_semantics<arbitrary>], iteration_bounds = array<i64: 2, 2>, scalar_prefetch = 1 : i64, scratch_operands = 1 : i64, tpu.core_type = #tpu.core_type<tc>, window_params = [{transform_indices = @transform_0, window_bounds = array<i64: 1, 128, 256>}, {pipeline_mode = #tpu.pipeline_mode<synchronous>, transform_indices = @transform_1, window_bounds = array<i64: 1, 128, 256>}, {transform_indices = @transform_2, window_bounds = array<i64: 1, 256, 768>}, {transform_indices = @transform_3, window_bounds = array<i64: 1, 1, 768>}, {transform_indices = @transform_4, window_bounds = array<i64: 1, 256, 256>}, {transform_indices = @transform_5, window_bounds = array<i64: 1, 1, 256>}, {transform_indices = @transform_6, window_bounds = array<i64: 1, 1, 256>}, {transform_indices = @transform_7, window_bounds = array<i64: 1, 768, 512>}, {transform_indices = @transform_8, window_bounds = array<i64: 1, 1, 512>}, {transform_indices = @transform_9, window_bounds = array<i64: 1, 512, 768>}, {transform_indices = @transform_10, window_bounds = array<i64: 1, 1, 256>}, {transform_indices = @transform_11, window_bounds = array<i64: 1, 1, 256>}, {transform_indices = @transform_12, window_bounds = array<i64: 1, 1, 256>}, {transform_indices = @transform_13, window_bounds = array<i64: 1, 128, 256>}]} {
    %0 = arith.index_cast %arg1 : i32 to index
    %1 = memref.load %arg2[%0] : memref<2xi32, #tpu.memory_space<smem>>
    %2 = tpu.iota {dimensions = array<i32: 0>} : vector<128x1xi32>
    %3 = vector.broadcast %1 : i32 to vector<128x1xi32>
    %4 = arith.cmpi slt, %2, %3 : vector<128x1xi32>
    %5 = arith.extui %4 : vector<128x1xi1> to vector<128x1xi32>
    %6 = arith.sitofp %5 : vector<128x1xi32> to vector<128x1xf32>
    %7 = tpu.iota {dimensions = array<i32: 1>} : vector<1x128xi32>
    %8 = vector.broadcast %1 : i32 to vector<1x128xi32>
    %9 = arith.cmpi slt, %7, %8 : vector<1x128xi32>
    %c0_i32 = arith.constant 0 : i32
    %10 = arith.cmpi eq, %arg0, %c0_i32 : i32
    %11 = arith.extui %10 : i1 to i32
    %c0_i32_0 = arith.constant 0 : i32
    %12 = arith.cmpi ne, %11, %c0_i32_0 : i32
    scf.if %12 {
      %c0_75 = arith.constant 0 : index
      %c0_76 = arith.constant 0 : index
      %c0_77 = arith.constant 0 : index
      %196 = vector.load %arg3[%c0_75, %c0_76, %c0_77] : memref<1x128x256xf32, #tpu.memory_space<vmem>>, vector<1x128x256xf32>
      %197 = vector.shape_cast %196 : vector<1x128x256xf32> to vector<128x256xf32>
      %c0_78 = arith.constant 0 : index
      %c0_79 = arith.constant 0 : index
      %c0_80 = arith.constant 0 : index
      %198 = vector.load %arg4[%c0_78, %c0_79, %c0_80] : memref<1x128x256xf32, #tpu.memory_space<vmem>>, vector<1x128x256xf32>
      %199 = vector.shape_cast %198 : vector<1x128x256xf32> to vector<128x256xf32>
      %200 = vector.broadcast %6 : vector<128x1xf32> to vector<128x256xf32>
      %201 = arith.mulf %199, %200 : vector<128x256xf32>
      %202 = arith.addf %197, %201 : vector<128x256xf32>
      %203 = arith.index_cast %arg1 : i32 to index
      %c0_81 = arith.constant 0 : index
      %c0_82 = arith.constant 0 : index
      %204 = vector.load %arg17[%203, %c0_81, %c0_82] : memref<2x128x256xf32, #tpu.memory_space<vmem>>, vector<1x128x256xf32>
      %205 = vector.shape_cast %204 : vector<1x128x256xf32> to vector<128x256xf32>
      %206 = vector.shape_cast %202 : vector<128x256xf32> to vector<1x128x256xf32>
      tpu.vector_store %arg17[%203, %c0_81, %c0_82], %206 {strides = array<i32>} : memref<2x128x256xf32, #tpu.memory_space<vmem>>, vector<1x128x256xf32>,
    } else {
    }
    %13 = arith.index_cast %arg1 : i32 to index
    %c0 = arith.constant 0 : index
    %c0_1 = arith.constant 0 : index
    %14 = vector.load %arg17[%13, %c0, %c0_1] : memref<2x128x256xf32, #tpu.memory_space<vmem>>, vector<1x128x256xf32>
    %15 = vector.shape_cast %14 : vector<1x128x256xf32> to vector<128x256xf32>
    %16 = arith.truncf %15 : vector<128x256xf32> to vector<128x256xbf16>
    %c0_2 = arith.constant 0 : index
    %c0_3 = arith.constant 0 : index
    %c0_4 = arith.constant 0 : index
    %17 = vector.load %arg5[%c0_2, %c0_3, %c0_4] : memref<1x256x768xbf16, #tpu.memory_space<vmem>>, vector<1x256x768xbf16>
    %18 = vector.shape_cast %17 : vector<1x256x768xbf16> to vector<256x768xbf16>
    %cst = arith.constant dense<0.000000e+00> : vector<128x768xf32>
    %19 = tpu.matmul %16, %18, %cst {dimension_numbers = #tpu.dot_dimension_numbers<[1], [0], [0], [1], [0, 0, 1, 1], [], []>} : vector<128x256xbf16>, vector<256x768xbf16>, vector<128x768xf32> -> vector<128x768xf32>
    %c0_5 = arith.constant 0 : index
    %c0_6 = arith.constant 0 : index
    %c0_7 = arith.constant 0 : index
    %20 = vector.load %arg6[%c0_5, %c0_6, %c0_7] : memref<1x1x768xf32, #tpu.memory_space<vmem>>, vector<1x1x768xf32>
    %21 = vector.shape_cast %20 : vector<1x1x768xf32> to vector<1x768xf32>
    %22 = vector.broadcast %21 : vector<1x768xf32> to vector<128x768xf32>
    %23 = arith.addf %19, %22 : vector<128x768xf32>
    %24 = vector.extract_strided_slice %23 {offsets = [0, 0], sizes = [128, 128], strides = [1, 1]} : vector<128x768xf32> to vector<128x128xf32>
    %cst_8 = arith.constant 0.0883883461 : f32
    %25 = vector.broadcast %cst_8 : f32 to vector<128x128xf32>
    %26 = arith.mulf %24, %25 : vector<128x128xf32>
    %27 = arith.truncf %26 : vector<128x128xf32> to vector<128x128xbf16>
    %28 = vector.extract_strided_slice %23 {offsets = [0, 256], sizes = [128, 128], strides = [1, 1]} : vector<128x768xf32> to vector<128x128xf32>
    %29 = arith.truncf %28 : vector<128x128xf32> to vector<128x128xbf16>
    %30 = vector.extract_strided_slice %23 {offsets = [0, 512], sizes = [128, 128], strides = [1, 1]} : vector<128x768xf32> to vector<128x128xf32>
    %31 = arith.truncf %30 : vector<128x128xf32> to vector<128x128xbf16>
    %cst_9 = arith.constant dense<0.000000e+00> : vector<128x128xf32>
    %32 = tpu.matmul %27, %29, %cst_9 {dimension_numbers = #tpu.dot_dimension_numbers<[1], [1], [0], [0], [0, 0, 1, 0], [], []>} : vector<128x128xbf16>, vector<128x128xbf16>, vector<128x128xf32> -> vector<128x128xf32>
    %cst_10 = arith.constant -1.000000e+30 : f32
    %33 = vector.shape_cast %9 : vector<1x128xi1> to vector<1x128xi1>
    %34 = vector.broadcast %33 : vector<1x128xi1> to vector<128x128xi1>
    %35 = vector.broadcast %cst_10 : f32 to vector<128x128xf32>
    %36 = arith.select %34, %32, %35 : vector<128x128xi1>, vector<128x128xf32>
    %cst_11 = arith.constant dense<0xFF800000> : vector<128xf32>
    %37 = vector.multi_reduction <maximumf>, %36, %cst_11 [1] : vector<128x128xf32> to vector<128xf32>
    %38 = vector.shape_cast %37 : vector<128xf32> to vector<128x1xf32>
    %39 = vector.broadcast %38 : vector<128x1xf32> to vector<128x128xf32>
    %40 = arith.subf %36, %39 : vector<128x128xf32>
    %41 = math.exp %40 : vector<128x128xf32>
    %cst_12 = arith.constant dense<0.000000e+00> : vector<128xf32>
    %42 = vector.multi_reduction <add>, %41, %cst_12 [1] : vector<128x128xf32> to vector<128xf32>
    %43 = vector.shape_cast %42 : vector<128xf32> to vector<128x1xf32>
    %44 = arith.truncf %41 : vector<128x128xf32> to vector<128x128xbf16>
    %cst_13 = arith.constant dense<0.000000e+00> : vector<128x128xf32>
    %45 = tpu.matmul %44, %31, %cst_13 {dimension_numbers = #tpu.dot_dimension_numbers<[1], [0], [0], [1], [0, 0, 1, 1], [], []>} : vector<128x128xbf16>, vector<128x128xbf16>, vector<128x128xf32> -> vector<128x128xf32>
    %46 = tpu.reciprocal %43 {approx = true} : vector<128x1xf32> -> vector<128x1xf32>
    %47 = vector.broadcast %46 : vector<128x1xf32> to vector<128x128xf32>
    %48 = arith.mulf %45, %47 : vector<128x128xf32>
    %49 = vector.extract_strided_slice %23 {offsets = [0, 128], sizes = [128, 128], strides = [1, 1]} : vector<128x768xf32> to vector<128x128xf32>
    %cst_14 = arith.constant 0.0883883461 : f32
    %50 = vector.broadcast %cst_14 : f32 to vector<128x128xf32>
    %51 = arith.mulf %49, %50 : vector<128x128xf32>
    %52 = arith.truncf %51 : vector<128x128xf32> to vector<128x128xbf16>
    %53 = vector.extract_strided_slice %23 {offsets = [0, 384], sizes = [128, 128], strides = [1, 1]} : vector<128x768xf32> to vector<128x128xf32>
    %54 = arith.truncf %53 : vector<128x128xf32> to vector<128x128xbf16>
    %55 = vector.extract_strided_slice %23 {offsets = [0, 640], sizes = [128, 128], strides = [1, 1]} : vector<128x768xf32> to vector<128x128xf32>
    %56 = arith.truncf %55 : vector<128x128xf32> to vector<128x128xbf16>
    %cst_15 = arith.constant dense<0.000000e+00> : vector<128x128xf32>
    %57 = tpu.matmul %52, %54, %cst_15 {dimension_numbers = #tpu.dot_dimension_numbers<[1], [1], [0], [0], [0, 0, 1, 0], [], []>} : vector<128x128xbf16>, vector<128x128xbf16>, vector<128x128xf32> -> vector<128x128xf32>
    %cst_16 = arith.constant -1.000000e+30 : f32
    %58 = vector.shape_cast %9 : vector<1x128xi1> to vector<1x128xi1>
    %59 = vector.broadcast %58 : vector<1x128xi1> to vector<128x128xi1>
    %60 = vector.broadcast %cst_16 : f32 to vector<128x128xf32>
    %61 = arith.select %59, %57, %60 : vector<128x128xi1>, vector<128x128xf32>
    %cst_17 = arith.constant dense<0xFF800000> : vector<128xf32>
    %62 = vector.multi_reduction <maximumf>, %61, %cst_17 [1] : vector<128x128xf32> to vector<128xf32>
    %63 = vector.shape_cast %62 : vector<128xf32> to vector<128x1xf32>
    %64 = vector.broadcast %63 : vector<128x1xf32> to vector<128x128xf32>
    %65 = arith.subf %61, %64 : vector<128x128xf32>
    %66 = math.exp %65 : vector<128x128xf32>
    %cst_18 = arith.constant dense<0.000000e+00> : vector<128xf32>
    %67 = vector.multi_reduction <add>, %66, %cst_18 [1] : vector<128x128xf32> to vector<128xf32>
    %68 = vector.shape_cast %67 : vector<128xf32> to vector<128x1xf32>
    %69 = arith.truncf %66 : vector<128x128xf32> to vector<128x128xbf16>
    %cst_19 = arith.constant dense<0.000000e+00> : vector<128x128xf32>
    %70 = tpu.matmul %69, %56, %cst_19 {dimension_numbers = #tpu.dot_dimension_numbers<[1], [0], [0], [1], [0, 0, 1, 1], [], []>} : vector<128x128xbf16>, vector<128x128xbf16>, vector<128x128xf32> -> vector<128x128xf32>
    %71 = tpu.reciprocal %68 {approx = true} : vector<128x1xf32> -> vector<128x1xf32>
    %72 = vector.broadcast %71 : vector<128x1xf32> to vector<128x128xf32>
    %73 = arith.mulf %70, %72 : vector<128x128xf32>
    %74 = tpu.concatenate %48, %73 in 1 : vector<128x128xf32>, vector<128x128xf32> -> vector<128x256xf32>
    %75 = arith.truncf %74 : vector<128x256xf32> to vector<128x256xbf16>
    %c0_20 = arith.constant 0 : index
    %c0_21 = arith.constant 0 : index
    %c0_22 = arith.constant 0 : index
    %76 = vector.load %arg7[%c0_20, %c0_21, %c0_22] : memref<1x256x256xbf16, #tpu.memory_space<vmem>>, vector<1x256x256xbf16>
    %77 = vector.shape_cast %76 : vector<1x256x256xbf16> to vector<256x256xbf16>
    %cst_23 = arith.constant dense<0.000000e+00> : vector<128x256xf32>
    %78 = tpu.matmul %75, %77, %cst_23 {dimension_numbers = #tpu.dot_dimension_numbers<[1], [0], [0], [1], [0, 0, 1, 1], [], []>} : vector<128x256xbf16>, vector<256x256xbf16>, vector<128x256xf32> -> vector<128x256xf32>
    %79 = arith.addf %15, %78 : vector<128x256xf32>
    %c0_24 = arith.constant 0 : index
    %c0_25 = arith.constant 0 : index
    %c0_26 = arith.constant 0 : index
    %80 = vector.load %arg8[%c0_24, %c0_25, %c0_26] : memref<1x1x256xf32, #tpu.memory_space<vmem>>, vector<1x1x256xf32>
    %81 = vector.shape_cast %80 : vector<1x1x256xf32> to vector<1x256xf32>
    %c0_27 = arith.constant 0 : index
    %c0_28 = arith.constant 0 : index
    %c0_29 = arith.constant 0 : index
    %82 = vector.load %arg9[%c0_27, %c0_28, %c0_29] : memref<1x1x256xf32, #tpu.memory_space<vmem>>, vector<1x1x256xf32>
    %83 = vector.shape_cast %82 : vector<1x1x256xf32> to vector<1x256xf32>
    %cst_30 = arith.constant dense<0.000000e+00> : vector<128xf32>
    %84 = vector.multi_reduction <add>, %79, %cst_30 [1] : vector<128x256xf32> to vector<128xf32>
    %85 = vector.shape_cast %84 : vector<128xf32> to vector<128x1xf32>
    %cst_31 = arith.constant 2.560000e+02 : f32
    %86 = vector.broadcast %cst_31 : f32 to vector<128x1xf32>
    %87 = arith.divf %85, %86 : vector<128x1xf32>
    %88 = vector.broadcast %87 : vector<128x1xf32> to vector<128x256xf32>
    %89 = arith.subf %79, %88 : vector<128x256xf32>
    %90 = arith.mulf %89, %89 : vector<128x256xf32>
    %cst_32 = arith.constant dense<0.000000e+00> : vector<128xf32>
    %91 = vector.multi_reduction <add>, %90, %cst_32 [1] : vector<128x256xf32> to vector<128xf32>
    %92 = vector.shape_cast %91 : vector<128xf32> to vector<128x1xf32>
    %cst_33 = arith.constant 2.560000e+02 : f32
    %93 = vector.broadcast %cst_33 : f32 to vector<128x1xf32>
    %94 = arith.divf %92, %93 : vector<128x1xf32>
    %cst_34 = arith.constant 9.99999974E-6 : f32
    %95 = vector.broadcast %cst_34 : f32 to vector<128x1xf32>
    %96 = arith.addf %94, %95 : vector<128x1xf32>
    %97 = math.rsqrt %96 : vector<128x1xf32>
    %98 = vector.broadcast %97 : vector<128x1xf32> to vector<128x256xf32>
    %99 = arith.mulf %89, %98 : vector<128x256xf32>
    %100 = vector.broadcast %81 : vector<1x256xf32> to vector<128x256xf32>
    %101 = arith.mulf %99, %100 : vector<128x256xf32>
    %102 = vector.broadcast %83 : vector<1x256xf32> to vector<128x256xf32>
    %103 = arith.addf %101, %102 : vector<128x256xf32>
    %104 = vector.broadcast %6 : vector<128x1xf32> to vector<128x256xf32>
    %105 = arith.mulf %103, %104 : vector<128x256xf32>
    %c1_i32 = arith.constant 1 : i32
    %106 = tpu.dynamic_rotate %105 by %c1_i32 dim 0 : vector<128x256xf32>, i32 -> vector<128x256xf32>
    %107 = tpu.iota {dimensions = array<i32: 0>} : vector<128x1xi32>
    %c1_i32_35 = arith.constant 1 : i32
    %108 = vector.broadcast %c1_i32_35 : i32 to vector<128x1xi32>
    %109 = arith.cmpi sge, %107, %108 : vector<128x1xi32>
    %cst_36 = arith.constant 0.000000e+00 : f32
    %110 = vector.shape_cast %109 : vector<128x1xi1> to vector<128x1xi1>
    %111 = vector.broadcast %110 : vector<128x1xi1> to vector<128x256xi1>
    %112 = vector.broadcast %cst_36 : f32 to vector<128x256xf32>
    %113 = arith.select %111, %106, %112 : vector<128x256xi1>, vector<128x256xf32>
    %c127_i32 = arith.constant 127 : i32
    %114 = tpu.dynamic_rotate %105 by %c127_i32 dim 0 : vector<128x256xf32>, i32 -> vector<128x256xf32>
    %115 = tpu.iota {dimensions = array<i32: 0>} : vector<128x1xi32>
    %c127_i32_37 = arith.constant 127 : i32
    %116 = vector.broadcast %c127_i32_37 : i32 to vector<128x1xi32>
    %117 = arith.cmpi slt, %115, %116 : vector<128x1xi32>
    %cst_38 = arith.constant 0.000000e+00 : f32
    %118 = vector.shape_cast %117 : vector<128x1xi1> to vector<128x1xi1>
    %119 = vector.broadcast %118 : vector<128x1xi1> to vector<128x256xi1>
    %120 = vector.broadcast %cst_38 : f32 to vector<128x256xf32>
    %121 = arith.select %119, %114, %120 : vector<128x256xi1>, vector<128x256xf32>
    %122 = tpu.concatenate %113, %105, %121 in 1 : vector<128x256xf32>, vector<128x256xf32>, vector<128x256xf32> -> vector<128x768xf32>
    %123 = arith.truncf %122 : vector<128x768xf32> to vector<128x768xbf16>
    %c0_39 = arith.constant 0 : index
    %c0_40 = arith.constant 0 : index
    %c0_41 = arith.constant 0 : index
    %124 = vector.load %arg10[%c0_39, %c0_40, %c0_41] : memref<1x768x512xbf16, #tpu.memory_space<vmem>>, vector<1x768x512xbf16>
    %125 = vector.shape_cast %124 : vector<1x768x512xbf16> to vector<768x512xbf16>
    %cst_42 = arith.constant dense<0.000000e+00> : vector<128x512xf32>
    %126 = tpu.matmul %123, %125, %cst_42 {dimension_numbers = #tpu.dot_dimension_numbers<[1], [0], [0], [1], [0, 0, 1, 1], [], []>} : vector<128x768xbf16>, vector<768x512xbf16>, vector<128x512xf32> -> vector<128x512xf32>
    %c0_43 = arith.constant 0 : index
    %c0_44 = arith.constant 0 : index
    %c0_45 = arith.constant 0 : index
    %127 = vector.load %arg11[%c0_43, %c0_44, %c0_45] : memref<1x1x512xf32, #tpu.memory_space<vmem>>, vector<1x1x512xf32>
    %128 = vector.shape_cast %127 : vector<1x1x512xf32> to vector<1x512xf32>
    %129 = vector.broadcast %128 : vector<1x512xf32> to vector<128x512xf32>
    %130 = arith.addf %126, %129 : vector<128x512xf32>
    %cst_46 = arith.constant 0.000000e+00 : f32
    %131 = vector.broadcast %cst_46 : f32 to vector<128x512xf32>
    %132 = arith.maximumf %130, %131 : vector<128x512xf32>
    %133 = arith.truncf %132 : vector<128x512xf32> to vector<128x512xbf16>
    %c0_47 = arith.constant 0 : index
    %c0_48 = arith.constant 0 : index
    %c0_49 = arith.constant 0 : index
    %134 = vector.load %arg12[%c0_47, %c0_48, %c0_49] : memref<1x512x768xbf16, #tpu.memory_space<vmem>>, vector<1x512x768xbf16>
    %135 = vector.shape_cast %134 : vector<1x512x768xbf16> to vector<512x768xbf16>
    %cst_50 = arith.constant dense<0.000000e+00> : vector<128x768xf32>
    %136 = tpu.matmul %133, %135, %cst_50 {dimension_numbers = #tpu.dot_dimension_numbers<[1], [0], [0], [1], [0, 0, 1, 1], [], []>} : vector<128x512xbf16>, vector<512x768xbf16>, vector<128x768xf32> -> vector<128x768xf32>
    %c0_51 = arith.constant 0 : index
    %c0_52 = arith.constant 0 : index
    %c0_53 = arith.constant 0 : index
    %137 = vector.load %arg13[%c0_51, %c0_52, %c0_53] : memref<1x1x256xf32, #tpu.memory_space<vmem>>, vector<1x1x256xf32>
    %138 = vector.shape_cast %137 : vector<1x1x256xf32> to vector<1x256xf32>
    %139 = vector.extract_strided_slice %136 {offsets = [0, 0], sizes = [128, 256], strides = [1, 1]} : vector<128x768xf32> to vector<128x256xf32>
    %c1_i32_54 = arith.constant 1 : i32
    %140 = tpu.dynamic_rotate %139 by %c1_i32_54 dim 0 : vector<128x256xf32>, i32 -> vector<128x256xf32>
    %141 = tpu.iota {dimensions = array<i32: 0>} : vector<128x1xi32>
    %c1_i32_55 = arith.constant 1 : i32
    %142 = vector.broadcast %c1_i32_55 : i32 to vector<128x1xi32>
    %143 = arith.cmpi sge, %141, %142 : vector<128x1xi32>
    %cst_56 = arith.constant 0.000000e+00 : f32
    %144 = vector.shape_cast %143 : vector<128x1xi1> to vector<128x1xi1>
    %145 = vector.broadcast %144 : vector<128x1xi1> to vector<128x256xi1>
    %146 = vector.broadcast %cst_56 : f32 to vector<128x256xf32>
    %147 = arith.select %145, %140, %146 : vector<128x256xi1>, vector<128x256xf32>
    %148 = vector.broadcast %138 : vector<1x256xf32> to vector<128x256xf32>
    %149 = arith.addf %148, %147 : vector<128x256xf32>
    %150 = vector.extract_strided_slice %136 {offsets = [0, 256], sizes = [128, 256], strides = [1, 1]} : vector<128x768xf32> to vector<128x256xf32>
    %151 = arith.addf %149, %150 : vector<128x256xf32>
    %152 = vector.extract_strided_slice %136 {offsets = [0, 512], sizes = [128, 256], strides = [1, 1]} : vector<128x768xf32> to vector<128x256xf32>
    %c127_i32_57 = arith.constant 127 : i32
    %153 = tpu.dynamic_rotate %152 by %c127_i32_57 dim 0 : vector<128x256xf32>, i32 -> vector<128x256xf32>
    %154 = tpu.iota {dimensions = array<i32: 0>} : vector<128x1xi32>
    %c127_i32_58 = arith.constant 127 : i32
    %155 = vector.broadcast %c127_i32_58 : i32 to vector<128x1xi32>
    %156 = arith.cmpi slt, %154, %155 : vector<128x1xi32>
    %cst_59 = arith.constant 0.000000e+00 : f32
    %157 = vector.shape_cast %156 : vector<128x1xi1> to vector<128x1xi1>
    %158 = vector.broadcast %157 : vector<128x1xi1> to vector<128x256xi1>
    %159 = vector.broadcast %cst_59 : f32 to vector<128x256xf32>
    %160 = arith.select %158, %153, %159 : vector<128x256xi1>, vector<128x256xf32>
    %161 = arith.addf %151, %160 : vector<128x256xf32>
    %162 = arith.addf %105, %161 : vector<128x256xf32>
    %c0_60 = arith.constant 0 : index
    %c0_61 = arith.constant 0 : index
    %c0_62 = arith.constant 0 : index
    %163 = vector.load %arg14[%c0_60, %c0_61, %c0_62] : memref<1x1x256xf32, #tpu.memory_space<vmem>>, vector<1x1x256xf32>
    %164 = vector.shape_cast %163 : vector<1x1x256xf32> to vector<1x256xf32>
    %c0_63 = arith.constant 0 : index
    %c0_64 = arith.constant 0 : index
    %c0_65 = arith.constant 0 : index
    %165 = vector.load %arg15[%c0_63, %c0_64, %c0_65] : memref<1x1x256xf32, #tpu.memory_space<vmem>>, vector<1x1x256xf32>
    %166 = vector.shape_cast %165 : vector<1x1x256xf32> to vector<1x256xf32>
    %cst_66 = arith.constant dense<0.000000e+00> : vector<128xf32>
    %167 = vector.multi_reduction <add>, %162, %cst_66 [1] : vector<128x256xf32> to vector<128xf32>
    %168 = vector.shape_cast %167 : vector<128xf32> to vector<128x1xf32>
    %cst_67 = arith.constant 2.560000e+02 : f32
    %169 = vector.broadcast %cst_67 : f32 to vector<128x1xf32>
    %170 = arith.divf %168, %169 : vector<128x1xf32>
    %171 = vector.broadcast %170 : vector<128x1xf32> to vector<128x256xf32>
    %172 = arith.subf %162, %171 : vector<128x256xf32>
    %173 = arith.mulf %172, %172 : vector<128x256xf32>
    %cst_68 = arith.constant dense<0.000000e+00> : vector<128xf32>
    %174 = vector.multi_reduction <add>, %173, %cst_68 [1] : vector<128x256xf32> to vector<128xf32>
    %175 = vector.shape_cast %174 : vector<128xf32> to vector<128x1xf32>
    %cst_69 = arith.constant 2.560000e+02 : f32
    %176 = vector.broadcast %cst_69 : f32 to vector<128x1xf32>
    %177 = arith.divf %175, %176 : vector<128x1xf32>
    %cst_70 = arith.constant 9.99999974E-6 : f32
    %178 = vector.broadcast %cst_70 : f32 to vector<128x1xf32>
    %179 = arith.addf %177, %178 : vector<128x1xf32>
    %180 = math.rsqrt %179 : vector<128x1xf32>
    %181 = vector.broadcast %180 : vector<128x1xf32> to vector<128x256xf32>
    %182 = arith.mulf %172, %181 : vector<128x256xf32>
    %183 = vector.broadcast %164 : vector<1x256xf32> to vector<128x256xf32>
    %184 = arith.mulf %182, %183 : vector<128x256xf32>
    %185 = vector.broadcast %166 : vector<1x256xf32> to vector<128x256xf32>
    %186 = arith.addf %184, %185 : vector<128x256xf32>
    %187 = vector.broadcast %6 : vector<128x1xf32> to vector<128x256xf32>
    %188 = arith.mulf %186, %187 : vector<128x256xf32>
    %189 = arith.index_cast %arg1 : i32 to index
    %c0_71 = arith.constant 0 : index
    %c0_72 = arith.constant 0 : index
    %190 = vector.load %arg17[%189, %c0_71, %c0_72] : memref<2x128x256xf32, #tpu.memory_space<vmem>>, vector<1x128x256xf32>
    %191 = vector.shape_cast %190 : vector<1x128x256xf32> to vector<128x256xf32>
    %192 = vector.shape_cast %188 : vector<128x256xf32> to vector<1x128x256xf32>
    tpu.vector_store %arg17[%189, %c0_71, %c0_72], %192 {strides = array<i32>} : memref<2x128x256xf32, #tpu.memory_space<vmem>>, vector<1x128x256xf32>,
    %c1_i32_73 = arith.constant 1 : i32
    %193 = arith.cmpi eq, %arg0, %c1_i32_73 : i32
    %194 = arith.extui %193 : i1 to i32
    %c0_i32_74 = arith.constant 0 : i32
    %195 = arith.cmpi ne, %194, %c0_i32_74 : i32
    scf.if %195 {
      %c0_75 = arith.constant 0 : index
      %c0_76 = arith.constant 0 : index
      %c0_77 = arith.constant 0 : index
      %196 = vector.load %arg16[%c0_75, %c0_76, %c0_77] : memref<1x128x256xf32, #tpu.memory_space<vmem>>, vector<1x128x256xf32>
      %197 = vector.shape_cast %196 : vector<1x128x256xf32> to vector<128x256xf32>
      %198 = vector.shape_cast %188 : vector<128x256xf32> to vector<1x128x256xf32>
      tpu.vector_store %arg16[%c0_75, %c0_76, %c0_77], %198 {strides = array<i32>} : memref<1x128x256xf32, #tpu.memory_space<vmem>>, vector<1x128x256xf32>,
    } else {
    }
    return
  }
  func.func @transform_0(%arg0: i32, %arg1: i32, %arg2: memref<2xi32, #tpu.memory_space<smem>>) -> (i32, i32, i32) {
    %c0_i32 = arith.constant 0 : i32
    %0 = arith.cmpi eq, %arg0, %c0_i32 : i32
    %c0_i32_0 = arith.constant 0 : i32
    %1 = arith.select %0, %arg1, %c0_i32_0 : i32
    %c0_i32_1 = arith.constant 0 : i32
    %c0_i32_2 = arith.constant 0 : i32
    %c0_i32_3 = arith.constant 0 : i32
    return %1, %c0_i32_1, %c0_i32_2 : i32, i32, i32
  }
  func.func @transform_1(%arg0: i32, %arg1: i32, %arg2: memref<2xi32, #tpu.memory_space<smem>>) -> (i32, i32, i32) {
    %c0_i32 = arith.constant 0 : i32
    %c0_i32_0 = arith.constant 0 : i32
    %c0_i32_1 = arith.constant 0 : i32
    %c0_i32_2 = arith.constant 0 : i32
    return %c0_i32, %c0_i32_0, %c0_i32_1 : i32, i32, i32
  }
  func.func @transform_2(%arg0: i32, %arg1: i32, %arg2: memref<2xi32, #tpu.memory_space<smem>>) -> (i32, i32, i32) {
    %c0_i32 = arith.constant 0 : i32
    %c0_i32_0 = arith.constant 0 : i32
    %c0_i32_1 = arith.constant 0 : i32
    return %arg0, %c0_i32, %c0_i32_0 : i32, i32, i32
  }
  func.func @transform_3(%arg0: i32, %arg1: i32, %arg2: memref<2xi32, #tpu.memory_space<smem>>) -> (i32, i32, i32) {
    %c0_i32 = arith.constant 0 : i32
    %c0_i32_0 = arith.constant 0 : i32
    %c0_i32_1 = arith.constant 0 : i32
    return %arg0, %c0_i32, %c0_i32_0 : i32, i32, i32
  }
  func.func @transform_4(%arg0: i32, %arg1: i32, %arg2: memref<2xi32, #tpu.memory_space<smem>>) -> (i32, i32, i32) {
    %c0_i32 = arith.constant 0 : i32
    %c0_i32_0 = arith.constant 0 : i32
    %c0_i32_1 = arith.constant 0 : i32
    return %arg0, %c0_i32, %c0_i32_0 : i32, i32, i32
  }
  func.func @transform_5(%arg0: i32, %arg1: i32, %arg2: memref<2xi32, #tpu.memory_space<smem>>) -> (i32, i32, i32) {
    %c0_i32 = arith.constant 0 : i32
    %c0_i32_0 = arith.constant 0 : i32
    %c0_i32_1 = arith.constant 0 : i32
    return %arg0, %c0_i32, %c0_i32_0 : i32, i32, i32
  }
  func.func @transform_6(%arg0: i32, %arg1: i32, %arg2: memref<2xi32, #tpu.memory_space<smem>>) -> (i32, i32, i32) {
    %c0_i32 = arith.constant 0 : i32
    %c0_i32_0 = arith.constant 0 : i32
    %c0_i32_1 = arith.constant 0 : i32
    return %arg0, %c0_i32, %c0_i32_0 : i32, i32, i32
  }
  func.func @transform_7(%arg0: i32, %arg1: i32, %arg2: memref<2xi32, #tpu.memory_space<smem>>) -> (i32, i32, i32) {
    %c0_i32 = arith.constant 0 : i32
    %c0_i32_0 = arith.constant 0 : i32
    %c0_i32_1 = arith.constant 0 : i32
    return %arg0, %c0_i32, %c0_i32_0 : i32, i32, i32
  }
  func.func @transform_8(%arg0: i32, %arg1: i32, %arg2: memref<2xi32, #tpu.memory_space<smem>>) -> (i32, i32, i32) {
    %c0_i32 = arith.constant 0 : i32
    %c0_i32_0 = arith.constant 0 : i32
    %c0_i32_1 = arith.constant 0 : i32
    return %arg0, %c0_i32, %c0_i32_0 : i32, i32, i32
  }
  func.func @transform_9(%arg0: i32, %arg1: i32, %arg2: memref<2xi32, #tpu.memory_space<smem>>) -> (i32, i32, i32) {
    %c0_i32 = arith.constant 0 : i32
    %c0_i32_0 = arith.constant 0 : i32
    %c0_i32_1 = arith.constant 0 : i32
    return %arg0, %c0_i32, %c0_i32_0 : i32, i32, i32
  }
  func.func @transform_10(%arg0: i32, %arg1: i32, %arg2: memref<2xi32, #tpu.memory_space<smem>>) -> (i32, i32, i32) {
    %c0_i32 = arith.constant 0 : i32
    %c0_i32_0 = arith.constant 0 : i32
    %c0_i32_1 = arith.constant 0 : i32
    return %arg0, %c0_i32, %c0_i32_0 : i32, i32, i32
  }
  func.func @transform_11(%arg0: i32, %arg1: i32, %arg2: memref<2xi32, #tpu.memory_space<smem>>) -> (i32, i32, i32) {
    %c0_i32 = arith.constant 0 : i32
    %c0_i32_0 = arith.constant 0 : i32
    %c0_i32_1 = arith.constant 0 : i32
    return %arg0, %c0_i32, %c0_i32_0 : i32, i32, i32
  }
  func.func @transform_12(%arg0: i32, %arg1: i32, %arg2: memref<2xi32, #tpu.memory_space<smem>>) -> (i32, i32, i32) {
    %c0_i32 = arith.constant 0 : i32
    %c0_i32_0 = arith.constant 0 : i32
    %c0_i32_1 = arith.constant 0 : i32
    return %arg0, %c0_i32, %c0_i32_0 : i32, i32, i32
  }
  func.func @transform_13(%arg0: i32, %arg1: i32, %arg2: memref<2xi32, #tpu.memory_space<smem>>) -> (i32, i32, i32) {
    %c1_i32 = arith.constant 1 : i32
    %0 = arith.cmpi eq, %arg0, %c1_i32 : i32
    %c0_i32 = arith.constant 0 : i32
    %1 = arith.select %0, %arg1, %c0_i32 : i32
    %c0_i32_0 = arith.constant 0 : i32
    %c0_i32_1 = arith.constant 0 : i32
    %c0_i32_2 = arith.constant 0 : i32
    return %1, %c0_i32_0, %c0_i32_1 : i32, i32, i32
  }
}

</mosaic_0001>

<bundles_post_ra>
// kernel: tpu_custom_call.1
= control target key start
LH: loop header
LB: loop body
LE: loop exit
PB: predicated region body
PF: predicated region fallthrough
CT: control target
= control target key end

     0   :  { %s15770_s0 = inlined_call_operand.hbm [shape: s32[2], index: 0, kind: input, shape index: {}]   ;;  %s15771_s1 = inlined_call_operand.hbm [shape: f32[2,128,256], index: 1, kind: input, shape index: {}]   ;;  %s15772_s2 = inlined_call_operand.hbm [shape: f32[1,128,256], index: 2, kind: input, shape index: {}]   ;;  %s15773_s3 = inlined_call_operand.hbm [shape: bf16[2,256,768], index: 3, kind: input, shape index: {}]   ;;  %s15774_s4 = inlined_call_operand.hbm [shape: f32[2,1,768], index: 4, kind: input, shape index: {}]   ;;  %s15775_s5 = inlined_call_operand.hbm [shape: bf16[2,256,256], index: 5, kind: input, shape index: {}]   ;;  %s15776_s6 = inlined_call_operand.hbm [shape: f32[2,1,256], index: 6, kind: input, shape index: {}]   ;;  %s15777_s7 = inlined_call_operand.hbm [shape: f32[2,1,256], index: 7, kind: input, shape index: {}]   ;;  %s15778_s8 = inlined_call_operand.hbm [shape: bf16[2,768,512], index: 8, kind: input, shape index: {}]   ;;  %s15779_s9 = inlined_call_operand.hbm [shape: f32[2,1,512], index: 9, kind: input, shape index: {}]   ;;  %s15780_s10 = inlined_call_operand.hbm [shape: bf16[2,512,768], index: 10, kind: input, shape index: {}]   ;;  %s15781_s11 = inlined_call_operand.hbm [shape: f32[2,1,256], index: 11, kind: input, shape index: {}]   ;;  %s15782_s12 = inlined_call_operand.hbm [shape: f32[2,1,256], index: 12, kind: input, shape index: {}]   ;;  %s15783_s13 = inlined_call_operand.hbm [shape: f32[2,1,256], index: 13, kind: input, shape index: {}]   ;;  %s15784_s14 = inlined_call_operand.hbm [shape: f32[2,128,256], index: 14, kind: output, shape index: {}]  }
   0x1   :  { %15908 = sst [smem:[#allocation87_spill]] %s15771_s1  ;;  %s11200_s15 = scalar_lea.hbm %s15770_s0, 16 }
   0x2   :  { %15909 = sst [smem:[#allocation88_spill]] %s15772_s2  ;;  %p11201_p0 = scmp.ne.s32.totalorder %s15770_s0, %s11200_s15 }
   0x3   :  { %15910 = sst [smem:[#allocation89_spill]] %s15773_s3  ;;  %p11204_p1 = scmp.lt.u32.totalorder %s11200_s15, %s15770_s0 }
   0x4   :  { %15911 = sst [smem:[#allocation90_spill]] %s15774_s4 }
   0x5   :  { %15912 = sst [smem:[#allocation91_spill]] %s15775_s5  ;;  %p11206_p2 = pnand %p11204_p1, %p11201_p0 }
   0x6   :  { %15913 = sst [smem:[#allocation92_spill]] %s15776_s6 }
   0x7   :  { %15914 = sst [smem:[#allocation93_spill]] %s15777_s7 }
   0x8   :  { %15915 = sst [smem:[#allocation94_spill]] %s15778_s8 }
   0x9   :  { %15916 = sst [smem:[#allocation95_spill]] %s15779_s9 }
   0xa   :  { %15917 = sst [smem:[#allocation96_spill]] %s15780_s10 }
   0xb   :  { %15918 = sst [smem:[#allocation97_spill]] %s15781_s11 }
   0xc   :  { %15919 = sst [smem:[#allocation98_spill]] %s15782_s12 }
   0xd   :  { %15920 = sst [smem:[#allocation99_spill]] %s15783_s13 }
   0xe   :  { %15921 = sst [smem:[#allocation100_spill]] %s15784_s14 }
   0xf   :  { %11209 = shalt.err (!%p11206_p2)  }
  0x10   :  { %s11756_s20 = smov [#allocation4]  }
  0x11   :  { %20 = dma.hbm_to_smem %s15770_s0, 16, %s11756_s20, [#allocation3] }
  0x12   :  { %11682 = dma.done.wait [#allocation3], 16 }
  0x13   :  { %11683 = vsyncadd [#allocation3], 4294967280 }
  0x14   :  { %22 = sfence }
  0x15   :  { %23 = vsyncpa [#allocation6], 0 }
  0x16   :  { %25 = vsyncpa [#allocation6 + $0x1], 0 }
  0x17   :  { %26 = vsyncpa [#allocation9], 0 }
  0x18   :  { %27 = vsyncpa [#allocation7], 0 }
  0x19   :  { %29 = vsyncpa [#allocation7 + $0x1], 0  ;;  %s11868_s23 = smov 0   ;;  %s11870_s24 = smov 0  }
  0x1a   :  { %s11872_s25 = smov 0   ;;  %s11874_s26 = smov 0  }
  0x1b   :  { %s11876_s27 = smov 0   ;;  %s11878_s28 = smov 0  }
  0x1c   :  { %s11880_s0 = smov 0   ;;  %s11882_s29 = smov 0  }
  0x1d   :  { %s11884_s30 = smov 0   ;;  %s11886_s15 = smov 0  }
  0x1e   :  { %s11888_s16 = smov 0   ;;  %s11890_s17 = smov 0  }
  0x1f   :  { %s11892_s18 = smov 0   ;;  %s11894_s19 = smov 0  }
  0x20 LB: > { %15922 = sst [smem:[#allocation27_spill]] %s11702_s23  ;;  %s44_s20 = sadd.s32 1, %s11746_s17  ;;  %s11754_s19 = sphi %s11894_s19, %s35_s19   ;;  %s11750_s18 = sphi %s11892_s18, %s16137_s18   ;;  %s11746_s17 = sphi %s11890_s17, %s16136_s17   ;;  %s11742_s16 = sphi %s11888_s16, %s16135_s16   ;;  %s11738_s15 = sphi %s11886_s15, %s16134_s15   ;;  %s11734_s30 = sphi %s11884_s30, %s16144_s30   ;;  %s11730_s29 = sphi %s11882_s29, %s16143_s29   ;;  %s11726_s0 = sphi %s11880_s0, %s16142_s0   ;;  %s11722_s28 = sphi %s11878_s28, %s16141_s28   ;;  %s11718_s27 = sphi %s11876_s27, %s16140_s27   ;;  %s11714_s26 = sphi %s11874_s26, %s16130_s26   ;;  %s11710_s25 = sphi %s11872_s25, %s16139_s25   ;;  %s11706_s24 = sphi %s11870_s24, %s16138_s24   ;;  %s11702_s23 = sphi %s11868_s23, %s16129_s23  }
  0x21   : > { %15923 = sst [smem:[#allocation28_spill]] %s11706_s24  ;;  %s47_s21 = sadd.s32 1, %s11750_s18 }
  0x22   : > { %15924 = sst [smem:[#allocation29_spill]] %s11714_s26  ;;  %p45_p3 = scmp.ge.s32.totalorder %s44_s20, 2 }
  0x23   : > { %15925 = sst [smem:[#allocation30_spill]] %s11718_s27  ;;  %p51_p4 = scmp.eq.s32.totalorder %s11750_s18, 0 }
  0x24   : > { %15926 = sst [smem:[#allocation31_spill]] %s11726_s0  ;;  %s58_s22 = sadd.s32 1, %s11734_s30 }
  0x25   : > { %15927 = sst [smem:[#allocation32_spill]] %s11730_s29  ;;  %p65_p5 = scmp.ne.s32.totalorder %s11734_s30, %s11730_s29 }
  0x26   : > { %15928 = sst [smem:[#allocation33_spill]] %s11738_s15  ;;  %s16146_s20 = smov (%p45_p3, %s44_s20), 0 }
  0x27   : > { %15929 = sst [smem:[#allocation34_spill]] %s11742_s16  ;;  %s16148_s21 = smov (!%p45_p3, %s47_s21), %s11750_s18 }
  0x28   : > { %15930 = sst [smem:[#allocation35_spill]] %s11746_s17  ;;  %p49_p6 = scmp.ge.s32.totalorder %s16148_s21, 2 }
  0x29   : > { %15931 = sst [smem:[#allocation36_spill]] %s11750_s18  ;;  %p66_p7 = scmp.eq.s32.totalorder %s11754_s19, 0 }
  0x2a   : > { %15932 = sst [smem:[#allocation37_spill]] %s16146_s20  ;;  %s105_s16 = sadd.s32 1, %s11722_s28 }
  0x2b   : > { %s11948_s14 = scalar_select %p51_p4, %s11746_s17, 0 }
  0x2c   : > { %p112_p8 = scmp.ne.s32.totalorder %s11722_s28, %s11718_s27  ;;  %s16150_s21 = smov (%p49_p6, %s16148_s21), 0 }
  0x2d   : > { %15933 = sst [smem:[#allocation38_spill]] %s16150_s21  ;;  %p11956_p9 = por %p66_p7, %p65_p5 }
  0x2e   : > { %p11960_p10 = por %p112_p8, %p66_p7  ;;  %p53_p11 = scmp.eq.s32.totalorder %s16150_s21, 0 }
  0x2f   : > { %s102_s13 = ssub.s32 %s11750_s18, %s16150_s21  ;;  %p388_p13 = scmp.eq.s32.totalorder %s11750_s18, 1 }
  0x30   : > { %p103_p12 = scmp.eq.s32.totalorder %s102_s13, 0  ;;  %p390_p0 = scmp.eq.s32.totalorder %s16150_s21, 1 }
  0x31   : > { %s54_s23 = scalar_select %p53_p11, %s16146_s20, 0 }
  0x32   : > { %s11970_s24 = scalar_select %p103_p12, %s11722_s28, %s105_s16  }
  0x33   : > { %s55_s27 = ssub.s32 %s11948_s14, %s54_s23  ;;  %s395_s26 = sadd.s32 1, %s11710_s25 }
  0x34   : > { %15936 = sst [smem:[#allocation39_spill]] %s11970_s24  ;;  %p56_p1 = scmp.eq.s32.totalorder %s55_s27, 0 }
  0x35   : > { %s389_s29 = scalar_select %p388_p13, %s11746_s17, 0 }
  0x36   : > { %s11977_s0 = scalar_select %p56_p1, %s11734_s30, %s58_s22  }
  0x37   : > { %s391_s12 = scalar_select %p390_p0, %s16146_s20, 0 }
  0x38   : > { %p10081_p3 = scmp.lt.s32.totalorder %s11754_s19, 4  ;;  %s445_s13 = sand.u32 1, %s11754_s19  }
  0x39   : > { %s392_s11 = ssub.s32 %s389_s29, %s391_s12  ;;  %s447_s10 = sand.u32 1, %s11734_s30  }
  0x3a   : > { %p393_p2 = scmp.eq.s32.totalorder %s392_s11, 0  ;;  %s8901_s16 = sshll.u32 %s447_s10, 8 }
  0x3b   : > { %s9503_s24 = sshll.u32 %s11948_s14, 12  ;;  %s15937_s1 = sld [smem:[#allocation87_spill]] }
  0x3c   : > { %s11984_s9 = scalar_select %p393_p2, %s11710_s25, %s395_s26  }
  0x3d   : > { %s449_s22 = scalar_lea.vmem [#allocation5], %s8901_s16  ;;  %p11996_p4 = pnand %p10081_p3, %p11956_p9 }
  0x3e   : > { %s458_s17 = sshll.u32 %s449_s22, 4  ;;  %p12002_p5 = pnand %p10081_p3, %p11960_p10  ;;  %s11992_s17 = int_to_ptr.vmem [resolvable:$true] %s458_s17 }
  0x3f   : > { %s12007_s12 = sand.u32 1, %s11722_s28   ;;  %p11212_p7 = pneg %p11996_p4 }
  0x40   : > { %s15939_s10 = scalar_select %p12002_p5, 1, 0 }
  0x41   : > { %s11990_s27 = scalar_lea.hbm %s15937_s1, %s9503_s24  ;;  %s9994_s14 = smul.u32 768, %s12007_s12 }
  0x42   : > { %s12010_s24 = scalar_lea.sflag [#allocation6], %s445_s13  ;;  %s11210_s26 = scalar_lea.hbm %s11990_s27, 4096 }
  0x43   : > { %p11211_p6 = scmp.ne.s32.totalorder %s11990_s27, %s11210_s26  ;;  %s11215_s15 = scalar_lea.hbm %s15937_s1, 8192 }
  0x44   : > { %p11216_p10 = scmp.lt.u32.totalorder %s11990_s27, %s15937_s1  ;;  %p11217_p11 = scmp.lt.u32.totalorder %s11215_s15, %s11210_s26 }
  0x45   : > { %p11213_p8 = pnand %p11212_p7, %p11211_p6  ;;  %p11219_p13 = scmp.lt.u32.totalorder %s11210_s26, %s11990_s27 }
  0x46   : > { %p11218_p12 = por %p11217_p11, %p11216_p10 }
  0x47   : > { %p11214_p9 = pneg %p11213_p8 }
  0x48   : > { %p11220_p0 = por %p11219_p13, %p11218_p12 }
  0x4a   : > { %p11221_p1 = pnand %p11220_p0, %p11214_p9 }
  0x4c   : > { %11224 = shalt.err (!%p11221_p1)
}
  0x4d   : > { %s11225_s13 = scalar_lea.vmem %s11992_s17, 4096  ;;  %s11757_s23 = smov [#allocation5]  }
  0x4e   : > { %p11226_p2 = scmp.ne.s32.totalorder %s11992_s17, %s11225_s13  ;;  %s11230_s22 = sshll.u32 %s11757_s23, 4  ;;  %s11231_s22 = int_to_ptr.vmem [resolvable:$false] %s11230_s22 }
  0x4f   : > { %s11232_s2 = scalar_lea.vmem %s11231_s22, 8192  ;;  %p11233_p8 = scmp.lt.s32.totalorder %s11992_s17, %s11231_s22 }
  0x50   : > { %p11228_p3 = pnand %p11226_p2, %p11212_p7  ;;  %p11234_p10 = scmp.lt.s32.totalorder %s11232_s2, %s11225_s13 }
  0x52   : > { %p11229_p6 = pneg %p11228_p3  ;;  %p11235_p11 = por %p11234_p10, %p11233_p8 }
  0x54   : > { %p11236_p12 = pnand %p11235_p11, %p11229_p6 }
  0x56   : > { %11239 = shalt.err (!%p11236_p12)
}
  0x57   : > { %s15798_s26 = smov 256   ;;  %s15800_s29 = smov 16  }
  0x58   : > { %10042 = dma.hbm_to_vmem [thread:$0]  (!%p11996_p4), %s11990_s27, 4096, %s11992_s17, %s12010_s24, %s15798_s26, %s15798_s26, %s15800_s29  }
  0x59   : > { %s9995_s15 = smul.u32 12288, %s11750_s18  ;;  %s472_s21 = scalar_lea.vmem [#allocation10], %s9994_s14 }
  0x5a   : > { %s479_s16 = sshll.u32 %s472_s21, 4  ;;  %s15940_s3 = sld [smem:[#allocation89_spill]]  ;;  %s12044_s16 = int_to_ptr.vmem [resolvable:$true] %s479_s16 }
  0x5b   : > { %p12055_p9 = pneg %p12002_p5 }
  0x60   : > { %s12049_s22 = scalar_lea.hbm %s15940_s3, %s9995_s15  ;;  %s11245_s2 = scalar_lea.hbm %s15940_s3, 24576 }
  0x61   : > { %s11240_s11 = scalar_lea.hbm %s12049_s22, 12288  ;;  %p11246_p0 = scmp.lt.u32.totalorder %s12049_s22, %s15940_s3 }
  0x62   : > { %p11241_p7 = scmp.ne.s32.totalorder %s12049_s22, %s11240_s11  ;;  %p11247_p1 = scmp.lt.u32.totalorder %s11245_s2, %s11240_s11 }
  0x63   : > { %p11249_p3 = scmp.lt.u32.totalorder %s11240_s11, %s12049_s22 }
  0x64   : > { %p11243_p4 = pnand %p12055_p9, %p11241_p7  ;;  %p11248_p2 = por %p11247_p1, %p11246_p0 }
  0x66   : > { %p11244_p13 = pneg %p11243_p4  ;;  %p11250_p6 = por %p11249_p3, %p11248_p2 }
  0x68   : > { %p11251_p8 = pnand %p11250_p6, %p11244_p13 }
  0x6a   : > { %11254 = shalt.err (!%p11251_p8)
}
  0x6b   : > { %s11255_s13 = scalar_lea.vmem %s12044_s16, 12288  ;;  %s11760_s23 = smov [#allocation10]  }
  0x6c   : > { %p11256_p10 = scmp.ne.s32.totalorder %s12044_s16, %s11255_s13  ;;  %s11260_s27 = sshll.u32 %s11760_s23, 4  ;;  %s11261_s27 = int_to_ptr.vmem [resolvable:$false] %s11260_s27 }
  0x6d   : > { %s11262_s14 = scalar_lea.vmem %s11261_s27, 24576  ;;  %p11263_p7 = scmp.lt.s32.totalorder %s12044_s16, %s11261_s27 }
  0x6e   : > { %p11258_p11 = pnand %p11256_p10, %p12055_p9  ;;  %p11264_p4 = scmp.lt.s32.totalorder %s11262_s14, %s11255_s13 }
  0x70   : > { %p11259_p12 = pneg %p11258_p11  ;;  %p11265_p0 = por %p11264_p4, %p11263_p7 }
  0x72   : > { %p11266_p1 = pnand %p11265_p0, %p11259_p12 }
  0x74   : > { %11269 = shalt.err (!%p11266_p1)
}
  0x75   : > { %s15803_s11 = smov 384   ;;  %s15804_s2 = smov 24  }
  0x76   : > { %10045 = dma.hbm_to_vmem [thread:$0]  (!%p12002_p5), %s12049_s22, 12288, %s12044_s16, %s12010_s24, %s15803_s11, %s15803_s11, %s15804_s2  }
  0x77   : > { %s9996_s15 = smul.u32 6, %s12007_s12  ;;  %s8906_s21 = sshll.u32 %s12007_s12, 8 }
  0x78   : > { %s9997_s13 = smul.u32 96, %s11750_s18  ;;  %s9504_s23 = sshll.u32 %s11750_s18, 12 }
  0x79   : > { %s15942_s4 = sld [smem:[#allocation90_spill]]  ;;  %s493_s29 = scalar_lea.vmem [#allocation11], %s9996_s15 }
  0x7a   : > { %s501_s1 = sshll.u32 %s493_s29, 4  ;;  %s15943_s5 = sld [smem:[#allocation91_spill]]  ;;  %s502_s1 = int_to_ptr.vmem [resolvable:$true] %s501_s1 }
  0x7f   : > { %s12089_s26 = scalar_lea.hbm %s15942_s4, %s9997_s13  ;;  %s11275_s14 = scalar_lea.hbm %s15942_s4, 192 }
  0x80   : > { %s12094_s16 = scalar_lea.hbm %s15943_s5, %s9504_s23  ;;  %s11270_s22 = scalar_lea.hbm %s12089_s26, 96 }
  0x81   : > { %p11271_p13 = scmp.ne.s32.totalorder %s12089_s26, %s11270_s22  ;;  %p11276_p6 = scmp.lt.u32.totalorder %s12089_s26, %s15942_s4 }
  0x82   : > { %p11277_p8 = scmp.lt.u32.totalorder %s11275_s14, %s11270_s22  ;;  %p11279_p11 = scmp.lt.u32.totalorder %s11270_s22, %s12089_s26 }
  0x83   : > { %p11273_p2 = pnand %p11271_p13, %p12055_p9 }
  0x84   : > { %p11278_p10 = por %p11277_p8, %p11276_p6 }
  0x85   : > { %p11274_p3 = pneg %p11273_p2 }
  0x86   : > { %p11280_p12 = por %p11279_p11, %p11278_p10 }
  0x88   : > { %p11281_p7 = pnand %p11280_p12, %p11274_p3 }
  0x8a   : > { %11284 = shalt.err (!%p11281_p7)
}
  0x8b   : > { %s11285_s3 = scalar_lea.vmem %s502_s1, 96  ;;  %s11763_s20 = smov [#allocation11]  }
  0x8c   : > { %p11286_p4 = scmp.ne.s32.totalorder %s502_s1, %s11285_s3  ;;  %s11290_s29 = sshll.u32 %s11763_s20, 4  ;;  %s11291_s29 = int_to_ptr.vmem [resolvable:$false] %s11290_s29 }
  0x8d   : > { %s11292_s15 = scalar_lea.vmem %s11291_s29, 192  ;;  %p11293_p13 = scmp.lt.s32.totalorder %s502_s1, %s11291_s29 }
  0x8e   : > { %p11288_p0 = pnand %p11286_p4, %p12055_p9  ;;  %p11294_p2 = scmp.lt.s32.totalorder %s11292_s15, %s11285_s3 }
  0x90   : > { %p11289_p1 = pneg %p11288_p0  ;;  %p11295_p5 = por %p11294_p2, %p11293_p13 }
  0x92   : > { %p11296_p6 = pnand %p11295_p5, %p11289_p1 }
  0x94   : > { %11299 = shalt.err (!%p11296_p6)
}
  0x95   : > { %p15944_p8 = scmp.ne.s32.totalorder %s15939_s10, 0  ;;  %s512_s11 = scalar_lea.vmem [#allocation12], %s8906_s21 }
  0x96   : > { %s519_s2 = sshll.u32 %s512_s11, 4  ;;  %s11300_s23 = scalar_lea.hbm %s12094_s16, 4096  ;;  %s12116_s2 = int_to_ptr.vmem [resolvable:$true] %s519_s2 }
  0x97   : > { %10048 = dma.hbm_to_vmem [thread:$0]  (!%p15944_p8), %s12089_s26, 96, %s502_s1, %s12010_s24  }
  0x98   : > { %p11301_p3 = scmp.ne.s32.totalorder %s12094_s16, %s11300_s23  ;;  %s11305_s13 = scalar_lea.hbm %s15943_s5, 8192 }
  0x99   : > { %p11306_p11 = scmp.lt.u32.totalorder %s12094_s16, %s15943_s5  ;;  %p11307_p12 = scmp.lt.u32.totalorder %s11305_s13, %s11300_s23 }
  0x9a   : > { %p11303_p5 = pnand %p11301_p3, %p12055_p9  ;;  %p11309_p4 = scmp.lt.u32.totalorder %s11300_s23, %s12094_s16 }
  0x9b   : > { %p11308_p7 = por %p11307_p12, %p11306_p11 }
  0x9c   : > { %p11304_p10 = pneg %p11303_p5 }
  0x9d   : > { %p11310_p0 = por %p11309_p4, %p11308_p7 }
  0x9f   : > { %p11311_p1 = pnand %p11310_p0, %p11304_p10 }
  0xa1   : > { %11314 = shalt.err (!%p11311_p1)
}
  0xa2   : > { %s11315_s1 = scalar_lea.vmem %s12116_s2, 4096  ;;  %s11764_s26 = smov [#allocation12]  }
  0xa3   : > { %p11316_p13 = scmp.ne.s32.totalorder %s12116_s2, %s11315_s1  ;;  %s11320_s21 = sshll.u32 %s11764_s26, 4  ;;  %s11321_s21 = int_to_ptr.vmem [resolvable:$false] %s11320_s21 }
  0xa4   : > { %s11322_s20 = scalar_lea.vmem %s11321_s21, 8192  ;;  %p11323_p3 = scmp.lt.s32.totalorder %s12116_s2, %s11321_s21 }
  0xa5   : > { %p11318_p2 = pnand %p11316_p13, %p12055_p9  ;;  %p11324_p5 = scmp.lt.s32.totalorder %s11322_s20, %s11315_s1 }
  0xa7   : > { %p11319_p6 = pneg %p11318_p2  ;;  %p11325_p11 = por %p11324_p5, %p11323_p3 }
  0xa9   : > { %p11326_p12 = pnand %p11325_p11, %p11319_p6 }
  0xab   : > { %11329 = shalt.err (!%p11326_p12)
}
  0xac   : > { %s11765_s29 = smov 128   ;;  %s11766_s15 = smov 8  }
  0xad   : > { %10051 = dma.hbm_to_vmem [thread:$0]  (!%p15944_p8), %s12094_s16, 4096, %s12116_s2, %s12010_s24, %s11765_s29, %s11765_s29, %s11766_s15  }
  0xae   : > { %s12141_s11 = sshll.u32 %s12007_s12, 1  ;;  %s12144_s23 = sshll.u32 %s11750_s18, 5 }
  0xaf   : > { %s15945_s6 = sld [smem:[#allocation92_spill]]  ;;  %s533_s14 = scalar_lea.vmem [#allocation13], %s12141_s11 }
  0xb0   : > { %s541_s3 = sshll.u32 %s533_s14, 4  ;;  %s15946_s7 = sld [smem:[#allocation93_spill]]  ;;  %s542_s3 = int_to_ptr.vmem [resolvable:$true] %s541_s3 }
  0xb5   : > { %s12150_s13 = scalar_lea.hbm %s15945_s6, %s12144_s23  ;;  %s11335_s29 = scalar_lea.hbm %s15945_s6, 64 }
  0xb6   : > { %s12157_s1 = scalar_lea.hbm %s15946_s7, %s12144_s23  ;;  %s11330_s26 = scalar_lea.hbm %s12150_s13, 32 }
  0xb7   : > { %p11331_p10 = scmp.ne.s32.totalorder %s12150_s13, %s11330_s26  ;;  %p11336_p0 = scmp.lt.u32.totalorder %s12150_s13, %s15945_s6 }
  0xb8   : > { %p11337_p1 = scmp.lt.u32.totalorder %s11335_s29, %s11330_s26  ;;  %p11339_p2 = scmp.lt.u32.totalorder %s11330_s26, %s12150_s13 }
  0xb9   : > { %p11333_p7 = pnand %p11331_p10, %p12055_p9 }
  0xba   : > { %p11338_p13 = por %p11337_p1, %p11336_p0 }
  0xbb   : > { %p11334_p4 = pneg %p11333_p7 }
  0xbc   : > { %p11340_p6 = por %p11339_p2, %p11338_p13 }
  0xbe   : > { %p11341_p3 = pnand %p11340_p6, %p11334_p4 }
  0xc0   : > { %11344 = shalt.err (!%p11341_p3)
}
  0xc1   : > { %s11345_s27 = scalar_lea.vmem %s542_s3, 32  ;;  %s11767_s14 = smov [#allocation13]  }
  0xc2   : > { %p11346_p5 = scmp.ne.s32.totalorder %s542_s3, %s11345_s27  ;;  %s11350_s16 = sshll.u32 %s11767_s14, 4  ;;  %s11351_s16 = int_to_ptr.vmem [resolvable:$false] %s11350_s16 }
  0xc3   : > { %s11352_s2 = scalar_lea.vmem %s11351_s16, 64  ;;  %p11353_p10 = scmp.lt.s32.totalorder %s542_s3, %s11351_s16 }
  0xc4   : > { %p11348_p11 = pnand %p11346_p5, %p12055_p9  ;;  %p11354_p7 = scmp.lt.s32.totalorder %s11352_s2, %s11345_s27 }
  0xc6   : > { %p11349_p12 = pneg %p11348_p11  ;;  %p11355_p8 = por %p11354_p7, %p11353_p10 }
  0xc8   : > { %p11356_p0 = pnand %p11355_p8, %p11349_p12 }
  0xca   : > { %11359 = shalt.err (!%p11356_p0)
}
  0xcb   : > { %p15947_p1 = scmp.ne.s32.totalorder %s15939_s10, 0  ;;  %s552_s26 = scalar_lea.vmem [#allocation14], %s12141_s11 }
  0xcc   : > { %s560_s21 = sshll.u32 %s552_s26, 4  ;;  %s15808_s20 = smul.u32 1536, %s12007_s12  ;;  %s561_s21 = int_to_ptr.vmem [resolvable:$true] %s560_s21 }
  0xcd   : > { %10054 = dma.hbm_to_vmem [thread:$0]  (!%p15947_p1), %s12150_s13, 32, %s542_s3, %s12010_s24  }
  0xce   : > { %s15809_s29 = smul.u32 24576, %s11750_s18  ;;  %s11360_s15 = scalar_lea.hbm %s12157_s1, 32 }
  0xcf   : > { %p11361_p8 = scmp.ne.s32.totalorder %s12157_s1, %s11360_s15  ;;  %s11365_s14 = scalar_lea.hbm %s15946_s7, 64 }
  0xd0   : > { %p11366_p2 = scmp.lt.u32.totalorder %s12157_s1, %s15946_s7  ;;  %p11367_p6 = scmp.lt.u32.totalorder %s11365_s14, %s11360_s15 }
  0xd1   : > { %p11363_p4 = pnand %p11361_p8, %p12055_p9  ;;  %p11369_p5 = scmp.lt.u32.totalorder %s11360_s15, %s12157_s1 }
  0xd2   : > { %p11368_p3 = por %p11367_p6, %p11366_p2 }
  0xd3   : > { %p11364_p13 = pneg %p11363_p4 }
  0xd4   : > { %p11370_p11 = por %p11369_p5, %p11368_p3 }
  0xd6   : > { %p11371_p12 = pnand %p11370_p11, %p11364_p13 }
  0xd8   : > { %11374 = shalt.err (!%p11371_p12)
}
  0xd9   : > { %s11375_s13 = scalar_lea.vmem %s561_s21, 32  ;;  %s11768_s3 = smov [#allocation14]  }
  0xda   : > { %p11376_p10 = scmp.ne.s32.totalorder %s561_s21, %s11375_s13  ;;  %s11380_s26 = sshll.u32 %s11768_s3, 4  ;;  %s11381_s26 = int_to_ptr.vmem [resolvable:$false] %s11380_s26 }
  0xdb   : > { %s11382_s22 = scalar_lea.vmem %s11381_s26, 64  ;;  %p11383_p8 = scmp.lt.s32.totalorder %s561_s21, %s11381_s26 }
  0xdc   : > { %p11378_p7 = pnand %p11376_p10, %p12055_p9  ;;  %p11384_p4 = scmp.lt.s32.totalorder %s11382_s22, %s11375_s13 }
  0xde   : > { %p11379_p0 = pneg %p11378_p7  ;;  %p11385_p1 = por %p11384_p4, %p11383_p8 }
  0xe0   : > { %p11386_p2 = pnand %p11385_p1, %p11379_p0 }
  0xe2   : > { %11389 = shalt.err (!%p11386_p2)
}
  0xe3   : > { %p15948_p6 = scmp.ne.s32.totalorder %s15939_s10, 0  ;;  %s15949_s8 = sld [smem:[#allocation94_spill]] }
  0xe4   : > { %s571_s16 = scalar_lea.vmem [#allocation15], %s15808_s20  ;;  %s8916_s13 = sshll.u32 %s12007_s12, 2 }
  0xe5   : > { %10057 = dma.hbm_to_vmem [thread:$0]  (!%p15948_p6), %s12157_s1, 32, %s561_s21, %s12010_s24  }
  0xe6   : > { %s578_s2 = sshll.u32 %s571_s16, 4  ;;  %s12208_s2 = int_to_ptr.vmem [resolvable:$true] %s578_s2 }
  0xe9   : > { %s12203_s14 = scalar_lea.hbm %s15949_s8, %s15809_s29  ;;  %s11395_s26 = scalar_lea.hbm %s15949_s8, 49152 }
  0xea   : > { %s11390_s3 = scalar_lea.hbm %s12203_s14, 24576  ;;  %p11396_p5 = scmp.lt.u32.totalorder %s12203_s14, %s15949_s8 }
  0xeb   : > { %p11391_p1 = scmp.ne.s32.totalorder %s12203_s14, %s11390_s3  ;;  %p11397_p11 = scmp.lt.u32.totalorder %s11395_s26, %s11390_s3 }
  0xec   : > { %p11399_p10 = scmp.lt.u32.totalorder %s11390_s3, %s12203_s14 }
  0xed   : > { %p11393_p13 = pnand %p11391_p1, %p12055_p9  ;;  %p11398_p12 = por %p11397_p11, %p11396_p5 }
  0xef   : > { %p11394_p3 = pneg %p11393_p13  ;;  %p11400_p7 = por %p11399_p10, %p11398_p12 }
  0xf1   : > { %p11401_p0 = pnand %p11400_p7, %p11394_p3 }
  0xf3   : > { %11404 = shalt.err (!%p11401_p0)
}
  0xf4   : > { %s11405_s27 = scalar_lea.vmem %s12208_s2, 24576  ;;  %s11769_s16 = smov [#allocation15]  }
  0xf5   : > { %p11406_p8 = scmp.ne.s32.totalorder %s12208_s2, %s11405_s27  ;;  %s11410_s1 = sshll.u32 %s11769_s16, 4  ;;  %s11411_s1 = int_to_ptr.vmem [resolvable:$false] %s11410_s1 }
  0xf6   : > { %s11412_s21 = scalar_lea.vmem %s11411_s1, 49152  ;;  %p11413_p1 = scmp.lt.s32.totalorder %s12208_s2, %s11411_s1 }
  0xf7   : > { %p11408_p4 = pnand %p11406_p8, %p12055_p9  ;;  %p11414_p13 = scmp.lt.s32.totalorder %s11412_s21, %s11405_s27 }
  0xf9   : > { %p11409_p2 = pneg %p11408_p4  ;;  %p11415_p5 = por %p11414_p13, %p11413_p1 }
  0xfb   : > { %p11416_p11 = pnand %p11415_p5, %p11409_p2 }
  0xfd   : > { %11419 = shalt.err (!%p11416_p11)
}
  0xfe   : > { %s15950_s3 = smov 16   ;;  %s15951_s26 = smov 256  }
  0xff   : > { %10060 = dma.hbm_to_vmem [thread:$0]  (!%p15948_p6), %s12203_s14, 24576, %s12208_s2, %s12010_s24, %s15951_s26, %s15951_s26, %s15950_s3  }
 0x100   : > { %s9507_s22 = sshll.u32 %s11750_s18, 6  ;;  %s592_s15 = scalar_lea.vmem [#allocation16], %s8916_s13 }
 0x101   : > { %s600_s16 = sshll.u32 %s592_s15, 4  ;;  %s15952_s21 = sld [smem:[#allocation95_spill]]  ;;  %s601_s16 = int_to_ptr.vmem [resolvable:$true] %s600_s16 }
 0x107   : > { %s598_s20 = scalar_lea.hbm %s15952_s21, %s9507_s22  ;;  %s11425_s6 = scalar_lea.hbm %s15952_s21, 128 }
 0x108   : > { %s11420_s29 = scalar_lea.hbm %s598_s20, 64  ;;  %p11426_p7 = scmp.lt.u32.totalorder %s598_s20, %s15952_s21 }
 0x109   : > { %p11421_p3 = scmp.ne.s32.totalorder %s598_s20, %s11420_s29  ;;  %p11427_p0 = scmp.lt.u32.totalorder %s11425_s6, %s11420_s29 }
 0x10a   : > { %p11429_p4 = scmp.lt.u32.totalorder %s11420_s29, %s598_s20 }
 0x10b   : > { %p11423_p12 = pnand %p11421_p3, %p12055_p9  ;;  %p11428_p8 = por %p11427_p0, %p11426_p7 }
 0x10d   : > { %p11424_p10 = pneg %p11423_p12  ;;  %p11430_p2 = por %p11429_p4, %p11428_p8 }
 0x10f   : > { %p11431_p1 = pnand %p11430_p2, %p11424_p10 }
 0x111   : > { %11434 = shalt.err (!%p11431_p1)
}
 0x112   : > { %s11435_s2 = scalar_lea.vmem %s601_s16, 64  ;;  %s11770_s13 = smov [#allocation16]  }
 0x113   : > { %p11436_p13 = scmp.ne.s32.totalorder %s601_s16, %s11435_s2  ;;  %s11440_s22 = sshll.u32 %s11770_s13, 4  ;;  %s11441_s22 = int_to_ptr.vmem [resolvable:$false] %s11440_s22 }
 0x114   : > { %s11442_s4 = scalar_lea.vmem %s11441_s22, 128  ;;  %p11443_p3 = scmp.lt.s32.totalorder %s601_s16, %s11441_s22 }
 0x115   : > { %p11438_p5 = pnand %p11436_p13, %p12055_p9  ;;  %p11444_p12 = scmp.lt.s32.totalorder %s11442_s4, %s11435_s2 }
 0x117   : > { %p11439_p11 = pneg %p11438_p5  ;;  %p11445_p6 = por %p11444_p12, %p11443_p3 }
 0x119   : > { %p11446_p0 = pnand %p11445_p6, %p11439_p11 }
 0x11b   : > { %11449 = shalt.err (!%p11446_p0)
}
 0x11c   : > { %p15953_p7 = scmp.ne.s32.totalorder %s15939_s10, 0  ;;  %s15954_s5 = smul.u32 24576, %s11750_s18 }
 0x11d   : > { %s15955_s29 = sld [smem:[#allocation96_spill]]  ;;  %s15957_s27 = smul.u32 1536, %s12007_s12 }
 0x11e   : > { %10063 = dma.hbm_to_vmem [thread:$0]  (!%p15953_p7), %s598_s20, 64, %s601_s16, %s12010_s24  }
 0x11f   : > { %s611_s14 = scalar_lea.vmem [#allocation17], %s15957_s27  ;;  %s15958_s4 = sld [smem:[#allocation97_spill]] }
 0x120   : > { %s618_s2 = sshll.u32 %s611_s14, 4  ;;  %s12263_s2 = int_to_ptr.vmem [resolvable:$true] %s618_s2 }
 0x123   : > { %s15956_s1 = smov %s15955_s29  ;;  %s12259_s15 = scalar_lea.hbm %s15955_s29, %s15954_s5 }
 0x124   : > { %s11450_s20 = scalar_lea.hbm %s12259_s15, 24576  ;;  %s11455_s5 = scalar_lea.hbm %s15956_s1, 49152 }
 0x125   : > { %s12269_s8 = scalar_lea.hbm %s15958_s4, %s12144_s23  ;;  %p11451_p6 = scmp.ne.s32.totalorder %s12259_s15, %s11450_s20 }
 0x126   : > { %p11456_p4 = scmp.lt.u32.totalorder %s12259_s15, %s15956_s1  ;;  %p11457_p2 = scmp.lt.u32.totalorder %s11455_s5, %s11450_s20 }
 0x127   : > { %p11453_p10 = pnand %p11451_p6, %p12055_p9  ;;  %p11459_p13 = scmp.lt.u32.totalorder %s11450_s20, %s12259_s15 }
 0x128   : > { %p11458_p1 = por %p11457_p2, %p11456_p4 }
 0x129   : > { %p11454_p8 = pneg %p11453_p10 }
 0x12a   : > { %p11460_p5 = por %p11459_p13, %p11458_p1 }
 0x12c   : > { %p11461_p11 = pnand %p11460_p5, %p11454_p8 }
 0x12e   : > { %11464 = shalt.err (!%p11461_p11)
}
 0x12f   : > { %s11465_s29 = scalar_lea.vmem %s12263_s2, 24576  ;;  %s11771_s27 = smov [#allocation17]  }
 0x130   : > { %p11466_p3 = scmp.ne.s32.totalorder %s12263_s2, %s11465_s29  ;;  %s11470_s14 = sshll.u32 %s11771_s27, 4  ;;  %s11471_s14 = int_to_ptr.vmem [resolvable:$false] %s11470_s14 }
 0x131   : > { %s11472_s13 = scalar_lea.vmem %s11471_s14, 49152  ;;  %p11473_p6 = scmp.lt.s32.totalorder %s12263_s2, %s11471_s14 }
 0x132   : > { %p11468_p12 = pnand %p11466_p3, %p12055_p9  ;;  %p11474_p10 = scmp.lt.s32.totalorder %s11472_s13, %s11465_s29 }
 0x134   : > { %p11469_p0 = pneg %p11468_p12  ;;  %p11475_p4 = por %p11474_p10, %p11473_p6 }
 0x136   : > { %p11476_p2 = pnand %p11475_p4, %p11469_p0 }
 0x138   : > { %11479 = shalt.err (!%p11476_p2)
}
 0x139   : > { %s15959_s22 = smov 24   ;;  %s15960_s20 = smov 384  }
 0x13a   : > { %10066 = dma.hbm_to_vmem [thread:$0]  (!%p15953_p7), %s12259_s15, 24576, %s12263_s2, %s12010_s24, %s15960_s20, %s15960_s20, %s15959_s22  }
 0x13b   : > { %s632_s16 = scalar_lea.vmem [#allocation18], %s12141_s11  ;;  %s15961_s7 = sld [smem:[#allocation98_spill]] }
 0x13c   : > { %s640_s12 = sshll.u32 %s632_s16, 4  ;;  %s11480_s27 = scalar_lea.hbm %s12269_s8, 32  ;;  %s641_s12 = int_to_ptr.vmem [resolvable:$true] %s640_s12 }
 0x13d   : > { %p11481_p8 = scmp.ne.s32.totalorder %s12269_s8, %s11480_s27  ;;  %s11485_s1 = scalar_lea.hbm %s15958_s4, 64 }
 0x13e   : > { %p11486_p5 = scmp.lt.u32.totalorder %s12269_s8, %s15958_s4  ;;  %p11487_p11 = scmp.lt.u32.totalorder %s11485_s1, %s11480_s27 }
 0x13f   : > { %p11483_p1 = pnand %p11481_p8, %p12055_p9  ;;  %p11489_p12 = scmp.lt.u32.totalorder %s11480_s27, %s12269_s8 }
 0x140   : > { %p11488_p3 = por %p11487_p11, %p11486_p5 }
 0x141   : > { %s12301_s29 = scalar_lea.hbm %s15961_s7, %s12144_s23  ;;  %p11484_p13 = pneg %p11483_p1 }
 0x142   : > { %p11490_p0 = por %p11489_p12, %p11488_p3 }
 0x144   : > { %p11491_p6 = pnand %p11490_p0, %p11484_p13 }
 0x146   : > { %11494 = shalt.err (!%p11491_p6)
}
 0x147   : > { %s11495_s15 = scalar_lea.vmem %s641_s12, 32  ;;  %s11772_s2 = smov [#allocation18]  }
 0x148   : > { %p11496_p10 = scmp.ne.s32.totalorder %s641_s12, %s11495_s15  ;;  %s11500_s22 = sshll.u32 %s11772_s2, 4  ;;  %s11501_s22 = int_to_ptr.vmem [resolvable:$false] %s11500_s22 }
 0x149   : > { %s11502_s20 = scalar_lea.vmem %s11501_s22, 64  ;;  %p11503_p8 = scmp.lt.s32.totalorder %s641_s12, %s11501_s22 }
 0x14a   : > { %p11498_p4 = pnand %p11496_p10, %p12055_p9  ;;  %p11504_p1 = scmp.lt.s32.totalorder %s11502_s20, %s11495_s15 }
 0x14c   : > { %p11499_p2 = pneg %p11498_p4  ;;  %p11505_p7 = por %p11504_p1, %p11503_p8 }
 0x14e   : > { %p11506_p5 = pnand %p11505_p7, %p11499_p2 }
 0x150   : > { %11509 = shalt.err (!%p11506_p5)
}
 0x151   : > { %p15962_p11 = scmp.ne.s32.totalorder %s15939_s10, 0  ;;  %s651_s18 = scalar_lea.vmem [#allocation19], %s12141_s11 }
 0x152   : > { %s659_s21 = sshll.u32 %s651_s18, 4  ;;  %s11510_s1 = scalar_lea.hbm %s12301_s29, 32  ;;  %s660_s21 = int_to_ptr.vmem [resolvable:$true] %s659_s21 }
 0x153   : > { %10069 = dma.hbm_to_vmem [thread:$0]  (!%p15962_p11), %s12269_s8, 32, %s641_s12, %s12010_s24  }
 0x154   : > { %p11511_p13 = scmp.ne.s32.totalorder %s12301_s29, %s11510_s1  ;;  %s11515_s6 = scalar_lea.hbm %s15961_s7, 64 }
 0x155   : > { %p11516_p12 = scmp.lt.u32.totalorder %s12301_s29, %s15961_s7  ;;  %p11517_p0 = scmp.lt.u32.totalorder %s11515_s6, %s11510_s1 }
 0x156   : > { %p11513_p3 = pnand %p11511_p13, %p12055_p9  ;;  %p11519_p10 = scmp.lt.u32.totalorder %s11510_s1, %s12301_s29 }
 0x157   : > { %p11518_p6 = por %p11517_p0, %p11516_p12 }
 0x158   : > { %p11514_p7 = pneg %p11513_p3 }
 0x159   : > { %p11520_p4 = por %p11519_p10, %p11518_p6 }
 0x15b   : > { %p11521_p2 = pnand %p11520_p4, %p11514_p7 }
 0x15d   : > { %11524 = shalt.err (!%p11521_p2)
}
 0x15e   : > { %s11525_s8 = scalar_lea.vmem %s660_s21, 32  ;;  %s11773_s12 = smov [#allocation19]  }
 0x15f   : > { %p11526_p8 = scmp.ne.s32.totalorder %s660_s21, %s11525_s8  ;;  %s11530_s13 = sshll.u32 %s11773_s12, 4  ;;  %s11531_s13 = int_to_ptr.vmem [resolvable:$false] %s11530_s13 }
 0x160   : > { %s11532_s15 = scalar_lea.vmem %s11531_s13, 64  ;;  %p11533_p13 = scmp.lt.s32.totalorder %s660_s21, %s11531_s13 }
 0x161   : > { %p11528_p1 = pnand %p11526_p8, %p12055_p9  ;;  %p11534_p3 = scmp.lt.s32.totalorder %s11532_s15, %s11525_s8 }
 0x163   : > { %p11529_p5 = pneg %p11528_p1  ;;  %p11535_p11 = por %p11534_p3, %p11533_p13 }
 0x165   : > { %p11536_p0 = pnand %p11535_p11, %p11529_p5 }
 0x167   : > { %11539 = shalt.err (!%p11536_p0)
}
 0x168   : > { %p15963_p12 = scmp.ne.s32.totalorder %s15939_s10, 0  ;;  %s15964_s2 = sld [smem:[#allocation31_spill]] }
 0x169   : > { %s15965_s22 = sld [smem:[#allocation32_spill]]  ;;  %s15966_s20 = sld [smem:[#allocation29_spill]] }
 0x16a   : > { %s15967_s18 = sld [smem:[#allocation30_spill]]  ;;  %s15968_s1 = sld [smem:[#allocation28_spill]] }
 0x16b   : > { %s15969_s16 = sld [smem:[#allocation27_spill]]  ;;  %s12341_s5 = sadd.s32 4294967295, %s11754_s19  }
 0x16c   : > { %10072 = dma.hbm_to_vmem [thread:$0]  (!%p15963_p12), %s12301_s29, 32, %s660_s21, %s12010_s24  }
 0x16d   : > { %s8897_s6 = sadd.s32 4294967294, %s11754_s19   ;;  %p15817_p7 = scmp.eq.s32.totalorder %s12341_s5, 0 }
 0x16e   : > { %p406_p2 = scmp.eq.s32.totalorder %s12341_s5, 3  ;;  %p412_p13 = scmp.eq.s32.totalorder %s8897_s6, 3 }
 0x16f   : > { %p71_p11 = scmp.ne.s32.totalorder %s15965_s22, %s15964_s2  ;;  %p8898_p3 = scmp.ge.s32.totalorder %s11754_s19, 1 }
 0x170   : > { %p118_p6 = scmp.ne.s32.totalorder %s15967_s18, %s15966_s20  ;;  %p405_p10 = scmp.ne.s32.totalorder %s11710_s25, %s15968_s1 }
 0x171   : > { %p12353_p4 = por %p15817_p7, %p71_p11  ;;  %p411_p1 = scmp.ne.s32.totalorder %s15968_s1, %s15969_s16 }
 0x172   : > { %p12360_p8 = por %p118_p6, %p15817_p7  ;;  %p12366_p5 = por %p406_p2, %p405_p10 }
 0x173   : > { %s15970_s27 = scalar_select %p12353_p4, 1, 0 }
 0x174   : > { %s15971_s29 = scalar_select %p12360_p8, 1, 0 }
 0x175   : > { %s15972_s21 = scalar_select %p12366_p5, 1, 0 }
 0x176   : > { %p419_p0 = scmp.lt.s32.totalorder %s11754_s19, 5  ;;  %p12372_p11 = por %p412_p13, %p411_p1 }
 0x177   : > { %s11774_s12 = smov [#allocation8]   ;;  %s15975_s22 = sld [smem:[#allocation99_spill]] }
 0x178   : > { %s15973_s14 = scalar_select %p12372_p11, 1, 0 }
 0x179   : > { %p12376_p4 = pnand %p8898_p3, %p419_p0  ;;  %s431_s13 = sshll.u32 %s11774_s12, 4  ;;  %s12382_s13 = int_to_ptr.vmem [resolvable:$true] %s431_s13 }
 0x17a   : > { %s670_s18 = scalar_lea.vmem [#allocation20], %s12141_s11 }
 0x17b   : > { %s15974_s8 = scalar_select %p12376_p4, 1, 0 }
 0x17c   : > { %p10035_p6 = pneg %p12376_p4  ;;  %s678_s1 = sshll.u32 %s670_s18, 4  ;;  %s679_s1 = int_to_ptr.vmem [resolvable:$true] %s678_s1 }
 0x17d   : > { %s12388_s20 = scalar_lea.hbm %s15975_s22, %s12144_s23  ;;  %s11545_s15 = scalar_lea.hbm %s15975_s22, 64 }
 0x17e   : > { %p12393_p10 = pnand %p10035_p6, %p15817_p7  ;;  %s11540_s6 = scalar_lea.hbm %s12388_s20, 32 }
 0x17f   : > { %p11541_p2 = scmp.ne.s32.totalorder %s12388_s20, %s11540_s6  ;;  %p11546_p3 = scmp.lt.u32.totalorder %s12388_s20, %s15975_s22 }
 0x180   : > { %s15976_s16 = scalar_select %p12393_p10, 1, 0 }
 0x181   : > { %p11543_p1 = pnand %p11541_p2, %p12055_p9  ;;  %p11547_p0 = scmp.lt.u32.totalorder %s11545_s15, %s11540_s6 }
 0x182   : > { %p11549_p6 = scmp.lt.u32.totalorder %s11540_s6, %s12388_s20 }
 0x183   : > { %p11544_p13 = pneg %p11543_p1  ;;  %p11548_p11 = por %p11547_p0, %p11546_p3 }
 0x185   : > { %p11550_p7 = por %p11549_p6, %p11548_p11 }
 0x187   : > { %p11551_p5 = pnand %p11550_p7, %p11544_p13 }
 0x189   : > { %11554 = shalt.err (!%p11551_p5)
}
 0x18a   : > { %s11555_s11 = scalar_lea.vmem %s679_s1, 32  ;;  %s11775_s18 = smov [#allocation20]  }
 0x18b   : > { %p11556_p8 = scmp.ne.s32.totalorder %s679_s1, %s11555_s11  ;;  %s11560_s7 = sshll.u32 %s11775_s18, 4  ;;  %s11561_s7 = int_to_ptr.vmem [resolvable:$false] %s11560_s7 }
 0x18c   : > { %s11562_s12 = scalar_lea.vmem %s11561_s7, 64  ;;  %p11563_p4 = scmp.lt.s32.totalorder %s679_s1, %s11561_s7 }
 0x18d   : > { %p11558_p2 = pnand %p11556_p8, %p12055_p9  ;;  %p11564_p10 = scmp.lt.s32.totalorder %s11562_s12, %s11555_s11 }
 0x18f   : > { %p11559_p1 = pneg %p11558_p2  ;;  %p11565_p12 = por %p11564_p10, %p11563_p4 }
 0x191   : > { %p11566_p0 = pnand %p11565_p12, %p11559_p1 }
 0x193   : > { %11569 = shalt.err (!%p11566_p0)
}
 0x194   : > { %p15977_p3 = scmp.ne.s32.totalorder %s15939_s10, 0  ;;  %s15978_s17 = sld [smem:[#allocation88_spill]] }
 0x195   : > { %p15980_p7 = scmp.ne.s32.totalorder %s15976_s16, 0 }
 0x196   : > { %10075 = dma.hbm_to_vmem [thread:$0]  (!%p15977_p3), %s12388_s20, 32, %s679_s1, %s12010_s24  }
 0x197   : > { %p11572_p8 = pneg %p15980_p7 }
 0x19a   : > { %s15979_s2 = smov %s15978_s17  ;;  %s11570_s23 = scalar_lea.hbm %s15978_s17, 4096 }
 0x19b   : > { %p11571_p9 = scmp.ne.s32.totalorder %s15979_s2, %s11570_s23  ;;  %p11577_p12 = scmp.lt.u32.totalorder %s11570_s23, %s15979_s2 }
 0x19d   : > { %p11573_p5 = pnand %p11572_p8, %p11571_p9 }
 0x19f   : > { %p11574_p4 = pneg %p11573_p5 }
 0x1a1   : > { %p11579_p11 = pnand %p11577_p12, %p11574_p4 }
 0x1a3   : > { %11582 = shalt.err (!%p11579_p11)
}
 0x1a4   : > { %s11583_s10 = scalar_lea.vmem %s12382_s13, 4096  ;;  %p11591_p2 = scmp.lt.s32.totalorder %s12382_s13, %s12382_s13 }
 0x1a5   : > { %p11584_p10 = scmp.ne.s32.totalorder %s12382_s13, %s11583_s10  ;;  %p11592_p1 = scmp.lt.s32.totalorder %s11583_s10, %s11583_s10 }
 0x1a7   : > { %p11586_p13 = pnand %p11584_p10, %p11572_p8  ;;  %p11593_p0 = por %p11592_p1, %p11591_p2 }
 0x1a9   : > { %p11587_p6 = pneg %p11586_p13 }
 0x1ab   : > { %p11594_p3 = pnand %p11593_p0, %p11587_p6 }
 0x1ad   : > { %11597 = shalt.err (!%p11594_p3)
}
 0x1ae   : > { %10038 = dma.hbm_to_vmem [thread:$0]  (!%p15980_p7), %s15979_s2, 4096, %s12382_s13, [#allocation9], %s15951_s26, %s15951_s26, %s15950_s3  }
 0x1af   : > { %p15981_p9 = scmp.ne.s32.totalorder %s15974_s8, 0 }
 0x1b1   : > { %687 = sbr.rel (%p15981_p9) target bundleno = 3238 (0xca6), region = 72 }
 0x1b8   : > { %s15982_s20 = sld [smem:[#allocation32_spill]]  ;;  %s689_s1 = sand.u32 1, %s12341_s5  }
 0x1b9   : > { %s690_s4 = scalar_lea.sflag [#allocation6], %s689_s1  ;;  %p15983_p8 = scmp.ne.s32.totalorder %s15970_s27, 0 }
 0x1be   : > { %s691_s18 = sand.u32 1, %s15982_s20  }
 0x1bf   : > { %s8930_s12 = sshll.u32 %s691_s18, 8 }
 0x1c0   : > { %s12443_s6 = scalar_lea.vmem [#allocation5], %s8930_s12 }
 0x1c1   : > { %11685 = dma.done.wait (%p15983_p8), %s690_s4, 4096  }
 0x1c2   : > { %11687 = vsyncadd (%p15983_p8), %s690_s4, 4294963200  ;;  %p15984_p5 = scmp.eq.s32.totalorder %s12341_s5, 0 }
 0x1c4   : > { %11689 = dma.done.wait (%p15984_p5), [#allocation9], 4096   ;;  %p15985_p7 = pmov %p15984_p5 }
 0x1c5   : > { %s15986_s3 = sld [smem:[#allocation30_spill]]  ;;  %p15987_p4 = scmp.ne.s32.totalorder %s15971_s29, 0 }
 0x1c6   : > { %11691 = vsyncadd (%p15985_p7), [#allocation9], 4294963200 }
 0x1cb   : > { %s12454_s26 = sand.u32 1, %s15986_s3  }
 0x1cc   : > { %s10002_s8 = smul.u32 768, %s12454_s26 }
 0x1ce   : > { %s12457_s13 = scalar_lea.vmem [#allocation10], %s10002_s8 }
 0x1cf   : > { %11693 = dma.done.wait (%p15987_p4), %s690_s4, 65856  }
 0x1d0   : > { %11695 = vsyncadd (%p15987_p4), %s690_s4, 4294901440  ;;  %s15988_s5 = sld [smem:[#allocation28_spill]]  ;;  %s15989_s27 = sld [smem:[#allocation33_spill]]  ;;  %v900_v0 = vlaneseq  ;;  %v11776_v19 = vmov 0.0  }
 0x1d1   : > { %s10003_s16 = smul.u32 6, %s12454_s26  ;;  %s8932_s17 = sshll.u32 %s12454_s26, 8 }
 0x1d2   : > { %s12466_s23 = sshll.u32 %s12454_s26, 1  ;;  %s10004_s15 = smul.u32 1536, %s12454_s26  ;;  %v12471_v1 = vshrl.u32 %v900_v0, 7  ;;  %v967_v2 = vand.u32 127, %v900_v0 }
 0x1d3   : > { %s8935_s7 = sshll.u32 %s12454_s26, 2  ;;  %s12553_s24 = scalar_lea.vmem [#allocation11], %s10003_s16 }
 0x1d4   : > { %v902_v3 = vadd.s32 8, %v12471_v1  ;;  %v903_v4 = vadd.s32 16, %v12471_v1  ;;  %v904_v5 = vadd.s32 24, %v12471_v1  ;;  %v905_v6 = vadd.s32 32, %v12471_v1  ;;  %s12557_s22 = scalar_lea.vmem [#allocation12], %s8932_s17  ;;  %s733_s20 = scalar_lea.vmem [#allocation13], %s12466_s23 }
 0x1d5   : > { %v906_v7 = vadd.s32 40, %v12471_v1  ;;  %v907_v8 = vadd.s32 48, %v12471_v1  ;;  %v908_v9 = vadd.s32 56, %v12471_v1  ;;  %v909_v10 = vadd.s32 64, %v12471_v1  ;;  %s742_s1 = scalar_lea.vmem [#allocation14], %s12466_s23  ;;  %s12563_s18 = scalar_lea.vmem [#allocation15], %s10004_s15 }
 0x1d6   : > { %s891_s11 = sand.u32 1, %s15988_s5   ;;  %s899_s10 = sld [smem:[#allocation4 + %s15989_s27]]  ;;  %v910_v11 = vadd.s32 72, %v12471_v1  ;;  %v911_v12 = vadd.s32 80, %v12471_v1  ;;  %v912_v13 = vadd.s32 88, %v12471_v1  ;;  %v913_v14 = vadd.s32 96, %v12471_v1 }
 0x1d7   : > { %s12475_s29 = sshll.u32 %s891_s11, 8  ;;  %v914_v15 = vadd.s32 104, %v12471_v1  ;;  %v915_v16 = vadd.s32 112, %v12471_v1  ;;  %v12493_v17 = vadd.s32 120, %v12471_v1  ;;  %s12567_s12 = scalar_lea.vmem [#allocation16], %s8935_s7 }
 0x1d8   : > { %s12571_s4 = scalar_lea.vmem [#allocation17], %s10004_s15  ;;  %s778_s3 = scalar_lea.vmem [#allocation18], %s12466_s23 }
 0x1d9   : > { %15990 = vst [vmem:[#allocation40_spill] sm:$0xff] %v12493_v17  ;;  %s787_s8 = scalar_lea.vmem [#allocation19], %s12466_s23  ;;  %s796_s5 = scalar_lea.vmem [#allocation20], %s12466_s23 }
 0x1da   : > { %s12577_s27 = scalar_lea.vmem [#allocation21], %s12475_s29  ;;  %s16009_s16 = sld [smem:[#allocation34_spill]] }
 0x1dc   : > { %v917_v18 = vstv %s899_s10 }
 0x1dd   : > { %vm918_vm0 = vcmp.lt.s32.totalorder %v12471_v1, %v917_v18  ;;  %vm919_vm1 = vcmp.lt.s32.totalorder %v902_v3, %v917_v18  ;;  %vm920_vm2 = vcmp.lt.s32.totalorder %v903_v4, %v917_v18  ;;  %vm921_vm3 = vcmp.lt.s32.totalorder %v904_v5, %v917_v18 }
 0x1de   : > { %vm922_vm4 = vcmp.lt.s32.totalorder %v905_v6, %v917_v18  ;;  %vm923_vm5 = vcmp.lt.s32.totalorder %v906_v7, %v917_v18  ;;  %vm924_vm6 = vcmp.lt.s32.totalorder %v907_v8, %v917_v18  ;;  %vm925_vm7 = vcmp.lt.s32.totalorder %v908_v9, %v917_v18 }
 0x1df   : > { %vm926_vm8 = vcmp.lt.s32.totalorder %v909_v10, %v917_v18  ;;  %vm927_vm9 = vcmp.lt.s32.totalorder %v910_v11, %v917_v18  ;;  %vm928_vm10 = vcmp.lt.s32.totalorder %v911_v12, %v917_v18  ;;  %vm929_vm11 = vcmp.lt.s32.totalorder %v912_v13, %v917_v18 }
 0x1e0   : > { %vm930_vm12 = vcmp.lt.s32.totalorder %v913_v14, %v917_v18  ;;  %vm931_vm13 = vcmp.lt.s32.totalorder %v914_v15, %v917_v18  ;;  %vm932_vm14 = vcmp.lt.s32.totalorder %v915_v16, %v917_v18  ;;  %vm933_vm15 = vcmp.lt.s32.totalorder %v12493_v17, %v917_v18  ;;  %p8956_p12 = scmp.ne.s32.totalorder %s16009_s16, 0 }
 0x1e1   : > { %v12499_v20 = vsel %vm918_vm0, 1.0, %v11776_v19  ;;  %v12502_v21 = vsel %vm919_vm1, 1.0, %v11776_v19  ;;  %v12505_v22 = vsel %vm920_vm2, 1.0, %v11776_v19  ;;  %v12508_v23 = vsel %vm921_vm3, 1.0, %v11776_v19  ;;  %s16010_s17 = sld [smem:[#allocation33_spill]] (!%p8956_p12)  ;;  %v973_v37 = vld [vmem:[%s12443_s6] sm:$0xff] (!%p8956_p12) }
 0x1e2   : > { %15991 = vst [vmem:[#allocation41_spill] sm:$0xff] %v12499_v20  ;;  %15992 = vst [vmem:[#allocation42_spill] sm:$0xff] %v12502_v21  ;;  %v12511_v24 = vsel %vm922_vm4, 1.0, %v11776_v19  ;;  %v12514_v25 = vsel %vm923_vm5, 1.0, %v11776_v19  ;;  %v12517_v26 = vsel %vm924_vm6, 1.0, %v11776_v19  ;;  %v12520_v27 = vsel %vm925_vm7, 1.0, %v11776_v19 }
 0x1e3   : > { %15993 = vst [vmem:[#allocation43_spill] sm:$0xff] %v12505_v22  ;;  %15994 = vst [vmem:[#allocation44_spill] sm:$0xff] %v12508_v23  ;;  %v12523_v28 = vsel %vm926_vm8, 1.0, %v11776_v19  ;;  %v12526_v29 = vsel %vm927_vm9, 1.0, %v11776_v19  ;;  %v12529_v30 = vsel %vm928_vm10, 1.0, %v11776_v19  ;;  %v12532_v31 = vsel %vm929_vm11, 1.0, %v11776_v19 }
 0x1e4   : > { %15995 = vst [vmem:[#allocation45_spill] sm:$0xff] %v12511_v24  ;;  %15996 = vst [vmem:[#allocation46_spill] sm:$0xff] %v12514_v25  ;;  %v12535_v32 = vsel %vm930_vm12, 1.0, %v11776_v19  ;;  %v12538_v33 = vsel %vm931_vm13, 1.0, %v11776_v19  ;;  %v12541_v34 = vsel %vm932_vm14, 1.0, %v11776_v19  ;;  %v12545_v35 = vsel %vm933_vm15, 1.0, %v11776_v19 }
 0x1e5   : > { %15997 = vst [vmem:[#allocation47_spill] sm:$0xff] %v12517_v26  ;;  %15998 = vst [vmem:[#allocation48_spill] sm:$0xff] %v12520_v27  ;;  %vm12547_vm0 = vcmp.lt.s32.totalorder %v967_v2, %v917_v18  ;;  %972 = sbr.rel (%p8956_p12) target bundleno = 515 (0x203), region = 128  ;;  %v1005_v38 = vld [vmem:[#allocation8] sm:$0xff] (!%p8956_p12)  ;;  %v974_v39 = vld [vmem:[%s12443_s6 + $0x8] sm:$0xff] (!%p8956_p12) }
 0x1e6   : > { %15999 = vst [vmem:[#allocation49_spill] sm:$0xff] %v12523_v28  ;;  %16000 = vst [vmem:[#allocation50_spill] sm:$0xff] %v12526_v29  ;;  %v1037_v40 = vmul.f32 (!%p8956_p12), %v12499_v20, %v1005_v38  ;;  %v1006_v41 = vld [vmem:[#allocation8 + $0x8] sm:$0xff] (!%p8956_p12)  ;;  %v975_v42 = vld [vmem:[%s12443_s6 + $0x10] sm:$0xff] (!%p8956_p12) }
 0x1e7   : > { %16001 = vst [vmem:[#allocation51_spill] sm:$0xff] %v12529_v30  ;;  %16002 = vst [vmem:[#allocation52_spill] sm:$0xff] %v12532_v31  ;;  %s9511_s26 = sshll.u32 (!%p8956_p12), %s16010_s17, 8  ;;  %v1007_v43 = vld [vmem:[#allocation8 + $0x10] sm:$0xff] (!%p8956_p12)  ;;  %v1038_v44 = vmul.f32 (!%p8956_p12), %v12499_v20, %v1006_v41  ;;  %v976_v46 = vld [vmem:[%s12443_s6 + $0x18] sm:$0xff] (!%p8956_p12) }
 0x1e8   : > { %16003 = vst [vmem:[#allocation53_spill] sm:$0xff] %v12535_v32  ;;  %16004 = vst [vmem:[#allocation54_spill] sm:$0xff] %v12538_v33  ;;  %v1039_v45 = vmul.f32 (!%p8956_p12), %v12502_v21, %v1007_v43  ;;  %v1008_v47 = vld [vmem:[#allocation8 + $0x18] sm:$0xff] (!%p8956_p12)  ;;  %v977_v48 = vld [vmem:[%s12443_s6 + $0x20] sm:$0xff] (!%p8956_p12)  ;;  %v1069_v49 = vadd.f32 (!%p8956_p12), %v1037_v40, %v973_v37  ;;  %s12595_s15 = scalar_lea.vmem (!%p8956_p12), [#allocation2], %s9511_s26 }
 0x1e9   : > { %16005 = vst [vmem:[#allocation55_spill] sm:$0xff] %v12541_v34  ;;  %16006 = vst [vmem:[#allocation56_spill] sm:$0xff] %v12545_v35  ;;  %v1040_v50 = vmul.f32 (!%p8956_p12), %v12502_v21, %v1008_v47  ;;  %v1009_v51 = vld [vmem:[#allocation8 + $0x20] sm:$0xff] (!%p8956_p12)  ;;  %v978_v52 = vld [vmem:[%s12443_s6 + $0x28] sm:$0xff] (!%p8956_p12)  ;;  %v1070_v54 = vadd.f32 (!%p8956_p12), %v1038_v44, %v974_v39 }
 0x1ea   : > { %v1010_v53 = vld [vmem:[#allocation8 + $0x28] sm:$0xff] (!%p8956_p12)  ;;  %v1071_v55 = vadd.f32 (!%p8956_p12), %v1039_v45, %v975_v42  ;;  %v1041_v56 = vmul.f32 (!%p8956_p12), %v12505_v22, %v1009_v51  ;;  %v979_v58 = vld [vmem:[%s12443_s6 + $0x30] sm:$0xff] (!%p8956_p12)  ;;  %v980_v60 = vld [vmem:[%s12443_s6 + $0x38] sm:$0xff] (!%p8956_p12)  ;;  %1104 = vst [vmem:[%s12595_s15] sm:$0xff] (!%p8956_p12), %v1069_v49 }
 0x1eb   : > { %v1042_v57 = vmul.f32 (!%p8956_p12), %v12505_v22, %v1010_v53  ;;  %v1011_v59 = vld [vmem:[#allocation8 + $0x30] sm:$0xff] (!%p8956_p12)  ;;  %v1072_v61 = vadd.f32 (!%p8956_p12), %v1040_v50, %v976_v46  ;;  %v1012_v63 = vld [vmem:[#allocation8 + $0x38] sm:$0xff] (!%p8956_p12)  ;;  %v981_v0 = vld [vmem:[%s12443_s6 + $0x40] sm:$0xff] (!%p8956_p12)  ;;  %1105 = vst [vmem:[%s12595_s15 + $0x8] sm:$0xff] (!%p8956_p12), %v1070_v54 }
 0x1ec   : > { %v1043_v62 = vmul.f32 %v12508_v23, %v1011_v59  ;;  %v1013_v2 = vld [vmem:[#allocation8 + $0x40] sm:$0xff]  ;;  %1106 = vst [vmem:[%s12595_s15 + $0x10] sm:$0xff] %v1071_v55  ;;  %v1073_v3 = vadd.f32 %v1041_v56, %v977_v48  ;;  %v1044_v5 = vmul.f32 %v12508_v23, %v1012_v63  ;;  %v982_v7 = vld [vmem:[%s12443_s6 + $0x48] sm:$0xff]  ;;  %v983_v9 = vld [vmem:[%s12443_s6 + $0x50] sm:$0xff] }
 0x1ed   : > { %v1074_v4 = vadd.f32 %v1042_v57, %v978_v52  ;;  %v1045_v6 = vmul.f32 %v12511_v24, %v1013_v2  ;;  %v1014_v8 = vld [vmem:[#allocation8 + $0x48] sm:$0xff]  ;;  %1107 = vst [vmem:[%s12595_s15 + $0x18] sm:$0xff] %v1072_v61  ;;  %v1015_v12 = vld [vmem:[#allocation8 + $0x50] sm:$0xff]  ;;  %v984_v13 = vld [vmem:[%s12443_s6 + $0x58] sm:$0xff] }
 0x1ee   : > { %v1075_v10 = vadd.f32 %v1043_v62, %v979_v58  ;;  %v1046_v11 = vmul.f32 %v12511_v24, %v1014_v8  ;;  %v1016_v14 = vld [vmem:[#allocation8 + $0x58] sm:$0xff]  ;;  %1108 = vst [vmem:[%s12595_s15 + $0x20] sm:$0xff] %v1073_v3  ;;  %v1076_v15 = vadd.f32 %v1044_v5, %v980_v60  ;;  %v1047_v18 = vmul.f32 %v12514_v25, %v1015_v12  ;;  %v985_v37 = vld [vmem:[%s12443_s6 + $0x60] sm:$0xff]  ;;  %v986_v39 = vld [vmem:[%s12443_s6 + $0x68] sm:$0xff] }
 0x1ef   : > { %1109 = vst [vmem:[%s12595_s15 + $0x28] sm:$0xff] %v1074_v4  ;;  %v1077_v16 = vadd.f32 %v1045_v6, %v981_v0  ;;  %v1048_v19 = vmul.f32 %v12514_v25, %v1016_v14  ;;  %v1017_v38 = vld [vmem:[#allocation8 + $0x60] sm:$0xff]  ;;  %v1018_v42 = vld [vmem:[#allocation8 + $0x68] sm:$0xff]  ;;  %v987_v43 = vld [vmem:[%s12443_s6 + $0x70] sm:$0xff] }
 0x1f0   : > { %1110 = vst [vmem:[%s12595_s15 + $0x30] sm:$0xff] %v1075_v10  ;;  %v1078_v40 = vadd.f32 %v1046_v11, %v982_v7  ;;  %v1049_v41 = vmul.f32 %v12517_v26, %v1017_v38  ;;  %v1019_v44 = vld [vmem:[#allocation8 + $0x70] sm:$0xff]  ;;  %1111 = vst [vmem:[%s12595_s15 + $0x38] sm:$0xff] %v1076_v15  ;;  %v1079_v45 = vadd.f32 %v1047_v18, %v983_v9  ;;  %v988_v49 = vld [vmem:[%s12443_s6 + $0x78] sm:$0xff] }
 0x1f1   : > { %1112 = vst [vmem:[%s12595_s15 + $0x40] sm:$0xff] %v1077_v16  ;;  %v1080_v46 = vadd.f32 %v1048_v19, %v984_v13  ;;  %v1050_v47 = vmul.f32 %v12517_v26, %v1018_v42  ;;  %v1051_v48 = vmul.f32 %v12520_v27, %v1019_v44  ;;  %v1020_v50 = vld [vmem:[#allocation8 + $0x78] sm:$0xff]  ;;  %v989_v51 = vld [vmem:[%s12443_s6 + $0x80] sm:$0xff]  ;;  %v990_v55 = vld [vmem:[%s12443_s6 + $0x88] sm:$0xff] }
 0x1f2   : > { %1113 = vst [vmem:[%s12595_s15 + $0x48] sm:$0xff] %v1078_v40  ;;  %v1081_v52 = vadd.f32 %v1049_v41, %v985_v37  ;;  %v1052_v53 = vmul.f32 %v12520_v27, %v1020_v50  ;;  %v1021_v54 = vld [vmem:[#allocation8 + $0x80] sm:$0xff]  ;;  %v1022_v56 = vld [vmem:[#allocation8 + $0x88] sm:$0xff]  ;;  %1114 = vst [vmem:[%s12595_s15 + $0x50] sm:$0xff] %v1079_v45 }
 0x1f3   : > { %1115 = vst [vmem:[%s12595_s15 + $0x58] sm:$0xff] %v1080_v46  ;;  %v1082_v57 = vadd.f32 %v1050_v47, %v986_v39  ;;  %v1083_v58 = vadd.f32 %v1051_v48, %v987_v43  ;;  %v1053_v59 = vmul.f32 %v12523_v28, %v1021_v54  ;;  %v1054_v60 = vmul.f32 %v12523_v28, %v1022_v56  ;;  %v991_v61 = vld [vmem:[%s12443_s6 + $0x90] sm:$0xff]  ;;  %v992_v63 = vld [vmem:[%s12443_s6 + $0x98] sm:$0xff]  ;;  %v993_v4 = vld [vmem:[%s12443_s6 + $0xa0] sm:$0xff] }
 0x1f4   : > { %v1023_v62 = vld [vmem:[#allocation8 + $0x90] sm:$0xff]  ;;  %1116 = vst [vmem:[%s12595_s15 + $0x60] sm:$0xff] %v1081_v52  ;;  %v1084_v0 = vadd.f32 %v1052_v53, %v988_v49  ;;  %v1024_v3 = vld [vmem:[#allocation8 + $0x98] sm:$0xff]  ;;  %v1025_v5 = vld [vmem:[#allocation8 + $0xa0] sm:$0xff] }
 0x1f5   : > { %v1055_v2 = vmul.f32 %v12526_v29, %v1023_v62  ;;  %1117 = vst [vmem:[%s12595_s15 + $0x68] sm:$0xff] %v1082_v57  ;;  %1118 = vst [vmem:[%s12595_s15 + $0x70] sm:$0xff] %v1083_v58  ;;  %v1085_v6 = vadd.f32 %v1053_v59, %v989_v51  ;;  %v1086_v7 = vadd.f32 %v1054_v60, %v990_v55  ;;  %v994_v10 = vld [vmem:[%s12443_s6 + $0xa8] sm:$0xff]  ;;  %v995_v12 = vld [vmem:[%s12443_s6 + $0xb0] sm:$0xff] }
 0x1f6   : > { %v1056_v8 = vmul.f32 %v12526_v29, %v1024_v3  ;;  %v1057_v9 = vmul.f32 %v12529_v30, %v1025_v5  ;;  %v1026_v11 = vld [vmem:[#allocation8 + $0xa8] sm:$0xff]  ;;  %1119 = vst [vmem:[%s12595_s15 + $0x78] sm:$0xff] %v1084_v0  ;;  %v1027_v15 = vld [vmem:[#allocation8 + $0xb0] sm:$0xff]  ;;  %v996_v16 = vld [vmem:[%s12443_s6 + $0xb8] sm:$0xff] }
 0x1f7   : > { %v1087_v13 = vadd.f32 %v1055_v2, %v991_v61  ;;  %v1058_v14 = vmul.f32 %v12529_v30, %v1026_v11  ;;  %v1028_v18 = vld [vmem:[#allocation8 + $0xb8] sm:$0xff]  ;;  %1120 = vst [vmem:[%s12595_s15 + $0x80] sm:$0xff] %v1085_v6  ;;  %1121 = vst [vmem:[%s12595_s15 + $0x88] sm:$0xff] %v1086_v7  ;;  %v1059_v38 = vmul.f32 %v12532_v31, %v1027_v15  ;;  %v997_v40 = vld [vmem:[%s12443_s6 + $0xc0] sm:$0xff] }
 0x1f8   : > { %v1088_v19 = vadd.f32 %v1056_v8, %v992_v63  ;;  %v1089_v37 = vadd.f32 %v1057_v9, %v993_v4  ;;  %v1060_v39 = vmul.f32 %v12532_v31, %v1028_v18  ;;  %v1029_v41 = vld [vmem:[#allocation8 + $0xc0] sm:$0xff]  ;;  %v998_v42 = vld [vmem:[%s12443_s6 + $0xc8] sm:$0xff]  ;;  %v999_v46 = vld [vmem:[%s12443_s6 + $0xd0] sm:$0xff] }
 0x1f9   : > { %1122 = vst [vmem:[%s12595_s15 + $0x90] sm:$0xff] %v1087_v13  ;;  %v1090_v43 = vadd.f32 %v1058_v14, %v994_v10  ;;  %v1061_v44 = vmul.f32 %v12535_v32, %v1029_v41  ;;  %v1030_v45 = vld [vmem:[#allocation8 + $0xc8] sm:$0xff]  ;;  %v1031_v47 = vld [vmem:[#allocation8 + $0xd0] sm:$0xff]  ;;  %v1091_v48 = vadd.f32 %v1059_v38, %v995_v12  ;;  %v1000_v52 = vld [vmem:[%s12443_s6 + $0xd8] sm:$0xff] }
 0x1fa   : > { %1123 = vst [vmem:[%s12595_s15 + $0x98] sm:$0xff] %v1088_v19  ;;  %1124 = vst [vmem:[%s12595_s15 + $0xa0] sm:$0xff] %v1089_v37  ;;  %v1092_v49 = vadd.f32 %v1060_v39, %v996_v16  ;;  %v1062_v50 = vmul.f32 %v12535_v32, %v1030_v45  ;;  %v1063_v51 = vmul.f32 %v12538_v33, %v1031_v47  ;;  %v1032_v53 = vld [vmem:[#allocation8 + $0xd8] sm:$0xff]  ;;  %v1001_v54 = vld [vmem:[%s12443_s6 + $0xe0] sm:$0xff] }
 0x1fb   : > { %1125 = vst [vmem:[%s12595_s15 + $0xa8] sm:$0xff] %v1090_v43  ;;  %v1093_v55 = vadd.f32 %v1061_v44, %v997_v40  ;;  %v1064_v56 = vmul.f32 %v12538_v33, %v1032_v53  ;;  %v1033_v57 = vld [vmem:[#allocation8 + $0xe0] sm:$0xff]  ;;  %v1002_v58 = vld [vmem:[%s12443_s6 + $0xe8] sm:$0xff]  ;;  %1126 = vst [vmem:[%s12595_s15 + $0xb0] sm:$0xff] %v1091_v48 }
 0x1fc   : > { %v1034_v59 = vld [vmem:[#allocation8 + $0xe8] sm:$0xff]  ;;  %1127 = vst [vmem:[%s12595_s15 + $0xb8] sm:$0xff] %v1092_v49  ;;  %v1094_v60 = vadd.f32 %v1062_v50, %v998_v42  ;;  %v1095_v61 = vadd.f32 %v1063_v51, %v999_v46  ;;  %v1065_v62 = vmul.f32 %v12541_v34, %v1033_v57  ;;  %v1003_v0 = vld [vmem:[%s12443_s6 + $0xf0] sm:$0xff]  ;;  %v1004_v5 = vld [vmem:[%s12443_s6 + $0xf8] sm:$0xff] }
 0x1fd   : > { %v1066_v63 = vmul.f32 %v12541_v34, %v1034_v59  ;;  %v1035_v2 = vld [vmem:[#allocation8 + $0xf0] sm:$0xff]  ;;  %1128 = vst [vmem:[%s12595_s15 + $0xc0] sm:$0xff] %v1093_v55  ;;  %v1096_v3 = vadd.f32 %v1064_v56, %v1000_v52  ;;  %v1036_v6 = vld [vmem:[#allocation8 + $0xf8] sm:$0xff] }
 0x1fe   : > { %v1067_v4 = vmul.f32 %v12545_v35, %v1035_v2  ;;  %1129 = vst [vmem:[%s12595_s15 + $0xc8] sm:$0xff] %v1094_v60  ;;  %1130 = vst [vmem:[%s12595_s15 + $0xd0] sm:$0xff] %v1095_v61  ;;  %v1097_v7 = vadd.f32 %v1065_v62, %v1001_v54  ;;  %v1068_v9 = vmul.f32 %v12545_v35, %v1036_v6 }
 0x1ff   : > { %v1098_v8 = vadd.f32 %v1066_v63, %v1002_v58  ;;  %1131 = vst [vmem:[%s12595_s15 + $0xd8] sm:$0xff] %v1096_v3 }
 0x200   : > { %v1099_v10 = vadd.f32 %v1067_v4, %v1003_v0  ;;  %1132 = vst [vmem:[%s12595_s15 + $0xe0] sm:$0xff] %v1097_v7  ;;  %v1100_v11 = vadd.f32 %v1068_v9, %v1004_v5 }
 0x201   : > { %1133 = vst [vmem:[%s12595_s15 + $0xe8] sm:$0xff] %v1098_v8 }
 0x202   : > { %1134 = vst [vmem:[%s12595_s15 + $0xf0] sm:$0xff] %v1099_v10  ;;  %1135 = vst [vmem:[%s12595_s15 + $0xf8] sm:$0xff] %v1100_v11 }
 0x203 PF: > { %v10208_v12 = vld [vmem:[%s12457_s13 + $0xc] ss:$24 sps:$4 sm:$0xff]   ;;  %v10210_v13 = vld [vmem:[%s12457_s13 + $0x8] ss:$24 sps:$4 sm:$0xff]   ;;  %v10211_v14 = vld [vmem:[%s12457_s13 + $0x3c] ss:$24 sps:$4 sm:$0xff]  }
 0x204   : > { %1908 = vmatprep.subr.bf16.mxu1 %v10208_v12  ;;  %v10213_v15 = vld [vmem:[%s12457_s13 + $0x38] ss:$24 sps:$4 sm:$0xff]   ;;  %v10214_v16 = vld [vmem:[%s12457_s13 + $0x6c] ss:$24 sps:$4 sm:$0xff]   ;;  %v10216_v18 = vld [vmem:[%s12457_s13 + $0x68] ss:$24 sps:$4 sm:$0xff]  }
 0x205   : > { %1909 = vmatpush1.bf16.msra.mxu1 %v10210_v13  ;;  %v10217_v19 = vld [vmem:[%s12457_s13 + $0x9c] ss:$24 sps:$4 sm:$0xff]   ;;  %v10219_v37 = vld [vmem:[%s12457_s13 + $0x98] ss:$24 sps:$4 sm:$0xff]   ;;  %v10220_v38 = vld [vmem:[%s12457_s13 + $0xcc] ss:$24 sps:$4 sm:$0xff]  }
 0x206   : > { %1910 = vmatprep.subr.bf16.mxu1 %v10211_v14  ;;  %s16011_s6 = sld [smem:[#allocation33_spill]]  ;;  %v10222_v39 = vld [vmem:[%s12457_s13 + $0xc8] ss:$24 sps:$4 sm:$0xff]   ;;  %v10223_v40 = vld [vmem:[%s12457_s13 + $0xfc] ss:$24 sps:$4 sm:$0xff]   ;;  %vm3702_vm1 = vcmp.lt.s32.totalorder %v12471_v1, 1 }
 0x207   : > { %v10244_v41 = vld [vmem:[%s12457_s13 + $0x4] ss:$24 sps:$4 sm:$0xff]   ;;  %v10246_v42 = vld [vmem:[%s12457_s13] ss:$24 sps:$4 sm:$0xff]   ;;  %v10250_v44 = vld [vmem:[%s12457_s13 + $0x34] ss:$24 sps:$4 sm:$0xff]  }
 0x208   : > { %v10225_v43 = vld [vmem:[%s12457_s13 + $0xf8] ss:$24 sps:$4 sm:$0xff]   ;;  %1795 = vmatprep.subr.bf16.mxu0 %v10244_v41  ;;  %v10226_v46 = vld [vmem:[%s12457_s13 + $0x12c] ss:$24 sps:$4 sm:$0xff]   ;;  %v10228_v47 = vld [vmem:[%s12457_s13 + $0x128] ss:$24 sps:$4 sm:$0xff]  }
 0x209   : > { %1911 = vmatpush1.bf16.msra.mxu1 %v10213_v15  ;;  %1796 = vmatpush1.bf16.msra.mxu0 %v10246_v42  ;;  %v10252_v45 = vld [vmem:[%s12457_s13 + $0x30] ss:$24 sps:$4 sm:$0xff]   ;;  %v10256_v48 = vld [vmem:[%s12457_s13 + $0x64] ss:$24 sps:$4 sm:$0xff]   ;;  %v10258_v50 = vld [vmem:[%s12457_s13 + $0x60] ss:$24 sps:$4 sm:$0xff]  }
 0x20a   : > { %1912 = vmatprep.subr.bf16.mxu1 %v10214_v16  ;;  %1797 = vmatprep.subr.bf16.mxu0 %v10250_v44  ;;  %v10229_v49 = vld [vmem:[%s12457_s13 + $0x15c] ss:$24 sps:$4 sm:$0xff]   ;;  %v10231_v52 = vld [vmem:[%s12457_s13 + $0x158] ss:$24 sps:$4 sm:$0xff]   ;;  %v10232_v55 = vld [vmem:[%s12457_s13 + $0x18c] ss:$24 sps:$4 sm:$0xff]  }
 0x20b   : > { %v10262_v51 = vld [vmem:[%s12457_s13 + $0x94] ss:$24 sps:$4 sm:$0xff]   ;;  %v10264_v53 = vld [vmem:[%s12457_s13 + $0x90] ss:$24 sps:$4 sm:$0xff]   ;;  %v10268_v56 = vld [vmem:[%s12457_s13 + $0xc4] ss:$24 sps:$4 sm:$0xff]  }
 0x20c   : > { %s9512_s7 = sshll.u32 %s16011_s6, 8  ;;  %v10234_v59 = vld [vmem:[%s12457_s13 + $0x188] ss:$24 sps:$4 sm:$0xff]   ;;  %v10235_v61 = vld [vmem:[%s12457_s13 + $0x1bc] ss:$24 sps:$4 sm:$0xff]   ;;  %vm3735_vm2 = vcmp.ge.s32.totalorder %v12471_v1, 1 }
 0x20d   : > { %1913 = vmatpush1.bf16.msra.mxu1 %v10216_v18  ;;  %1798 = vmatpush1.bf16.msra.mxu0 %v10252_v45  ;;  %s12704_s29 = scalar_lea.vmem [#allocation2], %s9512_s7  ;;  %v10270_v60 = vld [vmem:[%s12457_s13 + $0xc0] ss:$24 sps:$4 sm:$0xff]   ;;  %v10271_v62 = vld [vmem:[%s12457_s13 + $0xf4] ss:$24 sps:$4 sm:$0xff]   ;;  %vm11777_vm3 = vmmov 1  }
 0x20e   : > { %1914 = vmatprep.subr.bf16.mxu1 %v10217_v19  ;;  %1799 = vmatprep.subr.bf16.mxu0 %v10256_v48  ;;  %v1140_v54 = vld [vmem:[%s12704_s29 + $0x8] sm:$0xff]  ;;  %v1142_v57 = vld [vmem:[%s12704_s29 + $0x18] sm:$0xff]  ;;  %v1141_v44 = vld [vmem:[%s12704_s29 + $0x10] sm:$0xff]  ;;  %vm3847_vm5 = vcmp.lt.s32.totalorder %v12471_v1, 7 }
 0x20f   : > { %v12710_v58 = vpack.c.bf16 %v1142_v57, %v1140_v54  ;;  %v10237_v63 = vld [vmem:[%s12457_s13 + $0x1b8] ss:$24 sps:$4 sm:$0xff]   ;;  %v10238_v2 = vld [vmem:[%s12457_s13 + $0x1ec] ss:$24 sps:$4 sm:$0xff]   ;;  %v10240_v4 = vld [vmem:[%s12457_s13 + $0x1e8] ss:$24 sps:$4 sm:$0xff]  }
 0x210   : > { %v10273_v0 = vld [vmem:[%s12457_s13 + $0xf0] ss:$24 sps:$4 sm:$0xff]   ;;  %v10274_v3 = vld [vmem:[%s12457_s13 + $0x124] ss:$24 sps:$4 sm:$0xff]   ;;  %v10276_v5 = vld [vmem:[%s12457_s13 + $0x120] ss:$24 sps:$4 sm:$0xff]  }
 0x211   : > { %1915 = vmatpush1.bf16.msra.mxu1 %v10219_v37  ;;  %1800 = vmatpush1.bf16.msra.mxu0 %v10258_v50  ;;  %v10241_v6 = vld [vmem:[%s12457_s13 + $0x21c] ss:$24 sps:$4 sm:$0xff]   ;;  %v10243_v8 = vld [vmem:[%s12457_s13 + $0x218] ss:$24 sps:$4 sm:$0xff]   ;;  %v10247_v10 = vld [vmem:[%s12457_s13 + $0x24c] ss:$24 sps:$4 sm:$0xff]  }
 0x212   : > { %1916 = vmatprep.subr.bf16.mxu1 %v10220_v38  ;;  %1801 = vmatprep.subr.bf16.mxu0 %v10262_v51  ;;  %v10277_v7 = vld [vmem:[%s12457_s13 + $0x154] ss:$24 sps:$4 sm:$0xff]   ;;  %v10279_v9 = vld [vmem:[%s12457_s13 + $0x150] ss:$24 sps:$4 sm:$0xff]   ;;  %v10280_v11 = vld [vmem:[%s12457_s13 + $0x184] ss:$24 sps:$4 sm:$0xff]  }
 0x213   : > { %1940 = vmatprep.mubr.bf16.mxu1 %v12710_v58  ;;  %1827 = vmatprep.mubr.bf16.mxu0 %v12710_v58  ;;  %v10249_v12 = vld [vmem:[%s12457_s13 + $0x248] ss:$24 sps:$4 sm:$0xff]   ;;  %v10253_v14 = vld [vmem:[%s12457_s13 + $0x27c] ss:$24 sps:$4 sm:$0xff]   ;;  %v10255_v16 = vld [vmem:[%s12457_s13 + $0x278] ss:$24 sps:$4 sm:$0xff]  }
 0x214   : > { %v10282_v13 = vld [vmem:[%s12457_s13 + $0x180] ss:$24 sps:$4 sm:$0xff]   ;;  %v10283_v15 = vld [vmem:[%s12457_s13 + $0x1b4] ss:$24 sps:$4 sm:$0xff]   ;;  %v10285_v18 = vld [vmem:[%s12457_s13 + $0x1b0] ss:$24 sps:$4 sm:$0xff]  }
 0x215   : > { %1917 = vmatpush1.bf16.msra.mxu1 %v10222_v39  ;;  %1802 = vmatpush1.bf16.msra.mxu0 %v10264_v53  ;;  %v10259_v19 = vld [vmem:[%s12457_s13 + $0x2ac] ss:$24 sps:$4 sm:$0xff]   ;;  %v10261_v38 = vld [vmem:[%s12457_s13 + $0x2a8] ss:$24 sps:$4 sm:$0xff]   ;;  %v10265_v39 = vld [vmem:[%s12457_s13 + $0x2dc] ss:$24 sps:$4 sm:$0xff]  }
 0x216   : > { %1918 = vmatprep.subr.bf16.mxu1 %v10223_v40  ;;  %1803 = vmatprep.subr.bf16.mxu0 %v10268_v56  ;;  %v10286_v37 = vld [vmem:[%s12457_s13 + $0x1e4] ss:$24 sps:$4 sm:$0xff]   ;;  %v10288_v40 = vld [vmem:[%s12457_s13 + $0x1e0] ss:$24 sps:$4 sm:$0xff]   ;;  %v10289_v41 = vld [vmem:[%s12457_s13 + $0x214] ss:$24 sps:$4 sm:$0xff]  }
 0x217   : > { %v10267_v42 = vld [vmem:[%s12457_s13 + $0x2d8] ss:$24 sps:$4 sm:$0xff]   ;;  %v1144_v45 = vld [vmem:[%s12704_s29 + $0x28] sm:$0xff]  ;;  %v10292_v48 = vld [vmem:[%s12457_s13 + $0x244] ss:$24 sps:$4 sm:$0xff]  }
 0x218   : > { %v10294_v51 = vld [vmem:[%s12457_s13 + $0x240] ss:$24 sps:$4 sm:$0xff]   ;;  %v1145_v54 = vld [vmem:[%s12704_s29 + $0x30] sm:$0xff]  ;;  %vm13808_vm4 = vmpackc.low %vm11777_vm3, %vm3735_vm2 }
 0x219   : > { %1919 = vmatpush1.bf16.msra.mxu1 %v10225_v43  ;;  %1804 = vmatpush1.bf16.msra.mxu0 %v10270_v60  ;;  %v1139_v43 = vld [vmem:[%s12704_s29] sm:$0xff]  ;;  %v1150_v56 = vld [vmem:[%s12704_s29 + $0x58] sm:$0xff]  ;;  %v10297_v57 = vld [vmem:[%s12457_s13 + $0x270] ss:$24 sps:$4 sm:$0xff]  }
 0x21a   : > { %1920 = vmatprep.subr.bf16.mxu1 %v10226_v46  ;;  %1805 = vmatprep.subr.bf16.mxu0 %v10271_v62  ;;  %v1146_v46 = vld [vmem:[%s12704_s29 + $0x38] sm:$0xff]  ;;  %v1143_v53 = vld [vmem:[%s12704_s29 + $0x20] sm:$0xff] }
 0x21b   : > { %v12751_v50 = vpack.c.bf16 %v1146_v46, %v1144_v45  ;;  %v12763_v60 = vpack.c.bf16 %v1145_v54, %v1143_v53  ;;  %v10300_v62 = vld [vmem:[%s12457_s13 + $0x2a0] ss:$24 sps:$4 sm:$0xff]   ;;  %v10316_v46 = vld [vmem:[%s12457_s13 + $0xd0] ss:$24 sps:$4 sm:$0xff]  }
 0x21c   : > { %v1164_v53 = vld [vmem:[%s12704_s29 + $0xc8] sm:$0xff]  ;;  %v1166_v54 = vld [vmem:[%s12704_s29 + $0xd8] sm:$0xff] }
 0x21d   : > { %1921 = vmatpush1.bf16.msra.mxu1 %v10228_v47  ;;  %1806 = vmatpush1.bf16.msra.mxu0 %v10273_v0  ;;  %v10291_v47 = vld [vmem:[%s12457_s13 + $0x210] ss:$24 sps:$4 sm:$0xff]   ;;  %v1147_v0 = vld [vmem:[%s12704_s29 + $0x40] sm:$0xff] }
 0x21e   : > { %1922 = vmatprep.subr.bf16.mxu1 %v10229_v49  ;;  %1807 = vmatprep.subr.bf16.mxu0 %v10274_v3  ;;  %v12749_v49 = vpack.c.bf16 %v1141_v44, %v1139_v43  ;;  %v1152_v3 = vld [vmem:[%s12704_s29 + $0x68] sm:$0xff]  ;;  %v10313_v43 = vld [vmem:[%s12457_s13 + $0xa0] ss:$24 sps:$4 sm:$0xff]  }
 0x21f   : > { %v10318_v44 = vld [vmem:[%s12457_s13 + $0xd4] ss:$24 sps:$4 sm:$0xff]  }
 0x221   : > { %1923 = vmatpush1.bf16.msra.mxu1 %v10231_v52  ;;  %1808 = vmatpush1.bf16.msra.mxu0 %v10276_v5  ;;  %v10295_v52 = vld [vmem:[%s12457_s13 + $0x274] ss:$24 sps:$4 sm:$0xff]   ;;  %v10303_v5 = vld [vmem:[%s12457_s13 + $0x2d0] ss:$24 sps:$4 sm:$0xff]  }
 0x222   : > { %1924 = vmatprep.subr.bf16.mxu1 %v10232_v55  ;;  %1809 = vmatprep.subr.bf16.mxu0 %v10277_v7  ;;  %v1148_v55 = vld [vmem:[%s12704_s29 + $0x48] sm:$0xff] }
 0x225   : > { %1925 = vmatpush1.bf16.msra.mxu1 %v10234_v59  ;;  %1810 = vmatpush1.bf16.msra.mxu0 %v10279_v9  ;;  %v10298_v59 = vld [vmem:[%s12457_s13 + $0x2a4] ss:$24 sps:$4 sm:$0xff]  }
 0x226   : > { %1926 = vmatprep.subr.bf16.mxu1 %v10235_v61  ;;  %1811 = vmatprep.subr.bf16.mxu0 %v10280_v11  ;;  %v12765_v61 = vpack.c.bf16 %v1150_v56, %v1148_v55  ;;  %v1151_v11 = vld [vmem:[%s12704_s29 + $0x60] sm:$0xff]  ;;  %v10324_v56 = vld [vmem:[%s12457_s13 + $0x134] ss:$24 sps:$4 sm:$0xff]  }
 0x227   : > { %v10319_v55 = vld [vmem:[%s12457_s13 + $0x100] ss:$24 sps:$4 sm:$0xff]  }
 0x229   : > { %1927 = vmatpush1.bf16.msra.mxu1 %v10237_v63  ;;  %1812 = vmatpush1.bf16.msra.mxu0 %v10282_v13  ;;  %v10301_v63 = vld [vmem:[%s12457_s13 + $0x2d4] ss:$24 sps:$4 sm:$0xff]  }
 0x22a   : > { %1928 = vmatprep.subr.bf16.mxu1 %v10238_v2  ;;  %1813 = vmatprep.subr.bf16.mxu0 %v10283_v15  ;;  %v1149_v2 = vld [vmem:[%s12704_s29 + $0x50] sm:$0xff]  ;;  %v1156_v13 = vld [vmem:[%s12704_s29 + $0x88] sm:$0xff]  ;;  %v10307_v15 = vld [vmem:[%s12457_s13 + $0x40] ss:$24 sps:$4 sm:$0xff]  }
 0x22b   : > { %v12777_v7 = vpack.c.bf16 %v1149_v2, %v1147_v0  ;;  %v1163_v0 = vld [vmem:[%s12704_s29 + $0xc0] sm:$0xff]  ;;  %v1165_v2 = vld [vmem:[%s12704_s29 + $0xd0] sm:$0xff] }
 0x22d   : > { %1929 = vmatpush1.bf16.msra.mxu1 %v10240_v4  ;;  %1814 = vmatpush1.bf16.msra.mxu0 %v10285_v18  ;;  %v1154_v4 = vld [vmem:[%s12704_s29 + $0x78] sm:$0xff] }
 0x22e   : > { %1930 = vmatprep.subr.bf16.mxu1 %v10241_v6  ;;  %1815 = vmatprep.subr.bf16.mxu0 %v10286_v37  ;;  %v10306_v6 = vld [vmem:[%s12457_s13 + $0x14] ss:$24 sps:$4 sm:$0xff]   ;;  %v12780_v9 = vpack.c.bf16 %v1154_v4, %v1152_v3  ;;  %v1170_v4 = vld [vmem:[%s12704_s29 + $0xf8] sm:$0xff] }
 0x22f   : > { %v1168_v3 = vld [vmem:[%s12704_s29 + $0xe8] sm:$0xff] }
 0x231   : > { %1931 = vmatpush1.bf16.msra.mxu1 %v10243_v8  ;;  %1816 = vmatpush1.bf16.msra.mxu0 %v10288_v40  ;;  %v10304_v8 = vld [vmem:[%s12457_s13 + $0x10] ss:$24 sps:$4 sm:$0xff]  }
 0x232   : > { %1932 = vmatprep.subr.bf16.mxu1 %v10247_v10  ;;  %1817 = vmatprep.subr.bf16.mxu0 %v10289_v41  ;;  %v10309_v10 = vld [vmem:[%s12457_s13 + $0x44] ss:$24 sps:$4 sm:$0xff]   ;;  %v1157_v40 = vld [vmem:[%s12704_s29 + $0x90] sm:$0xff]  ;;  %v1160_v41 = vld [vmem:[%s12704_s29 + $0xa8] sm:$0xff] }
 0x235   : > { %1933 = vmatpush1.bf16.msra.mxu1 %v10249_v12  ;;  %1818 = vmatpush1.bf16.msra.mxu0 %v10291_v47  ;;  %v1153_v12 = vld [vmem:[%s12704_s29 + $0x70] sm:$0xff] }
 0x236   : > { %1934 = vmatprep.subr.bf16.mxu1 %v10253_v14  ;;  %1819 = vmatprep.subr.bf16.mxu0 %v10292_v48  ;;  %v1158_v14 = vld [vmem:[%s12704_s29 + $0x98] sm:$0xff]  ;;  %v12793_v18 = vpack.c.bf16 %v1153_v12, %v1151_v11  ;;  %v1186_v11 = vpack.c.bf16 %v1170_v4, %v1168_v3 }
 0x237   : > { %v12796_v37 = vpack.c.bf16 %v1158_v14, %v1156_v13  ;;  %v10321_v48 = vld [vmem:[%s12457_s13 + $0x104] ss:$24 sps:$4 sm:$0xff]   ;;  %v1169_v14 = vld [vmem:[%s12704_s29 + $0xf0] sm:$0xff] }
 0x238   : > { %v10333_v12 = vld [vmem:[%s12457_s13 + $0x1c4] ss:$24 sps:$4 sm:$0xff]  }
 0x239   : > { %1935 = vmatpush1.bf16.msra.mxu1 %v10255_v16  ;;  %1820 = vmatpush1.bf16.msra.mxu0 %v10294_v51  ;;  %v10312_v16 = vld [vmem:[%s12457_s13 + $0x74] ss:$24 sps:$4 sm:$0xff]   ;;  %v1159_v51 = vld [vmem:[%s12704_s29 + $0xa0] sm:$0xff] }
 0x23a   : > { %1936 = vmatprep.subr.bf16.mxu1 %v10259_v19  ;;  %1821 = vmatprep.subr.bf16.mxu0 %v10295_v52  ;;  %v10310_v19 = vld [vmem:[%s12457_s13 + $0x70] ss:$24 sps:$4 sm:$0xff]   ;;  %v1167_v13 = vld [vmem:[%s12704_s29 + $0xe0] sm:$0xff] }
 0x23b   : > { %v1161_v52 = vld [vmem:[%s12704_s29 + $0xb0] sm:$0xff] }
 0x23d   : > { %1937 = vmatpush1.bf16.msra.mxu1 %v10261_v38  ;;  %1822 = vmatpush1.bf16.msra.mxu0 %v10297_v57  ;;  %v10315_v38 = vld [vmem:[%s12457_s13 + $0xa4] ss:$24 sps:$4 sm:$0xff]   ;;  %v12825_v57 = vpack.c.bf16 %v1161_v52, %v1159_v51  ;;  %v10349_v52 = vld [vmem:[%s12457_s13 + $0x2e0] ss:$24 sps:$4 sm:$0xff]  }
 0x23e   : > { %1938 = vmatprep.subr.bf16.mxu1 %v10265_v39  ;;  %1823 = vmatprep.subr.bf16.mxu0 %v10298_v59  ;;  %v1155_v39 = vld [vmem:[%s12704_s29 + $0x80] sm:$0xff]  ;;  %v10322_v59 = vld [vmem:[%s12457_s13 + $0x130] ss:$24 sps:$4 sm:$0xff]  }
 0x23f   : > { %v12809_v45 = vpack.c.bf16 %v1157_v40, %v1155_v39  ;;  %v10339_v39 = vld [vmem:[%s12457_s13 + $0x224] ss:$24 sps:$4 sm:$0xff]   ;;  %v10337_v40 = vld [vmem:[%s12457_s13 + $0x220] ss:$24 sps:$4 sm:$0xff]  }
 0x240   : > { %v10351_v51 = vld [vmem:[%s12457_s13 + $0x2e4] ss:$24 sps:$4 sm:$0xff]  }
 0x241   : > { %1939 = vmatpush1.bf16.msra.mxu1 %v10267_v42  ;;  %1824 = vmatpush1.bf16.msra.mxu0 %v10300_v62  ;;  %v1162_v42 = vld [vmem:[%s12704_s29 + $0xb8] sm:$0xff]  ;;  %v12828_v62 = vpack.c.bf16 %v1166_v54, %v1164_v53 }
 0x242   : > { %1825 = vmatprep.subr.bf16.mxu0 %v10301_v63  ;;  %v12812_v47 = vpack.c.bf16 %v1162_v42, %v1160_v41  ;;  %v10327_v63 = vld [vmem:[%s12457_s13 + $0x164] ss:$24 sps:$4 sm:$0xff]   ;;  %v10342_v41 = vld [vmem:[%s12457_s13 + $0x254] ss:$24 sps:$4 sm:$0xff]   ;;  %v10340_v42 = vld [vmem:[%s12457_s13 + $0x250] ss:$24 sps:$4 sm:$0xff]  }
 0x244   : > { %1941 = vmatmul.mubr.bf16.vlgmr.msra.gmra.mrb[0].mxu1 %v12749_v49 }
 0x245   : > { %1950 = vmatprep.mubr.bf16.mxu1 %v12751_v50  ;;  %1826 = vmatpush1.bf16.msra.mxu0 %v10303_v5  ;;  %v10325_v5 = vld [vmem:[%s12457_s13 + $0x160] ss:$24 sps:$4 sm:$0xff]  }
 0x246   : > { %2021 = vmatprep.subr.bf16.mxu0 %v10306_v6  ;;  %v10330_v6 = vld [vmem:[%s12457_s13 + $0x194] ss:$24 sps:$4 sm:$0xff]  }
 0x248   : > { %1828 = vmatmul.mubr.bf16.vlgmr.msra.gmra.mrb[0].mxu0 %v12749_v49 }
 0x249   : > { %1837 = vmatprep.mubr.bf16.mxu0 %v12751_v50  ;;  %2022 = vmatpush1.bf16.msra.mxu0 %v10304_v8  ;;  %v1183_v8 = vpack.c.bf16 %v1165_v2, %v1163_v0  ;;  %v12898_v0 = vsub.s32 1, %v12471_v1 }
 0x24a   : > { %2023 = vmatprep.subr.bf16.mxu0 %v10309_v10  ;;  %v10328_v10 = vld [vmem:[%s12457_s13 + $0x190] ss:$24 sps:$4 sm:$0xff]  }
 0x24b   : > { %16013 = vst [vmem:[#allocation58_spill] sm:$0xff] %v12898_v0 }
 0x24c   : > { %1951 = vmatmul.mubr.bf16.gmra.mrb[4].mxu1 %v12763_v60 }
 0x24d   : > { %1960 = vmatprep.mubr.bf16.mxu1 %v12765_v61  ;;  %2024 = vmatpush1.bf16.msra.mxu0 %v10307_v15  ;;  %v10331_v15 = vld [vmem:[%s12457_s13 + $0x1c0] ss:$24 sps:$4 sm:$0xff]  }
 0x24e   : > { %2025 = vmatprep.subr.bf16.mxu0 %v10312_v16  ;;  %v10336_v16 = vld [vmem:[%s12457_s13 + $0x1f4] ss:$24 sps:$4 sm:$0xff]  }
 0x250   : > { %1838 = vmatmul.mubr.bf16.gmra.mrb[4].mxu0 %v12763_v60 }
 0x251   : > { %1847 = vmatprep.mubr.bf16.mxu0 %v12765_v61  ;;  %2026 = vmatpush1.bf16.msra.mxu0 %v10310_v19  ;;  %v1185_v19 = vpack.c.bf16 %v1169_v14, %v1167_v13 }
 0x252   : > { %2027 = vmatprep.subr.bf16.mxu0 %v10315_v38  ;;  %v10334_v38 = vld [vmem:[%s12457_s13 + $0x1f0] ss:$24 sps:$4 sm:$0xff]  }
 0x254   : > { %1961 = vmatmul.mubr.bf16.gmra.mrb[8].mxu1 %v12777_v7 }
 0x255   : > { %1970 = vmatprep.mubr.bf16.mxu1 %v12780_v9  ;;  %2028 = vmatpush1.bf16.msra.mxu0 %v10313_v43  ;;  %v10345_v43 = vld [vmem:[%s12457_s13 + $0x284] ss:$24 sps:$4 sm:$0xff]  }
 0x256   : > { %2029 = vmatprep.subr.bf16.mxu0 %v10318_v44  ;;  %v10343_v44 = vld [vmem:[%s12457_s13 + $0x280] ss:$24 sps:$4 sm:$0xff]  }
 0x258   : > { %1848 = vmatmul.mubr.bf16.gmra.mrb[8].mxu0 %v12777_v7 }
 0x259   : > { %1857 = vmatprep.mubr.bf16.mxu0 %v12780_v9  ;;  %2030 = vmatpush1.bf16.msra.mxu0 %v10316_v46  ;;  %v10348_v46 = vld [vmem:[%s12457_s13 + $0x2b4] ss:$24 sps:$4 sm:$0xff]  }
 0x25a   : > { %2031 = vmatprep.subr.bf16.mxu0 %v10321_v48  ;;  %v10346_v48 = vld [vmem:[%s12457_s13 + $0x2b0] ss:$24 sps:$4 sm:$0xff]   ;;  %s16120_s13 = sld [smem:[#allocation34_spill]] }
 0x25c   : > { %1971 = vmatmul.mubr.bf16.gmra.mrb[12].mxu1 %v12793_v18 }
 0x25d   : > { %1980 = vmatprep.mubr.bf16.mxu1 %v12796_v37  ;;  %2032 = vmatpush1.bf16.msra.mxu0 %v10319_v55 }
 0x25e   : > { %2033 = vmatprep.subr.bf16.mxu0 %v10324_v56 }
 0x260   : > { %1858 = vmatmul.mubr.bf16.gmra.mrb[12].mxu0 %v12793_v18  ;;  %p9497_p11 = scmp.ne.s32.totalorder %s16120_s13, 1 }
 0x261   : > { %1867 = vmatprep.mubr.bf16.mxu0 %v12796_v37  ;;  %2034 = vmatpush1.bf16.msra.mxu0 %v10322_v59 }
 0x262   : > { %2035 = vmatprep.subr.bf16.mxu0 %v10327_v63 }
 0x264   : > { %1981 = vmatmul.mubr.bf16.gmra.mrb[16].mxu1 %v12809_v45 }
 0x265   : > { %1990 = vmatprep.mubr.bf16.mxu1 %v12812_v47  ;;  %2036 = vmatpush1.bf16.msra.mxu0 %v10325_v5 }
 0x266   : > { %2037 = vmatprep.subr.bf16.mxu0 %v10330_v6 }
 0x268   : > { %1868 = vmatmul.mubr.bf16.gmra.mrb[16].mxu0 %v12809_v45 }
 0x269   : > { %1877 = vmatprep.mubr.bf16.mxu0 %v12812_v47  ;;  %2038 = vmatpush1.bf16.msra.mxu0 %v10328_v10 }
 0x26a   : > { %2039 = vmatprep.subr.bf16.mxu0 %v10333_v12 }
 0x26c   : > { %1991 = vmatmul.mubr.bf16.gmra.mrb[20].mxu1 %v12825_v57 }
 0x26d   : > { %2000 = vmatprep.mubr.bf16.mxu1 %v12828_v62  ;;  %2040 = vmatpush1.bf16.msra.mxu0 %v10331_v15 }
 0x26e   : > { %2041 = vmatprep.subr.bf16.mxu0 %v10336_v16 }
 0x270   : > { %1878 = vmatmul.mubr.bf16.gmra.mrb[20].mxu0 %v12825_v57 }
 0x271   : > { %1887 = vmatprep.mubr.bf16.mxu0 %v12828_v62  ;;  %2042 = vmatpush1.bf16.msra.mxu0 %v10334_v38 }
 0x272   : > { %2043 = vmatprep.subr.bf16.mxu0 %v10339_v39 }
 0x274   : > { %2001 = vmatmul.mubr.bf16.gmra.mrb[24].mxu1 %v1183_v8 }
 0x275   : > { %2010 = vmatprep.mubr.bf16.mxu1 %v1186_v11  ;;  %2044 = vmatpush1.bf16.msra.mxu0 %v10337_v40 }
 0x276   : > { %2045 = vmatprep.subr.bf16.mxu0 %v10342_v41 }
 0x278   : > { %1888 = vmatmul.mubr.bf16.gmra.mrb[24].mxu0 %v1183_v8 }
 0x279   : > { %1897 = vmatprep.mubr.bf16.mxu0 %v1186_v11  ;;  %2046 = vmatpush1.bf16.msra.mxu0 %v10340_v42 }
 0x27a   : > { %2047 = vmatprep.subr.bf16.mxu0 %v10345_v43 }
 0x27c   : > { %2011 = vmatmul.mubr.bf16.gmra.mrb[28].mxu1 %v1185_v19 }
 0x27d   : > { %2048 = vmatpush1.bf16.msra.mxu0 %v10343_v44 }
 0x27e   : > { %2049 = vmatprep.subr.bf16.mxu0 %v10348_v46 }
 0x280   : > { %1898 = vmatmul.mubr.bf16.gmra.mrb[28].mxu0 %v1185_v19 }
 0x281   : > { %2053 = vmatprep.mubr.bf16.mxu0 %v12710_v58  ;;  %2050 = vmatpush1.bf16.msra.mxu0 %v10346_v48  ;;  %v15825_v58 = vsub.s32 2, %v12471_v1 }
 0x282   : > { %2051 = vmatprep.subr.bf16.mxu0 %v10351_v51 }
 0x285   : > { %2052 = vmatpush1.bf16.msra.mxu0 %v10349_v52 }
 0x288   : > { %2054 = vmatmul.mubr.bf16.vlgmr.msra.gmra.mrb[32].mxu0 %v12749_v49  ;;  %v12877_v49 = vld [vmem:[%s12553_s24] sm:$0x3f] }
 0x289   : > { %2063 = vmatprep.mubr.bf16.mxu0 %v12751_v50  ;;  %v15824_v50 = vsub.s32 3, %v12471_v1  ;;  %v12910_v12 = vrot.slane %v12877_v49, %v12898_v0 }
 0x290   : > { %2064 = vmatmul.mubr.bf16.gmra.mrb[36].mxu0 %v12763_v60  ;;  %v12883_v60 = vrot.slane %v12877_v49, %v15825_v58 }
 0x291   : > { %2073 = vmatprep.mubr.bf16.mxu0 %v12765_v61 }
 0x298   : > { %2074 = vmatmul.mubr.bf16.gmra.mrb[40].mxu0 %v12777_v7  ;;  %v12888_v7 = vrot.slane %v12877_v49, %v15824_v50 }
 0x299   : > { %2083 = vmatprep.mubr.bf16.mxu0 %v12780_v9 }
 0x2a0   : > { %2084 = vmatmul.mubr.bf16.gmra.mrb[44].mxu0 %v12793_v18 }
 0x2a1   : > { %2093 = vmatprep.mubr.bf16.mxu0 %v12796_v37 }
 0x2a8   : > { %2094 = vmatmul.mubr.bf16.gmra.mrb[48].mxu0 %v12809_v45 }
 0x2a9   : > { %2103 = vmatprep.mubr.bf16.mxu0 %v12812_v47 }
 0x2b0   : > { %2104 = vmatmul.mubr.bf16.gmra.mrb[52].mxu0 %v12825_v57 }
 0x2b1   : > { %2113 = vmatprep.mubr.bf16.mxu0 %v12828_v62  ;;  %v12895_v62 = vsub.s32 0, %v12471_v1 }
 0x2b3   : > { %16012 = vst [vmem:[#allocation57_spill] sm:$0xff] %v12895_v62  ;;  %v12906_v10 = vrot.slane %v12877_v49, %v12895_v62 }
 0x2b8   : > { %2114 = vmatmul.mubr.bf16.gmra.mrb[56].mxu0 %v1183_v8 }
 0x2b9   : > { %2123 = vmatprep.mubr.bf16.mxu0 %v1186_v11 }
 0x2c0   : > { %2124 = vmatmul.mubr.bf16.gmra.mrb[60].mxu0 %v1185_v19 }
 0x317   : > { %v1942_v61 = vpop.f32.mrb[0].mxu1 }
 0x318   : > { %v1944_v9 = vpop.f32.mrb[1].mxu1  ;;  %v1943_v37 = vadd.f32 %v1942_v61, %v12883_v60 }
 0x319   : > { %v1946_v18 = vpop.f32.mrb[2].mxu1  ;;  %v1945_v53 = vadd.f32 %v1944_v9, %v12888_v7 }
 0x31a   : > { %v1947_v45 = vadd.f32 %v1946_v18, %v12883_v60  ;;  %v1948_v47 = vpop.f32.mrb[3].mxu1 }
 0x31b   : > { %v1949_v54 = vadd.f32 %v1948_v47, %v12888_v7  ;;  %v1829_v14 = vpop.f32.mrb[0].mxu0 }
 0x31c   : > { %v2158_v55 = vpack.c.bf16 %v1947_v45, %v1943_v37  ;;  %v1830_v16 = vadd.f32 %v1829_v14, %v12906_v10  ;;  %v1831_v19 = vpop.f32.mrb[1].mxu0 }
 0x31d   : > { %v2562_v56 = vpack.c.bf16 %v1949_v54, %v1945_v53  ;;  %v1832_v39 = vadd.f32 %v1831_v19, %v12910_v12  ;;  %v1833_v40 = vpop.f32.mrb[2].mxu0 }
 0x31e   : > { %9578 = vmatprep.subr.bf16.mxu1 %v2158_v55  ;;  %v2134_v44 = vmul.f32 0.088388346, %v1830_v16  ;;  %v1834_v46 = vadd.f32 %v1833_v40, %v12906_v10  ;;  %v1835_v48 = vpop.f32.mrb[3].mxu0 }
 0x31f   : > { %v1952_v57 = vpop.f32.mrb[4].mxu1  ;;  %9579 = vmatpush3.bf16.xpose.msra.mxu1 %v2158_v55  ;;  %9642 = vmatprep.subr.bf16.mxu0 %v2562_v56  ;;  %v2538_v61 = vmul.f32 0.088388346, %v1832_v39  ;;  %v1836_v9 = vadd.f32 %v1835_v48, %v12910_v12 }
 0x320   : > { %v1954_v59 = vpop.f32.mrb[5].mxu1  ;;  %9643 = vmatpush3.bf16.xpose.msra.mxu0 %v2562_v56  ;;  %v1953_v2 = vadd.f32 %v1952_v57, %v12883_v60  ;;  %v2135_v37 = vmul.f32 0.088388346, %v1834_v46 }
 0x321   : > { %v1956_v63 = vpop.f32.mrb[6].mxu1  ;;  %v1955_v5 = vadd.f32 %v1954_v59, %v12888_v7  ;;  %v2539_v47 = vmul.f32 0.088388346, %v1836_v9 }
 0x322   : > { %v1957_v3 = vadd.f32 %v1956_v63, %v12883_v60  ;;  %v1958_v4 = vpop.f32.mrb[7].mxu1  ;;  %v2150_v53 = vpack.c.bf16 %v2135_v37, %v2134_v44 }
 0x323   : > { %v1959_v6 = vadd.f32 %v1958_v4, %v12888_v7  ;;  %v2554_v55 = vpack.c.bf16 %v2539_v47, %v2538_v61  ;;  %v1839_v56 = vpop.f32.mrb[4].mxu0 }
 0x324   : > { %v2159_v8 = vpack.c.bf16 %v1957_v3, %v1953_v2  ;;  %v1840_v59 = vadd.f32 %v1839_v56, %v12906_v10  ;;  %v1841_v63 = vpop.f32.mrb[5].mxu0  ;;  %9594 = vmatprep.mubr.bf16.mxu1 %v2150_v53 }
 0x325   : > { %v2563_v11 = vpack.c.bf16 %v1959_v6, %v1955_v5  ;;  %v1842_v3 = vadd.f32 %v1841_v63, %v12910_v12  ;;  %v1843_v4 = vpop.f32.mrb[6].mxu0  ;;  %9658 = vmatprep.mubr.bf16.mxu0 %v2554_v55 }
 0x326   : > { %9580 = vmatprep.subr.bf16.mxu1 %v2159_v8  ;;  %v1845_v14 = vpop.f32.mrb[7].mxu0 }
 0x327   : > { %v1962_v13 = vpop.f32.mrb[8].mxu1  ;;  %9581 = vmatpush3.bf16.xpose.msra.mxu1 %v2159_v8  ;;  %9644 = vmatprep.subr.bf16.mxu0 %v2563_v11  ;;  %v12929_v19 = vmul.f32 0.088388346, %v1842_v3 }
 0x328   : > { %v1964_v15 = vpop.f32.mrb[9].mxu1  ;;  %9645 = vmatpush3.bf16.xpose.msra.mxu0 %v2563_v11  ;;  %v1963_v41 = vadd.f32 %v1962_v13, %v12883_v60  ;;  %v12924_v11 = vmul.f32 0.088388346, %v1840_v59  ;;  %v1844_v13 = vadd.f32 %v1843_v4, %v12906_v10 }
 0x329   : > { %v1966_v38 = vpop.f32.mrb[10].mxu1  ;;  %v1965_v51 = vadd.f32 %v1964_v15, %v12888_v7 }
 0x32a   : > { %v1967_v42 = vadd.f32 %v1966_v38, %v12883_v60  ;;  %v1968_v43 = vpop.f32.mrb[11].mxu1  ;;  %v1846_v38 = vadd.f32 %v1845_v14, %v12910_v12  ;;  %v12932_v40 = vmul.f32 0.088388346, %v1844_v13 }
 0x32b   : > { %v1969_v52 = vadd.f32 %v1968_v43, %v12888_v7  ;;  %v1849_v48 = vpop.f32.mrb[8].mxu0 }
 0x32c   : > { %v2160_v18 = vpack.c.bf16 %v1967_v42, %v1963_v41  ;;  %v12934_v42 = vmul.f32 0.088388346, %v1846_v38  ;;  %v2151_v43 = vpack.c.bf16 %v12932_v40, %v12924_v11  ;;  %v1851_v61 = vpop.f32.mrb[9].mxu0 }
 0x32d   : > { %v2564_v45 = vpack.c.bf16 %v1969_v52, %v1965_v51  ;;  %v1850_v52 = vadd.f32 %v1849_v48, %v12906_v10  ;;  %v1853_v37 = vpop.f32.mrb[10].mxu0 }
 0x32e   : > { %9582 = vmatprep.subr.bf16.mxu1 %v2160_v18  ;;  %v2555_v46 = vpack.c.bf16 %v12934_v42, %v12929_v19  ;;  %v1854_v55 = vadd.f32 %v1853_v37, %v12906_v10  ;;  %v1855_v56 = vpop.f32.mrb[11].mxu0 }
 0x32f   : > { %v1972_v54 = vpop.f32.mrb[12].mxu1  ;;  %9583 = vmatpush3.bf16.xpose.msra.mxu1 %v2160_v18  ;;  %9646 = vmatprep.subr.bf16.mxu0 %v2564_v45  ;;  %v1852_v18 = vadd.f32 %v1851_v61, %v12910_v12 }
 0x330   : > { %v1974_v57 = vpop.f32.mrb[13].mxu1  ;;  %9647 = vmatpush3.bf16.xpose.msra.mxu0 %v2564_v45  ;;  %v1973_v5 = vadd.f32 %v1972_v54, %v12883_v60  ;;  %v12944_v54 = vmul.f32 0.088388346, %v1850_v52  ;;  %v12952_v4 = vmul.f32 0.088388346, %v1854_v55 }
 0x331   : > { %v1976_v2 = vpop.f32.mrb[14].mxu1  ;;  %v1975_v15 = vadd.f32 %v1974_v57, %v12888_v7  ;;  %v12949_v63 = vmul.f32 0.088388346, %v1852_v18 }
 0x332   : > { %v1977_v6 = vadd.f32 %v1976_v2, %v12883_v60  ;;  %v1978_v8 = vpop.f32.mrb[15].mxu1  ;;  %v1856_v2 = vadd.f32 %v1855_v56, %v12910_v12 }
 0x333   : > { %v1979_v16 = vadd.f32 %v1978_v8, %v12888_v7  ;;  %v2152_v8 = vpack.c.bf16 %v12952_v4, %v12944_v54  ;;  %v1307_v54 = vsub.s32 5, %v12471_v1 }
 0x334   : > { %v2161_v39 = vpack.c.bf16 %v1977_v6, %v1973_v5  ;;  %v12954_v6 = vmul.f32 0.088388346, %v1856_v2 }
 0x335   : > { %v2565_v41 = vpack.c.bf16 %v1979_v16, %v1975_v15  ;;  %v1859_v15 = vpop.f32.mrb[12].mxu0 }
 0x336   : > { %9584 = vmatprep.subr.bf16.mxu1 %v2161_v39  ;;  %v1860_v38 = vadd.f32 %v1859_v15, %v12906_v10 }
 0x337   : > { %v1982_v44 = vpop.f32.mrb[16].mxu1  ;;  %9585 = vmatpush3.bf16.xpose.msra.mxu1 %v2161_v39  ;;  %9648 = vmatprep.subr.bf16.mxu0 %v2565_v41  ;;  %v1861_v39 = vpop.f32.mrb[13].mxu0 }
 0x338   : > { %v1984_v51 = vpop.f32.mrb[17].mxu1  ;;  %9649 = vmatpush3.bf16.xpose.msra.mxu0 %v2565_v41  ;;  %v1983_v45 = vadd.f32 %v1982_v44, %v12883_v60  ;;  %v1862_v44 = vadd.f32 %v1861_v39, %v12910_v12  ;;  %v1863_v48 = vpop.f32.mrb[14].mxu0 }
 0x339   : > { %v1986_v9 = vpop.f32.mrb[18].mxu1  ;;  %v1985_v57 = vadd.f32 %v1984_v51, %v12888_v7  ;;  %v1864_v18 = vadd.f32 %v1863_v48, %v12906_v10  ;;  %v1865_v37 = vpop.f32.mrb[15].mxu0 }
 0x33a   : > { %v1987_v47 = vadd.f32 %v1986_v9, %v12883_v60  ;;  %v1988_v53 = vpop.f32.mrb[19].mxu1  ;;  %v12964_v9 = vmul.f32 0.088388346, %v1860_v38  ;;  %v1866_v55 = vadd.f32 %v1865_v37, %v12910_v12 }
 0x33b   : > { %v1989_v59 = vadd.f32 %v1988_v53, %v12888_v7  ;;  %v12969_v53 = vmul.f32 0.088388346, %v1862_v44  ;;  %v1869_v15 = vpop.f32.mrb[16].mxu0 }
 0x33c   : > { %v2162_v3 = vpack.c.bf16 %v1987_v47, %v1983_v45  ;;  %v12974_v2 = vmul.f32 0.088388346, %v1866_v55  ;;  %v1870_v38 = vadd.f32 %v1869_v15, %v12906_v10  ;;  %v1871_v39 = vpop.f32.mrb[17].mxu0 }
 0x33d   : > { %v2566_v5 = vpack.c.bf16 %v1989_v59, %v1985_v57  ;;  %v12972_v57 = vmul.f32 0.088388346, %v1864_v18  ;;  %v1872_v44 = vadd.f32 %v1871_v39, %v12910_v12  ;;  %v1873_v48 = vpop.f32.mrb[18].mxu0 }
 0x33e   : > { %9586 = vmatprep.subr.bf16.mxu1 %v2162_v3  ;;  %v12984_v18 = vmul.f32 0.088388346, %v1870_v38  ;;  %v1874_v37 = vadd.f32 %v1873_v48, %v12906_v10 }
 0x33f   : > { %v1992_v13 = vpop.f32.mrb[20].mxu1  ;;  %9587 = vmatpush3.bf16.xpose.msra.mxu1 %v2162_v3  ;;  %9650 = vmatprep.subr.bf16.mxu0 %v2566_v5 }
 0x340   : > { %v1994_v16 = vpop.f32.mrb[21].mxu1  ;;  %9651 = vmatpush3.bf16.xpose.msra.mxu0 %v2566_v5  ;;  %v1993_v51 = vadd.f32 %v1992_v13, %v12883_v60  ;;  %v12992_v39 = vmul.f32 0.088388346, %v1874_v37 }
 0x341   : > { %v1996_v41 = vpop.f32.mrb[22].mxu1  ;;  %v1995_v45 = vadd.f32 %v1994_v16, %v12888_v7 }
 0x342   : > { %v1997_v52 = vadd.f32 %v1996_v41, %v12883_v60  ;;  %v1998_v61 = vpop.f32.mrb[23].mxu1 }
 0x343   : > { %v1999_v47 = vadd.f32 %v1998_v61, %v12888_v7 }
 0x344   : > { %v2163_v56 = vpack.c.bf16 %v1997_v52, %v1993_v51 }
 0x345   : > { %v2567_v59 = vpack.c.bf16 %v1999_v47, %v1995_v45  ;;  %v1875_v45 = vpop.f32.mrb[19].mxu0 }
 0x346   : > { %9588 = vmatprep.subr.bf16.mxu1 %v2163_v56 }
 0x347   : > { %v2002_v5 = vpop.f32.mrb[24].mxu1  ;;  %9589 = vmatpush3.bf16.xpose.msra.mxu1 %v2163_v56  ;;  %9652 = vmatprep.subr.bf16.mxu0 %v2567_v59  ;;  %v12989_v56 = vmul.f32 0.088388346, %v1872_v44  ;;  %v1879_v44 = vpop.f32.mrb[20].mxu0 }
 0x348   : > { %v2004_v16 = vpop.f32.mrb[25].mxu1  ;;  %9653 = vmatpush3.bf16.xpose.msra.mxu0 %v2567_v59  ;;  %v2003_v51 = vadd.f32 %v2002_v5, %v12883_v60  ;;  %v1876_v59 = vadd.f32 %v1875_v45, %v12910_v12 }
 0x349   : > { %v2006_v41 = vpop.f32.mrb[26].mxu1  ;;  %v2005_v47 = vadd.f32 %v2004_v16, %v12888_v7 }
 0x34a   : > { %v2007_v52 = vadd.f32 %v2006_v41, %v12883_v60  ;;  %v2008_v61 = vpop.f32.mrb[27].mxu1  ;;  %v12994_v50 = vmul.f32 0.088388346, %v1876_v59 }
 0x34b   : > { %v2009_v55 = vadd.f32 %v2008_v61, %v12888_v7 }
 0x34c   : > { %v2164_v15 = vpack.c.bf16 %v2007_v52, %v2003_v51  ;;  %v1880_v51 = vadd.f32 %v1879_v44, %v12906_v10  ;;  %v1881_v52 = vpop.f32.mrb[21].mxu0 }
 0x34d   : > { %v2568_v5 = vpack.c.bf16 %v2009_v55, %v2005_v47  ;;  %v1882_v37 = vadd.f32 %v1881_v52, %v12910_v12  ;;  %v1883_v45 = vpop.f32.mrb[22].mxu0 }
 0x34e   : > { %9590 = vmatprep.subr.bf16.mxu1 %v2164_v15  ;;  %v1884_v58 = vadd.f32 %v1883_v45, %v12906_v10  ;;  %v1885_v16 = vpop.f32.mrb[23].mxu0 }
 0x34f   : > { %v2012_v41 = vpop.f32.mrb[28].mxu1  ;;  %9591 = vmatpush3.bf16.xpose.msra.mxu1 %v2164_v15  ;;  %9654 = vmatprep.subr.bf16.mxu0 %v2568_v5  ;;  %v13004_v15 = vmul.f32 0.088388346, %v1880_v51  ;;  %v13009_v44 = vmul.f32 0.088388346, %v1882_v37  ;;  %v1886_v13 = vadd.f32 %v1885_v16, %v12910_v12 }
 0x350   : > { %v2014_v48 = vpop.f32.mrb[29].mxu1  ;;  %9655 = vmatpush3.bf16.xpose.msra.mxu0 %v2568_v5  ;;  %v2013_v47 = vadd.f32 %v2012_v41, %v12883_v60  ;;  %v2145_v3 = vmul.f32 0.088388346, %v1884_v58 }
 0x351   : > { %v2016_v61 = vpop.f32.mrb[30].mxu1  ;;  %v2015_v38 = vadd.f32 %v2014_v48, %v12888_v7  ;;  %v2549_v41 = vmul.f32 0.088388346, %v1886_v13 }
 0x352   : > { %v2017_v55 = vadd.f32 %v2016_v61, %v12883_v60  ;;  %v2018_v59 = vpop.f32.mrb[31].mxu1  ;;  %v2155_v60 = vpack.c.bf16 %v2145_v3, %v13004_v15  ;;  %v1889_v61 = vpop.f32.mrb[24].mxu0 }
 0x353   : > { %v2019_v5 = vadd.f32 %v2018_v59, %v12888_v7  ;;  %v2559_v51 = vpack.c.bf16 %v2549_v41, %v13009_v44  ;;  %v1890_v48 = vadd.f32 %v1889_v61, %v12906_v10  ;;  %v1891_v7 = vpop.f32.mrb[25].mxu0  ;;  %v16015_v61 = vpack.c.bf16 %v12972_v57, %v12964_v9 }
 0x354   : > { %v2165_v52 = vpack.c.bf16 %v2017_v55, %v2013_v47  ;;  %v1892_v37 = vadd.f32 %v1891_v7, %v12910_v12  ;;  %v1893_v45 = vpop.f32.mrb[26].mxu0  ;;  %v13043_v7 = vrot.slane %v12877_v49, %v1307_v54 }
 0x355   : > { %v2569_v14 = vpack.c.bf16 %v2019_v5, %v2015_v38  ;;  %v2146_v16 = vmul.f32 0.088388346, %v1890_v48  ;;  %v1894_v58 = vadd.f32 %v1893_v45, %v12906_v10  ;;  %v1895_v38 = vpop.f32.mrb[27].mxu0  ;;  %v16014_v5 = vpack.c.bf16 %v12954_v6, %v12949_v63 }
 0x356   : > { %9592 = vmatprep.subr.bf16.mxu1 %v2165_v52  ;;  %v2550_v13 = vmul.f32 0.088388346, %v1892_v37  ;;  %v1896_v47 = vadd.f32 %v1895_v38, %v12910_v12  ;;  %v1899_v15 = vpop.f32.mrb[28].mxu0  ;;  %v16018_v45 = vpack.c.bf16 %v12994_v50, %v12989_v56 }
 0x357   : > { %9593 = vmatpush3.bf16.xpose.msra.mxu1 %v2165_v52  ;;  %9656 = vmatprep.subr.bf16.mxu0 %v2569_v14  ;;  %v2147_v3 = vmul.f32 0.088388346, %v1894_v58  ;;  %v1900_v44 = vadd.f32 %v1899_v15, %v12906_v10  ;;  %v1901_v52 = vpop.f32.mrb[29].mxu0 }
 0x358   : > { %9657 = vmatpush3.bf16.xpose.msra.mxu0 %v2569_v14  ;;  %v2551_v55 = vmul.f32 0.088388346, %v1896_v47  ;;  %v1902_v11 = vadd.f32 %v1901_v52, %v12910_v12  ;;  %v1903_v40 = vpop.f32.mrb[30].mxu0 }
 0x359   : > { %v2156_v14 = vpack.c.bf16 %v2147_v3, %v2146_v16  ;;  %v2148_v19 = vmul.f32 0.088388346, %v1900_v44  ;;  %v1904_v42 = vadd.f32 %v1903_v40, %v12906_v10  ;;  %v16016_v10 = vpack.c.bf16 %v12974_v2, %v12969_v53 }
 0x35a   : > { %v2560_v59 = vpack.c.bf16 %v2551_v55, %v2550_v13  ;;  %v2552_v4 = vmul.f32 0.088388346, %v1902_v11 }
 0x35b   : > { %v2149_v41 = vmul.f32 0.088388346, %v1904_v42 }
 0x35d   : > { %v2157_v48 = vpack.c.bf16 %v2149_v41, %v2148_v19 }
 0x35e   : > { %9595 = vmatmul.mubr.bf16.vlgmr.msra.gmra.mrb[32].mxu1 %v2151_v43  ;;  %v1303_v43 = vsub.s32 4, %v12471_v1 }
 0x35f   : > { %9659 = vmatmul.mubr.bf16.vlgmr.msra.gmra.mrb[64].mxu0 %v2555_v46  ;;  %9598 = vmatprep.mubr.bf16.mxu1 %v2152_v8  ;;  %v1905_v46 = vpop.f32.mrb[31].mxu0 }
 0x360   : > { %9662 = vmatprep.mubr.bf16.mxu0 %v16014_v5  ;;  %v1906_v8 = vadd.f32 %v1905_v46, %v12910_v12  ;;  %v13037_v6 = vrot.slane %v12877_v49, %v1303_v43  ;;  %v16017_v12 = vpack.c.bf16 %v12992_v39, %v12984_v18  ;;  %v2055_v16 = vpop.f32.mrb[32].mxu0 }
 0x361   : > { %v2057_v57 = vpop.f32.mrb[33].mxu0 }
 0x362   : > { %v2553_v63 = vmul.f32 0.088388346, %v1906_v8  ;;  %v2056_v9 = vadd.f32 %v2055_v16, %v13037_v6  ;;  %v2058_v49 = vadd.f32 %v2057_v57, %v13043_v7  ;;  %v2059_v58 = vpop.f32.mrb[34].mxu0 }
 0x363   : > { %v2060_v38 = vadd.f32 %v2059_v58, %v13037_v6  ;;  %v2061_v53 = vpop.f32.mrb[35].mxu0 }
 0x364   : > { %v2561_v37 = vpack.c.bf16 %v2553_v63, %v2552_v4  ;;  %v2062_v2 = vadd.f32 %v2061_v53, %v13043_v7  ;;  %v2065_v50 = vpop.f32.mrb[36].mxu0 }
 0x365   : > { %v2166_v13 = vpack.c.bf16 %v2060_v38, %v2056_v9  ;;  %v2066_v56 = vadd.f32 %v2065_v50, %v13037_v6  ;;  %v2067_v39 = vpop.f32.mrb[37].mxu0 }
 0x366   : > { %9599 = vmatmul.mubr.bf16.gmra.mrb[36].mxu1 %v16015_v61  ;;  %v2570_v18 = vpack.c.bf16 %v2062_v2, %v2058_v49  ;;  %v2068_v47 = vadd.f32 %v2067_v39, %v13043_v7  ;;  %v2069_v3 = vpop.f32.mrb[38].mxu0 }
 0x367   : > { %9663 = vmatmul.mubr.bf16.gmra.mrb[68].mxu0 %v16016_v10  ;;  %9602 = vmatprep.mubr.bf16.mxu1 %v16017_v12  ;;  %v2070_v55 = vadd.f32 %v2069_v3, %v13037_v6  ;;  %v2071_v15 = vpop.f32.mrb[39].mxu0 }
 0x368   : > { %9666 = vmatprep.mubr.bf16.mxu0 %v16018_v45  ;;  %9610 = vmatprep.subr.bf16.mxu1 %v2166_v13 }
 0x369   : > { %9674 = vmatprep.subr.bf16.mxu0 %v2570_v18  ;;  %9611 = vmatpush3.bf16.msra.mxu1 %v2166_v13  ;;  %v2167_v5 = vpack.c.bf16 %v2070_v55, %v2066_v56 }
 0x36a   : > { %9675 = vmatpush3.bf16.msra.mxu0 %v2570_v18 }
 0x36b   : > { %9612 = vmatprep.subr.bf16.mxu1 %v2167_v5 }
 0x36d   : > { %9613 = vmatpush3.bf16.msra.mxu1 %v2167_v5 }
 0x36e   : > { %9603 = vmatmul.mubr.bf16.gmra.mrb[40].mxu1 %v2155_v60  ;;  %v2072_v60 = vadd.f32 %v2071_v15, %v13043_v7 }
 0x36f   : > { %9667 = vmatmul.mubr.bf16.gmra.mrb[72].mxu0 %v2559_v51  ;;  %9606 = vmatprep.mubr.bf16.mxu1 %v2156_v14  ;;  %v2075_v14 = vpop.f32.mrb[40].mxu0 }
 0x370   : > { %9670 = vmatprep.mubr.bf16.mxu0 %v2560_v59  ;;  %v2571_v51 = vpack.c.bf16 %v2072_v60, %v2068_v47  ;;  %v2076_v59 = vadd.f32 %v2075_v14, %v13037_v6  ;;  %v2077_v44 = vpop.f32.mrb[41].mxu0 }
 0x371   : > { %v2078_v52 = vadd.f32 %v2077_v44, %v13043_v7  ;;  %v2079_v11 = vpop.f32.mrb[42].mxu0 }
 0x372   : > { %9676 = vmatprep.subr.bf16.mxu0 %v2571_v51  ;;  %v2080_v40 = vadd.f32 %v2079_v11, %v13037_v6  ;;  %v2081_v43 = vpop.f32.mrb[43].mxu0 }
 0x373   : > { %9677 = vmatpush3.bf16.msra.mxu0 %v2571_v51  ;;  %v2082_v19 = vadd.f32 %v2081_v43, %v13043_v7  ;;  %v2085_v54 = vpop.f32.mrb[44].mxu0 }
 0x374   : > { %v2168_v42 = vpack.c.bf16 %v2080_v40, %v2076_v59  ;;  %v2086_v4 = vadd.f32 %v2085_v54, %v13037_v6  ;;  %v2087_v8 = vpop.f32.mrb[45].mxu0 }
 0x375   : > { %v2572_v46 = vpack.c.bf16 %v2082_v19, %v2078_v52  ;;  %v2088_v41 = vadd.f32 %v2087_v8, %v13043_v7  ;;  %v2089_v63 = vpop.f32.mrb[46].mxu0 }
 0x376   : > { %9607 = vmatmul.mubr.bf16.gmra.mrb[44].mxu1 %v2157_v48  ;;  %9614 = vmatprep.subr.bf16.mxu1 %v2168_v42  ;;  %v2090_v61 = vadd.f32 %v2089_v63, %v13037_v6  ;;  %v2091_v48 = vpop.f32.mrb[47].mxu0 }
 0x377   : > { %9671 = vmatmul.mubr.bf16.gmra.mrb[76].mxu0 %v2561_v37  ;;  %9678 = vmatprep.subr.bf16.mxu0 %v2572_v46  ;;  %v2092_v10 = vadd.f32 %v2091_v48, %v13043_v7 }
 0x378   : > { %9615 = vmatpush3.bf16.msra.mxu1 %v2168_v42  ;;  %9679 = vmatpush3.bf16.msra.mxu0 %v2572_v46  ;;  %v2169_v12 = vpack.c.bf16 %v2090_v61, %v2086_v4 }
 0x379   : > { %v2573_v37 = vpack.c.bf16 %v2092_v10, %v2088_v41 }
 0x37a   : > { %9616 = vmatprep.subr.bf16.mxu1 %v2169_v12 }
 0x37b   : > { %v2095_v45 = vpop.f32.mrb[48].mxu0  ;;  %9680 = vmatprep.subr.bf16.mxu0 %v2573_v37 }
 0x37c   : > { %9617 = vmatpush3.bf16.msra.mxu1 %v2169_v12  ;;  %v2096_v16 = vadd.f32 %v2095_v45, %v13037_v6  ;;  %v2097_v9 = vpop.f32.mrb[49].mxu0  ;;  %9681 = vmatpush3.bf16.msra.mxu0 %v2573_v37 }
 0x37d   : > { %v2098_v57 = vadd.f32 %v2097_v9, %v13043_v7  ;;  %v2099_v49 = vpop.f32.mrb[50].mxu0 }
 0x37e   : > { %v2100_v58 = vadd.f32 %v2099_v49, %v13037_v6  ;;  %v2101_v38 = vpop.f32.mrb[51].mxu0 }
 0x37f   : > { %v2102_v53 = vadd.f32 %v2101_v38, %v13043_v7 }
 0x380   : > { %v2170_v2 = vpack.c.bf16 %v2100_v58, %v2096_v16 }
 0x381   : > { %v2574_v13 = vpack.c.bf16 %v2102_v53, %v2098_v57 }
 0x382   : > { %9618 = vmatprep.subr.bf16.mxu1 %v2170_v2 }
 0x383   : > { %v2105_v18 = vpop.f32.mrb[52].mxu0  ;;  %9682 = vmatprep.subr.bf16.mxu0 %v2574_v13  ;;  %9619 = vmatpush3.bf16.msra.mxu1 %v2170_v2 }
 0x384   : > { %v2106_v50 = vadd.f32 %v2105_v18, %v13037_v6  ;;  %v2107_v56 = vpop.f32.mrb[53].mxu0  ;;  %9683 = vmatpush3.bf16.msra.mxu0 %v2574_v13 }
 0x385   : > { %v2108_v39 = vadd.f32 %v2107_v56, %v13043_v7  ;;  %v2109_v47 = vpop.f32.mrb[54].mxu0 }
 0x386   : > { %v2110_v3 = vadd.f32 %v2109_v47, %v13037_v6  ;;  %v2111_v55 = vpop.f32.mrb[55].mxu0 }
 0x387   : > { %v2112_v15 = vadd.f32 %v2111_v55, %v13043_v7 }
 0x388   : > { %v2171_v60 = vpack.c.bf16 %v2110_v3, %v2106_v50 }
 0x389   : > { %v2575_v5 = vpack.c.bf16 %v2112_v15, %v2108_v39 }
 0x38a   : > { %9620 = vmatprep.subr.bf16.mxu1 %v2171_v60 }
 0x38b   : > { %v2115_v51 = vpop.f32.mrb[56].mxu0  ;;  %9684 = vmatprep.subr.bf16.mxu0 %v2575_v5  ;;  %9621 = vmatpush3.bf16.msra.mxu1 %v2171_v60 }
 0x38c   : > { %v2116_v14 = vadd.f32 %v2115_v51, %v13037_v6  ;;  %v2117_v59 = vpop.f32.mrb[57].mxu0  ;;  %9685 = vmatpush3.bf16.msra.mxu0 %v2575_v5 }
 0x38d   : > { %v2118_v44 = vadd.f32 %v2117_v59, %v13043_v7  ;;  %v2119_v52 = vpop.f32.mrb[58].mxu0 }
 0x38e   : > { %v2120_v11 = vadd.f32 %v2119_v52, %v13037_v6  ;;  %v2121_v40 = vpop.f32.mrb[59].mxu0 }
 0x38f   : > { %v2122_v43 = vadd.f32 %v2121_v40, %v13043_v7 }
 0x390   : > { %v2172_v19 = vpack.c.bf16 %v2120_v11, %v2116_v14 }
 0x391   : > { %v2576_v42 = vpack.c.bf16 %v2122_v43, %v2118_v44 }
 0x392   : > { %9622 = vmatprep.subr.bf16.mxu1 %v2172_v19 }
 0x393   : > { %v2125_v46 = vpop.f32.mrb[60].mxu0  ;;  %9686 = vmatprep.subr.bf16.mxu0 %v2576_v42  ;;  %9623 = vmatpush3.bf16.msra.mxu1 %v2172_v19 }
 0x394   : > { %v2126_v54 = vadd.f32 %v2125_v46, %v13037_v6  ;;  %v2127_v4 = vpop.f32.mrb[61].mxu0  ;;  %9687 = vmatpush3.bf16.msra.mxu0 %v2576_v42 }
 0x395   : > { %v2128_v8 = vadd.f32 %v2127_v4, %v13043_v7  ;;  %v2129_v41 = vpop.f32.mrb[62].mxu0 }
 0x396   : > { %v2130_v63 = vadd.f32 %v2129_v41, %v13037_v6  ;;  %v2131_v61 = vpop.f32.mrb[63].mxu0 }
 0x397   : > { %v2132_v48 = vadd.f32 %v2131_v61, %v13043_v7 }
 0x398   : > { %v2173_v10 = vpack.c.bf16 %v2130_v63, %v2126_v54 }
 0x399   : > { %v2577_v12 = vpack.c.bf16 %v2132_v48, %v2128_v8 }
 0x39a   : > { %9624 = vmatprep.subr.bf16.mxu1 %v2173_v10 }
 0x39b   : > { %9688 = vmatprep.subr.bf16.mxu0 %v2577_v12  ;;  %9625 = vmatpush3.bf16.msra.mxu1 %v2173_v10 }
 0x39c   : > { %9689 = vmatpush3.bf16.msra.mxu0 %v2577_v12 }
 0x431   : > { %v9596_v37 = vpop.f32.mrb[32].mxu1 }
 0x432   : > { %v2208_v45 = vpop.f32.mrb[33].mxu1  ;;  %v9660_v16 = vpop.f32.mrb[64].mxu0  ;;  %v13118_v5 = vsel %vm12547_vm0, %v9596_v37, -1e+30 }
 0x433   : > { %v9597_v9 = vpop.f32.mrb[34].mxu1  ;;  %v2612_v57 = vpop.f32.mrb[65].mxu0  ;;  %v13088_v49 = vsel %vm12547_vm0, %v9660_v16, -1e+30  ;;  %v13092_v6 = vsel %vm12547_vm0, %v2208_v45, -1e+30 }
 0x434   : > { %2695 = vmax.xlane.f32.xlu0 %v13088_v49  ;;  %v9661_v7 = vpop.f32.mrb[66].mxu0  ;;  %2289 = vmax.xlane.f32.xlu1 %v13092_v6  ;;  %v2211_v58 = vpop.f32.mrb[35].mxu1  ;;  %v13098_v53 = vsel %vm12547_vm0, %v2612_v57, -1e+30  ;;  %v13122_v51 = vsel %vm12547_vm0, %v9597_v9, -1e+30 }
 0x435   : > { %v2615_v38 = vpop.f32.mrb[67].mxu0  ;;  %v13102_v2 = vsel %vm12547_vm0, %v2211_v58, -1e+30  ;;  %v13112_v47 = vsel %vm12547_vm0, %v9661_v7, -1e+30 }
 0x436   : > { %v13108_v56 = vsel %vm12547_vm0, %v2615_v38, -1e+30 }
 0x438   : > { %2691 = vmax.xlane.f32.xlu0 %v13098_v53  ;;  %2291 = vmax.xlane.f32.xlu1 %v13102_v2 }
 0x439   : > { %v9600_v13 = vpop.f32.mrb[36].mxu1 }
 0x43a   : > { %v9664_v18 = vpop.f32.mrb[68].mxu0  ;;  %v2224_v50 = vpop.f32.mrb[37].mxu1  ;;  %v13158_v9 = vsel %vm12547_vm0, %v9600_v13, -1e+30 }
 0x43b   : > { %v2628_v39 = vpop.f32.mrb[69].mxu0  ;;  %v9601_v3 = vpop.f32.mrb[38].mxu1  ;;  %v13128_v52 = vsel %vm12547_vm0, %v2224_v50, -1e+30  ;;  %v13138_v54 = vsel %vm12547_vm0, %v9664_v18, -1e+30 }
 0x43c   : > { %2693 = vmax.xlane.f32.xlu0 %v13108_v56  ;;  %2697 = vmax.xlane.f32.xlu1 %v13112_v47  ;;  %v9665_v55 = vpop.f32.mrb[70].mxu0  ;;  %v2227_v15 = vpop.f32.mrb[39].mxu1  ;;  %v13148_v61 = vsel %vm12547_vm0, %v2628_v39, -1e+30  ;;  %v13162_v57 = vsel %vm12547_vm0, %v9601_v3, -1e+30 }
 0x43d   : > { %v2631_v60 = vpop.f32.mrb[71].mxu0  ;;  %v13132_v11 = vsel %vm12547_vm0, %v2227_v15, -1e+30  ;;  %v13142_v4 = vsel %vm12547_vm0, %v9665_v55, -1e+30 }
 0x43e   : > { %v13152_v48 = vsel %vm12547_vm0, %v2631_v60, -1e+30 }
 0x440   : > { %2293 = vmax.xlane.f32.xlu0 %v13118_v5  ;;  %2295 = vmax.xlane.f32.xlu1 %v13122_v51 }
 0x441   : > { %v9604_v14 = vpop.f32.mrb[40].mxu1 }
 0x442   : > { %v9668_v59 = vpop.f32.mrb[72].mxu0  ;;  %v2240_v44 = vpop.f32.mrb[41].mxu1  ;;  %v13198_v39 = vsel %vm12547_vm0, %v9604_v14, -1e+30 }
 0x443   : > { %v2644_v40 = vpop.f32.mrb[73].mxu0  ;;  %v9605_v43 = vpop.f32.mrb[42].mxu1  ;;  %v13168_v7 = vsel %vm12547_vm0, %v2240_v44, -1e+30  ;;  %v13178_v38 = vsel %vm12547_vm0, %v9668_v59, -1e+30 }
 0x444   : > { %2297 = vmax.xlane.f32.xlu0 %v13128_v52  ;;  %2299 = vmax.xlane.f32.xlu1 %v13132_v11  ;;  %v9669_v19 = vpop.f32.mrb[74].mxu0  ;;  %v2243_v42 = vpop.f32.mrb[43].mxu1  ;;  %v13188_v18 = vsel %vm12547_vm0, %v2644_v40, -1e+30  ;;  %v13202_v3 = vsel %vm12547_vm0, %v9605_v43, -1e+30 }
 0x445   : > { %v2647_v46 = vpop.f32.mrb[75].mxu0  ;;  %v13172_v58 = vsel %vm12547_vm0, %v2243_v42, -1e+30  ;;  %v13182_v13 = vsel %vm12547_vm0, %v9669_v19, -1e+30 }
 0x446   : > { %v13192_v50 = vsel %vm12547_vm0, %v2647_v46, -1e+30 }
 0x448   : > { %2703 = vmax.xlane.f32.xlu0 %v13138_v54  ;;  %2705 = vmax.xlane.f32.xlu1 %v13142_v4 }
 0x449   : > { %v9608_v8 = vpop.f32.mrb[44].mxu1 }
 0x44a   : > { %v9672_v41 = vpop.f32.mrb[76].mxu0  ;;  %v2256_v63 = vpop.f32.mrb[45].mxu1  ;;  %v13238_v40 = vsel %vm12547_vm0, %v9608_v8, -1e+30 }
 0x44b   : > { %v2660_v10 = vpop.f32.mrb[77].mxu0  ;;  %v9609_v12 = vpop.f32.mrb[46].mxu1  ;;  %v13208_v55 = vsel %vm12547_vm0, %v2256_v63, -1e+30  ;;  %v13218_v60 = vsel %vm12547_vm0, %v9672_v41, -1e+30 }
 0x44c   : > { %2699 = vmax.xlane.f32.xlu0 %v13148_v61  ;;  %2701 = vmax.xlane.f32.xlu1 %v13152_v48  ;;  %v9673_v37 = vpop.f32.mrb[78].mxu0  ;;  %v2259_v45 = vpop.f32.mrb[47].mxu1  ;;  %v13228_v59 = vsel %vm12547_vm0, %v2660_v10, -1e+30  ;;  %v13242_v43 = vsel %vm12547_vm0, %v9609_v12, -1e+30 }
 0x44d   : > { %v2663_v16 = vpop.f32.mrb[79].mxu0  ;;  %v13212_v15 = vsel %vm12547_vm0, %v2259_v45, -1e+30  ;;  %v13222_v14 = vsel %vm12547_vm0, %v9673_v37, -1e+30 }
 0x44e   : > { %v13232_v44 = vsel %vm12547_vm0, %v2663_v16, -1e+30 }
 0x450   : > { %2301 = vmax.xlane.f32.xlu0 %v13158_v9  ;;  %2303 = vmax.xlane.f32.xlu1 %v13162_v57 }
 0x454   : > { %2305 = vmax.xlane.f32.xlu0 %v13168_v7  ;;  %2307 = vmax.xlane.f32.xlu1 %v13172_v58 }
 0x458   : > { %2711 = vmax.xlane.f32.xlu0 %v13178_v38  ;;  %2713 = vmax.xlane.f32.xlu1 %v13182_v13 }
 0x45c   : > { %2707 = vmax.xlane.f32.xlu0 %v13188_v18  ;;  %2709 = vmax.xlane.f32.xlu1 %v13192_v50 }
 0x460   : > { %2309 = vmax.xlane.f32.xlu0 %v13198_v39  ;;  %2311 = vmax.xlane.f32.xlu1 %v13202_v3 }
 0x464   : > { %2313 = vmax.xlane.f32.xlu0 %v13208_v55  ;;  %2315 = vmax.xlane.f32.xlu1 %v13212_v15 }
 0x468   : > { %2719 = vmax.xlane.f32.xlu0 %v13218_v60  ;;  %2721 = vmax.xlane.f32.xlu1 %v13222_v14 }
 0x46c   : > { %2715 = vmax.xlane.f32.xlu0 %v13228_v59  ;;  %2717 = vmax.xlane.f32.xlu1 %v13232_v44 }
 0x470   : > { %2317 = vmax.xlane.f32.xlu0 %v13238_v40  ;;  %2319 = vmax.xlane.f32.xlu1 %v13242_v43 }
 0x4c1   : > { %v2696_v19 = vpop.xlane.xlu0 %2695  ;;  %v2290_v42 = vpop.xlane.xlu1 %2289 }
 0x4c2   : > { %v2321_v46 = vsub.f32 %v13092_v6, %v2290_v42  ;;  %v2725_v41 = vsub.f32 %v13088_v49, %v2696_v19 }
 0x4c4   : > { %v2337_v63 = vmul.f32 1.442695, %v2321_v46  ;;  %v2743_v16 = vmul.f32 1.442695, %v2725_v41 }
 0x4c5   : > { %v2692_v10 = vpop.xlane.xlu0 %2691  ;;  %v2292_v37 = vpop.xlane.xlu1 %2291 }
 0x4c6   : > { %v2723_v8 = vsub.f32 %v13098_v53, %v2692_v10  ;;  %v2322_v45 = vsub.f32 %v13102_v2, %v2292_v37  ;;  %10976 = vpow2.f32 %v2337_v63 }
 0x4c8   : > { %v2739_v36 = vmul.f32 1.442695, %v2723_v8  ;;  %v2339_v12 = vmul.f32 1.442695, %v2322_v45 }
 0x4c9   : > { %v2694_v17 = vpop.xlane.xlu0 %2693  ;;  %v2698_v34 = vpop.xlane.xlu1 %2697 }
 0x4ca   : > { %10978 = vpow2.f32 %v2739_v36  ;;  %v2724_v32 = vsub.f32 %v13108_v56, %v2694_v17  ;;  %v2726_v6 = vsub.f32 %v13112_v47, %v2698_v34 }
 0x4cb   : > { %10980 = vpow2.f32 %v2339_v12 }
 0x4cc   : > { %v2741_v49 = vmul.f32 1.442695, %v2724_v32  ;;  %v2745_v19 = vmul.f32 1.442695, %v2726_v6  ;;  %10982 = vpow2.f32 %v2743_v16 }
 0x4cd   : > { %v2294_v42 = vpop.xlane.xlu0 %2293  ;;  %v2296_v46 = vpop.xlane.xlu1 %2295 }
 0x4ce   : > { %10984 = vpow2.f32 %v2741_v49  ;;  %v2323_v53 = vsub.f32 %v13118_v5, %v2294_v42  ;;  %v2324_v2 = vsub.f32 %v13122_v51, %v2296_v46 }
 0x4cf   : > { %10986 = vpow2.f32 %v2745_v19 }
 0x4d0   : > { %v2341_v41 = vmul.f32 1.442695, %v2323_v53  ;;  %v2343_v63 = vmul.f32 1.442695, %v2324_v2  ;;  %v10977_v32 = vpop.eup %10976 }
 0x4d1   : > { %v2298_v10 = vpop.xlane.xlu0 %2297  ;;  %v2300_v37 = vpop.xlane.xlu1 %2299 }
 0x4d2   : > { %10988 = vpow2.f32 %v2341_v41  ;;  %v2325_v17 = vsub.f32 %v13128_v52, %v2298_v10  ;;  %v2326_v34 = vsub.f32 %v13132_v11, %v2300_v37 }
 0x4d3   : > { %10990 = vpow2.f32 %v2343_v63 }
 0x4d4   : > { %v10979_v56 = vpop.eup %10978  ;;  %v2345_v47 = vmul.f32 1.442695, %v2325_v17  ;;  %v2347_v8 = vmul.f32 1.442695, %v2326_v34 }
 0x4d5   : > { %v10981_v45 = vpop.eup %10980  ;;  %v2704_v36 = vpop.xlane.xlu0 %2703  ;;  %2771 = vadd.xlane.f32.xlu0 %v10979_v56 }
 0x4d6   : > { %v2706_v5 = vpop.xlane.xlu1 %2705  ;;  %10992 = vpow2.f32 %v2345_v47  ;;  %v2729_v51 = vsub.f32 %v13138_v54, %v2704_v36  ;;  %v2401_v16 = vpack.c.bf16 %v10981_v45, %v10977_v32  ;;  %v10983_v6 = vpop.eup %10982 }
 0x4d7   : > { %v2730_v12 = vsub.f32 %v13142_v4, %v2706_v5  ;;  %10994 = vpow2.f32 %v2347_v8 }
 0x4d8   : > { %v10985_v52 = vpop.eup %10984  ;;  %v2751_v49 = vmul.f32 1.442695, %v2729_v51  ;;  %9626 = vmatprep.mubr.bf16.mxu1 %v2401_v16 }
 0x4d9   : > { %v10987_v11 = vpop.eup %10986  ;;  %v2753_v19 = vmul.f32 1.442695, %v2730_v12  ;;  %v2700_v42 = vpop.xlane.xlu0 %2699  ;;  %2369 = vadd.xlane.f32.xlu0 %v10977_v32  ;;  %2773 = vadd.xlane.f32.xlu1 %v10985_v52  ;;  %v2803_v53 = vpack.c.bf16 %v10985_v52, %v10979_v56 }
 0x4da   : > { %v2702_v46 = vpop.xlane.xlu1 %2701  ;;  %v2727_v2 = vsub.f32 %v13148_v61, %v2700_v42  ;;  %v2804_v54 = vpack.c.bf16 %v10987_v11, %v10983_v6  ;;  %10996 = vpow2.f32 %v2751_v49 }
 0x4db   : > { %v2728_v41 = vsub.f32 %v13152_v48, %v2702_v46  ;;  %9690 = vmatprep.mubr.bf16.mxu0 %v2803_v53  ;;  %10998 = vpow2.f32 %v2753_v19 }
 0x4dc   : > { %v10989_v4 = vpop.eup %10988  ;;  %v2747_v63 = vmul.f32 1.442695, %v2727_v2  ;;  %9691 = vmatmul.mubr.bf16.vlgmr.msra.gmra.mrb[80].mxu0 %v2804_v54 }
 0x4dd   : > { %v2749_v10 = vmul.f32 1.442695, %v2728_v41  ;;  %v10991_v37 = vpop.eup %10990  ;;  %v2302_v17 = vpop.xlane.xlu0 %2301  ;;  %2775 = vadd.xlane.f32.xlu0 %v10983_v6  ;;  %2371 = vadd.xlane.f32.xlu1 %v10981_v45 }
 0x4de   : > { %v2304_v34 = vpop.xlane.xlu1 %2303  ;;  %11000 = vpow2.f32 %v2747_v63  ;;  %v2327_v32 = vsub.f32 %v13158_v9, %v2302_v17  ;;  %v2402_v56 = vpack.c.bf16 %v10991_v37, %v10989_v4 }
 0x4df   : > { %v2328_v61 = vsub.f32 %v13162_v57, %v2304_v34  ;;  %11002 = vpow2.f32 %v2749_v10 }
 0x4e0   : > { %v10993_v48 = vpop.eup %10992  ;;  %v2349_v47 = vmul.f32 1.442695, %v2327_v32  ;;  %9627 = vmatmul.mubr.bf16.vlgmr.msra.gmra.mrb[48].mxu1 %v2402_v56 }
 0x4e1   : > { %v2351_v8 = vmul.f32 1.442695, %v2328_v61  ;;  %v10995_v36 = vpop.eup %10994  ;;  %v2306_v5 = vpop.xlane.xlu0 %2305  ;;  %2373 = vadd.xlane.f32.xlu0 %v10989_v4  ;;  %2777 = vadd.xlane.f32.xlu1 %v10987_v11 }
 0x4e2   : > { %v2308_v51 = vpop.xlane.xlu1 %2307  ;;  %11004 = vpow2.f32 %v2349_v47  ;;  %v2329_v12 = vsub.f32 %v13168_v7, %v2306_v5  ;;  %v2403_v16 = vpack.c.bf16 %v10995_v36, %v10993_v48 }
 0x4e3   : > { %v2330_v45 = vsub.f32 %v13172_v58, %v2308_v51  ;;  %11006 = vpow2.f32 %v2351_v8 }
 0x4e4   : > { %v2353_v9 = vmul.f32 1.442695, %v2329_v12  ;;  %9630 = vmatprep.mubr.bf16.mxu1 %v2403_v16  ;;  %v10997_v49 = vpop.eup %10996 }
 0x4e5   : > { %v2355_v57 = vmul.f32 1.442695, %v2330_v45  ;;  %v2712_v6 = vpop.xlane.xlu0 %2711  ;;  %2375 = vadd.xlane.f32.xlu1 %v10991_v37  ;;  %v10999_v11 = vpop.eup %10998 }
 0x4e6   : > { %v2714_v52 = vpop.xlane.xlu1 %2713  ;;  %11008 = vpow2.f32 %v2353_v9  ;;  %v2733_v19 = vsub.f32 %v13178_v38, %v2712_v6  ;;  %v2806_v10 = vpack.c.bf16 %v10999_v11, %v10997_v49 }
 0x4e7   : > { %v2734_v42 = vsub.f32 %v13182_v13, %v2714_v52  ;;  %11010 = vpow2.f32 %v2355_v57 }
 0x4e8   : > { %v11001_v46 = vpop.eup %11000  ;;  %v2759_v7 = vmul.f32 1.442695, %v2733_v19  ;;  %v10352_v19 = vld [vmem:[%s12557_s22] ss:$8 sps:$4 sm:$0xff]  }
 0x4e9   : > { %v11003_v53 = vpop.eup %11002  ;;  %v2761_v58 = vmul.f32 1.442695, %v2734_v42  ;;  %v2708_v2 = vpop.xlane.xlu0 %2707  ;;  %2779 = vadd.xlane.f32.xlu0 %v11001_v46 }
 0x4ea   : > { %v2710_v41 = vpop.xlane.xlu1 %2709  ;;  %v2731_v54 = vsub.f32 %v13188_v18, %v2708_v2  ;;  %2781 = vadd.xlane.f32.xlu1 %v11003_v53  ;;  %v2805_v63 = vpack.c.bf16 %v11003_v53, %v11001_v46  ;;  %11012 = vpow2.f32 %v2759_v7  ;;  %v10354_v53 = vld [vmem:[%s12557_s22 + $0x4] ss:$8 sps:$4 sm:$0xff]  }
 0x4eb   : > { %v2732_v4 = vsub.f32 %v13192_v50, %v2710_v41  ;;  %11014 = vpow2.f32 %v2761_v58  ;;  %3148 = vmatprep.subr.bf16.mxu0 %v10354_v53  ;;  %v10384_v53 = vld [vmem:[%s12557_s22 + $0xa4] ss:$8 sps:$4 sm:$0xff]  }
 0x4ec   : > { %v11005_v37 = vpop.eup %11004  ;;  %v2755_v38 = vmul.f32 1.442695, %v2731_v54  ;;  %9694 = vmatprep.mubr.bf16.mxu0 %v2805_v63  ;;  %3149 = vmatpush1.bf16.msra.mxu0 %v10352_v19  ;;  %v10355_v63 = vld [vmem:[%s12557_s22 + $0x10] ss:$8 sps:$4 sm:$0xff]   ;;  %v10376_v19 = vld [vmem:[%s12557_s22 + $0x80] ss:$8 sps:$4 sm:$0xff]  }
 0x4ed   : > { %v2757_v13 = vmul.f32 1.442695, %v2732_v4  ;;  %v11007_v17 = vpop.eup %11006  ;;  %9695 = vmatmul.mubr.bf16.gmra.mrb[84].mxu0 %v2806_v10  ;;  %v2310_v34 = vpop.xlane.xlu0 %2309  ;;  %2377 = vadd.xlane.f32.xlu0 %v10993_v48 }
 0x4ee   : > { %v2312_v32 = vpop.xlane.xlu1 %2311  ;;  %11016 = vpow2.f32 %v2755_v38  ;;  %v2331_v61 = vsub.f32 %v13198_v39, %v2310_v34  ;;  %2379 = vadd.xlane.f32.xlu1 %v10995_v36  ;;  %v2404_v50 = vpack.c.bf16 %v11007_v17, %v11005_v37  ;;  %v10357_v38 = vld [vmem:[%s12557_s22 + $0x14] ss:$8 sps:$4 sm:$0xff]  }
 0x4ef   : > { %v2332_v18 = vsub.f32 %v13202_v3, %v2312_v32  ;;  %11018 = vpow2.f32 %v2757_v13  ;;  %3150 = vmatprep.subr.bf16.mxu0 %v10357_v38 }
 0x4f0   : > { %v11009_v56 = vpop.eup %11008  ;;  %v2357_v47 = vmul.f32 1.442695, %v2331_v61  ;;  %9631 = vmatmul.mubr.bf16.gmra.mrb[52].mxu1 %v2404_v50  ;;  %3151 = vmatpush1.bf16.msra.mxu0 %v10355_v63  ;;  %v10394_v63 = vld [vmem:[%s12557_s22 + $0xe0] ss:$8 sps:$4 sm:$0xff]  }
 0x4f1   : > { %v2359_v8 = vmul.f32 1.442695, %v2332_v18  ;;  %v11011_v5 = vpop.eup %11010  ;;  %2783 = vadd.xlane.f32.xlu0 %v10997_v49  ;;  %v2314_v51 = vpop.xlane.xlu0 %2313  ;;  %v10358_v18 = vld [vmem:[%s12557_s22 + $0x20] ss:$8 sps:$4 sm:$0xff]  }
 0x4f2   : > { %v2316_v12 = vpop.xlane.xlu1 %2315  ;;  %11020 = vpow2.f32 %v2357_v47  ;;  %v2333_v45 = vsub.f32 %v13208_v55, %v2314_v51  ;;  %2785 = vadd.xlane.f32.xlu1 %v10999_v11  ;;  %v2405_v39 = vpack.c.bf16 %v11011_v5, %v11009_v56  ;;  %v10363_v47 = vld [vmem:[%s12557_s22 + $0x34] ss:$8 sps:$4 sm:$0xff]  }
 0x4f3   : > { %v2334_v48 = vsub.f32 %v13212_v15, %v2316_v12  ;;  %11022 = vpow2.f32 %v2359_v8  ;;  %v10364_v12 = vld [vmem:[%s12557_s22 + $0x40] ss:$8 sps:$4 sm:$0xff]  }
 0x4f4   : > { %v2361_v3 = vmul.f32 1.442695, %v2333_v45  ;;  %9634 = vmatprep.mubr.bf16.mxu1 %v2405_v39  ;;  %v11013_v57 = vpop.eup %11012  ;;  %v10366_v45 = vld [vmem:[%s12557_s22 + $0x44] ss:$8 sps:$4 sm:$0xff]  }
 0x4f5   : > { %v2363_v36 = vmul.f32 1.442695, %v2334_v48  ;;  %2381 = vadd.xlane.f32.xlu0 %v11005_v37  ;;  %v2720_v16 = vpop.xlane.xlu0 %2719  ;;  %v11015_v52 = vpop.eup %11014 }
 0x4f6   : > { %v2722_v9 = vpop.xlane.xlu1 %2721  ;;  %11024 = vpow2.f32 %v2361_v3  ;;  %v2737_v6 = vsub.f32 %v13218_v60, %v2720_v16  ;;  %2383 = vadd.xlane.f32.xlu1 %v11007_v17  ;;  %v10367_v16 = vld [vmem:[%s12557_s22 + $0x50] ss:$8 sps:$4 sm:$0xff]  }
 0x4f7   : > { %v2738_v55 = vsub.f32 %v13222_v14, %v2722_v9  ;;  %11026 = vpow2.f32 %v2363_v36  ;;  %v2808_v14 = vpack.c.bf16 %v11015_v52, %v11013_v57  ;;  %v10369_v9 = vld [vmem:[%s12557_s22 + $0x54] ss:$8 sps:$4 sm:$0xff]  }
 0x4f8   : > { %v11017_v15 = vpop.eup %11016  ;;  %v2767_v49 = vmul.f32 1.442695, %v2737_v6 }
 0x4f9   : > { %v11019_v42 = vpop.eup %11018  ;;  %v2769_v11 = vmul.f32 1.442695, %v2738_v55  ;;  %2787 = vadd.xlane.f32.xlu0 %v11017_v15  ;;  %v2716_v46 = vpop.xlane.xlu0 %2715  ;;  %v10370_v55 = vld [vmem:[%s12557_s22 + $0x60] ss:$8 sps:$4 sm:$0xff]  }
 0x4fa   : > { %v2718_v7 = vpop.xlane.xlu1 %2717  ;;  %v2735_v58 = vsub.f32 %v13228_v59, %v2716_v46  ;;  %2789 = vadd.xlane.f32.xlu1 %v11019_v42  ;;  %v2807_v2 = vpack.c.bf16 %v11019_v42, %v11017_v15  ;;  %11028 = vpow2.f32 %v2767_v49  ;;  %v10373_v15 = vld [vmem:[%s12557_s22 + $0x70] ss:$8 sps:$4 sm:$0xff]   ;;  %v10375_v49 = vld [vmem:[%s12557_s22 + $0x74] ss:$8 sps:$4 sm:$0xff]   ;;  %v10378_v42 = vld [vmem:[%s12557_s22 + $0x84] ss:$8 sps:$4 sm:$0xff]  }
 0x4fb   : > { %v2736_v60 = vsub.f32 %v13232_v44, %v2718_v7  ;;  %11030 = vpow2.f32 %v2769_v11  ;;  %v10379_v11 = vld [vmem:[%s12557_s22 + $0x90] ss:$8 sps:$4 sm:$0xff]   ;;  %v10381_v46 = vld [vmem:[%s12557_s22 + $0x94] ss:$8 sps:$4 sm:$0xff]   ;;  %v10382_v7 = vld [vmem:[%s12557_s22 + $0xa0] ss:$8 sps:$4 sm:$0xff]  }
 0x4fc   : > { %v11021_v41 = vpop.eup %11020  ;;  %v2763_v54 = vmul.f32 1.442695, %v2735_v58  ;;  %9698 = vmatprep.mubr.bf16.mxu0 %v2807_v2  ;;  %v10385_v58 = vld [vmem:[%s12557_s22 + $0xb0] ss:$8 sps:$4 sm:$0xff]   ;;  %v10390_v2 = vld [vmem:[%s12557_s22 + $0xc4] ss:$8 sps:$4 sm:$0xff]  }
 0x4fd   : > { %v2765_v4 = vmul.f32 1.442695, %v2736_v60  ;;  %v11023_v10 = vpop.eup %11022  ;;  %9699 = vmatmul.mubr.bf16.gmra.mrb[88].mxu0 %v2808_v14  ;;  %2385 = vadd.xlane.f32.xlu0 %v11009_v56  ;;  %v2318_v59 = vpop.xlane.xlu0 %2317  ;;  %v10360_v56 = vld [vmem:[%s12557_s22 + $0x24] ss:$8 sps:$4 sm:$0xff]   ;;  %v10387_v60 = vld [vmem:[%s12557_s22 + $0xb4] ss:$8 sps:$4 sm:$0xff]  }
 0x4fe   : > { %v2320_v37 = vpop.xlane.xlu1 %2319  ;;  %11032 = vpow2.f32 %v2763_v54  ;;  %v2335_v44 = vsub.f32 %v13238_v40, %v2318_v59  ;;  %2387 = vadd.xlane.f32.xlu1 %v11011_v5  ;;  %v2406_v17 = vpack.c.bf16 %v11023_v10, %v11021_v41  ;;  %3152 = vmatprep.subr.bf16.mxu0 %v10360_v56  ;;  %v10388_v14 = vld [vmem:[%s12557_s22 + $0xc0] ss:$8 sps:$4 sm:$0xff]   ;;  %v10391_v54 = vld [vmem:[%s12557_s22 + $0xd0] ss:$8 sps:$4 sm:$0xff]  }
 0x4ff   : > { %v2336_v13 = vsub.f32 %v13242_v43, %v2320_v37  ;;  %11034 = vpow2.f32 %v2765_v4  ;;  %3153 = vmatpush1.bf16.msra.mxu0 %v10358_v18  ;;  %v10361_v43 = vld [vmem:[%s12557_s22 + $0x30] ss:$8 sps:$4 sm:$0xff]   ;;  %v10396_v4 = vld [vmem:[%s12557_s22 + $0xe4] ss:$8 sps:$4 sm:$0xff]  }
 0x500   : > { %v11025_v34 = vpop.eup %11024  ;;  %v2365_v32 = vmul.f32 1.442695, %v2335_v44  ;;  %9635 = vmatmul.mubr.bf16.gmra.mrb[56].mxu1 %v2406_v17  ;;  %3154 = vmatprep.subr.bf16.mxu0 %v10363_v47  ;;  %v10397_v59 = vld [vmem:[%s12557_s22 + $0xf0] ss:$8 sps:$4 sm:$0xff]  }
 0x501   : > { %v2367_v61 = vmul.f32 1.442695, %v2336_v13  ;;  %v11027_v50 = vpop.eup %11026  ;;  %2791 = vadd.xlane.f32.xlu0 %v11013_v57 }
 0x502   : > { %11036 = vpow2.f32 %v2365_v32  ;;  %2793 = vadd.xlane.f32.xlu1 %v11015_v52  ;;  %v2407_v40 = vpack.c.bf16 %v11027_v50, %v11025_v34  ;;  %v10372_v52 = vld [vmem:[%s12557_s22 + $0x64] ss:$8 sps:$4 sm:$0xff]  }
 0x503   : > { %11038 = vpow2.f32 %v2367_v61  ;;  %3155 = vmatpush1.bf16.msra.mxu0 %v10361_v43 }
 0x504   : > { %9638 = vmatprep.mubr.bf16.mxu1 %v2407_v40  ;;  %v11029_v8 = vpop.eup %11028  ;;  %3156 = vmatprep.subr.bf16.mxu0 %v10366_v45 }
 0x505   : > { %2389 = vadd.xlane.f32.xlu0 %v11021_v41  ;;  %v11031_v5 = vpop.eup %11030  ;;  %v10393_v41 = vld [vmem:[%s12557_s22 + $0xd4] ss:$8 sps:$4 sm:$0xff]  }
 0x506   : > { %2391 = vadd.xlane.f32.xlu1 %v11023_v10  ;;  %v2810_v3 = vpack.c.bf16 %v11031_v5, %v11029_v8  ;;  %v10399_v10 = vld [vmem:[%s12557_s22 + $0xf4] ss:$8 sps:$4 sm:$0xff]  }
 0x507   : > { %3157 = vmatpush1.bf16.msra.mxu0 %v10364_v12 }
 0x508   : > { %v11033_v51 = vpop.eup %11032  ;;  %3158 = vmatprep.subr.bf16.mxu0 %v10369_v9 }
 0x509   : > { %v11035_v48 = vpop.eup %11034  ;;  %2795 = vadd.xlane.f32.xlu0 %v11033_v51 }
 0x50a   : > { %2797 = vadd.xlane.f32.xlu1 %v11035_v48  ;;  %v2809_v39 = vpack.c.bf16 %v11035_v48, %v11033_v51 }
 0x50b   : > { %3159 = vmatpush1.bf16.msra.mxu0 %v10367_v16 }
 0x50c   : > { %v11037_v36 = vpop.eup %11036  ;;  %9702 = vmatprep.mubr.bf16.mxu0 %v2809_v39  ;;  %3160 = vmatprep.subr.bf16.mxu0 %v10372_v52 }
 0x50d   : > { %v11039_v57 = vpop.eup %11038  ;;  %9703 = vmatmul.mubr.bf16.gmra.mrb[92].mxu0 %v2810_v3  ;;  %2393 = vadd.xlane.f32.xlu0 %v11025_v34 }
 0x50e   : > { %2395 = vadd.xlane.f32.xlu1 %v11027_v50  ;;  %v2408_v6 = vpack.c.bf16 %v11039_v57, %v11037_v36 }
 0x50f   : > { %3161 = vmatpush1.bf16.msra.mxu0 %v10370_v55 }
 0x510   : > { %9639 = vmatmul.mubr.bf16.gmra.mrb[60].mxu1 %v2408_v6  ;;  %3162 = vmatprep.subr.bf16.mxu0 %v10375_v49 }
 0x511   : > { %2799 = vadd.xlane.f32.xlu0 %v11029_v8 }
 0x512   : > { %2801 = vadd.xlane.f32.xlu1 %v11031_v5 }
 0x513   : > { %3163 = vmatpush1.bf16.msra.mxu0 %v10373_v15 }
 0x514   : > { %3164 = vmatprep.subr.bf16.mxu0 %v10378_v42 }
 0x515   : > { %2397 = vadd.xlane.f32.xlu0 %v11037_v36 }
 0x516   : > { %2399 = vadd.xlane.f32.xlu1 %v11039_v57 }
 0x517   : > { %3165 = vmatpush1.bf16.msra.mxu0 %v10376_v19 }
 0x518   : > { %3166 = vmatprep.subr.bf16.mxu0 %v10381_v46 }
 0x51b   : > { %3167 = vmatpush1.bf16.msra.mxu0 %v10379_v11 }
 0x51c   : > { %3168 = vmatprep.subr.bf16.mxu0 %v10384_v53 }
 0x51f   : > { %3169 = vmatpush1.bf16.msra.mxu0 %v10382_v7 }
 0x520   : > { %3170 = vmatprep.subr.bf16.mxu0 %v10387_v60 }
 0x523   : > { %3171 = vmatpush1.bf16.msra.mxu0 %v10385_v58 }
 0x524   : > { %3172 = vmatprep.subr.bf16.mxu0 %v10390_v2 }
 0x527   : > { %3173 = vmatpush1.bf16.msra.mxu0 %v10388_v14 }
 0x528   : > { %3174 = vmatprep.subr.bf16.mxu0 %v10393_v41 }
 0x52b   : > { %3175 = vmatpush1.bf16.msra.mxu0 %v10391_v54 }
 0x52c   : > { %3176 = vmatprep.subr.bf16.mxu0 %v10396_v4 }
 0x52f   : > { %3177 = vmatpush1.bf16.msra.mxu0 %v10394_v63 }
 0x530   : > { %3178 = vmatprep.subr.bf16.mxu0 %v10399_v10 }
 0x533   : > { %3179 = vmatpush1.bf16.msra.mxu0 %v10397_v59 }
 0x562   : > { %v2772_v38 = vpop.xlane.xlu0 %2771 }
 0x563   : > { %11040 = vrcp.f32 %v2772_v38 }
 0x566   : > { %v2774_v37 = vpop.xlane.xlu1 %2773  ;;  %v2370_v13 = vpop.xlane.xlu0 %2369 }
 0x56a   : > { %v2372_v44 = vpop.xlane.xlu1 %2371  ;;  %v2776_v34 = vpop.xlane.xlu0 %2775 }
 0x56b   : > { %11042 = vrcp.f32 %v2776_v34 }
 0x56d   : > { %v11041_v45 = vpop.eup %11040 }
 0x56e   : > { %v2778_v17 = vpop.xlane.xlu1 %2777  ;;  %v2374_v61 = vpop.xlane.xlu0 %2373 }
 0x56f   : > { %11044 = vrcp.f32 %v2778_v17 }
 0x570   : > { %11046 = vrcp.f32 %v2774_v37 }
 0x571   : > { %11048 = vrcp.f32 %v2370_v13 }
 0x572   : > { %v2376_v32 = vpop.xlane.xlu1 %2375  ;;  %11050 = vrcp.f32 %v2374_v61 }
 0x573   : > { %11052 = vrcp.f32 %v2376_v32 }
 0x574   : > { %11054 = vrcp.f32 %v2372_v44 }
 0x575   : > { %v11043_v39 = vpop.eup %11042 }
 0x576   : > { %v2780_v18 = vpop.xlane.xlu0 %2779 }
 0x577   : > { %v2782_v50 = vpop.xlane.xlu1 %2781  ;;  %11056 = vrcp.f32 %v2780_v18 }
 0x578   : > { %11058 = vrcp.f32 %v2782_v50 }
 0x579   : > { %v11045_v36 = vpop.eup %11044 }
 0x57a   : > { %v2378_v56 = vpop.xlane.xlu0 %2377  ;;  %v11047_v9 = vpop.eup %11046 }
 0x57b   : > { %v2380_v40 = vpop.xlane.xlu1 %2379  ;;  %v11049_v52 = vpop.eup %11048 }
 0x57c   : > { %v11051_v11 = vpop.eup %11050 }
 0x57d   : > { %v11053_v58 = vpop.eup %11052 }
 0x57e   : > { %v2784_v43 = vpop.xlane.xlu0 %2783  ;;  %v11055_v14 = vpop.eup %11054 }
 0x57f   : > { %v2786_v47 = vpop.xlane.xlu1 %2785  ;;  %11060 = vrcp.f32 %v2784_v43 }
 0x580   : > { %11062 = vrcp.f32 %v2786_v47 }
 0x581   : > { %11064 = vrcp.f32 %v2378_v56  ;;  %v11057_v13 = vpop.eup %11056 }
 0x582   : > { %v2382_v8 = vpop.xlane.xlu0 %2381  ;;  %v11059_v34 = vpop.eup %11058 }
 0x583   : > { %v2384_v5 = vpop.xlane.xlu1 %2383  ;;  %11066 = vrcp.f32 %v2382_v8 }
 0x584   : > { %11068 = vrcp.f32 %v2384_v5 }
 0x585   : > { %11070 = vrcp.f32 %v2380_v40 }
 0x586   : > { %v13310_v51 = vpop.xlane.xlu0 %2787 }
 0x587   : > { %v13312_v12 = vpop.xlane.xlu1 %2789  ;;  %11072 = vrcp.f32 %v13310_v51 }
 0x588   : > { %11074 = vrcp.f32 %v13312_v12 }
 0x589   : > { %v11061_v18 = vpop.eup %11060 }
 0x58a   : > { %v13314_v15 = vpop.xlane.xlu0 %2385  ;;  %v11063_v43 = vpop.eup %11062 }
 0x58b   : > { %v13316_v46 = vpop.xlane.xlu1 %2387  ;;  %v11065_v47 = vpop.eup %11064 }
 0x58d   : > { %v11067_v8 = vpop.eup %11066 }
 0x58e   : > { %v2792_v37 = vpop.xlane.xlu0 %2791 }
 0x58f   : > { %v2794_v44 = vpop.xlane.xlu1 %2793  ;;  %11076 = vrcp.f32 %v2792_v37 }
 0x590   : > { %11078 = vrcp.f32 %v2794_v44 }
 0x591   : > { %11080 = vrcp.f32 %v13314_v15 }
 0x592   : > { %v2390_v17 = vpop.xlane.xlu0 %2389 }
 0x593   : > { %v2392_v32 = vpop.xlane.xlu1 %2391  ;;  %11082 = vrcp.f32 %v2390_v17 }
 0x594   : > { %11084 = vrcp.f32 %v2392_v32 }
 0x595   : > { %11086 = vrcp.f32 %v13316_v46 }
 0x5af   : > { %v9692_v48 = vpop.f32.mrb[80].mxu0 }
 0x5b0   : > { %v2845_v3 = vpop.f32.mrb[81].mxu0  ;;  %v2926_v57 = vmul.f32 %v11043_v39, %v9692_v48 }
 0x5b1   : > { %v9693_v16 = vpop.f32.mrb[82].mxu0  ;;  %v2924_v49 = vmul.f32 %v11041_v45, %v2845_v3 }
 0x5b2   : > { %v2927_v6 = vmul.f32 %v11045_v36, %v9693_v16  ;;  %v2848_v55 = vpop.f32.mrb[83].mxu0  ;;  %v11069_v16 = vpop.eup %11068 }
 0x5b3   : > { %v9628_v19 = vpop.f32.mrb[48].mxu1  ;;  %v2925_v42 = vmul.f32 %v11047_v9, %v2848_v55  ;;  %v2796_v9 = vpop.xlane.xlu0 %2795 }
 0x5b4   : > { %v2943_v7 = vpack.c.bf16 %v2927_v6, %v2926_v57  ;;  %v2443_v53 = vpop.f32.mrb[49].mxu1  ;;  %v2524_v41 = vmul.f32 %v11051_v11, %v9628_v19  ;;  %v11071_v55 = vpop.eup %11070  ;;  %11088 = vrcp.f32 %v2796_v9 }
 0x5b5   : > { %v2941_v60 = vpack.c.bf16 %v2925_v42, %v2924_v49  ;;  %v9629_v2 = vpop.f32.mrb[50].mxu1  ;;  %v2522_v63 = vmul.f32 %v11049_v52, %v2443_v53  ;;  %v2798_v52 = vpop.xlane.xlu1 %2797 }
 0x5b6   : > { %v2525_v54 = vmul.f32 %v11053_v58, %v9629_v2  ;;  %v2446_v4 = vpop.f32.mrb[51].mxu1  ;;  %v11073_v2 = vpop.eup %11072  ;;  %11090 = vrcp.f32 %v2798_v52 }
 0x5b7   : > { %v2523_v10 = vmul.f32 %v11055_v14, %v2446_v4  ;;  %3180 = vmatprep.mubr.bf16.mxu0 %v2941_v60  ;;  %v2394_v60 = vpop.xlane.xlu0 %2393  ;;  %v11075_v14 = vpop.eup %11074 }
 0x5b8   : > { %v2942_v59 = vpack.c.bf16 %v2525_v54, %v2524_v41  ;;  %v11077_v54 = vpop.eup %11076 }
 0x5b9   : > { %v2940_v38 = vpack.c.bf16 %v2523_v10, %v2522_v63  ;;  %v2396_v12 = vpop.xlane.xlu1 %2395  ;;  %v11079_v10 = vpop.eup %11078 }
 0x5bb   : > { %3181 = vmatmul.mubr.bf16.vlgmr.msra.gmra.mrb[96].mxu0 %v2940_v38  ;;  %v2800_v4 = vpop.xlane.xlu0 %2799  ;;  %v11081_v38 = vpop.eup %11080 }
 0x5bc   : > { %3190 = vmatprep.mubr.bf16.mxu0 %v2943_v7  ;;  %11092 = vrcp.f32 %v2800_v4 }
 0x5c0   : > { %v9696_v61 = vpop.f32.mrb[84].mxu0 }
 0x5c1   : > { %v2861_v50 = vpop.f32.mrb[85].mxu0  ;;  %v2930_v48 = vmul.f32 %v11061_v18, %v9696_v61 }
 0x5c2   : > { %v9697_v45 = vpop.f32.mrb[86].mxu0  ;;  %v2928_v5 = vmul.f32 %v11057_v13, %v2861_v50 }
 0x5c3   : > { %v2931_v56 = vmul.f32 %v11063_v43, %v9697_v45  ;;  %v9632_v39 = vpop.f32.mrb[52].mxu1  ;;  %v2864_v3 = vpop.f32.mrb[87].mxu0  ;;  %3191 = vmatmul.mubr.bf16.gmra.mrb[100].mxu0 %v2942_v59 }
 0x5c4   : > { %v2929_v36 = vmul.f32 %v11059_v34, %v2864_v3  ;;  %v2459_v40 = vpop.f32.mrb[53].mxu1  ;;  %v2528_v49 = vmul.f32 %v11067_v8, %v9632_v39  ;;  %v2802_v59 = vpop.xlane.xlu1 %2801 }
 0x5c5   : > { %v2947_v57 = vpack.c.bf16 %v2931_v56, %v2930_v48  ;;  %v9633_v6 = vpop.f32.mrb[54].mxu1  ;;  %v2526_v7 = vmul.f32 %v11065_v47, %v2459_v40  ;;  %v11083_v34 = vpop.eup %11082  ;;  %11094 = vrcp.f32 %v2802_v59 }
 0x5c6   : > { %v2945_v19 = vpack.c.bf16 %v2929_v36, %v2928_v5  ;;  %v2529_v42 = vmul.f32 %v11069_v16, %v9633_v6  ;;  %v2462_v11 = vpop.f32.mrb[55].mxu1  ;;  %v11085_v18 = vpop.eup %11084  ;;  %11096 = vrcp.f32 %v2394_v60 }
 0x5c7   : > { %v2527_v53 = vmul.f32 %v11071_v55, %v2462_v11  ;;  %v11087_v45 = vpop.eup %11086  ;;  %v2398_v3 = vpop.xlane.xlu0 %2397 }
 0x5c8   : > { %v2946_v58 = vpack.c.bf16 %v2529_v42, %v2528_v49  ;;  %3200 = vmatprep.mubr.bf16.mxu0 %v2945_v19  ;;  %v2400_v36 = vpop.xlane.xlu1 %2399  ;;  %11098 = vrcp.f32 %v2398_v3  ;;  %v11089_v9 = vpop.eup %11088 }
 0x5c9   : > { %v2944_v51 = vpack.c.bf16 %v2527_v53, %v2526_v7  ;;  %11100 = vrcp.f32 %v2400_v36 }
 0x5ca   : > { %11102 = vrcp.f32 %v2396_v12 }
 0x5cb   : > { %3201 = vmatmul.mubr.bf16.gmra.mrb[104].mxu0 %v2944_v51 }
 0x5cc   : > { %3210 = vmatprep.mubr.bf16.mxu0 %v2947_v57  ;;  %v11091_v57 = vpop.eup %11090 }
 0x5cd   : > { %v11093_v55 = vpop.eup %11092 }
 0x5cf   : > { %v11095_v49 = vpop.eup %11094 }
 0x5d0   : > { %v9700_v41 = vpop.f32.mrb[88].mxu0  ;;  %v11097_v42 = vpop.eup %11096 }
 0x5d1   : > { %v2877_v63 = vpop.f32.mrb[89].mxu0  ;;  %v2934_v15 = vmul.f32 %v11077_v54, %v9700_v41 }
 0x5d2   : > { %v9701_v37 = vpop.f32.mrb[90].mxu0  ;;  %v2932_v32 = vmul.f32 %v11073_v2, %v2877_v63  ;;  %v11099_v51 = vpop.eup %11098 }
 0x5d3   : > { %v2935_v44 = vmul.f32 %v11079_v10, %v9701_v37  ;;  %v9636_v13 = vpop.f32.mrb[56].mxu1  ;;  %v2880_v17 = vpop.f32.mrb[91].mxu0  ;;  %3211 = vmatmul.mubr.bf16.gmra.mrb[108].mxu0 %v2946_v58 }
 0x5d4   : > { %v2933_v46 = vmul.f32 %v11075_v14, %v2880_v17  ;;  %v2475_v61 = vpop.f32.mrb[57].mxu1  ;;  %v2532_v47 = vmul.f32 %v11083_v34, %v9636_v13  ;;  %v11101_v41 = vpop.eup %11100  ;;  %v11168_v34 = vld [vmem:[%s12704_s29] sm:$0xff] }
 0x5d5   : > { %v2951_v50 = vpack.c.bf16 %v2935_v44, %v2934_v15  ;;  %v9637_v43 = vpop.f32.mrb[58].mxu1  ;;  %v2530_v8 = vmul.f32 %v11081_v38, %v2475_v61  ;;  %v11103_v4 = vpop.eup %11102  ;;  %v11169_v61 = vld [vmem:[%s12704_s29 + $0x8] sm:$0xff] }
 0x5d6   : > { %v2949_v48 = vpack.c.bf16 %v2933_v46, %v2932_v32  ;;  %v2533_v56 = vmul.f32 %v11085_v18, %v9637_v43  ;;  %v2478_v39 = vpop.f32.mrb[59].mxu1  ;;  %v11170_v43 = vld [vmem:[%s12704_s29 + $0x10] sm:$0xff] }
 0x5d7   : > { %v2531_v5 = vmul.f32 %v11087_v45, %v2478_v39 }
 0x5d8   : > { %v2950_v40 = vpack.c.bf16 %v2533_v56, %v2532_v47  ;;  %3220 = vmatprep.mubr.bf16.mxu0 %v2949_v48  ;;  %v11171_v48 = vld [vmem:[%s12704_s29 + $0x18] sm:$0xff] }
 0x5d9   : > { %v2948_v16 = vpack.c.bf16 %v2531_v5, %v2530_v8  ;;  %v11172_v5 = vld [vmem:[%s12704_s29 + $0x20] sm:$0xff] }
 0x5db   : > { %3221 = vmatmul.mubr.bf16.gmra.mrb[112].mxu0 %v2948_v16  ;;  %v11173_v16 = vld [vmem:[%s12704_s29 + $0x28] sm:$0xff] }
 0x5dc   : > { %3230 = vmatprep.mubr.bf16.mxu0 %v2951_v50 }
 0x5e0   : > { %v9704_v6 = vpop.f32.mrb[92].mxu0 }
 0x5e1   : > { %v2893_v52 = vpop.f32.mrb[93].mxu0  ;;  %v2938_v11 = vmul.f32 %v11093_v55, %v9704_v6 }
 0x5e2   : > { %v9705_v19 = vpop.f32.mrb[94].mxu0  ;;  %v2936_v60 = vmul.f32 %v11089_v9, %v2893_v52 }
 0x5e3   : > { %v2939_v7 = vmul.f32 %v11095_v49, %v9705_v19  ;;  %v9640_v53 = vpop.f32.mrb[60].mxu1  ;;  %v2896_v58 = vpop.f32.mrb[95].mxu0  ;;  %3231 = vmatmul.mubr.bf16.gmra.mrb[116].mxu0 %v2950_v40  ;;  %v11174_v49 = vld [vmem:[%s12704_s29 + $0x40] sm:$0xff] }
 0x5e4   : > { %v2937_v2 = vmul.f32 %v11091_v57, %v2896_v58  ;;  %v2491_v14 = vpop.f32.mrb[61].mxu1  ;;  %v2536_v63 = vmul.f32 %v11099_v51, %v9640_v53 }
 0x5e5   : > { %v2955_v12 = vpack.c.bf16 %v2939_v7, %v2938_v11  ;;  %v9641_v54 = vpop.f32.mrb[62].mxu1  ;;  %v2534_v38 = vmul.f32 %v11097_v42, %v2491_v14  ;;  %v11175_v11 = vld [vmem:[%s12704_s29 + $0x48] sm:$0xff] }
 0x5e6   : > { %v2953_v10 = vpack.c.bf16 %v2937_v2, %v2936_v60  ;;  %v2537_v59 = vmul.f32 %v11101_v41, %v9641_v54  ;;  %v2494_v37 = vpop.f32.mrb[63].mxu1  ;;  %v11176_v2 = vld [vmem:[%s12704_s29 + $0x60] sm:$0xff] }
 0x5e7   : > { %v2535_v15 = vmul.f32 %v11103_v4, %v2494_v37  ;;  %v11178_v37 = vld [vmem:[%s12704_s29 + $0x80] sm:$0xff] }
 0x5e8   : > { %v2954_v44 = vpack.c.bf16 %v2537_v59, %v2536_v63  ;;  %3240 = vmatprep.mubr.bf16.mxu0 %v2953_v10 }
 0x5e9   : > { %v2952_v13 = vpack.c.bf16 %v2535_v15, %v2534_v38 }
 0x5eb   : > { %3241 = vmatmul.mubr.bf16.gmra.mrb[120].mxu0 %v2952_v13 }
 0x5ec   : > { %3250 = vmatprep.mubr.bf16.mxu0 %v2955_v12  ;;  %v11177_v12 = vld [vmem:[%s12704_s29 + $0x68] sm:$0xff] }
 0x5f3   : > { %3251 = vmatmul.mubr.bf16.gmra.mrb[124].mxu0 %v2954_v44  ;;  %v11179_v44 = vld [vmem:[%s12704_s29 + $0x88] sm:$0xff] }
 0x68e   : > { %v3182_v17 = vpop.f32.mrb[96].mxu0 }
 0x68f   : > { %v13323_v32 = vadd.f32 %v11168_v34, %v3182_v17  ;;  %v3184_v46 = vpop.f32.mrb[97].mxu0 }
 0x690   : > { %v13326_v18 = vadd.f32 %v11169_v61, %v3184_v46  ;;  %v3186_v50 = vpop.f32.mrb[98].mxu0 }
 0x691   : > { %v13329_v45 = vadd.f32 %v11170_v43, %v3186_v50  ;;  %v3188_v47 = vpop.f32.mrb[99].mxu0  ;;  %v11180_v50 = vld [vmem:[%s12704_s29 + $0xa0] sm:$0xff] }
 0x692   : > { %v13332_v56 = vadd.f32 %v11171_v48, %v3188_v47  ;;  %v3295_v39 = vadd.f32 %v13326_v18, %v13323_v32  ;;  %v11181_v48 = vld [vmem:[%s12704_s29 + $0xa8] sm:$0xff] }
 0x694   : > { %3296 = vadd.xlane.f32.xlu0 %v3295_v39  ;;  %v3298_v3 = vadd.f32 %v13332_v56, %v13329_v45 }
 0x696   : > { %3299 = vadd.xlane.f32.xlu1 %v3298_v3  ;;  %v3192_v8 = vpop.f32.mrb[100].mxu0 }
 0x697   : > { %v13339_v36 = vadd.f32 %v11172_v5, %v3192_v8  ;;  %v3194_v40 = vpop.f32.mrb[101].mxu0 }
 0x698   : > { %v13342_v9 = vadd.f32 %v11173_v16, %v3194_v40  ;;  %v13344_v57 = vpop.f32.mrb[102].mxu0  ;;  %v11182_v16 = vld [vmem:[%s12704_s29 + $0xc0] sm:$0xff] }
 0x699   : > { %v13346_v6 = vpop.f32.mrb[103].mxu0 }
 0x69a   : > { %v3301_v55 = vadd.f32 %v13342_v9, %v13339_v36 }
 0x69c   : > { %3302 = vadd.xlane.f32.xlu1 %v3301_v55 }
 0x69e   : > { %v3202_v52 = vpop.f32.mrb[104].mxu0 }
 0x69f   : > { %v13351_v19 = vadd.f32 %v11174_v49, %v3202_v52  ;;  %v3204_v42 = vpop.f32.mrb[105].mxu0  ;;  %v11183_v49 = vld [vmem:[%s12704_s29 + $0xc8] sm:$0xff] }
 0x6a0   : > { %v13354_v7 = vadd.f32 %v11175_v11, %v3204_v42  ;;  %v13356_v53 = vpop.f32.mrb[106].mxu0 }
 0x6a1   : > { %v13358_v58 = vpop.f32.mrb[107].mxu0 }
 0x6a2   : > { %v3307_v51 = vadd.f32 %v13354_v7, %v13351_v19 }
 0x6a4   : > { %3308 = vadd.xlane.f32.xlu1 %v3307_v51 }
 0x6a6   : > { %v3212_v60 = vpop.f32.mrb[108].mxu0 }
 0x6a7   : > { %v13363_v14 = vadd.f32 %v11176_v2, %v3212_v60  ;;  %v3214_v41 = vpop.f32.mrb[109].mxu0 }
 0x6a8   : > { %v13366_v54 = vadd.f32 %v11177_v12, %v3214_v41  ;;  %v3216_v4 = vpop.f32.mrb[110].mxu0  ;;  %v11184_v41 = vld [vmem:[%s12704_s29 + $0xe0] sm:$0xff] }
 0x6a9   : > { %v3218_v63 = vpop.f32.mrb[111].mxu0 }
 0x6aa   : > { %v3313_v10 = vadd.f32 %v13366_v54, %v13363_v14 }
 0x6ac   : > { %3314 = vadd.xlane.f32.xlu1 %v3313_v10 }
 0x6ae   : > { %v3222_v59 = vpop.f32.mrb[112].mxu0 }
 0x6af   : > { %v13371_v38 = vadd.f32 %v11178_v37, %v3222_v59  ;;  %v3224_v15 = vpop.f32.mrb[113].mxu0  ;;  %v11185_v59 = vld [vmem:[%s12704_s29 + $0xe8] sm:$0xff] }
 0x6b0   : > { %v13374_v13 = vadd.f32 %v11179_v44, %v3224_v15  ;;  %v3226_v17 = vpop.f32.mrb[114].mxu0  ;;  %v11186_v44 = vld [vmem:[%s12704_s29 + $0xf0] sm:$0xff] }
 0x6b1   : > { %v3228_v34 = vpop.f32.mrb[115].mxu0 }
 0x6b2   : > { %v3319_v46 = vadd.f32 %v13374_v13, %v13371_v38 }
 0x6b4   : > { %3320 = vadd.xlane.f32.xlu1 %v3319_v46 }
 0x6b6   : > { %v3232_v61 = vpop.f32.mrb[116].mxu0 }
 0x6b7   : > { %v13379_v43 = vadd.f32 %v11180_v50, %v3232_v61  ;;  %v3234_v47 = vpop.f32.mrb[117].mxu0  ;;  %v11187_v50 = vld [vmem:[%s12704_s29 + $0xf8] sm:$0xff] }
 0x6b8   : > { %v13382_v39 = vadd.f32 %v11181_v48, %v3234_v47  ;;  %v3236_v3 = vpop.f32.mrb[118].mxu0 }
 0x6b9   : > { %v3238_v8 = vpop.f32.mrb[119].mxu0 }
 0x6ba   : > { %v3325_v5 = vadd.f32 %v13382_v39, %v13379_v43 }
 0x6bc   : > { %3326 = vadd.xlane.f32.xlu1 %v3325_v5  ;;  %v11188_v5 = vld [vmem:[%s12704_s29 + $0x30] sm:$0xff] }
 0x6be   : > { %v3242_v40 = vpop.f32.mrb[120].mxu0 }
 0x6bf   : > { %v13387_v55 = vadd.f32 %v11182_v16, %v3242_v40  ;;  %v3244_v52 = vpop.f32.mrb[121].mxu0  ;;  %v13410_v40 = vadd.f32 %v11188_v5, %v13344_v57  ;;  %v11189_v16 = vld [vmem:[%s12704_s29 + $0x38] sm:$0xff] }
 0x6c0   : > { %v13390_v42 = vadd.f32 %v11183_v49, %v3244_v52  ;;  %v3246_v11 = vpop.f32.mrb[122].mxu0  ;;  %v13414_v52 = vadd.f32 %v11189_v16, %v13346_v6 }
 0x6c1   : > { %v3248_v51 = vpop.f32.mrb[123].mxu0 }
 0x6c2   : > { %v3331_v60 = vadd.f32 %v13390_v42, %v13387_v55  ;;  %v3304_v6 = vadd.f32 %v13414_v52, %v13410_v40 }
 0x6c4   : > { %3332 = vadd.xlane.f32.xlu1 %v3331_v60  ;;  %v11190_v60 = vld [vmem:[%s12704_s29 + $0x50] sm:$0xff] }
 0x6c6   : > { %v3252_v2 = vpop.f32.mrb[124].mxu0 }
 0x6c7   : > { %v13395_v12 = vadd.f32 %v11184_v41, %v3252_v2  ;;  %v3254_v10 = vpop.f32.mrb[125].mxu0  ;;  %v13420_v2 = vadd.f32 %v11190_v60, %v13356_v53  ;;  %v11191_v41 = vld [vmem:[%s12704_s29 + $0x58] sm:$0xff] }
 0x6c8   : > { %v13398_v37 = vadd.f32 %v11185_v59, %v3254_v10  ;;  %v3256_v15 = vpop.f32.mrb[126].mxu0  ;;  %v13424_v57 = vadd.f32 %v11191_v41, %v13358_v58  ;;  %v11192_v10 = vld [vmem:[%s12704_s29 + $0x70] sm:$0xff] }
 0x6c9   : > { %v13401_v46 = vadd.f32 %v11186_v44, %v3256_v15  ;;  %v3258_v61 = vpop.f32.mrb[127].mxu0  ;;  %v13429_v59 = vadd.f32 %v11192_v10, %v3216_v4  ;;  %v11193_v15 = vld [vmem:[%s12704_s29 + $0x78] sm:$0xff]  ;;  %v11196_v4 = vld [vmem:[%s12704_s29 + $0xb0] sm:$0xff] }
 0x6ca   : > { %v13404_v47 = vadd.f32 %v11187_v50, %v3258_v61  ;;  %v3337_v48 = vadd.f32 %v13398_v37, %v13395_v12  ;;  %v13432_v44 = vadd.f32 %v11193_v15, %v3218_v63  ;;  %v3310_v53 = vadd.f32 %v13424_v57, %v13420_v2  ;;  %v11194_v61 = vld [vmem:[%s12704_s29 + $0x90] sm:$0xff]  ;;  %v11195_v50 = vld [vmem:[%s12704_s29 + $0x98] sm:$0xff] }
 0x6cb   : > { %v13437_v58 = vadd.f32 %v11194_v61, %v3226_v17  ;;  %v13445_v16 = vadd.f32 %v11196_v4, %v3236_v3  ;;  %v11197_v63 = vld [vmem:[%s12704_s29 + $0xb8] sm:$0xff]  ;;  %v11198_v41 = vld [vmem:[%s12704_s29 + $0xd0] sm:$0xff] }
 0x6cc   : > { %3338 = vadd.xlane.f32.xlu1 %v3337_v48  ;;  %v3340_v49 = vadd.f32 %v13404_v47, %v13401_v46  ;;  %v13440_v48 = vadd.f32 %v11195_v50, %v3228_v34  ;;  %v3316_v5 = vadd.f32 %v13432_v44, %v13429_v59  ;;  %v13453_v17 = vadd.f32 %v11198_v41, %v3246_v11 }
 0x6ce   : > { %3341 = vadd.xlane.f32.xlu0 %v3340_v49  ;;  %v13448_v49 = vadd.f32 %v11197_v63, %v3238_v8  ;;  %v3322_v60 = vadd.f32 %v13440_v48, %v13437_v58 }
 0x6d0   : > { %v3328_v10 = vadd.f32 %v13448_v49, %v13445_v16 }
 0x6d2   : > { %3305 = vadd.xlane.f32.xlu0 %v3304_v6  ;;  %v11199_v6 = vld [vmem:[%s12704_s29 + $0xd8] sm:$0xff] }
 0x6d3   : > { %v13456_v34 = vadd.f32 %v11199_v6, %v3248_v51 }
 0x6d5   : > { %v3334_v3 = vadd.f32 %v13456_v34, %v13453_v17 }
 0x6d6   : > { %3311 = vadd.xlane.f32.xlu0 %v3310_v53 }
 0x6da   : > { %3317 = vadd.xlane.f32.xlu0 %v3316_v5 }
 0x6de   : > { %3323 = vadd.xlane.f32.xlu0 %v3322_v60 }
 0x6e2   : > { %3329 = vadd.xlane.f32.xlu0 %v3328_v10 }
 0x6e6   : > { %3335 = vadd.xlane.f32.xlu0 %v3334_v3 }
 0x721   : > { %v3297_v8 = vpop.xlane.xlu0 %3296 }
 0x722   : > { %v3344_v15 = vmul.f32 0.00390625, %v3297_v8 }
 0x723   : > { %v3300_v53 = vpop.xlane.xlu1 %3299 }
 0x724   : > { %v13463_v61 = vsub.f32 %v13323_v32, %v3344_v15  ;;  %v13466_v11 = vsub.f32 %v13326_v18, %v3344_v15  ;;  %v3345_v50 = vmul.f32 0.00390625, %v3300_v53 }
 0x726   : > { %v13469_v51 = vsub.f32 %v13329_v45, %v3345_v50  ;;  %v13472_v5 = vsub.f32 %v13332_v56, %v3345_v50  ;;  %v3392_v4 = vmul.f32 %v13463_v61, %v13463_v61  ;;  %v3393_v63 = vmul.f32 %v13466_v11, %v13466_v11 }
 0x728   : > { %v3424_v60 = vadd.f32 %v3393_v63, %v3392_v4  ;;  %v3394_v32 = vmul.f32 %v13469_v51, %v13469_v51  ;;  %v3395_v18 = vmul.f32 %v13472_v5, %v13472_v5 }
 0x729   : > { %v3303_v41 = vpop.xlane.xlu1 %3302 }
 0x72a   : > { %v3346_v6 = vmul.f32 0.00390625, %v3303_v41  ;;  %3425 = vadd.xlane.f32.xlu0 %v3424_v60  ;;  %v3427_v45 = vadd.f32 %v3395_v18, %v3394_v32 }
 0x72c   : > { %v13483_v56 = vsub.f32 %v13339_v36, %v3346_v6  ;;  %v13486_v10 = vsub.f32 %v13342_v9, %v3346_v6  ;;  %3428 = vadd.xlane.f32.xlu1 %v3427_v45 }
 0x72e   : > { %v3396_v3 = vmul.f32 %v13483_v56, %v13483_v56  ;;  %v3397_v8 = vmul.f32 %v13486_v10, %v13486_v10 }
 0x730   : > { %v3430_v15 = vadd.f32 %v3397_v8, %v3396_v3 }
 0x731   : > { %v3309_v53 = vpop.xlane.xlu1 %3308 }
 0x732   : > { %v3348_v50 = vmul.f32 0.00390625, %v3309_v53  ;;  %3431 = vadd.xlane.f32.xlu1 %v3430_v15 }
 0x734   : > { %v13493_v4 = vsub.f32 %v13351_v19, %v3348_v50  ;;  %v13496_v36 = vsub.f32 %v13354_v7, %v3348_v50 }
 0x736   : > { %v3400_v9 = vmul.f32 %v13493_v4, %v13493_v4  ;;  %v3401_v63 = vmul.f32 %v13496_v36, %v13496_v36 }
 0x738   : > { %v3436_v60 = vadd.f32 %v3401_v63, %v3400_v9 }
 0x739   : > { %v3315_v32 = vpop.xlane.xlu1 %3314 }
 0x73a   : > { %v3350_v18 = vmul.f32 0.00390625, %v3315_v32  ;;  %3437 = vadd.xlane.f32.xlu1 %v3436_v60  ;;  %v10405_v32 = vld [vmem:[%s12563_s18 + $0xc] ss:$16 sps:$4 sm:$0xff]  }
 0x73b   : > { %5521 = vmatprep.subr.bf16.mxu0 %v10405_v32  ;;  %v10417_v32 = vld [vmem:[%s12563_s18 + $0x4c] ss:$16 sps:$4 sm:$0xff]  }
 0x73c   : > { %v13503_v41 = vsub.f32 %v13363_v14, %v3350_v18  ;;  %v13506_v6 = vsub.f32 %v13366_v54, %v3350_v18 }
 0x73e   : > { %v3404_v19 = vmul.f32 %v13503_v41, %v13503_v41  ;;  %v3405_v7 = vmul.f32 %v13506_v6, %v13506_v6 }
 0x740   : > { %v3442_v45 = vadd.f32 %v3405_v7, %v3404_v19  ;;  %v10400_v7 = vld [vmem:[%s12563_s18] ss:$16 sps:$4 sm:$0xff]  }
 0x741   : > { %v3321_v3 = vpop.xlane.xlu1 %3320 }
 0x742   : > { %v3352_v8 = vmul.f32 0.00390625, %v3321_v3  ;;  %3443 = vadd.xlane.f32.xlu1 %v3442_v45  ;;  %v10403_v45 = vld [vmem:[%s12563_s18 + $0x8] ss:$16 sps:$4 sm:$0xff]  }
 0x743   : > { %5522 = vmatpush1.bf16.msra.mxu0 %v10403_v45 }
 0x744   : > { %v13513_v14 = vsub.f32 %v13371_v38, %v3352_v8  ;;  %v13516_v54 = vsub.f32 %v13374_v13, %v3352_v8  ;;  %v10402_v13 = vld [vmem:[%s12563_s18 + $0x4] ss:$16 sps:$4 sm:$0xff]   ;;  %v10411_v8 = vld [vmem:[%s12563_s18 + $0x2c] ss:$16 sps:$4 sm:$0xff]  }
 0x745   : > { %5182 = vmatprep.subr.bf16.mxu1 %v10402_v13  ;;  %5523 = vmatprep.subr.bf16.mxu0 %v10411_v8  ;;  %v10414_v13 = vld [vmem:[%s12563_s18 + $0x44] ss:$16 sps:$4 sm:$0xff]   ;;  %v10418_v8 = vld [vmem:[%s12563_s18 + $0x60] ss:$16 sps:$4 sm:$0xff]  }
 0x746   : > { %v3408_v15 = vmul.f32 %v13513_v14, %v13513_v14  ;;  %v3409_v53 = vmul.f32 %v13516_v54, %v13516_v54  ;;  %5183 = vmatpush1.bf16.msra.mxu1 %v10400_v7  ;;  %v10412_v7 = vld [vmem:[%s12563_s18 + $0x40] ss:$16 sps:$4 sm:$0xff]  }
 0x748   : > { %v3448_v50 = vadd.f32 %v3409_v53, %v3408_v15  ;;  %v10406_v53 = vld [vmem:[%s12563_s18 + $0x20] ss:$16 sps:$4 sm:$0xff]  }
 0x749   : > { %v3327_v9 = vpop.xlane.xlu1 %3326 }
 0x74a   : > { %v3354_v63 = vmul.f32 0.00390625, %v3327_v9  ;;  %3449 = vadd.xlane.f32.xlu1 %v3448_v50  ;;  %v10409_v50 = vld [vmem:[%s12563_s18 + $0x28] ss:$16 sps:$4 sm:$0xff]  }
 0x74b   : > { %5524 = vmatpush1.bf16.msra.mxu0 %v10409_v50 }
 0x74c   : > { %v13523_v60 = vsub.f32 %v13379_v43, %v3354_v63  ;;  %v13526_v38 = vsub.f32 %v13382_v39, %v3354_v63  ;;  %v10408_v39 = vld [vmem:[%s12563_s18 + $0x24] ss:$16 sps:$4 sm:$0xff]   ;;  %5525 = vmatprep.subr.bf16.mxu0 %v10417_v32 }
 0x74d   : > { %5184 = vmatprep.subr.bf16.mxu1 %v10408_v39 }
 0x74e   : > { %v3412_v18 = vmul.f32 %v13523_v60, %v13523_v60  ;;  %v3413_v19 = vmul.f32 %v13526_v38, %v13526_v38  ;;  %5185 = vmatpush1.bf16.msra.mxu1 %v10406_v53 }
 0x74f   : > { %5186 = vmatprep.subr.bf16.mxu1 %v10414_v13 }
 0x750   : > { %v3454_v3 = vadd.f32 %v3413_v19, %v3412_v18 }
 0x751   : > { %v3333_v43 = vpop.xlane.xlu1 %3332 }
 0x752   : > { %v3356_v15 = vmul.f32 0.00390625, %v3333_v43  ;;  %3455 = vadd.xlane.f32.xlu1 %v3454_v3  ;;  %5187 = vmatpush1.bf16.msra.mxu1 %v10412_v7  ;;  %v10420_v3 = vld [vmem:[%s12563_s18 + $0x64] ss:$16 sps:$4 sm:$0xff]   ;;  %v10423_v43 = vld [vmem:[%s12563_s18 + $0x6c] ss:$16 sps:$4 sm:$0xff]  }
 0x753   : > { %5188 = vmatprep.subr.bf16.mxu1 %v10420_v3 }
 0x754   : > { %v13541_v9 = vsub.f32 %v13387_v55, %v3356_v15  ;;  %v13544_v63 = vsub.f32 %v13390_v42, %v3356_v15  ;;  %v10415_v55 = vld [vmem:[%s12563_s18 + $0x48] ss:$16 sps:$4 sm:$0xff]  }
 0x755   : > { %5526 = vmatpush1.bf16.msra.mxu0 %v10415_v55  ;;  %v10421_v15 = vld [vmem:[%s12563_s18 + $0x68] ss:$16 sps:$4 sm:$0xff]  }
 0x756   : > { %v3416_v18 = vmul.f32 %v13541_v9, %v13541_v9  ;;  %v3417_v19 = vmul.f32 %v13544_v63, %v13544_v63  ;;  %5527 = vmatprep.subr.bf16.mxu0 %v10423_v43  ;;  %5189 = vmatpush1.bf16.msra.mxu1 %v10418_v8  ;;  %v10432_v8 = vld [vmem:[%s12563_s18 + $0xa4] ss:$16 sps:$4 sm:$0xff]  }
 0x758   : > { %v3460_v45 = vadd.f32 %v3417_v19, %v3416_v18  ;;  %v10426_v18 = vld [vmem:[%s12563_s18 + $0x84] ss:$16 sps:$4 sm:$0xff]   ;;  %v10429_v19 = vld [vmem:[%s12563_s18 + $0x8c] ss:$16 sps:$4 sm:$0xff]  }
 0x759   : > { %v3339_v42 = vpop.xlane.xlu1 %3338  ;;  %5528 = vmatpush1.bf16.msra.mxu0 %v10421_v15  ;;  %5190 = vmatprep.subr.bf16.mxu1 %v10426_v18  ;;  %v10435_v15 = vld [vmem:[%s12563_s18 + $0xac] ss:$16 sps:$4 sm:$0xff]  }
 0x75a   : > { %v3358_v39 = vmul.f32 0.00390625, %v3339_v42  ;;  %3461 = vadd.xlane.f32.xlu1 %v3460_v45  ;;  %v10424_v45 = vld [vmem:[%s12563_s18 + $0x80] ss:$16 sps:$4 sm:$0xff]   ;;  %v10427_v42 = vld [vmem:[%s12563_s18 + $0x88] ss:$16 sps:$4 sm:$0xff]   ;;  %5529 = vmatprep.subr.bf16.mxu0 %v10429_v19 }
 0x75b   : > { %v3342_v53 = vpop.xlane.xlu0 %3341  ;;  %5191 = vmatpush1.bf16.msra.mxu1 %v10424_v45  ;;  %v10430_v19 = vld [vmem:[%s12563_s18 + $0xa0] ss:$16 sps:$4 sm:$0xff]  }
 0x75c   : > { %v13559_v50 = vsub.f32 %v13395_v12, %v3358_v39  ;;  %v13562_v13 = vsub.f32 %v13398_v37, %v3358_v39  ;;  %v3359_v32 = vmul.f32 0.00390625, %v3342_v53  ;;  %5192 = vmatprep.subr.bf16.mxu1 %v10432_v8  ;;  %v10439_v8 = vld [vmem:[%s12563_s18 + $0xc8] ss:$16 sps:$4 sm:$0xff]  }
 0x75d   : > { %5530 = vmatpush1.bf16.msra.mxu0 %v10427_v42 }
 0x75e   : > { %16019 = vst [vmem:[#allocation59_spill] sm:$0xff] %v13559_v50  ;;  %v13567_v7 = vsub.f32 %v13401_v46, %v3359_v32  ;;  %v13570_v55 = vsub.f32 %v13404_v47, %v3359_v32  ;;  %v3420_v12 = vmul.f32 %v13559_v50, %v13559_v50  ;;  %v3421_v37 = vmul.f32 %v13562_v13, %v13562_v13 }
 0x75f   : > { %v3306_v3 = vpop.xlane.xlu0 %3305  ;;  %5531 = vmatprep.subr.bf16.mxu0 %v10435_v15  ;;  %5193 = vmatpush1.bf16.msra.mxu1 %v10430_v19 }
 0x760   : > { %v3347_v43 = vmul.f32 0.00390625, %v3306_v3  ;;  %v3466_v46 = vadd.f32 %v3421_v37, %v3420_v12  ;;  %v3422_v39 = vmul.f32 %v13567_v7, %v13567_v7  ;;  %v3423_v47 = vmul.f32 %v13570_v55, %v13570_v55  ;;  %v10433_v12 = vld [vmem:[%s12563_s18 + $0xa8] ss:$16 sps:$4 sm:$0xff]   ;;  %v10441_v3 = vld [vmem:[%s12563_s18 + $0xcc] ss:$16 sps:$4 sm:$0xff]  }
 0x761   : > { %5532 = vmatpush1.bf16.msra.mxu0 %v10433_v12  ;;  %v10447_v12 = vld [vmem:[%s12563_s18 + $0xec] ss:$16 sps:$4 sm:$0xff]  }
 0x762   : > { %v13585_v53 = vsub.f32 %v13410_v40, %v3347_v43  ;;  %v13588_v32 = vsub.f32 %v13414_v52, %v3347_v43  ;;  %3467 = vadd.xlane.f32.xlu1 %v3466_v46  ;;  %v3469_v18 = vadd.f32 %v3423_v47, %v3422_v39  ;;  %v10438_v52 = vld [vmem:[%s12563_s18 + $0xc4] ss:$16 sps:$4 sm:$0xff]   ;;  %v10436_v47 = vld [vmem:[%s12563_s18 + $0xc0] ss:$16 sps:$4 sm:$0xff]   ;;  %5533 = vmatprep.subr.bf16.mxu0 %v10441_v3 }
 0x763   : > { %v3312_v37 = vpop.xlane.xlu0 %3311  ;;  %5194 = vmatprep.subr.bf16.mxu1 %v10438_v52  ;;  %v10445_v52 = vld [vmem:[%s12563_s18 + $0xe8] ss:$16 sps:$4 sm:$0xff]  }
 0x764   : > { %v3349_v45 = vmul.f32 0.00390625, %v3312_v37  ;;  %3470 = vadd.xlane.f32.xlu0 %v3469_v18  ;;  %v3398_v42 = vmul.f32 %v13585_v53, %v13585_v53  ;;  %v3399_v40 = vmul.f32 %v13588_v32, %v13588_v32  ;;  %5195 = vmatpush1.bf16.msra.mxu1 %v10436_v47 }
 0x765   : > { %5534 = vmatpush1.bf16.msra.mxu0 %v10439_v8  ;;  %v10453_v8 = vld [vmem:[%s12563_s18 + $0x10c] ss:$16 sps:$4 sm:$0xff]  }
 0x766   : > { %v13599_v43 = vsub.f32 %v13420_v2, %v3349_v45  ;;  %v13602_v46 = vsub.f32 %v13424_v57, %v3349_v45  ;;  %v3433_v39 = vadd.f32 %v3399_v40, %v3398_v42  ;;  %v10444_v57 = vld [vmem:[%s12563_s18 + $0xe4] ss:$16 sps:$4 sm:$0xff]   ;;  %v10442_v40 = vld [vmem:[%s12563_s18 + $0xe0] ss:$16 sps:$4 sm:$0xff]   ;;  %5535 = vmatprep.subr.bf16.mxu0 %v10447_v12 }
 0x767   : > { %v3318_v15 = vpop.xlane.xlu0 %3317  ;;  %5196 = vmatprep.subr.bf16.mxu1 %v10444_v57  ;;  %v10451_v57 = vld [vmem:[%s12563_s18 + $0x108] ss:$16 sps:$4 sm:$0xff]  }
 0x768   : > { %v3351_v18 = vmul.f32 0.00390625, %v3318_v15  ;;  %3434 = vadd.xlane.f32.xlu0 %v3433_v39  ;;  %v3402_v19 = vmul.f32 %v13599_v43, %v13599_v43  ;;  %v3403_v2 = vmul.f32 %v13602_v46, %v13602_v46  ;;  %5197 = vmatpush1.bf16.msra.mxu1 %v10442_v40 }
 0x769   : > { %5536 = vmatpush1.bf16.msra.mxu0 %v10445_v52  ;;  %v10459_v52 = vld [vmem:[%s12563_s18 + $0x12c] ss:$16 sps:$4 sm:$0xff]  }
 0x76a   : > { %v13613_v37 = vsub.f32 %v13429_v59, %v3351_v18  ;;  %v13616_v45 = vsub.f32 %v13432_v44, %v3351_v18  ;;  %v3439_v42 = vadd.f32 %v3403_v2, %v3402_v19  ;;  %v10450_v44 = vld [vmem:[%s12563_s18 + $0x104] ss:$16 sps:$4 sm:$0xff]   ;;  %v10448_v2 = vld [vmem:[%s12563_s18 + $0x100] ss:$16 sps:$4 sm:$0xff]   ;;  %5537 = vmatprep.subr.bf16.mxu0 %v10453_v8 }
 0x76b   : > { %v3324_v3 = vpop.xlane.xlu0 %3323  ;;  %5198 = vmatprep.subr.bf16.mxu1 %v10450_v44  ;;  %v10457_v44 = vld [vmem:[%s12563_s18 + $0x128] ss:$16 sps:$4 sm:$0xff]  }
 0x76c   : > { %v3353_v39 = vmul.f32 0.00390625, %v3324_v3  ;;  %3440 = vadd.xlane.f32.xlu0 %v3439_v42  ;;  %v3406_v47 = vmul.f32 %v13613_v37, %v13613_v37  ;;  %v3407_v59 = vmul.f32 %v13616_v45, %v13616_v45  ;;  %5199 = vmatpush1.bf16.msra.mxu1 %v10448_v2 }
 0x76d   : > { %5538 = vmatpush1.bf16.msra.mxu0 %v10451_v57 }
 0x76e   : > { %v13627_v15 = vsub.f32 %v13437_v58, %v3353_v39  ;;  %v13630_v18 = vsub.f32 %v13440_v48, %v3353_v39  ;;  %v3445_v19 = vadd.f32 %v3407_v59, %v3406_v47  ;;  %v10456_v48 = vld [vmem:[%s12563_s18 + $0x124] ss:$16 sps:$4 sm:$0xff]   ;;  %v10454_v59 = vld [vmem:[%s12563_s18 + $0x120] ss:$16 sps:$4 sm:$0xff]   ;;  %5539 = vmatprep.subr.bf16.mxu0 %v10459_v52 }
 0x76f   : > { %v3330_v12 = vpop.xlane.xlu0 %3329  ;;  %5200 = vmatprep.subr.bf16.mxu1 %v10456_v48  ;;  %v10463_v48 = vld [vmem:[%s12563_s18 + $0x148] ss:$16 sps:$4 sm:$0xff]  }
 0x770   : > { %v3355_v42 = vmul.f32 0.00390625, %v3330_v12  ;;  %3446 = vadd.xlane.f32.xlu0 %v3445_v19  ;;  %v3410_v40 = vmul.f32 %v13627_v15, %v13627_v15  ;;  %v3411_v58 = vmul.f32 %v13630_v18, %v13630_v18  ;;  %5201 = vmatpush1.bf16.msra.mxu1 %v10454_v59  ;;  %v10471_v59 = vld [vmem:[%s12563_s18 + $0x16c] ss:$16 sps:$4 sm:$0xff]  }
 0x771   : > { %5540 = vmatpush1.bf16.msra.mxu0 %v10457_v44  ;;  %v10466_v44 = vld [vmem:[%s12563_s18 + $0x160] ss:$16 sps:$4 sm:$0xff]  }
 0x772   : > { %v13641_v3 = vsub.f32 %v13445_v16, %v3355_v42  ;;  %v13644_v39 = vsub.f32 %v13448_v49, %v3355_v42  ;;  %v3451_v47 = vadd.f32 %v3411_v58, %v3410_v40  ;;  %v10462_v42 = vld [vmem:[%s12563_s18 + $0x144] ss:$16 sps:$4 sm:$0xff]   ;;  %v10465_v40 = vld [vmem:[%s12563_s18 + $0x14c] ss:$16 sps:$4 sm:$0xff]   ;;  %v10460_v58 = vld [vmem:[%s12563_s18 + $0x140] ss:$16 sps:$4 sm:$0xff]  }
 0x773   : > { %v3336_v8 = vpop.xlane.xlu0 %3335  ;;  %5202 = vmatprep.subr.bf16.mxu1 %v10462_v42  ;;  %5541 = vmatprep.subr.bf16.mxu0 %v10465_v40  ;;  %v10480_v42 = vld [vmem:[%s12563_s18 + $0x1a4] ss:$16 sps:$4 sm:$0xff]   ;;  %v10483_v40 = vld [vmem:[%s12563_s18 + $0x1ac] ss:$16 sps:$4 sm:$0xff]  }
 0x774   : > { %v3357_v19 = vmul.f32 0.00390625, %v3336_v8  ;;  %3452 = vadd.xlane.f32.xlu0 %v3451_v47  ;;  %v3414_v2 = vmul.f32 %v13641_v3, %v13641_v3  ;;  %v3415_v16 = vmul.f32 %v13644_v39, %v13644_v39  ;;  %5203 = vmatpush1.bf16.msra.mxu1 %v10460_v58  ;;  %v10468_v47 = vld [vmem:[%s12563_s18 + $0x164] ss:$16 sps:$4 sm:$0xff]   ;;  %v10469_v8 = vld [vmem:[%s12563_s18 + $0x168] ss:$16 sps:$4 sm:$0xff]  }
 0x775   : > { %5542 = vmatpush1.bf16.msra.mxu0 %v10463_v48  ;;  %5204 = vmatprep.subr.bf16.mxu1 %v10468_v47  ;;  %v10478_v58 = vld [vmem:[%s12563_s18 + $0x1a0] ss:$16 sps:$4 sm:$0xff]   ;;  %v10481_v48 = vld [vmem:[%s12563_s18 + $0x1a8] ss:$16 sps:$4 sm:$0xff]  }
 0x776   : > { %v13653_v49 = vsub.f32 %v13453_v17, %v3357_v19  ;;  %v13656_v57 = vsub.f32 %v13456_v34, %v3357_v19  ;;  %v3457_v12 = vadd.f32 %v3415_v16, %v3414_v2  ;;  %5543 = vmatprep.subr.bf16.mxu0 %v10471_v59  ;;  %v10474_v19 = vld [vmem:[%s12563_s18 + $0x184] ss:$16 sps:$4 sm:$0xff]   ;;  %v10477_v2 = vld [vmem:[%s12563_s18 + $0x18c] ss:$16 sps:$4 sm:$0xff]   ;;  %v10472_v16 = vld [vmem:[%s12563_s18 + $0x180] ss:$16 sps:$4 sm:$0xff]  }
 0x777   : > { %v10487_v47 = vld [vmem:[%s12563_s18 + $0x1c8] ss:$16 sps:$4 sm:$0xff]   ;;  %v10492_v59 = vld [vmem:[%s12563_s18 + $0x1e4] ss:$16 sps:$4 sm:$0xff]  }
 0x778   : > { %3458 = vadd.xlane.f32.xlu0 %v3457_v12  ;;  %v3418_v52 = vmul.f32 %v13653_v49, %v13653_v49  ;;  %v3419_v17 = vmul.f32 %v13656_v57, %v13656_v57  ;;  %5205 = vmatpush1.bf16.msra.mxu1 %v10466_v44  ;;  %v10475_v12 = vld [vmem:[%s12563_s18 + $0x188] ss:$16 sps:$4 sm:$0xff]   ;;  %v10495_v44 = vld [vmem:[%s12563_s18 + $0x1ec] ss:$16 sps:$4 sm:$0xff]  }
 0x779   : > { %5544 = vmatpush1.bf16.msra.mxu0 %v10469_v8  ;;  %5206 = vmatprep.subr.bf16.mxu1 %v10474_v19  ;;  %v10490_v8 = vld [vmem:[%s12563_s18 + $0x1e0] ss:$16 sps:$4 sm:$0xff]   ;;  %v10493_v19 = vld [vmem:[%s12563_s18 + $0x1e8] ss:$16 sps:$4 sm:$0xff]  }
 0x77a   : > { %v3463_v34 = vadd.f32 %v3419_v17, %v3418_v52  ;;  %5545 = vmatprep.subr.bf16.mxu0 %v10477_v2  ;;  %v10486_v52 = vld [vmem:[%s12563_s18 + $0x1c4] ss:$16 sps:$4 sm:$0xff]   ;;  %v10489_v17 = vld [vmem:[%s12563_s18 + $0x1cc] ss:$16 sps:$4 sm:$0xff]  }
 0x77b   : > { %v10498_v2 = vld [vmem:[%s12563_s18 + $0x204] ss:$16 sps:$4 sm:$0xff]  }
 0x77c   : > { %3464 = vadd.xlane.f32.xlu0 %v3463_v34  ;;  %5207 = vmatpush1.bf16.msra.mxu1 %v10472_v16  ;;  %v10484_v34 = vld [vmem:[%s12563_s18 + $0x1c0] ss:$16 sps:$4 sm:$0xff]   ;;  %v10501_v16 = vld [vmem:[%s12563_s18 + $0x20c] ss:$16 sps:$4 sm:$0xff]  }
 0x77d   : > { %5546 = vmatpush1.bf16.msra.mxu0 %v10475_v12  ;;  %5208 = vmatprep.subr.bf16.mxu1 %v10480_v42 }
 0x77e   : > { %5547 = vmatprep.subr.bf16.mxu0 %v10483_v40 }
 0x780   : > { %5209 = vmatpush1.bf16.msra.mxu1 %v10478_v58 }
 0x781   : > { %5548 = vmatpush1.bf16.msra.mxu0 %v10481_v48  ;;  %5210 = vmatprep.subr.bf16.mxu1 %v10486_v52 }
 0x782   : > { %5549 = vmatprep.subr.bf16.mxu0 %v10489_v17 }
 0x784   : > { %5211 = vmatpush1.bf16.msra.mxu1 %v10484_v34 }
 0x785   : > { %5550 = vmatpush1.bf16.msra.mxu0 %v10487_v47  ;;  %5212 = vmatprep.subr.bf16.mxu1 %v10492_v59 }
 0x786   : > { %5551 = vmatprep.subr.bf16.mxu0 %v10495_v44 }
 0x788   : > { %5213 = vmatpush1.bf16.msra.mxu1 %v10490_v8 }
 0x789   : > { %5552 = vmatpush1.bf16.msra.mxu0 %v10493_v19  ;;  %5295 = vmatprep.subr.bf16.mxu1 %v10498_v2 }
 0x78a   : > { %5634 = vmatprep.subr.bf16.mxu0 %v10501_v16  ;;  %v3293_v16 = vld [vmem:[%s733_s20] sm:$0x3] }
 0x7b7   : > { %v3426_v42 = vpop.xlane.xlu0 %3425 }
 0x7b8   : > { %v3472_v48 = vmul.f32 0.00390625, %v3426_v42  ;;  %v13692_v42 = vrot.slane %v3293_v16, %v12898_v0 }
 0x7b9   : > { %v3429_v12 = vpop.xlane.xlu1 %3428 }
 0x7ba   : > { %v3473_v58 = vmul.f32 0.00390625, %v3429_v12  ;;  %v3488_v34 = vadd.f32 1e-05, %v3472_v48  ;;  %v3294_v48 = vld [vmem:[%s742_s1] sm:$0x3] }
 0x7bc   : > { %v3489_v17 = vadd.f32 1e-05, %v3473_v58 }
 0x7be   : > { %11104 = vrsqrt.f32 %v3489_v17 }
 0x7bf   : > { %v3432_v40 = vpop.xlane.xlu1 %3431  ;;  %11106 = vrsqrt.f32 %v3488_v34 }
 0x7c0   : > { %v3474_v52 = vmul.f32 0.00390625, %v3432_v40 }
 0x7c2   : > { %v3490_v47 = vadd.f32 1e-05, %v3474_v52  ;;  %v13699_v52 = vrot.slane %v3293_v16, %v12895_v62 }
 0x7c4   : > { %11108 = vrsqrt.f32 %v3490_v47 }
 0x7c7   : > { %v3438_v59 = vpop.xlane.xlu1 %3437 }
 0x7c8   : > { %v3476_v44 = vmul.f32 0.00390625, %v3438_v59  ;;  %v11105_v19 = vpop.eup %11104 }
 0x7c9   : > { %v11107_v2 = vpop.eup %11106  ;;  %v3523_v33 = vmul.f32 %v11105_v19, %v13472_v5  ;;  %v3522_v58 = vmul.f32 %v11105_v19, %v13469_v51  ;;  %v13709_v51 = vrot.slane %v3294_v48, %v12898_v0 }
 0x7ca   : > { %v3492_v8 = vadd.f32 1e-05, %v3476_v44  ;;  %v3521_v40 = vmul.f32 %v11107_v2, %v13466_v11  ;;  %v3520_v17 = vmul.f32 %v11107_v2, %v13463_v61  ;;  %v13706_v11 = vrot.slane %v3294_v48, %v12895_v62 }
 0x7cb   : > { %v3566_v44 = vmul.f32 %v13692_v42, %v3523_v33  ;;  %v3565_v16 = vmul.f32 %v13699_v52, %v3522_v58 }
 0x7cc   : > { %11110 = vrsqrt.f32 %v3492_v8  ;;  %v3564_v19 = vmul.f32 %v13692_v42, %v3521_v40  ;;  %v3563_v61 = vmul.f32 %v13699_v52, %v3520_v17 }
 0x7cd   : > { %v3608_v0 = vadd.f32 %v13706_v11, %v3565_v16 }
 0x7ce   : > { %v11109_v50 = vpop.eup %11108  ;;  %v3607_v48 = vadd.f32 %v13709_v51, %v3564_v19  ;;  %v3606_v58 = vadd.f32 %v13706_v11, %v3563_v61 }
 0x7cf   : > { %v3444_v12 = vpop.xlane.xlu1 %3443  ;;  %v3524_v34 = vmul.f32 %v11109_v50, %v13483_v56  ;;  %v3525_v5 = vmul.f32 %v11109_v50, %v13486_v10  ;;  %v13729_v16 = vmul.f32 %v12502_v21, %v3608_v0 }
 0x7d0   : > { %v3478_v47 = vmul.f32 0.00390625, %v3444_v12  ;;  %v3609_v12 = vadd.f32 %v13709_v51, %v3566_v44  ;;  %v13726_v19 = vmul.f32 %v12499_v20, %v3607_v48 }
 0x7d1   : > { %v3567_v56 = vmul.f32 %v13699_v52, %v3524_v34  ;;  %v3568_v10 = vmul.f32 %v13692_v42, %v3525_v5  ;;  %16021 = vst [vmem:[#allocation61_spill] sm:$0xff] %v13729_v16 }
 0x7d2   : > { %v3494_v2 = vadd.f32 1e-05, %v3478_v47  ;;  %v13723_v47 = vmul.f32 %v12502_v21, %v3609_v12  ;;  %v3671_v48 = vrot.slane %v13726_v19, 7 }
 0x7d3   : > { %v3610_v17 = vadd.f32 %v13706_v11, %v3567_v56  ;;  %v3611_v34 = vadd.f32 %v13709_v51, %v3568_v10  ;;  %v13733_v56 = vmul.f32 %v12499_v20, %v3606_v58  ;;  %v3672_v58 = vrot.slane %v13729_v16, 7 }
 0x7d4   : > { %16020 = vst [vmem:[#allocation60_spill] sm:$0xff] %v13723_v47  ;;  %v3673_v0 = vrot.slane %v13723_v47, 7 }
 0x7d5   : > { %16022 = vst [vmem:[#allocation62_spill] sm:$0xff] %v13733_v56  ;;  %v13736_v10 = vmul.f32 %v12505_v22, %v3610_v17 }
 0x7d6   : > { %v11111_v40 = vpop.eup %11110 }
 0x7d7   : > { %v3450_v44 = vpop.xlane.xlu1 %3449  ;;  %v3529_v61 = vmul.f32 %v11111_v40, %v13496_v36 }
 0x7d9   : > { %v3572_v36 = vmul.f32 %v13692_v42, %v3529_v61 }
 0x7df   : > { %v3456_v61 = vpop.xlane.xlu1 %3455 }
 0x7e0   : > { %v3482_v16 = vmul.f32 0.00390625, %v3456_v61 }
 0x7f1   : > { %v3471_v59 = vpop.xlane.xlu0 %3470 }
 0x7f2   : > { %v3487_v8 = vmul.f32 0.00390625, %v3471_v59 }
 0x7f4   : > { %v3503_v50 = vadd.f32 1e-05, %v3487_v8 }
 0x7f5   : > { %v3435_v33 = vpop.xlane.xlu0 %3434 }
 0x7f6   : > { %11112 = vrsqrt.f32 %v3503_v50  ;;  %v3475_v59 = vmul.f32 0.00390625, %v3435_v33  ;;  %v13739_v50 = vmul.f32 %v12505_v22, %v3611_v34  ;;  %v3480_v33 = vmul.f32 0.00390625, %v3450_v44 }
 0x7f7   : > { %11114 = vrsqrt.f32 %v3494_v2 }
 0x7f8   : > { %v3491_v62 = vadd.f32 1e-05, %v3475_v59 }
 0x7f9   : > { %v3441_v5 = vpop.xlane.xlu0 %3440 }
 0x7fa   : > { %11116 = vrsqrt.f32 %v3491_v62  ;;  %v3477_v8 = vmul.f32 0.00390625, %v3441_v5  ;;  %v3528_v62 = vmul.f32 %v11111_v40, %v13493_v4  ;;  %v3670_v4 = vrot.slane %v13733_v56, 7 }
 0x7fb   : > { %v3615_v40 = vadd.f32 %v13709_v51, %v3572_v36 }
 0x7fc   : > { %v3493_v2 = vadd.f32 1e-05, %v3477_v8  ;;  %v3571_v44 = vmul.f32 %v13699_v52, %v3528_v62  ;;  %v3496_v8 = vadd.f32 1e-05, %v3480_v33  ;;  %v3731_v33 = vsel %vm3702_vm1, %v3670_v4, %v3672_v58 }
 0x7fd   : > { %v3447_v12 = vpop.xlane.xlu0 %3446 }
 0x7fe   : > { %11118 = vrsqrt.f32 %v3493_v2  ;;  %v3479_v59 = vmul.f32 0.00390625, %v3447_v12 }
 0x800   : > { %v11113_v17 = vpop.eup %11112  ;;  %v3495_v34 = vadd.f32 1e-05, %v3479_v59  ;;  %v3732_v59 = vsel %vm3702_vm1, %v3671_v48, %v3673_v0 }
 0x801   : > { %v3550_v2 = vmul.f32 %v11113_v17, %v13567_v7  ;;  %v3551_v12 = vmul.f32 %v11113_v17, %v13570_v55  ;;  %v3453_v22 = vpop.xlane.xlu0 %3452  ;;  %v13756_v20 = vpop.eup %11114  ;;  %v16023_v17 = vrot.slane %v13739_v50, 7 }
 0x802   : > { %11120 = vrsqrt.f32 %v3495_v34  ;;  %v3481_v21 = vmul.f32 0.00390625, %v3453_v22  ;;  %v16024_v34 = vrot.slane %v13736_v10, 7 }
 0x803   : > { %v3593_v5 = vmul.f32 %v13699_v52, %v3550_v2  ;;  %v3594_v62 = vmul.f32 %v13692_v42, %v3551_v12  ;;  %v13767_v22 = vsel %vm3702_vm1, %v3673_v0, %v16023_v17  ;;  %v3614_v2 = vadd.f32 %v13706_v11, %v3571_v44 }
 0x804   : > { %v11117_v7 = vpop.eup %11116  ;;  %v3497_v55 = vadd.f32 1e-05, %v3481_v21  ;;  %v13773_v36 = vsel %vm3702_vm1, %v3672_v58, %v16024_v34  ;;  %11122 = vrsqrt.f32 %v3496_v8  ;;  %v13781_v17 = vmul.f32 %v12511_v24, %v3615_v40 }
 0x805   : > { %v3636_v12 = vadd.f32 %v13706_v11, %v3593_v5  ;;  %v3637_v61 = vadd.f32 %v13709_v51, %v3594_v62  ;;  %v3459_v21 = vpop.xlane.xlu0 %3458  ;;  %v3526_v56 = vmul.f32 %v11117_v7, %v13585_v53  ;;  %v3527_v47 = vmul.f32 %v11117_v7, %v13588_v32 }
 0x806   : > { %11124 = vrsqrt.f32 %v3497_v55  ;;  %v3483_v0 = vmul.f32 0.00390625, %v3459_v21  ;;  %16025 = vst [vmem:[#allocation63_spill] sm:$0xff] %v13781_v17  ;;  %v3533_v58 = vmul.f32 %v13756_v20, %v13506_v6  ;;  %v3498_v62 = vadd.f32 1e-05, %v3482_v16  ;;  %v3462_v21 = vpop.xlane.xlu1 %3461 }
 0x807   : > { %v13786_v44 = vmul.f32 %v12545_v35, %v3636_v12  ;;  %v13789_v5 = vmul.f32 %v12545_v35, %v3637_v61  ;;  %v3569_v53 = vmul.f32 %v13699_v52, %v3526_v56  ;;  %v3570_v32 = vmul.f32 %v13692_v42, %v3527_v47 }
 0x808   : > { %v11119_v8 = vpop.eup %11118  ;;  %v3499_v7 = vadd.f32 1e-05, %v3483_v0 }
 0x809   : > { %16026 = vst [vmem:[#allocation64_spill] sm:$0xff] %v13786_v44  ;;  %16027 = vst [vmem:[#allocation65_spill] sm:$0xff] %v13789_v5  ;;  %v3530_v55 = vmul.f32 %v11119_v8, %v13599_v43  ;;  %v3531_v40 = vmul.f32 %v11119_v8, %v13602_v46  ;;  %v3465_v34 = vpop.xlane.xlu0 %3464  ;;  %v15853_v6 = vrot.slane %v13789_v5, 7  ;;  %v15854_v12 = vrot.slane %v13786_v44, 7 }
 0x80a   : > { %v3612_v61 = vadd.f32 %v13706_v11, %v3569_v53  ;;  %v3613_v35 = vadd.f32 %v13709_v51, %v3570_v32  ;;  %11126 = vrsqrt.f32 %v3499_v7  ;;  %v3485_v16 = vmul.f32 0.00390625, %v3465_v34  ;;  %v3468_v56 = vpop.xlane.xlu1 %3467 }
 0x80b   : > { %v3573_v47 = vmul.f32 %v13699_v52, %v3530_v55  ;;  %v3574_v43 = vmul.f32 %v13692_v42, %v3531_v40  ;;  %v3734_v46 = vsel %vm3702_vm1, %v15853_v6, %v3671_v48  ;;  %v3733_v0 = vsel %vm3702_vm1, %v15854_v12, %v3670_v4  ;;  %v10496_v6 = vld [vmem:[%s12563_s18 + $0x200] ss:$16 sps:$4 sm:$0xff]   ;;  %v10499_v4 = vld [vmem:[%s12563_s18 + $0x208] ss:$16 sps:$4 sm:$0xff]  }
 0x80c   : > { %v11121_v8 = vpop.eup %11120  ;;  %v3576_v53 = vmul.f32 %v13692_v42, %v3533_v58  ;;  %v13818_v32 = vmul.f32 %v12508_v23, %v3612_v61  ;;  %v13821_v48 = vmul.f32 %v12508_v23, %v3613_v35  ;;  %v9282_v7 = vpack.c.bf16 %v3732_v59, %v3734_v46  ;;  %v10798_v23 = vld [vmem:[%s12571_s4 + $0x364] ss:$24 sps:$4 sm:$0xff]  }
 0x80d   : > { %11128 = vrsqrt.f32 %v3498_v62  ;;  %v3484_v55 = vmul.f32 0.00390625, %v3462_v21  ;;  %v3617_v40 = vadd.f32 %v13709_v51, %v3574_v43  ;;  %v3535_v34 = vmul.f32 %v11121_v8, %v13616_v45  ;;  %v10504_v62 = vld [vmem:[%s12563_s18 + $0x224] ss:$16 sps:$4 sm:$0xff]   ;;  %v10505_v43 = vld [vmem:[%s12563_s18 + $0x228] ss:$16 sps:$4 sm:$0xff]  }
 0x80e   : > { %16030 = vst [vmem:[#allocation66_spill] sm:$0xff] %v13821_v48  ;;  %v3616_v12 = vadd.f32 %v13706_v11, %v3573_v47  ;;  %v3501_v58 = vadd.f32 1e-05, %v3485_v16  ;;  %9283 = vmatprep.mubr.msk.bf16.mxu1 %vm13808_vm4, %v9282_v7  ;;  %9295 = vmatprep.mubr.msk.bf16.mxu0 %vm13808_vm4, %v9282_v7  ;;  %v9285_v35 = vpack.c.bf16 %v3731_v33, %v3733_v0  ;;  %v3677_v59 = vrot.slane %v13821_v48, 7  ;;  %v13834_v21 = vpop.eup %11122  ;;  %v10507_v47 = vld [vmem:[%s12563_s18 + $0x22c] ss:$16 sps:$4 sm:$0xff]  }
 0x80f   : > { %v13837_v61 = vmul.f32 %v12514_v25, %v3617_v40  ;;  %v3534_v45 = vmul.f32 %v11121_v8, %v13613_v37  ;;  %v3578_v16 = vmul.f32 %v13692_v42, %v3535_v34  ;;  %v13844_v7 = vmul.f32 %v12511_v24, %v3614_v2  ;;  %v10792_v24 = vld [vmem:[%s12571_s4 + $0x334] ss:$24 sps:$4 sm:$0xff]  }
 0x810   : > { %v11125_v46 = vpop.eup %11124  ;;  %v3532_v33 = vmul.f32 %v13756_v20, %v13503_v41  ;;  %9286 = vmatmul.mubr.msk.bf16.vlgmr.msra.gmra.mrb[64].mxu1 %vm13808_vm4, %v9285_v35  ;;  %9298 = vmatmul.mubr.msk.bf16.vlgmr.msra.gmra.mrb[128].mxu0 %vm13808_vm4, %v9285_v35  ;;  %v16033_v37 = vrot.slane %v13739_v50, 7  ;;  %v3619_v8 = vadd.f32 %v13709_v51, %v3576_v53  ;;  %v3500_v2 = vadd.f32 1e-05, %v3484_v55  ;;  %v10502_v20 = vld [vmem:[%s12563_s18 + $0x220] ss:$16 sps:$4 sm:$0xff]  }
 0x811   : > { %16031 = vst [vmem:[#allocation67_spill] sm:$0xff] %v13837_v61  ;;  %16032 = vst [vmem:[#allocation68_spill] sm:$0xff] %v13844_v7  ;;  %v3621_v40 = vadd.f32 %v13709_v51, %v3578_v16  ;;  %v3539_v34 = vmul.f32 %v11125_v46, %v13630_v18  ;;  %5296 = vmatpush1.bf16.msra.mxu1 %v10496_v6  ;;  %v3537_v41 = vmul.f32 %v13834_v21, %v13516_v54 }
 0x812   : > { %v3728_v0 = vsel %vm3702_vm1, %v16033_v37, %v3677_v59  ;;  %5635 = vmatpush1.bf16.msra.mxu0 %v10499_v4  ;;  %5297 = vmatprep.subr.bf16.mxu1 %v10504_v62  ;;  %v10510_v37 = vld [vmem:[%s12563_s18 + $0x244] ss:$16 sps:$4 sm:$0xff]   ;;  %v3679_v53 = vrot.slane %v13781_v17, 7  ;;  %v15855_v55 = vrot.slane %v13837_v61, 7  ;;  %v13868_v16 = vmul.f32 %v12514_v25, %v3616_v12  ;;  %v10513_v4 = vld [vmem:[%s12563_s18 + $0x24c] ss:$16 sps:$4 sm:$0xff]  }
 0x813   : > { %v3967_v35 = vpack.c.bf16 %v3728_v0, %v13767_v22  ;;  %v3577_v18 = vmul.f32 %v13699_v52, %v3534_v45  ;;  %11130 = vrsqrt.f32 %v3501_v58  ;;  %5636 = vmatprep.subr.bf16.mxu0 %v10507_v47  ;;  %v16035_v54 = vrot.slane %v13818_v32, 7  ;;  %v10784_v25 = vld [vmem:[%s12571_s4 + $0x300] ss:$24 sps:$4 sm:$0xff]  }
 0x814   : > { %16034 = vst [vmem:[#allocation69_spill] sm:$0xff] %v13868_v16  ;;  %v16036_v6 = vrot.slane %v13736_v10, 7  ;;  %v13878_v62 = vpop.eup %11126  ;;  %v13881_v0 = vmul.f32 %v12520_v27, %v3621_v40  ;;  %v3582_v12 = vmul.f32 %v13692_v42, %v3539_v34  ;;  %v3724_v58 = vsel %vm3702_vm1, %v3679_v53, %v15855_v55 }
 0x815   : > { %5224 = vmatprep.mubr.bf16.mxu1 %v3967_v35  ;;  %5563 = vmatprep.mubr.bf16.mxu0 %v3967_v35  ;;  %v3575_v45 = vmul.f32 %v13699_v52, %v3532_v33  ;;  %v13890_v47 = vmul.f32 %v12517_v26, %v3619_v8  ;;  %11132 = vrsqrt.f32 %v3500_v2  ;;  %v3580_v40 = vmul.f32 %v13692_v42, %v3537_v41  ;;  %v10508_v35 = vld [vmem:[%s12563_s18 + $0x240] ss:$16 sps:$4 sm:$0xff]   ;;  %v10511_v2 = vld [vmem:[%s12563_s18 + $0x248] ss:$16 sps:$4 sm:$0xff]  }
 0x816   : > { %v3727_v22 = vsel %vm3702_vm1, %v16036_v6, %v16035_v54  ;;  %16037 = vst [vmem:[#allocation70_spill] sm:$0xff] %v13881_v0  ;;  %v3486_v54 = vmul.f32 0.00390625, %v3468_v56  ;;  %5298 = vmatpush1.bf16.msra.mxu1 %v10502_v20  ;;  %5637 = vmatpush1.bf16.msra.mxu0 %v10505_v43  ;;  %v3726_v6 = vsel %vm3702_vm1, %v3677_v59, %v3679_v53  ;;  %v3680_v43 = vrot.slane %v13868_v16, 7  ;;  %v10516_v59 = vld [vmem:[%s12563_s18 + $0x264] ss:$16 sps:$4 sm:$0xff]  }
 0x817   : > { %16038 = vst [vmem:[#allocation71_spill] sm:$0xff] %v13890_v47  ;;  %v3966_v34 = vpack.c.bf16 %v3727_v22, %v13773_v36  ;;  %5299 = vmatprep.subr.bf16.mxu1 %v10510_v37  ;;  %v13897_v55 = vpop.eup %11128  ;;  %v3620_v33 = vadd.f32 %v13706_v11, %v3577_v18  ;;  %v3538_v8 = vmul.f32 %v11125_v46, %v13627_v15  ;;  %v10519_v56 = vld [vmem:[%s12563_s18 + $0x26c] ss:$16 sps:$4 sm:$0xff]   ;;  %v15856_v37 = vrot.slane %v13881_v0, 7 }
 0x818   : > { %5638 = vmatprep.subr.bf16.mxu0 %v10513_v4  ;;  %v3973_v20 = vpack.c.bf16 %v3724_v58, %v3726_v6  ;;  %v3625_v41 = vadd.f32 %v13709_v51, %v3582_v12  ;;  %v3543_v36 = vmul.f32 %v13878_v62, %v13644_v39  ;;  %v3618_v15 = vadd.f32 %v13706_v11, %v3575_v45  ;;  %v10514_v4 = vld [vmem:[%s12563_s18 + $0x260] ss:$16 sps:$4 sm:$0xff]  }
 0x819   : > { %5225 = vmatmul.mubr.bf16.gmra.mrb[68].mxu1 %v3966_v34  ;;  %5564 = vmatmul.mubr.bf16.gmra.mrb[132].mxu0 %v3966_v34  ;;  %v3536_v46 = vmul.f32 %v13834_v21, %v13513_v14  ;;  %v3502_v53 = vadd.f32 1e-05, %v3486_v54  ;;  %v3678_v18 = vrot.slane %v13844_v7, 7  ;;  %v3623_v22 = vadd.f32 %v13709_v51, %v3580_v40  ;;  %v10517_v21 = vld [vmem:[%s12563_s18 + $0x268] ss:$16 sps:$4 sm:$0xff]  }
 0x81a   : > { %5234 = vmatprep.mubr.bf16.mxu1 %v3973_v20  ;;  %v3541_v39 = vmul.f32 %v13897_v55, %v13526_v38  ;;  %5300 = vmatpush1.bf16.msra.mxu1 %v10508_v35  ;;  %v3683_v12 = vrot.slane %v13890_v47, 7  ;;  %v13919_v58 = vmul.f32 %v12520_v27, %v3620_v33  ;;  %v3581_v14 = vmul.f32 %v13699_v52, %v3538_v8  ;;  %v10522_v54 = vld [vmem:[%s12563_s18 + $0x284] ss:$16 sps:$4 sm:$0xff]  }
 0x81b   : > { %5573 = vmatprep.mubr.bf16.mxu0 %v3973_v20  ;;  %5639 = vmatpush1.bf16.msra.mxu0 %v10511_v2  ;;  %v3723_v45 = vsel %vm3702_vm1, %v3678_v18, %v3680_v43  ;;  %v13929_v38 = vmul.f32 %v12526_v29, %v3625_v41  ;;  %v3586_v40 = vmul.f32 %v13692_v42, %v3543_v36  ;;  %11134 = vrsqrt.f32 %v3502_v53  ;;  %v10525_v20 = vld [vmem:[%s12563_s18 + $0x28c] ss:$16 sps:$4 sm:$0xff]  }
 0x81c   : > { %16039 = vst [vmem:[#allocation72_spill] sm:$0xff] %v13919_v58  ;;  %5301 = vmatprep.subr.bf16.mxu1 %v10516_v59  ;;  %5640 = vmatprep.subr.bf16.mxu0 %v10519_v56  ;;  %v3720_v34 = vsel %vm3702_vm1, %v3683_v12, %v15856_v37  ;;  %v13937_v6 = vmul.f32 %v12517_v26, %v3618_v15  ;;  %v16042_v8 = vrot.slane %v13818_v32, 7  ;;  %v10520_v56 = vld [vmem:[%s12563_s18 + $0x280] ss:$16 sps:$4 sm:$0xff]   ;;  %v16044_v15 = vrot.slane %v13837_v61, 7 }
 0x81d   : > { %16040 = vst [vmem:[#allocation73_spill] sm:$0xff] %v13929_v38  ;;  %v11131_v35 = vpop.eup %11130  ;;  %v3579_v33 = vmul.f32 %v13699_v52, %v3536_v46  ;;  %v13946_v41 = vmul.f32 %v12523_v28, %v3623_v22  ;;  %v3584_v36 = vmul.f32 %v13692_v42, %v3541_v39  ;;  %v3624_v37 = vadd.f32 %v13706_v11, %v3581_v14  ;;  %v10523_v22 = vld [vmem:[%s12563_s18 + $0x288] ss:$16 sps:$4 sm:$0xff]   ;;  %v10528_v39 = vld [vmem:[%s12563_s18 + $0x2a4] ss:$16 sps:$4 sm:$0xff]  }
 0x81e   : > { %16041 = vst [vmem:[#allocation74_spill] sm:$0xff] %v13937_v6  ;;  %v3725_v2 = vsel %vm3702_vm1, %v16042_v8, %v3678_v18  ;;  %5302 = vmatpush1.bf16.msra.mxu1 %v10514_v4  ;;  %v3722_v46 = vsel %vm3702_vm1, %v16044_v15, %v3683_v12  ;;  %v3542_v18 = vmul.f32 %v13878_v62, %v13641_v3  ;;  %v3684_v4 = vrot.slane %v13919_v58, 7  ;;  %v10531_v12 = vld [vmem:[%s12563_s18 + $0x2ac] ss:$16 sps:$4 sm:$0xff]  }
 0x81f   : > { %16043 = vst [vmem:[#allocation75_spill] sm:$0xff] %v13946_v41  ;;  %v3972_v59 = vpack.c.bf16 %v3723_v45, %v3725_v2  ;;  %v11133_v53 = vpop.eup %11132  ;;  %5641 = vmatpush1.bf16.msra.mxu0 %v10517_v21  ;;  %5303 = vmatprep.subr.bf16.mxu1 %v10522_v54  ;;  %v3979_v8 = vpack.c.bf16 %v3720_v34, %v3722_v46  ;;  %v15857_v14 = vrot.slane %v13929_v38, 7  ;;  %v3682_v21 = vrot.slane %v13937_v6, 7 }
 0x820   : > { %v3629_v45 = vadd.f32 %v13709_v51, %v3586_v40  ;;  %v3547_v2 = vmul.f32 %v11131_v35, %v13656_v57  ;;  %v3622_v3 = vadd.f32 %v13706_v11, %v3579_v33  ;;  %v3540_v62 = vmul.f32 %v13897_v55, %v13523_v60  ;;  %5642 = vmatprep.subr.bf16.mxu0 %v10525_v20  ;;  %v10526_v40 = vld [vmem:[%s12563_s18 + $0x2a0] ss:$16 sps:$4 sm:$0xff]   ;;  %v10529_v55 = vld [vmem:[%s12563_s18 + $0x2a8] ss:$16 sps:$4 sm:$0xff]   ;;  %v10534_v20 = vld [vmem:[%s12563_s18 + $0x2c4] ss:$16 sps:$4 sm:$0xff]  }
 0x821   : > { %5235 = vmatmul.mubr.bf16.gmra.mrb[72].mxu1 %v3972_v59  ;;  %5574 = vmatmul.mubr.bf16.gmra.mrb[136].mxu0 %v3972_v59  ;;  %v3627_v54 = vadd.f32 %v13709_v51, %v3584_v36  ;;  %v3545_v57 = vmul.f32 %v11133_v53, %v13544_v63  ;;  %v3687_v34 = vrot.slane %v13946_v41, 7  ;;  %v13973_v33 = vmul.f32 %v12526_v29, %v3624_v37 }
 0x822   : > { %5244 = vmatprep.mubr.bf16.mxu1 %v3979_v8  ;;  %5304 = vmatpush1.bf16.msra.mxu1 %v10520_v56  ;;  %v3585_v60 = vmul.f32 %v13699_v52, %v3542_v18  ;;  %v3719_v63 = vsel %vm3702_vm1, %v3682_v21, %v3684_v4  ;;  %v13983_v36 = vmul.f32 %v12532_v31, %v3629_v45  ;;  %v10537_v18 = vld [vmem:[%s12563_s18 + $0x2cc] ss:$16 sps:$4 sm:$0xff]   ;;  %v10532_v45 = vld [vmem:[%s12563_s18 + $0x2c0] ss:$16 sps:$4 sm:$0xff]  }
 0x823   : > { %5583 = vmatprep.mubr.bf16.mxu0 %v3979_v8  ;;  %16045 = vst [vmem:[#allocation76_spill] sm:$0xff] %v13973_v33  ;;  %5643 = vmatpush1.bf16.msra.mxu0 %v10523_v22  ;;  %v3590_v59 = vmul.f32 %v13692_v42, %v3547_v2  ;;  %v3716_v37 = vsel %vm3702_vm1, %v3687_v34, %v15857_v14  ;;  %v16049_v2 = vrot.slane %v13881_v0, 7  ;;  %v10540_v14 = vld [vmem:[%s12563_s18 + $0x2e4] ss:$16 sps:$4 sm:$0xff]  }
 0x824   : > { %5305 = vmatprep.subr.bf16.mxu1 %v10528_v39  ;;  %16046 = vst [vmem:[#allocation77_spill] sm:$0xff] %v13983_v36  ;;  %5644 = vmatprep.subr.bf16.mxu0 %v10531_v12  ;;  %v13991_v56 = vmul.f32 %v12523_v28, %v3622_v3  ;;  %v3583_v15 = vmul.f32 %v13699_v52, %v3540_v62 }
 0x825   : > { %v3721_v46 = vsel %vm3702_vm1, %v3680_v43, %v3682_v21  ;;  %v14000_v22 = vmul.f32 %v12529_v30, %v3627_v54  ;;  %v3588_v8 = vmul.f32 %v13692_v42, %v3545_v57  ;;  %v3718_v12 = vsel %vm3702_vm1, %v16049_v2, %v3687_v34  ;;  %v11135_v3 = vpop.eup %11134  ;;  %v10535_v21 = vld [vmem:[%s12563_s18 + $0x2c8] ss:$16 sps:$4 sm:$0xff]  }
 0x826   : > { %16047 = vst [vmem:[#allocation78_spill] sm:$0xff] %v13991_v56  ;;  %5306 = vmatpush1.bf16.msra.mxu1 %v10526_v40  ;;  %v3978_v39 = vpack.c.bf16 %v3719_v63, %v3721_v46  ;;  %v3628_v62 = vadd.f32 %v13706_v11, %v3585_v60  ;;  %v3546_v43 = vmul.f32 %v11131_v35, %v13653_v49  ;;  %v3688_v57 = vrot.slane %v13973_v33, 7  ;;  %v10543_v63 = vld [vmem:[%s12563_s18 + $0x2ec] ss:$16 sps:$4 sm:$0xff]  }
 0x827   : > { %16048 = vst [vmem:[#allocation79_spill] sm:$0xff] %v14000_v22  ;;  %5645 = vmatpush1.bf16.msra.mxu0 %v10529_v55  ;;  %5307 = vmatprep.subr.bf16.mxu1 %v10534_v20  ;;  %v3985_v54 = vpack.c.bf16 %v3716_v37, %v3718_v12  ;;  %v3633_v40 = vadd.f32 %v13709_v51, %v3590_v59  ;;  %v15858_v34 = vrot.slane %v13983_v36, 7  ;;  %v3686_v35 = vrot.slane %v13991_v56, 7  ;;  %v10538_v59 = vld [vmem:[%s12563_s18 + $0x2e0] ss:$16 sps:$4 sm:$0xff]  }
 0x828   : > { %v3626_v60 = vadd.f32 %v13706_v11, %v3583_v15  ;;  %v3544_v49 = vmul.f32 %v11133_v53, %v13541_v9  ;;  %5646 = vmatprep.subr.bf16.mxu0 %v10537_v18  ;;  %v3631_v55 = vadd.f32 %v13709_v51, %v3588_v8  ;;  %v3549_v20 = vmul.f32 %v11135_v3, %v13562_v13  ;;  %v10541_v53 = vld [vmem:[%s12563_s18 + $0x2e8] ss:$16 sps:$4 sm:$0xff]   ;;  %v10546_v15 = vld [vmem:[%s12563_s18 + $0x304] ss:$16 sps:$4 sm:$0xff]   ;;  %v10549_v12 = vld [vmem:[%s12563_s18 + $0x30c] ss:$16 sps:$4 sm:$0xff]  }
 0x829   : > { %5245 = vmatmul.mubr.bf16.gmra.mrb[76].mxu1 %v3978_v39  ;;  %5584 = vmatmul.mubr.bf16.gmra.mrb[140].mxu0 %v3978_v39  ;;  %v3691_v37 = vrot.slane %v14000_v22, 7  ;;  %v14024_v46 = vmul.f32 %v12532_v31, %v3628_v62  ;;  %v3589_v9 = vmul.f32 %v13699_v52, %v3546_v43  ;;  %v3715_v13 = vsel %vm3702_vm1, %v3686_v35, %v3688_v57  ;;  %v16051_v18 = vld [vmem:[#allocation54_spill] sm:$0xff]  ;;  %v16054_v62 = vld [vmem:[#allocation53_spill] sm:$0xff] }
 0x82a   : > { %5254 = vmatprep.mubr.bf16.mxu1 %v3985_v54  ;;  %5308 = vmatpush1.bf16.msra.mxu1 %v10532_v45  ;;  %v14034_v8 = vmul.f32 %v16051_v18, %v3633_v40  ;;  %v3587_v45 = vmul.f32 %v13699_v52, %v3544_v49  ;;  %v3717_v2 = vsel %vm3702_vm1, %v3684_v4, %v3686_v35  ;;  %v10544_v40 = vld [vmem:[%s12563_s18 + $0x300] ss:$16 sps:$4 sm:$0xff]   ;;  %v10547_v4 = vld [vmem:[%s12563_s18 + $0x308] ss:$16 sps:$4 sm:$0xff]  }
 0x82b   : > { %5593 = vmatprep.mubr.bf16.mxu0 %v3985_v54  ;;  %16050 = vst [vmem:[#allocation80_spill] sm:$0xff] %v14024_v46  ;;  %5647 = vmatpush1.bf16.msra.mxu0 %v10535_v21  ;;  %v3712_v39 = vsel %vm3702_vm1, %v3691_v37, %v15858_v34  ;;  %v14050_v43 = vmul.f32 %v16054_v62, %v3631_v55  ;;  %v10552_v34 = vld [vmem:[%s12563_s18 + $0x324] ss:$16 sps:$4 sm:$0xff]   ;;  %v3692_v55 = vrot.slane %v14024_v46, 7 }
 0x82c   : > { %5309 = vmatprep.subr.bf16.mxu1 %v10540_v14  ;;  %16052 = vst [vmem:[#allocation81_spill] sm:$0xff] %v14034_v8  ;;  %5648 = vmatprep.subr.bf16.mxu0 %v10543_v63  ;;  %v14041_v14 = vmul.f32 %v12529_v30, %v3626_v60  ;;  %v3592_v21 = vmul.f32 %v13692_v42, %v3549_v20  ;;  %v16056_v63 = vrot.slane %v13929_v38, 7  ;;  %v10555_v42 = vld [vmem:[%s12563_s18 + $0x32c] ss:$16 sps:$4 sm:$0xff]   ;;  %v3697_v20 = vrot.slane %v14034_v8, 7 }
 0x82d   : > { %16055 = vst [vmem:[#allocation83_spill] sm:$0xff] %v14050_v43  ;;  %v3984_v54 = vpack.c.bf16 %v3715_v13, %v3717_v2  ;;  %v3632_v49 = vadd.f32 %v13706_v11, %v3589_v9 }
 0x82e   : > { %16053 = vst [vmem:[#allocation82_spill] sm:$0xff] %v14041_v14  ;;  %5310 = vmatpush1.bf16.msra.mxu1 %v10538_v59  ;;  %v3714_v60 = vsel %vm3702_vm1, %v16056_v63, %v3691_v37  ;;  %v3630_v59 = vadd.f32 %v13706_v11, %v3587_v45  ;;  %v16057_v37 = vld [vmem:[#allocation59_spill] sm:$0xff]  ;;  %v3690_v9 = vrot.slane %v14041_v14, 7  ;;  %v10553_v45 = vld [vmem:[%s12563_s18 + $0x328] ss:$16 sps:$4 sm:$0xff]  }
 0x82f   : > { %5649 = vmatpush1.bf16.msra.mxu0 %v10541_v53  ;;  %5311 = vmatprep.subr.bf16.mxu1 %v10546_v15  ;;  %v3991_v35 = vpack.c.bf16 %v3712_v39, %v3714_v60  ;;  %v3548_v13 = vmul.f32 %v11135_v3, %v16057_v37  ;;  %v3635_v53 = vadd.f32 %v13709_v51, %v3592_v21  ;;  %v10550_v15 = vld [vmem:[%s12563_s18 + $0x320] ss:$16 sps:$4 sm:$0xff]   ;;  %v3695_v39 = vrot.slane %v14050_v43, 7  ;;  %v10564_v37 = vld [vmem:[%s12563_s18 + $0x364] ss:$16 sps:$4 sm:$0xff]  }
 0x830   : > { %5650 = vmatprep.subr.bf16.mxu0 %v10549_v12  ;;  %v14071_v2 = vmul.f32 %v16051_v18, %v3632_v49  ;;  %v3711_v3 = vsel %vm3702_vm1, %v3690_v9, %v3692_v55  ;;  %v10558_v12 = vld [vmem:[%s12563_s18 + $0x344] ss:$16 sps:$4 sm:$0xff]   ;;  %v14080_v21 = vmul.f32 %v16054_v62, %v3630_v59  ;;  %v16060_v63 = vld [vmem:[#allocation55_spill] sm:$0xff] }
 0x831   : > { %5255 = vmatmul.mubr.bf16.gmra.mrb[80].mxu1 %v3984_v54  ;;  %5594 = vmatmul.mubr.bf16.gmra.mrb[144].mxu0 %v3984_v54  ;;  %v3708_v51 = vsel %vm3702_vm1, %v3695_v39, %v3697_v20  ;;  %v3591_v54 = vmul.f32 %v13699_v52, %v3548_v13  ;;  %v14089_v60 = vmul.f32 %v16060_v63, %v3635_v53  ;;  %v10559_v52 = vld [vmem:[%s12563_s18 + $0x348] ss:$16 sps:$4 sm:$0xff]   ;;  %v10567_v13 = vld [vmem:[%s12563_s18 + $0x36c] ss:$16 sps:$4 sm:$0xff]  }
 0x832   : > { %5264 = vmatprep.mubr.bf16.mxu1 %v3991_v35  ;;  %5312 = vmatpush1.bf16.msra.mxu1 %v10544_v40  ;;  %16058 = vst [vmem:[#allocation59_spill] sm:$0xff] %v14071_v2  ;;  %16059 = vst [vmem:[#allocation84_spill] sm:$0xff] %v14080_v21  ;;  %v10561_v40 = vld [vmem:[%s12563_s18 + $0x34c] ss:$16 sps:$4 sm:$0xff]   ;;  %v3694_v53 = vrot.slane %v14080_v21, 7 }
 0x833   : > { %5603 = vmatprep.mubr.bf16.mxu0 %v3991_v35  ;;  %5651 = vmatpush1.bf16.msra.mxu0 %v10547_v4  ;;  %16061 = vst [vmem:[#allocation85_spill] sm:$0xff] %v14089_v60  ;;  %v10556_v4 = vld [vmem:[%s12563_s18 + $0x340] ss:$16 sps:$4 sm:$0xff]   ;;  %v16062_v35 = vrot.slane %v13983_v36, 7 }
 0x834   : > { %5313 = vmatprep.subr.bf16.mxu1 %v10552_v34  ;;  %5652 = vmatprep.subr.bf16.mxu0 %v10555_v42  ;;  %v3713_v34 = vsel %vm3702_vm1, %v3688_v57, %v3690_v9  ;;  %v3696_v57 = vrot.slane %v14071_v2, 7  ;;  %v3634_v9 = vadd.f32 %v13706_v11, %v3591_v54  ;;  %v10570_v11 = vld [vmem:[%s12563_s18 + $0x384] ss:$16 sps:$4 sm:$0xff]   ;;  %v3709_v54 = vsel %vm3702_vm1, %v3692_v55, %v3694_v53  ;;  %v10579_v55 = vld [vmem:[%s12563_s18 + $0x3ac] ss:$16 sps:$4 sm:$0xff]  }
 0x835   : > { %v3990_v49 = vpack.c.bf16 %v3711_v3, %v3713_v34  ;;  %v3710_v42 = vsel %vm3702_vm1, %v16062_v35, %v3695_v39  ;;  %v3699_v39 = vrot.slane %v14089_v60, 7  ;;  %v10573_v34 = vld [vmem:[%s12563_s18 + $0x38c] ss:$16 sps:$4 sm:$0xff]  }
 0x836   : > { %5314 = vmatpush1.bf16.msra.mxu1 %v10550_v15  ;;  %v3997_v59 = vpack.c.bf16 %v3708_v51, %v3710_v42  ;;  %v10562_v15 = vld [vmem:[%s12563_s18 + $0x360] ss:$16 sps:$4 sm:$0xff]   ;;  %v3707_v3 = vsel %vm3702_vm1, %v3694_v53, %v3696_v57  ;;  %v14111_v51 = vmul.f32 %v16060_v63, %v3634_v9  ;;  %v10582_v53 = vld [vmem:[%s12563_s18 + $0x3c4] ss:$16 sps:$4 sm:$0xff]  }
 0x837   : > { %5653 = vmatpush1.bf16.msra.mxu0 %v10553_v45  ;;  %5315 = vmatprep.subr.bf16.mxu1 %v10558_v12  ;;  %v10565_v45 = vld [vmem:[%s12563_s18 + $0x368] ss:$16 sps:$4 sm:$0xff]   ;;  %v3706_v12 = vsel %vm3702_vm1, %v3697_v20, %v3699_v39  ;;  %v10696_v63 = vld [vmem:[%s12571_s4 + $0x34] ss:$24 sps:$4 sm:$0xff]  }
 0x838   : > { %5654 = vmatprep.subr.bf16.mxu0 %v10561_v40  ;;  %16063 = vst [vmem:[#allocation86_spill] sm:$0xff] %v14111_v51  ;;  %v3996_v40 = vpack.c.bf16 %v3707_v3, %v3709_v54  ;;  %v10571_v20 = vld [vmem:[%s12563_s18 + $0x388] ss:$16 sps:$4 sm:$0xff]  }
 0x839   : > { %5265 = vmatmul.mubr.bf16.gmra.mrb[84].mxu1 %v3990_v49  ;;  %5604 = vmatmul.mubr.bf16.gmra.mrb[148].mxu0 %v3990_v49  ;;  %v10568_v49 = vld [vmem:[%s12563_s18 + $0x380] ss:$16 sps:$4 sm:$0xff]   ;;  %v16066_v54 = vld [vmem:[#allocation60_spill] sm:$0xff] }
 0x83a   : > { %5274 = vmatprep.mubr.bf16.mxu1 %v3997_v59  ;;  %5316 = vmatpush1.bf16.msra.mxu1 %v10556_v4  ;;  %v16064_v4 = vrot.slane %v13789_v5, 7 }
 0x83b   : > { %5613 = vmatprep.mubr.bf16.mxu0 %v3997_v59  ;;  %5655 = vmatpush1.bf16.msra.mxu0 %v10559_v52  ;;  %v10576_v52 = vld [vmem:[%s12563_s18 + $0x3a4] ss:$16 sps:$4 sm:$0xff]   ;;  %v3698_v59 = vrot.slane %v14111_v51, 7 }
 0x83c   : > { %5317 = vmatprep.subr.bf16.mxu1 %v10564_v37  ;;  %5656 = vmatprep.subr.bf16.mxu0 %v10567_v13  ;;  %v3704_v35 = vsel %vm3702_vm1, %v3699_v39, %v16064_v4  ;;  %v10574_v37 = vld [vmem:[%s12563_s18 + $0x3a0] ss:$16 sps:$4 sm:$0xff]   ;;  %v10577_v13 = vld [vmem:[%s12563_s18 + $0x3a8] ss:$16 sps:$4 sm:$0xff]  }
 0x83d   : > { %v4003_v42 = vpack.c.bf16 %v3704_v35, %v3706_v12  ;;  %v3705_v9 = vsel %vm3702_vm1, %v3696_v57, %v3698_v59  ;;  %v10583_v12 = vld [vmem:[%s12563_s18 + $0x3c8] ss:$16 sps:$4 sm:$0xff]   ;;  %v3963_v57 = vpack.c.bf16 %v16066_v54, %v13726_v19  ;;  %v10594_v35 = vld [vmem:[%s12563_s18 + $0x404] ss:$16 sps:$4 sm:$0xff]  }
 0x83e   : > { %5318 = vmatpush1.bf16.msra.mxu1 %v10562_v15  ;;  %v16065_v15 = vrot.slane %v13786_v44, 7  ;;  %v10589_v4 = vld [vmem:[%s12563_s18 + $0x3e8] ss:$16 sps:$4 sm:$0xff]  }
 0x83f   : > { %5657 = vmatpush1.bf16.msra.mxu0 %v10565_v45  ;;  %5319 = vmatprep.subr.bf16.mxu1 %v10570_v11  ;;  %v10585_v45 = vld [vmem:[%s12563_s18 + $0x3cc] ss:$16 sps:$4 sm:$0xff]   ;;  %v10580_v11 = vld [vmem:[%s12563_s18 + $0x3c0] ss:$16 sps:$4 sm:$0xff]  }
 0x840   : > { %5658 = vmatprep.subr.bf16.mxu0 %v10573_v34  ;;  %v3703_v39 = vsel %vm3702_vm1, %v3698_v59, %v16065_v15  ;;  %v10588_v34 = vld [vmem:[%s12563_s18 + $0x3e4] ss:$16 sps:$4 sm:$0xff]   ;;  %v10592_v59 = vld [vmem:[%s12563_s18 + $0x400] ss:$16 sps:$4 sm:$0xff]  }
 0x841   : > { %5275 = vmatmul.mubr.bf16.gmra.mrb[88].mxu1 %v3996_v40  ;;  %5614 = vmatmul.mubr.bf16.gmra.mrb[152].mxu0 %v3996_v40  ;;  %v4002_v3 = vpack.c.bf16 %v3703_v39, %v3705_v9  ;;  %v10591_v40 = vld [vmem:[%s12563_s18 + $0x3ec] ss:$16 sps:$4 sm:$0xff]   ;;  %v10600_v9 = vld [vmem:[%s12563_s18 + $0x424] ss:$16 sps:$4 sm:$0xff]   ;;  %v10598_v15 = vld [vmem:[%s12563_s18 + $0x420] ss:$16 sps:$4 sm:$0xff]  }
 0x842   : > { %5284 = vmatprep.mubr.bf16.mxu1 %v4003_v42  ;;  %5320 = vmatpush1.bf16.msra.mxu1 %v10568_v49  ;;  %v10586_v49 = vld [vmem:[%s12563_s18 + $0x3e0] ss:$16 sps:$4 sm:$0xff]   ;;  %v10601_v39 = vld [vmem:[%s12563_s18 + $0x428] ss:$16 sps:$4 sm:$0xff]  }
 0x843   : > { %5623 = vmatprep.mubr.bf16.mxu0 %v4003_v42  ;;  %5659 = vmatpush1.bf16.msra.mxu0 %v10571_v20  ;;  %v10597_v20 = vld [vmem:[%s12563_s18 + $0x40c] ss:$16 sps:$4 sm:$0xff]   ;;  %v16067_v42 = vld [vmem:[#allocation62_spill] sm:$0xff] }
 0x844   : > { %5321 = vmatprep.subr.bf16.mxu1 %v10576_v52  ;;  %5660 = vmatprep.subr.bf16.mxu0 %v10579_v55  ;;  %v16068_v52 = vld [vmem:[#allocation61_spill] sm:$0xff] }
 0x845   : > { %v3962_v55 = vpack.c.bf16 %v16068_v52, %v16067_v42 }
 0x846   : > { %5322 = vmatpush1.bf16.msra.mxu1 %v10574_v37  ;;  %v10595_v37 = vld [vmem:[%s12563_s18 + $0x408] ss:$16 sps:$4 sm:$0xff]  }
 0x847   : > { %5661 = vmatpush1.bf16.msra.mxu0 %v10577_v13  ;;  %5323 = vmatprep.subr.bf16.mxu1 %v10582_v53  ;;  %v3969_v13 = vpack.c.bf16 %v13821_v48, %v13739_v50  ;;  %v10603_v53 = vld [vmem:[%s12563_s18 + $0x42c] ss:$16 sps:$4 sm:$0xff]  }
 0x848   : > { %5662 = vmatprep.subr.bf16.mxu0 %v10585_v45  ;;  %v10606_v45 = vld [vmem:[%s12563_s18 + $0x444] ss:$16 sps:$4 sm:$0xff]  }
 0x849   : > { %5285 = vmatmul.mubr.bf16.gmra.mrb[92].mxu1 %v4002_v3  ;;  %5624 = vmatmul.mubr.bf16.gmra.mrb[156].mxu0 %v4002_v3  ;;  %v10609_v3 = vld [vmem:[%s12563_s18 + $0x44c] ss:$16 sps:$4 sm:$0xff]  }
 0x84a   : > { %5327 = vmatprep.mubr.bf16.mxu1 %v3963_v57  ;;  %5324 = vmatpush1.bf16.msra.mxu1 %v10580_v11  ;;  %v3968_v11 = vpack.c.bf16 %v13818_v32, %v13736_v10 }
 0x84b   : > { %5666 = vmatprep.mubr.bf16.mxu0 %v3963_v57  ;;  %5663 = vmatpush1.bf16.msra.mxu0 %v10583_v12  ;;  %v10604_v12 = vld [vmem:[%s12563_s18 + $0x440] ss:$16 sps:$4 sm:$0xff]   ;;  %v10607_v57 = vld [vmem:[%s12563_s18 + $0x448] ss:$16 sps:$4 sm:$0xff]  }
 0x84c   : > { %5325 = vmatprep.subr.bf16.mxu1 %v10588_v34  ;;  %5664 = vmatprep.subr.bf16.mxu0 %v10591_v40  ;;  %v3975_v34 = vpack.c.bf16 %v13837_v61, %v13781_v17  ;;  %v10612_v40 = vld [vmem:[%s12563_s18 + $0x464] ss:$16 sps:$4 sm:$0xff]  }
 0x84e   : > { %5326 = vmatpush1.bf16.msra.mxu1 %v10586_v49  ;;  %v10615_v49 = vld [vmem:[%s12563_s18 + $0x46c] ss:$16 sps:$4 sm:$0xff]  }
 0x84f   : > { %5665 = vmatpush1.bf16.msra.mxu0 %v10589_v4  ;;  %5408 = vmatprep.subr.bf16.mxu1 %v10594_v35  ;;  %v10610_v4 = vld [vmem:[%s12563_s18 + $0x460] ss:$16 sps:$4 sm:$0xff]   ;;  %v10613_v35 = vld [vmem:[%s12563_s18 + $0x468] ss:$16 sps:$4 sm:$0xff]  }
 0x850   : > { %5747 = vmatprep.subr.bf16.mxu0 %v10597_v20  ;;  %v10618_v20 = vld [vmem:[%s12563_s18 + $0x484] ss:$16 sps:$4 sm:$0xff]  }
 0x851   : > { %5328 = vmatmul.mubr.bf16.vlgmr.msra.gmra.mrb[64].mxu1 %v3962_v55 }
 0x852   : > { %5667 = vmatmul.mubr.bf16.vlgmr.msra.gmra.mrb[128].mxu0 %v3962_v55  ;;  %5337 = vmatprep.mubr.bf16.mxu1 %v3969_v13  ;;  %v10621_v55 = vld [vmem:[%s12563_s18 + $0x48c] ss:$16 sps:$4 sm:$0xff]  }
 0x853   : > { %5409 = vmatpush1.bf16.msra.mxu1 %v10592_v59  ;;  %5676 = vmatprep.mubr.bf16.mxu0 %v3969_v13  ;;  %v3974_v59 = vpack.c.bf16 %v13868_v16, %v13844_v7  ;;  %v10619_v13 = vld [vmem:[%s12563_s18 + $0x488] ss:$16 sps:$4 sm:$0xff]  }
 0x854   : > { %5748 = vmatpush1.bf16.msra.mxu0 %v10595_v37  ;;  %5410 = vmatprep.subr.bf16.mxu1 %v10600_v9  ;;  %v10616_v37 = vld [vmem:[%s12563_s18 + $0x480] ss:$16 sps:$4 sm:$0xff]   ;;  %v3981_v9 = vpack.c.bf16 %v13881_v0, %v13890_v47 }
 0x855   : > { %5749 = vmatprep.subr.bf16.mxu0 %v10603_v53  ;;  %v10624_v53 = vld [vmem:[%s12563_s18 + $0x4a4] ss:$16 sps:$4 sm:$0xff]  }
 0x857   : > { %5411 = vmatpush1.bf16.msra.mxu1 %v10598_v15  ;;  %v10627_v15 = vld [vmem:[%s12563_s18 + $0x4ac] ss:$16 sps:$4 sm:$0xff]  }
 0x858   : > { %5750 = vmatpush1.bf16.msra.mxu0 %v10601_v39  ;;  %5412 = vmatprep.subr.bf16.mxu1 %v10606_v45  ;;  %v10622_v39 = vld [vmem:[%s12563_s18 + $0x4a0] ss:$16 sps:$4 sm:$0xff]   ;;  %v10625_v45 = vld [vmem:[%s12563_s18 + $0x4a8] ss:$16 sps:$4 sm:$0xff]  }
 0x859   : > { %5338 = vmatmul.mubr.bf16.gmra.mrb[68].mxu1 %v3968_v11  ;;  %5751 = vmatprep.subr.bf16.mxu0 %v10609_v3  ;;  %v10630_v3 = vld [vmem:[%s12563_s18 + $0x4c4] ss:$16 sps:$4 sm:$0xff]  }
 0x85a   : > { %5677 = vmatmul.mubr.bf16.gmra.mrb[132].mxu0 %v3968_v11  ;;  %5347 = vmatprep.mubr.bf16.mxu1 %v3975_v34  ;;  %v10633_v11 = vld [vmem:[%s12563_s18 + $0x4cc] ss:$16 sps:$4 sm:$0xff]  }
 0x85b   : > { %5413 = vmatpush1.bf16.msra.mxu1 %v10604_v12  ;;  %5686 = vmatprep.mubr.bf16.mxu0 %v3975_v34  ;;  %v3980_v12 = vpack.c.bf16 %v13919_v58, %v13937_v6  ;;  %v10631_v34 = vld [vmem:[%s12563_s18 + $0x4c8] ss:$16 sps:$4 sm:$0xff]  }
 0x85c   : > { %5752 = vmatpush1.bf16.msra.mxu0 %v10607_v57  ;;  %5414 = vmatprep.subr.bf16.mxu1 %v10612_v40  ;;  %v10628_v57 = vld [vmem:[%s12563_s18 + $0x4c0] ss:$16 sps:$4 sm:$0xff]   ;;  %v3987_v40 = vpack.c.bf16 %v13929_v38, %v13946_v41 }
 0x85d   : > { %5753 = vmatprep.subr.bf16.mxu0 %v10615_v49  ;;  %v10636_v49 = vld [vmem:[%s12563_s18 + $0x4e4] ss:$16 sps:$4 sm:$0xff]  }
 0x85f   : > { %5415 = vmatpush1.bf16.msra.mxu1 %v10610_v4  ;;  %v10639_v4 = vld [vmem:[%s12563_s18 + $0x4ec] ss:$16 sps:$4 sm:$0xff]  }
 0x860   : > { %5754 = vmatpush1.bf16.msra.mxu0 %v10613_v35  ;;  %5416 = vmatprep.subr.bf16.mxu1 %v10618_v20  ;;  %v10634_v35 = vld [vmem:[%s12563_s18 + $0x4e0] ss:$16 sps:$4 sm:$0xff]   ;;  %v10637_v20 = vld [vmem:[%s12563_s18 + $0x4e8] ss:$16 sps:$4 sm:$0xff]  }
 0x861   : > { %5348 = vmatmul.mubr.bf16.gmra.mrb[72].mxu1 %v3974_v59  ;;  %5755 = vmatprep.subr.bf16.mxu0 %v10621_v55  ;;  %v10642_v55 = vld [vmem:[%s12563_s18 + $0x504] ss:$16 sps:$4 sm:$0xff]  }
 0x862   : > { %5687 = vmatmul.mubr.bf16.gmra.mrb[136].mxu0 %v3974_v59  ;;  %5357 = vmatprep.mubr.bf16.mxu1 %v3981_v9  ;;  %v10645_v59 = vld [vmem:[%s12563_s18 + $0x50c] ss:$16 sps:$4 sm:$0xff]  }
 0x863   : > { %5417 = vmatpush1.bf16.msra.mxu1 %v10616_v37  ;;  %5696 = vmatprep.mubr.bf16.mxu0 %v3981_v9  ;;  %v3986_v37 = vpack.c.bf16 %v13973_v33, %v13991_v56  ;;  %v10643_v9 = vld [vmem:[%s12563_s18 + $0x508] ss:$16 sps:$4 sm:$0xff]  }
 0x864   : > { %5756 = vmatpush1.bf16.msra.mxu0 %v10619_v13  ;;  %5418 = vmatprep.subr.bf16.mxu1 %v10624_v53  ;;  %v10640_v13 = vld [vmem:[%s12563_s18 + $0x500] ss:$16 sps:$4 sm:$0xff]   ;;  %v3993_v53 = vpack.c.bf16 %v13983_v36, %v14000_v22 }
 0x865   : > { %5757 = vmatprep.subr.bf16.mxu0 %v10627_v15  ;;  %v10648_v15 = vld [vmem:[%s12563_s18 + $0x524] ss:$16 sps:$4 sm:$0xff]  }
 0x867   : > { %5419 = vmatpush1.bf16.msra.mxu1 %v10622_v39  ;;  %v10651_v39 = vld [vmem:[%s12563_s18 + $0x52c] ss:$16 sps:$4 sm:$0xff]  }
 0x868   : > { %5758 = vmatpush1.bf16.msra.mxu0 %v10625_v45  ;;  %5420 = vmatprep.subr.bf16.mxu1 %v10630_v3  ;;  %v10646_v45 = vld [vmem:[%s12563_s18 + $0x520] ss:$16 sps:$4 sm:$0xff]   ;;  %v10649_v3 = vld [vmem:[%s12563_s18 + $0x528] ss:$16 sps:$4 sm:$0xff]  }
 0x869   : > { %5358 = vmatmul.mubr.bf16.gmra.mrb[76].mxu1 %v3980_v12  ;;  %5759 = vmatprep.subr.bf16.mxu0 %v10633_v11  ;;  %v10654_v11 = vld [vmem:[%s12563_s18 + $0x544] ss:$16 sps:$4 sm:$0xff]  }
 0x86a   : > { %5697 = vmatmul.mubr.bf16.gmra.mrb[140].mxu0 %v3980_v12  ;;  %5367 = vmatprep.mubr.bf16.mxu1 %v3987_v40  ;;  %v10657_v12 = vld [vmem:[%s12563_s18 + $0x54c] ss:$16 sps:$4 sm:$0xff]  }
 0x86b   : > { %5421 = vmatpush1.bf16.msra.mxu1 %v10628_v57  ;;  %5706 = vmatprep.mubr.bf16.mxu0 %v3987_v40  ;;  %v3992_v57 = vpack.c.bf16 %v14024_v46, %v14041_v14  ;;  %v10655_v40 = vld [vmem:[%s12563_s18 + $0x548] ss:$16 sps:$4 sm:$0xff]  }
 0x86c   : > { %5760 = vmatpush1.bf16.msra.mxu0 %v10631_v34  ;;  %5422 = vmatprep.subr.bf16.mxu1 %v10636_v49  ;;  %v10652_v34 = vld [vmem:[%s12563_s18 + $0x540] ss:$16 sps:$4 sm:$0xff]   ;;  %v3999_v49 = vpack.c.bf16 %v14034_v8, %v14050_v43 }
 0x86d   : > { %5761 = vmatprep.subr.bf16.mxu0 %v10639_v4  ;;  %v10660_v4 = vld [vmem:[%s12563_s18 + $0x564] ss:$16 sps:$4 sm:$0xff]  }
 0x86f   : > { %5423 = vmatpush1.bf16.msra.mxu1 %v10634_v35  ;;  %v10663_v35 = vld [vmem:[%s12563_s18 + $0x56c] ss:$16 sps:$4 sm:$0xff]  }
 0x870   : > { %5762 = vmatpush1.bf16.msra.mxu0 %v10637_v20  ;;  %5424 = vmatprep.subr.bf16.mxu1 %v10642_v55  ;;  %v10658_v20 = vld [vmem:[%s12563_s18 + $0x560] ss:$16 sps:$4 sm:$0xff]   ;;  %v10661_v55 = vld [vmem:[%s12563_s18 + $0x568] ss:$16 sps:$4 sm:$0xff]  }
 0x871   : > { %5368 = vmatmul.mubr.bf16.gmra.mrb[80].mxu1 %v3986_v37  ;;  %5763 = vmatprep.subr.bf16.mxu0 %v10645_v59  ;;  %v10666_v59 = vld [vmem:[%s12563_s18 + $0x584] ss:$16 sps:$4 sm:$0xff]  }
 0x872   : > { %5707 = vmatmul.mubr.bf16.gmra.mrb[144].mxu0 %v3986_v37  ;;  %5377 = vmatprep.mubr.bf16.mxu1 %v3993_v53  ;;  %v10669_v37 = vld [vmem:[%s12563_s18 + $0x58c] ss:$16 sps:$4 sm:$0xff]  }
 0x873   : > { %5425 = vmatpush1.bf16.msra.mxu1 %v10640_v13  ;;  %5716 = vmatprep.mubr.bf16.mxu0 %v3993_v53  ;;  %v3998_v13 = vpack.c.bf16 %v14071_v2, %v14080_v21  ;;  %v10667_v53 = vld [vmem:[%s12563_s18 + $0x588] ss:$16 sps:$4 sm:$0xff]  }
 0x874   : > { %5764 = vmatpush1.bf16.msra.mxu0 %v10643_v9  ;;  %5426 = vmatprep.subr.bf16.mxu1 %v10648_v15  ;;  %v10664_v9 = vld [vmem:[%s12563_s18 + $0x580] ss:$16 sps:$4 sm:$0xff]   ;;  %v4005_v15 = vpack.c.bf16 %v13789_v5, %v14089_v60 }
 0x875   : > { %5765 = vmatprep.subr.bf16.mxu0 %v10651_v39  ;;  %v10672_v39 = vld [vmem:[%s12563_s18 + $0x5a4] ss:$16 sps:$4 sm:$0xff]  }
 0x877   : > { %5427 = vmatpush1.bf16.msra.mxu1 %v10646_v45  ;;  %v10675_v45 = vld [vmem:[%s12563_s18 + $0x5ac] ss:$16 sps:$4 sm:$0xff]  }
 0x878   : > { %5766 = vmatpush1.bf16.msra.mxu0 %v10649_v3  ;;  %5428 = vmatprep.subr.bf16.mxu1 %v10654_v11  ;;  %v3820_v3 = vrot.slane %v13739_v50, 1  ;;  %v10670_v11 = vld [vmem:[%s12563_s18 + $0x5a0] ss:$16 sps:$4 sm:$0xff]  }
 0x879   : > { %5378 = vmatmul.mubr.bf16.gmra.mrb[84].mxu1 %v3992_v57  ;;  %5767 = vmatprep.subr.bf16.mxu0 %v10657_v12  ;;  %v3818_v12 = vrot.slane %v16066_v54, 1 }
 0x87a   : > { %5717 = vmatmul.mubr.bf16.gmra.mrb[148].mxu0 %v3992_v57  ;;  %5387 = vmatprep.mubr.bf16.mxu1 %v3999_v49  ;;  %v10673_v57 = vld [vmem:[%s12563_s18 + $0x5a8] ss:$16 sps:$4 sm:$0xff]  }
 0x87b   : > { %5429 = vmatpush1.bf16.msra.mxu1 %v10652_v34  ;;  %5726 = vmatprep.mubr.bf16.mxu0 %v3999_v49  ;;  %v10678_v34 = vld [vmem:[%s12563_s18 + $0x5c4] ss:$16 sps:$4 sm:$0xff]   ;;  %v15859_v49 = vrot.slane %v13726_v19, 1 }
 0x87c   : > { %5768 = vmatpush1.bf16.msra.mxu0 %v10655_v40  ;;  %5430 = vmatprep.subr.bf16.mxu1 %v10660_v4  ;;  %v10681_v40 = vld [vmem:[%s12563_s18 + $0x5cc] ss:$16 sps:$4 sm:$0xff]   ;;  %v3875_v4 = vsel %vm3847_vm5, %v3818_v12, %v3820_v3 }
 0x87d   : > { %5769 = vmatprep.subr.bf16.mxu0 %v10663_v35  ;;  %v4004_v35 = vpack.c.bf16 %v13786_v44, %v14111_v51 }
 0x87f   : > { %5431 = vmatpush1.bf16.msra.mxu1 %v10658_v20  ;;  %v10676_v20 = vld [vmem:[%s12563_s18 + $0x5c0] ss:$16 sps:$4 sm:$0xff]  }
 0x880   : > { %5770 = vmatpush1.bf16.msra.mxu0 %v10661_v55  ;;  %5432 = vmatprep.subr.bf16.mxu1 %v10666_v59  ;;  %v3877_v55 = vsel %vm3847_vm5, %v15859_v49, %v3818_v12  ;;  %v10679_v59 = vld [vmem:[%s12563_s18 + $0x5c8] ss:$16 sps:$4 sm:$0xff]   ;;  %v3824_v12 = vrot.slane %v13781_v17, 1 }
 0x881   : > { %5388 = vmatmul.mubr.bf16.gmra.mrb[88].mxu1 %v3998_v13  ;;  %5771 = vmatprep.subr.bf16.mxu0 %v10669_v37  ;;  %v3965_v37 = vpack.c.bf16 %v3875_v4, %v3877_v55  ;;  %v10693_v4 = vld [vmem:[%s12571_s4 + $0xc] ss:$24 sps:$4 sm:$0xff]   ;;  %v10691_v49 = vld [vmem:[%s12571_s4 + $0x8] ss:$24 sps:$4 sm:$0xff]  }
 0x882   : > { %5727 = vmatmul.mubr.bf16.gmra.mrb[152].mxu0 %v3998_v13  ;;  %5397 = vmatprep.mubr.bf16.mxu1 %v4005_v15  ;;  %v10684_v13 = vld [vmem:[%s12563_s18 + $0x5e4] ss:$16 sps:$4 sm:$0xff]  }
 0x883   : > { %5433 = vmatpush1.bf16.msra.mxu1 %v10664_v9  ;;  %5736 = vmatprep.mubr.bf16.mxu0 %v4005_v15  ;;  %v10687_v9 = vld [vmem:[%s12563_s18 + $0x5ec] ss:$16 sps:$4 sm:$0xff]   ;;  %v3822_v15 = vrot.slane %v13821_v48, 1 }
 0x884   : > { %5772 = vmatpush1.bf16.msra.mxu0 %v10667_v53  ;;  %5434 = vmatprep.subr.bf16.mxu1 %v10672_v39  ;;  %v3819_v53 = vrot.slane %v13736_v10, 1  ;;  %v10682_v39 = vld [vmem:[%s12563_s18 + $0x5e0] ss:$16 sps:$4 sm:$0xff]  }
 0x885   : > { %5773 = vmatprep.subr.bf16.mxu0 %v10675_v45  ;;  %v3817_v45 = vrot.slane %v16068_v52, 1 }
 0x887   : > { %5435 = vmatpush1.bf16.msra.mxu1 %v10670_v11  ;;  %v10685_v11 = vld [vmem:[%s12563_s18 + $0x5e8] ss:$16 sps:$4 sm:$0xff]  }
 0x888   : > { %5774 = vmatpush1.bf16.msra.mxu0 %v10673_v57  ;;  %5436 = vmatprep.subr.bf16.mxu1 %v10678_v34  ;;  %v10690_v57 = vld [vmem:[%s12571_s4 + $0x4] ss:$24 sps:$4 sm:$0xff]   ;;  %v15861_v34 = vrot.slane %v16067_v42, 1 }
 0x889   : > { %5398 = vmatmul.mubr.bf16.gmra.mrb[92].mxu1 %v4004_v35  ;;  %5775 = vmatprep.subr.bf16.mxu0 %v10681_v40  ;;  %v3874_v40 = vsel %vm3847_vm5, %v3817_v45, %v3819_v53 }
 0x88a   : > { %5737 = vmatmul.mubr.bf16.gmra.mrb[156].mxu0 %v4004_v35  ;;  %5440 = vmatprep.mubr.bf16.mxu1 %v3965_v37  ;;  %v3871_v35 = vsel %vm3847_vm5, %v3822_v15, %v3824_v12  ;;  %v3876_v55 = vsel %vm3847_vm5, %v15861_v34, %v3817_v45  ;;  %v3828_v45 = vrot.slane %v13890_v47, 1 }
 0x88b   : > { %5437 = vmatpush1.bf16.msra.mxu1 %v10676_v20  ;;  %5779 = vmatprep.mubr.bf16.mxu0 %v3965_v37  ;;  %v3873_v20 = vsel %vm3847_vm5, %v3820_v3, %v3822_v15  ;;  %v10688_v37 = vld [vmem:[%s12571_s4] ss:$24 sps:$4 sm:$0xff]   ;;  %v3826_v3 = vrot.slane %v13837_v61, 1  ;;  %v10699_v15 = vld [vmem:[%s12571_s4 + $0x3c] ss:$24 sps:$4 sm:$0xff]  }
 0x88c   : > { %5776 = vmatpush1.bf16.msra.mxu0 %v10679_v59  ;;  %5438 = vmatprep.subr.bf16.mxu1 %v10684_v13  ;;  %v3964_v59 = vpack.c.bf16 %v3874_v40, %v3876_v55  ;;  %v3971_v13 = vpack.c.bf16 %v3871_v35, %v3873_v20  ;;  %v10702_v35 = vld [vmem:[%s12571_s4 + $0x64] ss:$24 sps:$4 sm:$0xff]  }
 0x88d   : > { %5777 = vmatprep.subr.bf16.mxu0 %v10687_v9  ;;  %v3821_v9 = vrot.slane %v13818_v32, 1  ;;  %v3867_v20 = vsel %vm3847_vm5, %v3826_v3, %v3828_v45  ;;  %v3869_v55 = vsel %vm3847_vm5, %v3824_v12, %v3826_v3  ;;  %v10711_v12 = vld [vmem:[%s12571_s4 + $0x9c] ss:$24 sps:$4 sm:$0xff]   ;;  %v3827_v3 = vrot.slane %v13937_v6, 1 }
 0x88e   : > { %v3977_v34 = vpack.c.bf16 %v3867_v20, %v3869_v55  ;;  %v10717_v55 = vld [vmem:[%s12571_s4 + $0xcc] ss:$24 sps:$4 sm:$0xff]  }
 0x88f   : > { %5439 = vmatpush1.bf16.msra.mxu1 %v10682_v39  ;;  %v3823_v39 = vrot.slane %v13844_v7, 1  ;;  %v3872_v40 = vsel %vm3847_vm5, %v3819_v53, %v3821_v9  ;;  %v10708_v53 = vld [vmem:[%s12571_s4 + $0x94] ss:$24 sps:$4 sm:$0xff]  }
 0x890   : > { %5778 = vmatpush1.bf16.msra.mxu0 %v10685_v11  ;;  %7108 = vmatprep.subr.bf16.mxu1 %v10690_v57  ;;  %v10694_v11 = vld [vmem:[%s12571_s4 + $0x30] ss:$24 sps:$4 sm:$0xff]  }
 0x891   : > { %7334 = vmatprep.subr.bf16.mxu0 %v10693_v4  ;;  %v3870_v57 = vsel %vm3847_vm5, %v3821_v9, %v3823_v39  ;;  %v10697_v4 = vld [vmem:[%s12571_s4 + $0x38] ss:$24 sps:$4 sm:$0xff]   ;;  %v3830_v9 = vrot.slane %v13881_v0, 1 }
 0x892   : > { %5441 = vmatmul.mubr.bf16.vlgmr.msra.gmra.mrb[64].mxu1 %v3964_v59 }
 0x893   : > { %5780 = vmatmul.mubr.bf16.vlgmr.msra.gmra.mrb[128].mxu0 %v3964_v59  ;;  %5450 = vmatprep.mubr.bf16.mxu1 %v3971_v13  ;;  %v10705_v59 = vld [vmem:[%s12571_s4 + $0x6c] ss:$24 sps:$4 sm:$0xff]   ;;  %v3865_v20 = vsel %vm3847_vm5, %v3828_v45, %v3830_v9  ;;  %v10723_v45 = vld [vmem:[%s12571_s4 + $0xfc] ss:$24 sps:$4 sm:$0xff]  }
 0x894   : > { %5789 = vmatprep.mubr.bf16.mxu0 %v3971_v13  ;;  %7109 = vmatpush1.bf16.msra.mxu1 %v10688_v37  ;;  %v3970_v37 = vpack.c.bf16 %v3870_v57, %v3872_v40  ;;  %v10700_v13 = vld [vmem:[%s12571_s4 + $0x60] ss:$24 sps:$4 sm:$0xff]  }
 0x895   : > { %7335 = vmatpush1.bf16.msra.mxu0 %v10691_v49  ;;  %7110 = vmatprep.subr.bf16.mxu1 %v10696_v63  ;;  %v3825_v49 = vrot.slane %v13868_v16, 1  ;;  %v10703_v63 = vld [vmem:[%s12571_s4 + $0x68] ss:$24 sps:$4 sm:$0xff]  }
 0x896   : > { %7336 = vmatprep.subr.bf16.mxu0 %v10699_v15  ;;  %v3832_v15 = vrot.slane %v13946_v41, 1 }
 0x897   : > { %v3866_v57 = vsel %vm3847_vm5, %v3825_v49, %v3827_v3  ;;  %v3868_v40 = vsel %vm3847_vm5, %v3823_v39, %v3825_v49  ;;  %v3829_v39 = vrot.slane %v13919_v58, 1  ;;  %v10715_v49 = vld [vmem:[%s12571_s4 + $0xc8] ss:$24 sps:$4 sm:$0xff]  }
 0x898   : > { %7111 = vmatpush1.bf16.msra.mxu1 %v10694_v11  ;;  %v10706_v11 = vld [vmem:[%s12571_s4 + $0x90] ss:$24 sps:$4 sm:$0xff]  }
 0x899   : > { %7337 = vmatpush1.bf16.msra.mxu0 %v10697_v4  ;;  %7112 = vmatprep.subr.bf16.mxu1 %v10702_v35  ;;  %v10709_v4 = vld [vmem:[%s12571_s4 + $0x98] ss:$24 sps:$4 sm:$0xff]   ;;  %v10714_v35 = vld [vmem:[%s12571_s4 + $0xc4] ss:$24 sps:$4 sm:$0xff]  }
 0x89a   : > { %5451 = vmatmul.mubr.bf16.gmra.mrb[68].mxu1 %v3970_v37  ;;  %7338 = vmatprep.subr.bf16.mxu0 %v10705_v59  ;;  %v3976_v59 = vpack.c.bf16 %v3866_v57, %v3868_v40  ;;  %v3864_v40 = vsel %vm3847_vm5, %v3827_v3, %v3829_v39  ;;  %v3833_v3 = vrot.slane %v13973_v33, 1 }
 0x89b   : > { %5790 = vmatmul.mubr.bf16.gmra.mrb[132].mxu0 %v3970_v37  ;;  %5460 = vmatprep.mubr.bf16.mxu1 %v3977_v34  ;;  %v10712_v37 = vld [vmem:[%s12571_s4 + $0xc0] ss:$24 sps:$4 sm:$0xff]  }
 0x89c   : > { %5799 = vmatprep.mubr.bf16.mxu0 %v3977_v34  ;;  %7113 = vmatpush1.bf16.msra.mxu1 %v10700_v13  ;;  %v3863_v34 = vsel %vm3847_vm5, %v3830_v9, %v3832_v15  ;;  %v3831_v9 = vrot.slane %v13991_v56, 1 }
 0x89d   : > { %7339 = vmatpush1.bf16.msra.mxu0 %v10703_v63  ;;  %7114 = vmatprep.subr.bf16.mxu1 %v10708_v53  ;;  %v3983_v13 = vpack.c.bf16 %v3863_v34, %v3865_v20  ;;  %v10720_v63 = vld [vmem:[%s12571_s4 + $0xf4] ss:$24 sps:$4 sm:$0xff]   ;;  %v3834_v53 = vrot.slane %v13929_v38, 1 }
 0x89e   : > { %7340 = vmatprep.subr.bf16.mxu0 %v10711_v12  ;;  %v3836_v12 = vrot.slane %v14000_v22, 1  ;;  %v3862_v57 = vsel %vm3847_vm5, %v3829_v39, %v3831_v9  ;;  %v10727_v39 = vld [vmem:[%s12571_s4 + $0x128] ss:$24 sps:$4 sm:$0xff]  }
 0x89f   : > { %v3861_v20 = vsel %vm3847_vm5, %v3832_v15, %v3834_v53  ;;  %v10735_v15 = vld [vmem:[%s12571_s4 + $0x15c] ss:$24 sps:$4 sm:$0xff]  }
 0x8a0   : > { %7115 = vmatpush1.bf16.msra.mxu1 %v10706_v11  ;;  %v10718_v11 = vld [vmem:[%s12571_s4 + $0xf0] ss:$24 sps:$4 sm:$0xff]   ;;  %v3859_v34 = vsel %vm3847_vm5, %v3834_v53, %v3836_v12  ;;  %v3835_v53 = vrot.slane %v14041_v14, 1 }
 0x8a1   : > { %7341 = vmatpush1.bf16.msra.mxu0 %v10709_v4  ;;  %7116 = vmatprep.subr.bf16.mxu1 %v10714_v35  ;;  %v10721_v4 = vld [vmem:[%s12571_s4 + $0xf8] ss:$24 sps:$4 sm:$0xff]   ;;  %v10726_v35 = vld [vmem:[%s12571_s4 + $0x124] ss:$24 sps:$4 sm:$0xff]  }
 0x8a2   : > { %5461 = vmatmul.mubr.bf16.gmra.mrb[72].mxu1 %v3976_v59  ;;  %7342 = vmatprep.subr.bf16.mxu0 %v10717_v55  ;;  %v10729_v55 = vld [vmem:[%s12571_s4 + $0x12c] ss:$24 sps:$4 sm:$0xff]  }
 0x8a3   : > { %5800 = vmatmul.mubr.bf16.gmra.mrb[136].mxu0 %v3976_v59  ;;  %5470 = vmatprep.mubr.bf16.mxu1 %v3983_v13  ;;  %v3982_v59 = vpack.c.bf16 %v3862_v57, %v3864_v40  ;;  %v3858_v57 = vsel %vm3847_vm5, %v3833_v3, %v3835_v53  ;;  %v3860_v40 = vsel %vm3847_vm5, %v3831_v9, %v3833_v3  ;;  %v3837_v9 = vrot.slane %v14024_v46, 1  ;;  %v10739_v3 = vld [vmem:[%s12571_s4 + $0x188] ss:$24 sps:$4 sm:$0xff]  }
 0x8a4   : > { %5809 = vmatprep.mubr.bf16.mxu0 %v3983_v13  ;;  %7117 = vmatpush1.bf16.msra.mxu1 %v10712_v37  ;;  %v10724_v37 = vld [vmem:[%s12571_s4 + $0x120] ss:$24 sps:$4 sm:$0xff]   ;;  %v3989_v13 = vpack.c.bf16 %v3859_v34, %v3861_v20 }
 0x8a5   : > { %7343 = vmatpush1.bf16.msra.mxu0 %v10715_v49  ;;  %7118 = vmatprep.subr.bf16.mxu1 %v10720_v63  ;;  %v10732_v49 = vld [vmem:[%s12571_s4 + $0x154] ss:$24 sps:$4 sm:$0xff]   ;;  %v3838_v63 = vrot.slane %v13983_v36, 1 }
 0x8a6   : > { %7344 = vmatprep.subr.bf16.mxu0 %v10723_v45  ;;  %v3840_v45 = vrot.slane %v14050_v43, 1 }
 0x8a7   : > { %v3857_v20 = vsel %vm3847_vm5, %v3836_v12, %v3838_v63  ;;  %v10747_v12 = vld [vmem:[%s12571_s4 + $0x1bc] ss:$24 sps:$4 sm:$0xff]  }
 0x8a8   : > { %7119 = vmatpush1.bf16.msra.mxu1 %v10718_v11  ;;  %v10730_v11 = vld [vmem:[%s12571_s4 + $0x150] ss:$24 sps:$4 sm:$0xff]   ;;  %v3855_v34 = vsel %vm3847_vm5, %v3838_v63, %v3840_v45  ;;  %v3839_v63 = vrot.slane %v14080_v21, 1 }
 0x8a9   : > { %7345 = vmatpush1.bf16.msra.mxu0 %v10721_v4  ;;  %7120 = vmatprep.subr.bf16.mxu1 %v10726_v35  ;;  %v10733_v4 = vld [vmem:[%s12571_s4 + $0x158] ss:$24 sps:$4 sm:$0xff]   ;;  %v10738_v35 = vld [vmem:[%s12571_s4 + $0x184] ss:$24 sps:$4 sm:$0xff]  }
 0x8aa   : > { %5471 = vmatmul.mubr.bf16.gmra.mrb[76].mxu1 %v3982_v59  ;;  %7346 = vmatprep.subr.bf16.mxu0 %v10729_v55  ;;  %v10741_v55 = vld [vmem:[%s12571_s4 + $0x18c] ss:$24 sps:$4 sm:$0xff]  }
 0x8ab   : > { %5810 = vmatmul.mubr.bf16.gmra.mrb[140].mxu0 %v3982_v59  ;;  %5480 = vmatprep.mubr.bf16.mxu1 %v3989_v13  ;;  %v3988_v59 = vpack.c.bf16 %v3858_v57, %v3860_v40  ;;  %v3854_v57 = vsel %vm3847_vm5, %v3837_v9, %v3839_v63  ;;  %v3856_v40 = vsel %vm3847_vm5, %v3835_v53, %v3837_v9  ;;  %v10751_v9 = vld [vmem:[%s12571_s4 + $0x1e8] ss:$24 sps:$4 sm:$0xff]  }
 0x8ac   : > { %5819 = vmatprep.mubr.bf16.mxu0 %v3989_v13  ;;  %7121 = vmatpush1.bf16.msra.mxu1 %v10724_v37  ;;  %v10736_v37 = vld [vmem:[%s12571_s4 + $0x180] ss:$24 sps:$4 sm:$0xff]   ;;  %v3995_v13 = vpack.c.bf16 %v3855_v34, %v3857_v20 }
 0x8ad   : > { %7347 = vmatpush1.bf16.msra.mxu0 %v10727_v39  ;;  %7122 = vmatprep.subr.bf16.mxu1 %v10732_v49  ;;  %v10744_v39 = vld [vmem:[%s12571_s4 + $0x1b4] ss:$24 sps:$4 sm:$0xff]   ;;  %v3842_v49 = vrot.slane %v14034_v8, 1 }
 0x8ae   : > { %7348 = vmatprep.subr.bf16.mxu0 %v10735_v15  ;;  %v3844_v15 = vrot.slane %v14089_v60, 1 }
 0x8af   : > { %v3853_v20 = vsel %vm3847_vm5, %v3840_v45, %v3842_v49  ;;  %v10759_v45 = vld [vmem:[%s12571_s4 + $0x21c] ss:$24 sps:$4 sm:$0xff]  }
 0x8b0   : > { %7123 = vmatpush1.bf16.msra.mxu1 %v10730_v11  ;;  %v10742_v11 = vld [vmem:[%s12571_s4 + $0x1b0] ss:$24 sps:$4 sm:$0xff]   ;;  %v3851_v34 = vsel %vm3847_vm5, %v3842_v49, %v3844_v15  ;;  %v3843_v49 = vrot.slane %v14111_v51, 1 }
 0x8b1   : > { %7349 = vmatpush1.bf16.msra.mxu0 %v10733_v4  ;;  %7124 = vmatprep.subr.bf16.mxu1 %v10738_v35  ;;  %v10745_v4 = vld [vmem:[%s12571_s4 + $0x1b8] ss:$24 sps:$4 sm:$0xff]   ;;  %v10750_v35 = vld [vmem:[%s12571_s4 + $0x1e4] ss:$24 sps:$4 sm:$0xff]   ;;  %v4001_v53 = vpack.c.bf16 %v3851_v34, %v3853_v20  ;;  %v16070_v20 = vrot.slane %v13726_v19, 1 }
 0x8b2   : > { %5481 = vmatmul.mubr.bf16.gmra.mrb[80].mxu1 %v3988_v59  ;;  %7350 = vmatprep.subr.bf16.mxu0 %v10741_v55  ;;  %v10753_v55 = vld [vmem:[%s12571_s4 + $0x1ec] ss:$24 sps:$4 sm:$0xff]  }
 0x8b3   : > { %5820 = vmatmul.mubr.bf16.gmra.mrb[144].mxu0 %v3988_v59  ;;  %5490 = vmatprep.mubr.bf16.mxu1 %v3995_v13  ;;  %v3994_v59 = vpack.c.bf16 %v3854_v57, %v3856_v40  ;;  %v16069_v40 = vld [vmem:[#allocation40_spill] sm:$0xff] }
 0x8b4   : > { %5829 = vmatprep.mubr.bf16.mxu0 %v3995_v13  ;;  %7125 = vmatpush1.bf16.msra.mxu1 %v10736_v37  ;;  %v10748_v37 = vld [vmem:[%s12571_s4 + $0x1e0] ss:$24 sps:$4 sm:$0xff]   ;;  %v3841_v13 = vrot.slane %v14071_v2, 1  ;;  %vm3895_vm6 = vcmp.lt.s32.totalorder %v16069_v40, 127 }
 0x8b5   : > { %7351 = vmatpush1.bf16.msra.mxu0 %v10739_v3  ;;  %7126 = vmatprep.subr.bf16.mxu1 %v10744_v39  ;;  %v10756_v3 = vld [vmem:[%s12571_s4 + $0x214] ss:$24 sps:$4 sm:$0xff]   ;;  %v3846_v39 = vrot.slane %v13789_v5, 1  ;;  %vm14389_vm7 = vmpackc.low %vm3895_vm6, %vm11777_vm3 }
 0x8b6   : > { %7352 = vmatprep.subr.bf16.mxu0 %v10747_v12  ;;  %v10754_v12 = vld [vmem:[%s12571_s4 + $0x210] ss:$24 sps:$4 sm:$0xff]   ;;  %v3852_v57 = vsel %vm3847_vm5, %v3839_v63, %v3841_v13  ;;  %v10801_v5 = vld [vmem:[%s12571_s4 + $0x36c] ss:$24 sps:$4 sm:$0xff]  }
 0x8b7   : > { %v3849_v34 = vsel %vm3847_vm5, %v3844_v15, %v3846_v39 }
 0x8b8   : > { %7127 = vmatpush1.bf16.msra.mxu1 %v10742_v11  ;;  %v3850_v11 = vsel %vm3847_vm5, %v3841_v13, %v3843_v49  ;;  %v3845_v13 = vrot.slane %v13786_v44, 1 }
 0x8b9   : > { %7353 = vmatpush1.bf16.msra.mxu0 %v10745_v4  ;;  %7128 = vmatprep.subr.bf16.mxu1 %v10750_v35  ;;  %v10757_v4 = vld [vmem:[%s12571_s4 + $0x218] ss:$24 sps:$4 sm:$0xff]   ;;  %v10762_v35 = vld [vmem:[%s12571_s4 + $0x244] ss:$24 sps:$4 sm:$0xff]   ;;  %v4000_v63 = vpack.c.bf16 %v3850_v11, %v3852_v57  ;;  %v16073_v11 = vrot.slane %v16067_v42, 1 }
 0x8ba   : > { %5491 = vmatmul.mubr.bf16.gmra.mrb[84].mxu1 %v3994_v59  ;;  %7354 = vmatprep.subr.bf16.mxu0 %v10753_v55  ;;  %v3879_v55 = vsel %vm3847_vm5, %v3846_v39, %v16070_v20  ;;  %v10771_v39 = vld [vmem:[%s12571_s4 + $0x27c] ss:$24 sps:$4 sm:$0xff]   ;;  %v10775_v20 = vld [vmem:[%s12571_s4 + $0x2a8] ss:$24 sps:$4 sm:$0xff]  }
 0x8bb   : > { %5830 = vmatmul.mubr.bf16.gmra.mrb[148].mxu0 %v3994_v59  ;;  %5500 = vmatprep.mubr.bf16.mxu1 %v4001_v53  ;;  %v10765_v59 = vld [vmem:[%s12571_s4 + $0x24c] ss:$24 sps:$4 sm:$0xff]   ;;  %v9288_v15 = vpack.c.bf16 %v3879_v55, %v3849_v34  ;;  %v3878_v57 = vsel %vm3847_vm5, %v3845_v13, %v16073_v11  ;;  %v16076_v11 = vld [vmem:[#allocation58_spill] sm:$0xff] }
 0x8bc   : > { %5839 = vmatprep.mubr.bf16.mxu0 %v4001_v53  ;;  %7129 = vmatpush1.bf16.msra.mxu1 %v10748_v37  ;;  %v10760_v53 = vld [vmem:[%s12571_s4 + $0x240] ss:$24 sps:$4 sm:$0xff]   ;;  %v10774_v34 = vld [vmem:[%s12571_s4 + $0x2a4] ss:$24 sps:$4 sm:$0xff]  }
 0x8bd   : > { %7355 = vmatpush1.bf16.msra.mxu0 %v10751_v9  ;;  %7130 = vmatprep.subr.bf16.mxu1 %v10756_v3  ;;  %v10763_v9 = vld [vmem:[%s12571_s4 + $0x248] ss:$24 sps:$4 sm:$0xff]   ;;  %v10768_v3 = vld [vmem:[%s12571_s4 + $0x274] ss:$24 sps:$4 sm:$0xff]   ;;  %v10786_v37 = vld [vmem:[%s12571_s4 + $0x304] ss:$24 sps:$4 sm:$0xff]  }
 0x8be   : > { %7356 = vmatprep.subr.bf16.mxu0 %v10759_v45  ;;  %v10766_v45 = vld [vmem:[%s12571_s4 + $0x270] ss:$24 sps:$4 sm:$0xff]   ;;  %v10777_v55 = vld [vmem:[%s12571_s4 + $0x2ac] ss:$24 sps:$4 sm:$0xff]  }
 0x8c0   : > { %7131 = vmatpush1.bf16.msra.mxu1 %v10754_v12  ;;  %v3848_v12 = vsel %vm3847_vm5, %v3843_v49, %v3845_v13  ;;  %v10772_v49 = vld [vmem:[%s12571_s4 + $0x2a0] ss:$24 sps:$4 sm:$0xff]   ;;  %v10789_v13 = vld [vmem:[%s12571_s4 + $0x30c] ss:$24 sps:$4 sm:$0xff]  }
 0x8c1   : > { %7357 = vmatpush1.bf16.msra.mxu0 %v10757_v4  ;;  %7132 = vmatprep.subr.bf16.mxu1 %v10762_v35  ;;  %v10769_v4 = vld [vmem:[%s12571_s4 + $0x278] ss:$24 sps:$4 sm:$0xff]   ;;  %v9291_v35 = vpack.c.bf16 %v3878_v57, %v3848_v12 }
 0x8c2   : > { %5501 = vmatmul.mubr.bf16.gmra.mrb[88].mxu1 %v4000_v63  ;;  %7358 = vmatprep.subr.bf16.mxu0 %v10765_v59  ;;  %v10780_v59 = vld [vmem:[%s12571_s4 + $0x2d4] ss:$24 sps:$4 sm:$0xff]  }
 0x8c3   : > { %5840 = vmatmul.mubr.bf16.gmra.mrb[152].mxu0 %v4000_v63  ;;  %9289 = vmatprep.mubr.msk.bf16.mxu1 %vm14389_vm7, %v9288_v15  ;;  %v10783_v63 = vld [vmem:[%s12571_s4 + $0x2dc] ss:$24 sps:$4 sm:$0xff]  }
 0x8c4   : > { %9301 = vmatprep.mubr.msk.bf16.mxu0 %vm14389_vm7, %v9288_v15  ;;  %7133 = vmatpush1.bf16.msra.mxu1 %v10760_v53  ;;  %v10778_v53 = vld [vmem:[%s12571_s4 + $0x2d0] ss:$24 sps:$4 sm:$0xff]  }
 0x8c5   : > { %7359 = vmatpush1.bf16.msra.mxu0 %v10763_v9  ;;  %7134 = vmatprep.subr.bf16.mxu1 %v10768_v3  ;;  %v10781_v15 = vld [vmem:[%s12571_s4 + $0x2d8] ss:$24 sps:$4 sm:$0xff]  }
 0x8c6   : > { %7360 = vmatprep.subr.bf16.mxu0 %v10771_v39  ;;  %v4200_v9 = vld [vmem:[%s12567_s12] sm:$0xf] }
 0x8c7   : > { %v16074_v3 = vld [vmem:[#allocation57_spill] sm:$0xff]  ;;  %v14433_v57 = vrot.slane %v4200_v9, %v16076_v11 }
 0x8c8   : > { %7135 = vmatpush1.bf16.msra.mxu1 %v10766_v45  ;;  %v14426_v39 = vrot.slane %v4200_v9, %v16074_v3  ;;  %v16075_v45 = vsub.s32 2, %v12471_v1 }
 0x8c9   : > { %7361 = vmatpush1.bf16.msra.mxu0 %v10769_v4  ;;  %7136 = vmatprep.subr.bf16.mxu1 %v10774_v34  ;;  %v16077_v4 = vsub.s32 3, %v12471_v1  ;;  %v16101_v1 = vld [vmem:[#allocation85_spill] sm:$0xff] }
 0x8ca   : > { %9292 = vmatmul.mubr.msk.bf16.gmra.mrb[92].mxu1 %vm14389_vm7, %v9291_v35  ;;  %7362 = vmatprep.subr.bf16.mxu0 %v10777_v55  ;;  %v14430_v12 = vrot.slane %v4200_v9, %v16075_v45 }
 0x8cb   : > { %9304 = vmatmul.mubr.msk.bf16.gmra.mrb[156].mxu0 %vm14389_vm7, %v9291_v35  ;;  %v14437_v35 = vrot.slane %v4200_v9, %v16077_v4 }
 0x8cc   : > { %7137 = vmatpush1.bf16.msra.mxu1 %v10772_v49 }
 0x8cd   : > { %7363 = vmatpush1.bf16.msra.mxu0 %v10775_v20  ;;  %7138 = vmatprep.subr.bf16.mxu1 %v10780_v59 }
 0x8ce   : > { %7364 = vmatprep.subr.bf16.mxu0 %v10783_v63 }
 0x8d0   : > { %7139 = vmatpush1.bf16.msra.mxu1 %v10778_v53 }
 0x8d1   : > { %7365 = vmatpush1.bf16.msra.mxu0 %v10781_v15  ;;  %7221 = vmatprep.subr.bf16.mxu1 %v10786_v37 }
 0x8d2   : > { %7447 = vmatprep.subr.bf16.mxu0 %v10789_v13 }
 0x965   : > { %v5442_v49 = vpop.f32.mrb[64].mxu1 }
 0x966   : > { %v9706_v34 = vadd.f32 %v5442_v49, %v14426_v39  ;;  %v5781_v20 = vpop.f32.mrb[128].mxu0  ;;  %v5444_v55 = vpop.f32.mrb[65].mxu1 }
 0x967   : > { %v9738_v59 = vadd.f32 %v5781_v20, %v14430_v12  ;;  %v9707_v63 = vadd.f32 %v5444_v55, %v14433_v57  ;;  %v5783_v53 = vpop.f32.mrb[129].mxu0  ;;  %v5446_v15 = vpop.f32.mrb[66].mxu1 }
 0x968   : > { %v9739_v37 = vadd.f32 %v5783_v53, %v14437_v35  ;;  %v9708_v13 = vadd.f32 %v5446_v15, %v14426_v39  ;;  %v5785_v45 = vpop.f32.mrb[130].mxu0  ;;  %v5448_v18 = vpop.f32.mrb[67].mxu1  ;;  %v5860_v62 = vmax.f32 %v9706_v34, 0.0  ;;  %v10787_v34 = vld [vmem:[%s12571_s4 + $0x308] ss:$24 sps:$4 sm:$0xff]  }
 0x969   : > { %v9740_v9 = vadd.f32 %v5785_v45, %v14430_v12  ;;  %v9709_v4 = vadd.f32 %v5448_v18, %v14433_v57  ;;  %v5787_v49 = vpop.f32.mrb[131].mxu0  ;;  %v5862_v55 = vmax.f32 %v9738_v59, 0.0  ;;  %v5861_v30 = vmax.f32 %v9707_v63, 0.0 }
 0x96a   : > { %v5864_v31 = vmax.f32 %v9708_v13, 0.0  ;;  %v9741_v20 = vadd.f32 %v5787_v49, %v14437_v35  ;;  %v5863_v15 = vmax.f32 %v9739_v37, 0.0 }
 0x96b   : > { %v5866_v53 = vmax.f32 %v9740_v9, 0.0  ;;  %v5865_v29 = vmax.f32 %v9709_v4, 0.0  ;;  %v10795_v9 = vld [vmem:[%s12571_s4 + $0x33c] ss:$24 sps:$4 sm:$0xff]  }
 0x96c   : > { %v14447_v28 = vpack.c.bf16 %v5864_v31, %v5860_v62  ;;  %v5867_v27 = vmax.f32 %v9741_v20, 0.0 }
 0x96d   : > { %v14449_v45 = vpack.c.bf16 %v5866_v53, %v5862_v55  ;;  %v14451_v26 = vpack.c.bf16 %v5865_v29, %v5861_v30  ;;  %v5452_v18 = vpop.f32.mrb[68].mxu1 }
 0x96e   : > { %v14455_v13 = vpack.c.bf16 %v5867_v27, %v5863_v15  ;;  %v9710_v59 = vadd.f32 %v5452_v18, %v14426_v39  ;;  %v5791_v49 = vpop.f32.mrb[132].mxu0  ;;  %v5454_v63 = vpop.f32.mrb[69].mxu1  ;;  %v10790_v18 = vld [vmem:[%s12571_s4 + $0x330] ss:$24 sps:$4 sm:$0xff]  }
 0x96f   : > { %v9742_v37 = vadd.f32 %v5791_v49, %v14430_v12  ;;  %v9711_v31 = vadd.f32 %v5454_v63, %v14433_v57  ;;  %v5793_v62 = vpop.f32.mrb[133].mxu0  ;;  %v5456_v29 = vpop.f32.mrb[70].mxu1  ;;  %7140 = vmatprep.mubr.bf16.mxu1 %v14451_v26  ;;  %7366 = vmatprep.mubr.bf16.mxu0 %v14451_v26  ;;  %v10793_v49 = vld [vmem:[%s12571_s4 + $0x338] ss:$24 sps:$4 sm:$0xff]  }
 0x970   : > { %v9743_v27 = vadd.f32 %v5793_v62, %v14437_v35  ;;  %v9712_v30 = vadd.f32 %v5456_v29, %v14426_v39  ;;  %v5795_v4 = vpop.f32.mrb[134].mxu0  ;;  %v5458_v20 = vpop.f32.mrb[71].mxu1  ;;  %7141 = vmatmul.mubr.bf16.vlgmr.msra.gmra.mrb[96].mxu1 %v14447_v28  ;;  %7367 = vmatmul.mubr.bf16.vlgmr.msra.gmra.mrb[160].mxu0 %v14447_v28  ;;  %v5868_v63 = vmax.f32 %v9710_v59, 0.0 }
 0x971   : > { %v9744_v55 = vadd.f32 %v5795_v4, %v14430_v12  ;;  %v9713_v53 = vadd.f32 %v5458_v20, %v14433_v57  ;;  %v5797_v15 = vpop.f32.mrb[135].mxu0  ;;  %7222 = vmatpush1.bf16.msra.mxu1 %v10784_v25  ;;  %7448 = vmatpush1.bf16.msra.mxu0 %v10787_v34  ;;  %v5870_v44 = vmax.f32 %v9742_v37, 0.0  ;;  %v5869_v60 = vmax.f32 %v9711_v31, 0.0 }
 0x972   : > { %v5872_v62 = vmax.f32 %v9712_v30, 0.0  ;;  %v9745_v29 = vadd.f32 %v5797_v15, %v14437_v35  ;;  %7223 = vmatprep.subr.bf16.mxu1 %v10792_v24  ;;  %7449 = vmatprep.subr.bf16.mxu0 %v10795_v9  ;;  %v5871_v20 = vmax.f32 %v9743_v27, 0.0  ;;  %v10796_v9 = vld [vmem:[%s12571_s4 + $0x360] ss:$24 sps:$4 sm:$0xff]  }
 0x973   : > { %v5874_v4 = vmax.f32 %v9744_v55, 0.0  ;;  %v5873_v51 = vmax.f32 %v9713_v53, 0.0  ;;  %v10799_v15 = vld [vmem:[%s12571_s4 + $0x368] ss:$24 sps:$4 sm:$0xff]   ;;  %v10804_v55 = vld [vmem:[%s12571_s4 + $0x394] ss:$24 sps:$4 sm:$0xff]  }
 0x974   : > { %v14475_v25 = vpack.c.bf16 %v5872_v62, %v5868_v63  ;;  %v5875_v34 = vmax.f32 %v9745_v29, 0.0  ;;  %v10807_v53 = vld [vmem:[%s12571_s4 + $0x39c] ss:$24 sps:$4 sm:$0xff]  }
 0x975   : > { %v14477_v59 = vpack.c.bf16 %v5874_v4, %v5870_v44  ;;  %v14479_v30 = vpack.c.bf16 %v5873_v51, %v5869_v60  ;;  %v5462_v24 = vpop.f32.mrb[72].mxu1  ;;  %7224 = vmatpush1.bf16.msra.mxu1 %v10790_v18  ;;  %7450 = vmatpush1.bf16.msra.mxu0 %v10793_v49 }
 0x976   : > { %v14483_v8 = vpack.c.bf16 %v5875_v34, %v5871_v20  ;;  %v9714_v37 = vadd.f32 %v5462_v24, %v14426_v39  ;;  %v5801_v31 = vpop.f32.mrb[136].mxu0  ;;  %v5464_v27 = vpop.f32.mrb[73].mxu1  ;;  %7225 = vmatprep.subr.bf16.mxu1 %v10798_v23  ;;  %7451 = vmatprep.subr.bf16.mxu0 %v10801_v5  ;;  %v10802_v20 = vld [vmem:[%s12571_s4 + $0x390] ss:$24 sps:$4 sm:$0xff]  }
 0x977   : > { %v9746_v44 = vadd.f32 %v5801_v31, %v14430_v12  ;;  %v9715_v60 = vadd.f32 %v5464_v27, %v14433_v57  ;;  %v5803_v51 = vpop.f32.mrb[137].mxu0  ;;  %v5466_v18 = vpop.f32.mrb[74].mxu1  ;;  %7150 = vmatprep.mubr.bf16.mxu1 %v14479_v30  ;;  %7376 = vmatprep.mubr.bf16.mxu0 %v14479_v30  ;;  %v10805_v34 = vld [vmem:[%s12571_s4 + $0x398] ss:$24 sps:$4 sm:$0xff]  }
 0x978   : > { %v9747_v49 = vadd.f32 %v5803_v51, %v14437_v35  ;;  %v9716_v63 = vadd.f32 %v5466_v18, %v14426_v39  ;;  %v5805_v23 = vpop.f32.mrb[138].mxu0  ;;  %v5468_v5 = vpop.f32.mrb[75].mxu1  ;;  %7151 = vmatmul.mubr.bf16.gmra.mrb[100].mxu1 %v14475_v25  ;;  %7377 = vmatmul.mubr.bf16.gmra.mrb[164].mxu0 %v14475_v25  ;;  %v5876_v24 = vmax.f32 %v9714_v37, 0.0  ;;  %v10810_v51 = vld [vmem:[%s12571_s4 + $0x3c4] ss:$24 sps:$4 sm:$0xff]  }
 0x979   : > { %v9748_v62 = vadd.f32 %v5805_v23, %v14430_v12  ;;  %v9717_v29 = vadd.f32 %v5468_v5, %v14433_v57  ;;  %v5807_v4 = vpop.f32.mrb[139].mxu0  ;;  %7226 = vmatpush1.bf16.msra.mxu1 %v10796_v9  ;;  %7452 = vmatpush1.bf16.msra.mxu0 %v10799_v15  ;;  %v10813_v18 = vld [vmem:[%s12571_s4 + $0x3cc] ss:$24 sps:$4 sm:$0xff]   ;;  %v5878_v2 = vmax.f32 %v9746_v44, 0.0  ;;  %v5877_v40 = vmax.f32 %v9715_v60, 0.0 }
 0x97a   : > { %v5880_v31 = vmax.f32 %v9716_v63, 0.0  ;;  %v9749_v27 = vadd.f32 %v5807_v4, %v14437_v35  ;;  %7227 = vmatprep.subr.bf16.mxu1 %v10804_v55  ;;  %7453 = vmatprep.subr.bf16.mxu0 %v10807_v53  ;;  %v5879_v5 = vmax.f32 %v9747_v49, 0.0  ;;  %v10808_v53 = vld [vmem:[%s12571_s4 + $0x3c0] ss:$24 sps:$4 sm:$0xff]  }
 0x97b   : > { %v5882_v23 = vmax.f32 %v9748_v62, 0.0  ;;  %v5881_v43 = vmax.f32 %v9717_v29, 0.0  ;;  %v10811_v4 = vld [vmem:[%s12571_s4 + $0x3c8] ss:$24 sps:$4 sm:$0xff]   ;;  %v10816_v62 = vld [vmem:[%s12571_s4 + $0x3f4] ss:$24 sps:$4 sm:$0xff]  }
 0x97c   : > { %v14503_v9 = vpack.c.bf16 %v5880_v31, %v5876_v24  ;;  %v5883_v15 = vmax.f32 %v9749_v27, 0.0  ;;  %v10819_v29 = vld [vmem:[%s12571_s4 + $0x3fc] ss:$24 sps:$4 sm:$0xff]  }
 0x97d   : > { %v14505_v37 = vpack.c.bf16 %v5882_v23, %v5878_v2  ;;  %v14507_v63 = vpack.c.bf16 %v5881_v43, %v5877_v40  ;;  %v5472_v55 = vpop.f32.mrb[76].mxu1  ;;  %7228 = vmatpush1.bf16.msra.mxu1 %v10802_v20  ;;  %7454 = vmatpush1.bf16.msra.mxu0 %v10805_v34 }
 0x97e   : > { %v14511_v21 = vpack.c.bf16 %v5883_v15, %v5879_v5  ;;  %v9718_v44 = vadd.f32 %v5472_v55, %v14426_v39  ;;  %v5811_v60 = vpop.f32.mrb[140].mxu0  ;;  %v5474_v49 = vpop.f32.mrb[77].mxu1  ;;  %7229 = vmatprep.subr.bf16.mxu1 %v10810_v51  ;;  %7455 = vmatprep.subr.bf16.mxu0 %v10813_v18  ;;  %v10814_v5 = vld [vmem:[%s12571_s4 + $0x3f0] ss:$24 sps:$4 sm:$0xff]  }
 0x97f   : > { %v9750_v2 = vadd.f32 %v5811_v60, %v14430_v12  ;;  %v9719_v43 = vadd.f32 %v5474_v49, %v14433_v57  ;;  %v5813_v40 = vpop.f32.mrb[141].mxu0  ;;  %v5476_v20 = vpop.f32.mrb[78].mxu1  ;;  %7160 = vmatprep.mubr.bf16.mxu1 %v14507_v63  ;;  %7386 = vmatprep.mubr.bf16.mxu0 %v14507_v63  ;;  %v10817_v15 = vld [vmem:[%s12571_s4 + $0x3f8] ss:$24 sps:$4 sm:$0xff]  }
 0x980   : > { %v9751_v34 = vadd.f32 %v5813_v40, %v14437_v35  ;;  %v9720_v24 = vadd.f32 %v5476_v20, %v14426_v39  ;;  %v5815_v31 = vpop.f32.mrb[142].mxu0  ;;  %v5478_v27 = vpop.f32.mrb[79].mxu1  ;;  %7161 = vmatmul.mubr.bf16.gmra.mrb[104].mxu1 %v14503_v9  ;;  %7387 = vmatmul.mubr.bf16.gmra.mrb[168].mxu0 %v14503_v9  ;;  %v5884_v55 = vmax.f32 %v9718_v44, 0.0  ;;  %v10822_v40 = vld [vmem:[%s12571_s4 + $0x424] ss:$24 sps:$4 sm:$0xff]  }
 0x981   : > { %v9752_v51 = vadd.f32 %v5815_v31, %v14430_v12  ;;  %v9721_v18 = vadd.f32 %v5478_v27, %v14433_v57  ;;  %v5817_v23 = vpop.f32.mrb[143].mxu0  ;;  %7230 = vmatpush1.bf16.msra.mxu1 %v10808_v53  ;;  %7456 = vmatpush1.bf16.msra.mxu0 %v10811_v4  ;;  %v10825_v20 = vld [vmem:[%s12571_s4 + $0x42c] ss:$24 sps:$4 sm:$0xff]   ;;  %v5886_v36 = vmax.f32 %v9750_v2, 0.0  ;;  %v5885_v46 = vmax.f32 %v9719_v43, 0.0 }
 0x982   : > { %v5888_v60 = vmax.f32 %v9720_v24, 0.0  ;;  %v9753_v49 = vadd.f32 %v5817_v23, %v14437_v35  ;;  %7231 = vmatprep.subr.bf16.mxu1 %v10816_v62  ;;  %7457 = vmatprep.subr.bf16.mxu0 %v10819_v29  ;;  %v5887_v27 = vmax.f32 %v9751_v34, 0.0  ;;  %v10820_v29 = vld [vmem:[%s12571_s4 + $0x420] ss:$24 sps:$4 sm:$0xff]  }
 0x983   : > { %v5890_v31 = vmax.f32 %v9752_v51, 0.0  ;;  %v5889_v22 = vmax.f32 %v9721_v18, 0.0  ;;  %v10823_v23 = vld [vmem:[%s12571_s4 + $0x428] ss:$24 sps:$4 sm:$0xff]   ;;  %v10828_v51 = vld [vmem:[%s12571_s4 + $0x454] ss:$24 sps:$4 sm:$0xff]  }
 0x984   : > { %v14531_v53 = vpack.c.bf16 %v5888_v60, %v5884_v55  ;;  %v5891_v4 = vmax.f32 %v9753_v49, 0.0  ;;  %v10831_v18 = vld [vmem:[%s12571_s4 + $0x45c] ss:$24 sps:$4 sm:$0xff]  }
 0x985   : > { %v14533_v44 = vpack.c.bf16 %v5890_v31, %v5886_v36  ;;  %v14535_v24 = vpack.c.bf16 %v5889_v22, %v5885_v46  ;;  %v5482_v62 = vpop.f32.mrb[80].mxu1  ;;  %7232 = vmatpush1.bf16.msra.mxu1 %v10814_v5  ;;  %7458 = vmatpush1.bf16.msra.mxu0 %v10817_v15 }
 0x986   : > { %v14539_v14 = vpack.c.bf16 %v5891_v4, %v5887_v27  ;;  %v9722_v2 = vadd.f32 %v5482_v62, %v14426_v39  ;;  %v5821_v43 = vpop.f32.mrb[144].mxu0  ;;  %v5484_v34 = vpop.f32.mrb[81].mxu1  ;;  %7233 = vmatprep.subr.bf16.mxu1 %v10822_v40  ;;  %7459 = vmatprep.subr.bf16.mxu0 %v10825_v20  ;;  %v10826_v27 = vld [vmem:[%s12571_s4 + $0x450] ss:$24 sps:$4 sm:$0xff]  }
 0x987   : > { %v9754_v36 = vadd.f32 %v5821_v43, %v14430_v12  ;;  %v9723_v22 = vadd.f32 %v5484_v34, %v14433_v57  ;;  %v5823_v46 = vpop.f32.mrb[145].mxu0  ;;  %v5486_v5 = vpop.f32.mrb[82].mxu1  ;;  %7170 = vmatprep.mubr.bf16.mxu1 %v14535_v24  ;;  %7396 = vmatprep.mubr.bf16.mxu0 %v14535_v24  ;;  %v10829_v4 = vld [vmem:[%s12571_s4 + $0x458] ss:$24 sps:$4 sm:$0xff]  }
 0x988   : > { %v9755_v15 = vadd.f32 %v5823_v46, %v14437_v35  ;;  %v9724_v55 = vadd.f32 %v5486_v5, %v14426_v39  ;;  %v5825_v60 = vpop.f32.mrb[146].mxu0  ;;  %v5488_v49 = vpop.f32.mrb[83].mxu1  ;;  %7171 = vmatmul.mubr.bf16.gmra.mrb[108].mxu1 %v14531_v53  ;;  %7397 = vmatmul.mubr.bf16.gmra.mrb[172].mxu0 %v14531_v53  ;;  %v5892_v62 = vmax.f32 %v9722_v2, 0.0  ;;  %v10834_v46 = vld [vmem:[%s12571_s4 + $0x484] ss:$24 sps:$4 sm:$0xff]  }
 0x989   : > { %v9756_v40 = vadd.f32 %v5825_v60, %v14430_v12  ;;  %v9725_v20 = vadd.f32 %v5488_v49, %v14433_v57  ;;  %v5827_v31 = vpop.f32.mrb[147].mxu0  ;;  %7234 = vmatpush1.bf16.msra.mxu1 %v10820_v29  ;;  %7460 = vmatpush1.bf16.msra.mxu0 %v10823_v23  ;;  %v10837_v5 = vld [vmem:[%s12571_s4 + $0x48c] ss:$24 sps:$4 sm:$0xff]   ;;  %v5894_v38 = vmax.f32 %v9754_v36, 0.0  ;;  %v5893_v33 = vmax.f32 %v9723_v22, 0.0 }
 0x98a   : > { %v5896_v43 = vmax.f32 %v9724_v55, 0.0  ;;  %v9757_v34 = vadd.f32 %v5827_v31, %v14437_v35  ;;  %7235 = vmatprep.subr.bf16.mxu1 %v10828_v51  ;;  %7461 = vmatprep.subr.bf16.mxu0 %v10831_v18  ;;  %v5895_v49 = vmax.f32 %v9755_v15, 0.0  ;;  %v10832_v18 = vld [vmem:[%s12571_s4 + $0x480] ss:$24 sps:$4 sm:$0xff]  }
 0x98b   : > { %v5898_v60 = vmax.f32 %v9756_v40, 0.0  ;;  %v5897_v41 = vmax.f32 %v9725_v20, 0.0  ;;  %v10835_v31 = vld [vmem:[%s12571_s4 + $0x488] ss:$24 sps:$4 sm:$0xff]   ;;  %v10840_v40 = vld [vmem:[%s12571_s4 + $0x4b4] ss:$24 sps:$4 sm:$0xff]  }
 0x98c   : > { %v14559_v29 = vpack.c.bf16 %v5896_v43, %v5892_v62  ;;  %v5899_v23 = vmax.f32 %v9757_v34, 0.0  ;;  %v10843_v20 = vld [vmem:[%s12571_s4 + $0x4bc] ss:$24 sps:$4 sm:$0xff]  }
 0x98d   : > { %v14561_v2 = vpack.c.bf16 %v5898_v60, %v5894_v38  ;;  %v14563_v55 = vpack.c.bf16 %v5897_v41, %v5893_v33  ;;  %v5492_v51 = vpop.f32.mrb[84].mxu1  ;;  %7236 = vmatpush1.bf16.msra.mxu1 %v10826_v27  ;;  %7462 = vmatpush1.bf16.msra.mxu0 %v10829_v4 }
 0x98e   : > { %v14567_v56 = vpack.c.bf16 %v5899_v23, %v5895_v49  ;;  %v9726_v36 = vadd.f32 %v5492_v51, %v14426_v39  ;;  %v5831_v22 = vpop.f32.mrb[148].mxu0  ;;  %v5494_v15 = vpop.f32.mrb[85].mxu1  ;;  %7237 = vmatprep.subr.bf16.mxu1 %v10834_v46  ;;  %7463 = vmatprep.subr.bf16.mxu0 %v10837_v5  ;;  %v10838_v49 = vld [vmem:[%s12571_s4 + $0x4b0] ss:$24 sps:$4 sm:$0xff]  }
 0x98f   : > { %v9758_v38 = vadd.f32 %v5831_v22, %v14430_v12  ;;  %v9727_v41 = vadd.f32 %v5494_v15, %v14433_v57  ;;  %v5833_v33 = vpop.f32.mrb[149].mxu0  ;;  %v5496_v27 = vpop.f32.mrb[86].mxu1  ;;  %7180 = vmatprep.mubr.bf16.mxu1 %v14563_v55  ;;  %7406 = vmatprep.mubr.bf16.mxu0 %v14563_v55  ;;  %v10841_v23 = vld [vmem:[%s12571_s4 + $0x4b8] ss:$24 sps:$4 sm:$0xff]  }
 0x990   : > { %v9759_v4 = vadd.f32 %v5833_v33, %v14437_v35  ;;  %v9728_v62 = vadd.f32 %v5496_v27, %v14426_v39  ;;  %v5835_v43 = vpop.f32.mrb[150].mxu0  ;;  %v5498_v34 = vpop.f32.mrb[87].mxu1  ;;  %7181 = vmatmul.mubr.bf16.gmra.mrb[112].mxu1 %v14559_v29  ;;  %7407 = vmatmul.mubr.bf16.gmra.mrb[176].mxu0 %v14559_v29  ;;  %v5900_v51 = vmax.f32 %v9726_v36, 0.0  ;;  %v10846_v33 = vld [vmem:[%s12571_s4 + $0x4e4] ss:$24 sps:$4 sm:$0xff]  }
 0x991   : > { %v9760_v46 = vadd.f32 %v5835_v43, %v14430_v12  ;;  %v9729_v5 = vadd.f32 %v5498_v34, %v14433_v57  ;;  %v5837_v60 = vpop.f32.mrb[151].mxu0  ;;  %7238 = vmatpush1.bf16.msra.mxu1 %v10832_v18  ;;  %7464 = vmatpush1.bf16.msra.mxu0 %v10835_v31  ;;  %v10849_v27 = vld [vmem:[%s12571_s4 + $0x4ec] ss:$24 sps:$4 sm:$0xff]   ;;  %v5902_v0 = vmax.f32 %v9758_v38, 0.0  ;;  %v5901_v58 = vmax.f32 %v9727_v41, 0.0 }
 0x992   : > { %v5904_v22 = vmax.f32 %v9728_v62, 0.0  ;;  %v9761_v15 = vadd.f32 %v5837_v60, %v14437_v35  ;;  %7239 = vmatprep.subr.bf16.mxu1 %v10840_v40  ;;  %7465 = vmatprep.subr.bf16.mxu0 %v10843_v20  ;;  %v5903_v34 = vmax.f32 %v9759_v4, 0.0  ;;  %v10844_v20 = vld [vmem:[%s12571_s4 + $0x4e0] ss:$24 sps:$4 sm:$0xff]  }
 0x993   : > { %v5906_v43 = vmax.f32 %v9760_v46, 0.0  ;;  %v5905_v47 = vmax.f32 %v9729_v5, 0.0  ;;  %v10847_v60 = vld [vmem:[%s12571_s4 + $0x4e8] ss:$24 sps:$4 sm:$0xff]   ;;  %v10852_v46 = vld [vmem:[%s12571_s4 + $0x514] ss:$24 sps:$4 sm:$0xff]  }
 0x994   : > { %v14587_v18 = vpack.c.bf16 %v5904_v22, %v5900_v51  ;;  %v5907_v31 = vmax.f32 %v9761_v15, 0.0  ;;  %v10855_v5 = vld [vmem:[%s12571_s4 + $0x51c] ss:$24 sps:$4 sm:$0xff]  }
 0x995   : > { %v14589_v36 = vpack.c.bf16 %v5906_v43, %v5902_v0  ;;  %v14591_v62 = vpack.c.bf16 %v5905_v47, %v5901_v58  ;;  %v5502_v40 = vpop.f32.mrb[88].mxu1  ;;  %7240 = vmatpush1.bf16.msra.mxu1 %v10838_v49  ;;  %7466 = vmatpush1.bf16.msra.mxu0 %v10841_v23 }
 0x996   : > { %v14595_v6 = vpack.c.bf16 %v5907_v31, %v5903_v34  ;;  %v9730_v38 = vadd.f32 %v5502_v40, %v14426_v39  ;;  %v5841_v41 = vpop.f32.mrb[152].mxu0  ;;  %v5504_v4 = vpop.f32.mrb[89].mxu1  ;;  %7241 = vmatprep.subr.bf16.mxu1 %v10846_v33  ;;  %7467 = vmatprep.subr.bf16.mxu0 %v10849_v27  ;;  %v10850_v34 = vld [vmem:[%s12571_s4 + $0x510] ss:$24 sps:$4 sm:$0xff]  }
 0x997   : > { %v9762_v0 = vadd.f32 %v5841_v41, %v14430_v12  ;;  %v9731_v47 = vadd.f32 %v5504_v4, %v14433_v57  ;;  %v5843_v58 = vpop.f32.mrb[153].mxu0  ;;  %v5506_v49 = vpop.f32.mrb[90].mxu1  ;;  %7190 = vmatprep.mubr.bf16.mxu1 %v14591_v62  ;;  %7416 = vmatprep.mubr.bf16.mxu0 %v14591_v62  ;;  %v10853_v31 = vld [vmem:[%s12571_s4 + $0x518] ss:$24 sps:$4 sm:$0xff]  }
 0x998   : > { %v9763_v23 = vadd.f32 %v5843_v58, %v14437_v35  ;;  %v9732_v51 = vadd.f32 %v5506_v49, %v14426_v39  ;;  %v5845_v22 = vpop.f32.mrb[154].mxu0  ;;  %v5508_v15 = vpop.f32.mrb[91].mxu1  ;;  %7191 = vmatmul.mubr.bf16.gmra.mrb[116].mxu1 %v14587_v18  ;;  %7417 = vmatmul.mubr.bf16.gmra.mrb[180].mxu0 %v14587_v18  ;;  %v5908_v40 = vmax.f32 %v9730_v38, 0.0  ;;  %v10858_v58 = vld [vmem:[%s12571_s4 + $0x544] ss:$24 sps:$4 sm:$0xff]  }
 0x999   : > { %v9764_v33 = vadd.f32 %v5845_v22, %v14430_v12  ;;  %v9733_v27 = vadd.f32 %v5508_v15, %v14433_v57  ;;  %v5847_v43 = vpop.f32.mrb[155].mxu0  ;;  %7242 = vmatpush1.bf16.msra.mxu1 %v10844_v20  ;;  %7468 = vmatpush1.bf16.msra.mxu0 %v10847_v60  ;;  %v10861_v49 = vld [vmem:[%s12571_s4 + $0x54c] ss:$24 sps:$4 sm:$0xff]   ;;  %v5910_v61 = vmax.f32 %v9762_v0, 0.0  ;;  %v5909_v16 = vmax.f32 %v9731_v47, 0.0 }
 0x99a   : > { %v5912_v41 = vmax.f32 %v9732_v51, 0.0  ;;  %v9765_v4 = vadd.f32 %v5847_v43, %v14437_v35  ;;  %7243 = vmatprep.subr.bf16.mxu1 %v10852_v46  ;;  %7469 = vmatprep.subr.bf16.mxu0 %v10855_v5  ;;  %v5911_v15 = vmax.f32 %v9763_v23, 0.0  ;;  %v10856_v5 = vld [vmem:[%s12571_s4 + $0x540] ss:$24 sps:$4 sm:$0xff]  }
 0x99b   : > { %v5914_v22 = vmax.f32 %v9764_v33, 0.0  ;;  %v5913_v17 = vmax.f32 %v9733_v27, 0.0  ;;  %v10859_v43 = vld [vmem:[%s12571_s4 + $0x548] ss:$24 sps:$4 sm:$0xff]   ;;  %v10864_v33 = vld [vmem:[%s12571_s4 + $0x574] ss:$24 sps:$4 sm:$0xff]  }
 0x99c   : > { %v14615_v20 = vpack.c.bf16 %v5912_v41, %v5908_v40  ;;  %v5915_v60 = vmax.f32 %v9765_v4, 0.0  ;;  %v10867_v27 = vld [vmem:[%s12571_s4 + $0x57c] ss:$24 sps:$4 sm:$0xff]  }
 0x99d   : > { %v14617_v38 = vpack.c.bf16 %v5914_v22, %v5910_v61  ;;  %v14619_v51 = vpack.c.bf16 %v5913_v17, %v5909_v16  ;;  %v5512_v46 = vpop.f32.mrb[92].mxu1  ;;  %7244 = vmatpush1.bf16.msra.mxu1 %v10850_v34  ;;  %7470 = vmatpush1.bf16.msra.mxu0 %v10853_v31 }
 0x99e   : > { %v14623_v7 = vpack.c.bf16 %v5915_v60, %v5911_v15  ;;  %v9734_v0 = vadd.f32 %v5512_v46, %v14426_v39  ;;  %v5851_v47 = vpop.f32.mrb[156].mxu0  ;;  %v5514_v23 = vpop.f32.mrb[93].mxu1  ;;  %7245 = vmatprep.subr.bf16.mxu1 %v10858_v58  ;;  %7471 = vmatprep.subr.bf16.mxu0 %v10861_v49  ;;  %v10862_v15 = vld [vmem:[%s12571_s4 + $0x570] ss:$24 sps:$4 sm:$0xff]  }
 0x99f   : > { %v9766_v61 = vadd.f32 %v5851_v47, %v14430_v12  ;;  %v9735_v17 = vadd.f32 %v5514_v23, %v14433_v57  ;;  %v5853_v16 = vpop.f32.mrb[157].mxu0  ;;  %v5516_v34 = vpop.f32.mrb[94].mxu1  ;;  %7200 = vmatprep.mubr.bf16.mxu1 %v14619_v51  ;;  %7426 = vmatprep.mubr.bf16.mxu0 %v14619_v51  ;;  %v10865_v60 = vld [vmem:[%s12571_s4 + $0x578] ss:$24 sps:$4 sm:$0xff]   ;;  %v10870_v23 = vld [vmem:[%s12571_s4 + $0x5a4] ss:$24 sps:$4 sm:$0xff]  }
 0x9a0   : > { %v9767_v31 = vadd.f32 %v5853_v16, %v14437_v35  ;;  %v9736_v40 = vadd.f32 %v5516_v34, %v14426_v39  ;;  %v5855_v41 = vpop.f32.mrb[158].mxu0  ;;  %v5518_v4 = vpop.f32.mrb[95].mxu1  ;;  %7201 = vmatmul.mubr.bf16.gmra.mrb[120].mxu1 %v14615_v20  ;;  %7427 = vmatmul.mubr.bf16.gmra.mrb[184].mxu0 %v14615_v20  ;;  %v5916_v46 = vmax.f32 %v9734_v0, 0.0  ;;  %v10873_v16 = vld [vmem:[%s12571_s4 + $0x5ac] ss:$24 sps:$4 sm:$0xff]  }
 0x9a1   : > { %v9768_v58 = vadd.f32 %v5855_v41, %v14430_v12  ;;  %v9737_v49 = vadd.f32 %v5518_v4, %v14433_v57  ;;  %v5857_v22 = vpop.f32.mrb[159].mxu0  ;;  %7246 = vmatpush1.bf16.msra.mxu1 %v10856_v5  ;;  %7472 = vmatpush1.bf16.msra.mxu0 %v10859_v43  ;;  %v5918_v34 = vmax.f32 %v9766_v61, 0.0  ;;  %v5917_v48 = vmax.f32 %v9735_v17, 0.0  ;;  %v10876_v61 = vld [vmem:[%s12571_s4 + $0x5d4] ss:$24 sps:$4 sm:$0xff]  }
 0x9a2   : > { %v5920_v47 = vmax.f32 %v9736_v40, 0.0  ;;  %v9769_v39 = vadd.f32 %v5857_v22, %v14437_v35  ;;  %7247 = vmatprep.subr.bf16.mxu1 %v10864_v33  ;;  %7473 = vmatprep.subr.bf16.mxu0 %v10867_v27  ;;  %v5919_v5 = vmax.f32 %v9767_v31, 0.0  ;;  %v10868_v35 = vld [vmem:[%s12571_s4 + $0x5a0] ss:$24 sps:$4 sm:$0xff]   ;;  %v10879_v17 = vld [vmem:[%s12571_s4 + $0x5dc] ss:$24 sps:$4 sm:$0xff]  }
 0x9a3   : > { %v5922_v12 = vmax.f32 %v9768_v58, 0.0  ;;  %v5921_v57 = vmax.f32 %v9737_v49, 0.0  ;;  %v10871_v27 = vld [vmem:[%s12571_s4 + $0x5a8] ss:$24 sps:$4 sm:$0xff]   ;;  %v10877_v31 = vld [vmem:[%s12571_s4 + $0x5d8] ss:$24 sps:$4 sm:$0xff]  }
 0x9a4   : > { %v14643_v43 = vpack.c.bf16 %v5920_v47, %v5916_v46  ;;  %v5923_v41 = vmax.f32 %v9769_v39, 0.0  ;;  %v10882_v4 = vld [vmem:[%s12571_s4 + $0x14] ss:$24 sps:$4 sm:$0xff]   ;;  %v10880_v58 = vld [vmem:[%s12571_s4 + $0x10] ss:$24 sps:$4 sm:$0xff]  }
 0x9a5   : > { %v14645_v0 = vpack.c.bf16 %v5922_v12, %v5918_v34  ;;  %v14647_v40 = vpack.c.bf16 %v5921_v57, %v5917_v48  ;;  %7248 = vmatpush1.bf16.msra.mxu1 %v10862_v15  ;;  %7474 = vmatpush1.bf16.msra.mxu0 %v10865_v60  ;;  %v10874_v48 = vld [vmem:[%s12571_s4 + $0x5d0] ss:$24 sps:$4 sm:$0xff]   ;;  %v10885_v49 = vld [vmem:[%s12571_s4 + $0x44] ss:$24 sps:$4 sm:$0xff]   ;;  %v10883_v22 = vld [vmem:[%s12571_s4 + $0x40] ss:$24 sps:$4 sm:$0xff]  }
 0x9a6   : > { %v14650_v33 = vpack.c.bf16 %v5923_v41, %v5919_v5  ;;  %7249 = vmatprep.subr.bf16.mxu1 %v10870_v23  ;;  %7475 = vmatprep.subr.bf16.mxu0 %v10873_v16  ;;  %v10888_v15 = vld [vmem:[%s12571_s4 + $0x74] ss:$24 sps:$4 sm:$0xff]   ;;  %v10886_v60 = vld [vmem:[%s12571_s4 + $0x70] ss:$24 sps:$4 sm:$0xff]   ;;  %v10891_v46 = vld [vmem:[%s12571_s4 + $0xa4] ss:$24 sps:$4 sm:$0xff]  }
 0x9a7   : > { %7210 = vmatprep.mubr.bf16.mxu1 %v14647_v40  ;;  %7436 = vmatprep.mubr.bf16.mxu0 %v14647_v40  ;;  %v10889_v47 = vld [vmem:[%s12571_s4 + $0xa0] ss:$24 sps:$4 sm:$0xff]   ;;  %v10894_v39 = vld [vmem:[%s12571_s4 + $0xd4] ss:$24 sps:$4 sm:$0xff]   ;;  %v10892_v23 = vld [vmem:[%s12571_s4 + $0xd0] ss:$24 sps:$4 sm:$0xff]  }
 0x9a8   : > { %7211 = vmatmul.mubr.bf16.gmra.mrb[124].mxu1 %v14643_v43  ;;  %7437 = vmatmul.mubr.bf16.gmra.mrb[188].mxu0 %v14643_v43  ;;  %v10897_v16 = vld [vmem:[%s12571_s4 + $0x104] ss:$24 sps:$4 sm:$0xff]   ;;  %v10895_v34 = vld [vmem:[%s12571_s4 + $0x100] ss:$24 sps:$4 sm:$0xff]   ;;  %v10900_v12 = vld [vmem:[%s12571_s4 + $0x134] ss:$24 sps:$4 sm:$0xff]  }
 0x9a9   : > { %7250 = vmatpush1.bf16.msra.mxu1 %v10868_v35  ;;  %7253 = vmatprep.mubr.bf16.mxu1 %v14455_v13  ;;  %v10898_v57 = vld [vmem:[%s12571_s4 + $0x130] ss:$24 sps:$4 sm:$0xff]   ;;  %v10903_v5 = vld [vmem:[%s12571_s4 + $0x164] ss:$24 sps:$4 sm:$0xff]   ;;  %v10901_v41 = vld [vmem:[%s12571_s4 + $0x160] ss:$24 sps:$4 sm:$0xff]  }
 0x9aa   : > { %7476 = vmatpush1.bf16.msra.mxu0 %v10871_v27  ;;  %7479 = vmatprep.mubr.bf16.mxu0 %v14455_v13  ;;  %v10906_v35 = vld [vmem:[%s12571_s4 + $0x194] ss:$24 sps:$4 sm:$0xff]   ;;  %v10904_v27 = vld [vmem:[%s12571_s4 + $0x190] ss:$24 sps:$4 sm:$0xff]  }
 0x9ab   : > { %7251 = vmatprep.subr.bf16.mxu1 %v10876_v61  ;;  %7477 = vmatprep.subr.bf16.mxu0 %v10879_v17  ;;  %v10909_v61 = vld [vmem:[%s12571_s4 + $0x1c4] ss:$24 sps:$4 sm:$0xff]   ;;  %v10907_v17 = vld [vmem:[%s12571_s4 + $0x1c0] ss:$24 sps:$4 sm:$0xff]  }
 0x9ad   : > { %7252 = vmatpush1.bf16.msra.mxu1 %v10874_v48  ;;  %v10912_v48 = vld [vmem:[%s12571_s4 + $0x1f4] ss:$24 sps:$4 sm:$0xff]  }
 0x9ae   : > { %7478 = vmatpush1.bf16.msra.mxu0 %v10877_v31  ;;  %7560 = vmatprep.subr.bf16.mxu1 %v10882_v4  ;;  %v10910_v31 = vld [vmem:[%s12571_s4 + $0x1f0] ss:$24 sps:$4 sm:$0xff]   ;;  %v10915_v4 = vld [vmem:[%s12571_s4 + $0x224] ss:$24 sps:$4 sm:$0xff]  }
 0x9b0   : > { %7254 = vmatmul.mubr.bf16.vlgmr.msra.gmra.mrb[96].mxu1 %v14449_v45 }
 0x9b1   : > { %7480 = vmatmul.mubr.bf16.vlgmr.msra.gmra.mrb[160].mxu0 %v14449_v45  ;;  %7263 = vmatprep.mubr.bf16.mxu1 %v14483_v8 }
 0x9b2   : > { %7489 = vmatprep.mubr.bf16.mxu0 %v14483_v8  ;;  %7561 = vmatpush1.bf16.msra.mxu1 %v10880_v58  ;;  %v10913_v58 = vld [vmem:[%s12571_s4 + $0x220] ss:$24 sps:$4 sm:$0xff]  }
 0x9b3   : > { %7562 = vmatprep.subr.bf16.mxu1 %v10885_v49  ;;  %v10918_v49 = vld [vmem:[%s12571_s4 + $0x254] ss:$24 sps:$4 sm:$0xff]  }
 0x9b6   : > { %7563 = vmatpush1.bf16.msra.mxu1 %v10883_v22  ;;  %v10916_v22 = vld [vmem:[%s12571_s4 + $0x250] ss:$24 sps:$4 sm:$0xff]  }
 0x9b7   : > { %7564 = vmatprep.subr.bf16.mxu1 %v10888_v15  ;;  %v10921_v15 = vld [vmem:[%s12571_s4 + $0x284] ss:$24 sps:$4 sm:$0xff]  }
 0x9b8   : > { %7264 = vmatmul.mubr.bf16.gmra.mrb[100].mxu1 %v14477_v59 }
 0x9b9   : > { %7490 = vmatmul.mubr.bf16.gmra.mrb[164].mxu0 %v14477_v59  ;;  %7273 = vmatprep.mubr.bf16.mxu1 %v14511_v21 }
 0x9ba   : > { %7499 = vmatprep.mubr.bf16.mxu0 %v14511_v21  ;;  %7565 = vmatpush1.bf16.msra.mxu1 %v10886_v60  ;;  %v10919_v60 = vld [vmem:[%s12571_s4 + $0x280] ss:$24 sps:$4 sm:$0xff]  }
 0x9bb   : > { %7566 = vmatprep.subr.bf16.mxu1 %v10891_v46  ;;  %v10924_v46 = vld [vmem:[%s12571_s4 + $0x2b4] ss:$24 sps:$4 sm:$0xff]  }
 0x9be   : > { %7567 = vmatpush1.bf16.msra.mxu1 %v10889_v47  ;;  %v10922_v47 = vld [vmem:[%s12571_s4 + $0x2b0] ss:$24 sps:$4 sm:$0xff]  }
 0x9bf   : > { %7568 = vmatprep.subr.bf16.mxu1 %v10894_v39  ;;  %v10927_v39 = vld [vmem:[%s12571_s4 + $0x2e4] ss:$24 sps:$4 sm:$0xff]  }
 0x9c0   : > { %7274 = vmatmul.mubr.bf16.gmra.mrb[104].mxu1 %v14505_v37 }
 0x9c1   : > { %7500 = vmatmul.mubr.bf16.gmra.mrb[168].mxu0 %v14505_v37  ;;  %7283 = vmatprep.mubr.bf16.mxu1 %v14539_v14 }
 0x9c2   : > { %7509 = vmatprep.mubr.bf16.mxu0 %v14539_v14  ;;  %7569 = vmatpush1.bf16.msra.mxu1 %v10892_v23  ;;  %v10925_v23 = vld [vmem:[%s12571_s4 + $0x2e0] ss:$24 sps:$4 sm:$0xff]  }
 0x9c3   : > { %7570 = vmatprep.subr.bf16.mxu1 %v10897_v16  ;;  %v10930_v16 = vld [vmem:[%s12571_s4 + $0x314] ss:$24 sps:$4 sm:$0xff]  }
 0x9c6   : > { %7571 = vmatpush1.bf16.msra.mxu1 %v10895_v34  ;;  %v10928_v34 = vld [vmem:[%s12571_s4 + $0x310] ss:$24 sps:$4 sm:$0xff]  }
 0x9c7   : > { %7572 = vmatprep.subr.bf16.mxu1 %v10900_v12  ;;  %v10933_v12 = vld [vmem:[%s12571_s4 + $0x344] ss:$24 sps:$4 sm:$0xff]  }
 0x9c8   : > { %7284 = vmatmul.mubr.bf16.gmra.mrb[108].mxu1 %v14533_v44 }
 0x9c9   : > { %7510 = vmatmul.mubr.bf16.gmra.mrb[172].mxu0 %v14533_v44  ;;  %7293 = vmatprep.mubr.bf16.mxu1 %v14567_v56 }
 0x9ca   : > { %7519 = vmatprep.mubr.bf16.mxu0 %v14567_v56  ;;  %7573 = vmatpush1.bf16.msra.mxu1 %v10898_v57  ;;  %v10931_v57 = vld [vmem:[%s12571_s4 + $0x340] ss:$24 sps:$4 sm:$0xff]  }
 0x9cb   : > { %7574 = vmatprep.subr.bf16.mxu1 %v10903_v5  ;;  %v10934_v5 = vld [vmem:[%s12571_s4 + $0x370] ss:$24 sps:$4 sm:$0xff]  }
 0x9ce   : > { %7575 = vmatpush1.bf16.msra.mxu1 %v10901_v41  ;;  %v10939_v41 = vld [vmem:[%s12571_s4 + $0x3a4] ss:$24 sps:$4 sm:$0xff]  }
 0x9cf   : > { %7576 = vmatprep.subr.bf16.mxu1 %v10906_v35  ;;  %v10940_v35 = vld [vmem:[%s12571_s4 + $0x3d0] ss:$24 sps:$4 sm:$0xff]  }
 0x9d0   : > { %7294 = vmatmul.mubr.bf16.gmra.mrb[112].mxu1 %v14561_v2 }
 0x9d1   : > { %7520 = vmatmul.mubr.bf16.gmra.mrb[176].mxu0 %v14561_v2  ;;  %7303 = vmatprep.mubr.bf16.mxu1 %v14595_v6 }
 0x9d2   : > { %7529 = vmatprep.mubr.bf16.mxu0 %v14595_v6  ;;  %7577 = vmatpush1.bf16.msra.mxu1 %v10904_v27  ;;  %v10945_v27 = vld [vmem:[%s12571_s4 + $0x404] ss:$24 sps:$4 sm:$0xff]  }
 0x9d3   : > { %7578 = vmatprep.subr.bf16.mxu1 %v10909_v61  ;;  %v10946_v61 = vld [vmem:[%s12571_s4 + $0x430] ss:$24 sps:$4 sm:$0xff]  }
 0x9d6   : > { %7579 = vmatpush1.bf16.msra.mxu1 %v10907_v17  ;;  %v10951_v17 = vld [vmem:[%s12571_s4 + $0x464] ss:$24 sps:$4 sm:$0xff]  }
 0x9d7   : > { %7580 = vmatprep.subr.bf16.mxu1 %v10912_v48  ;;  %v10952_v48 = vld [vmem:[%s12571_s4 + $0x490] ss:$24 sps:$4 sm:$0xff]  }
 0x9d8   : > { %7304 = vmatmul.mubr.bf16.gmra.mrb[116].mxu1 %v14589_v36 }
 0x9d9   : > { %7530 = vmatmul.mubr.bf16.gmra.mrb[180].mxu0 %v14589_v36  ;;  %7313 = vmatprep.mubr.bf16.mxu1 %v14623_v7 }
 0x9da   : > { %7539 = vmatprep.mubr.bf16.mxu0 %v14623_v7  ;;  %7581 = vmatpush1.bf16.msra.mxu1 %v10910_v31  ;;  %v10957_v31 = vld [vmem:[%s12571_s4 + $0x4c4] ss:$24 sps:$4 sm:$0xff]  }
 0x9db   : > { %7582 = vmatprep.subr.bf16.mxu1 %v10915_v4  ;;  %v10958_v4 = vld [vmem:[%s12571_s4 + $0x4f0] ss:$24 sps:$4 sm:$0xff]  }
 0x9de   : > { %7583 = vmatpush1.bf16.msra.mxu1 %v10913_v58  ;;  %v10963_v58 = vld [vmem:[%s12571_s4 + $0x524] ss:$24 sps:$4 sm:$0xff]  }
 0x9df   : > { %7584 = vmatprep.subr.bf16.mxu1 %v10918_v49  ;;  %v10964_v49 = vld [vmem:[%s12571_s4 + $0x550] ss:$24 sps:$4 sm:$0xff]  }
 0x9e0   : > { %7314 = vmatmul.mubr.bf16.gmra.mrb[120].mxu1 %v14617_v38 }
 0x9e1   : > { %7540 = vmatmul.mubr.bf16.gmra.mrb[184].mxu0 %v14617_v38  ;;  %7323 = vmatprep.mubr.bf16.mxu1 %v14650_v33 }
 0x9e2   : > { %7549 = vmatprep.mubr.bf16.mxu0 %v14650_v33  ;;  %7585 = vmatpush1.bf16.msra.mxu1 %v10916_v22  ;;  %v10969_v22 = vld [vmem:[%s12571_s4 + $0x584] ss:$24 sps:$4 sm:$0xff]  }
 0x9e3   : > { %7586 = vmatprep.subr.bf16.mxu1 %v10921_v15  ;;  %v10967_v15 = vld [vmem:[%s12571_s4 + $0x580] ss:$24 sps:$4 sm:$0xff]  }
 0x9e6   : > { %7587 = vmatpush1.bf16.msra.mxu1 %v10919_v60  ;;  %v10975_v60 = vld [vmem:[%s12571_s4 + $0x5e4] ss:$24 sps:$4 sm:$0xff]  }
 0x9e7   : > { %7588 = vmatprep.subr.bf16.mxu1 %v10924_v46  ;;  %v10973_v46 = vld [vmem:[%s12571_s4 + $0x5e0] ss:$24 sps:$4 sm:$0xff]  }
 0x9e8   : > { %7324 = vmatmul.mubr.bf16.gmra.mrb[124].mxu1 %v14645_v0 }
 0x9e9   : > { %7550 = vmatmul.mubr.bf16.gmra.mrb[188].mxu0 %v14645_v0  ;;  %7592 = vmatprep.mubr.bf16.mxu1 %v14451_v26  ;;  %v10936_v26 = vld [vmem:[%s12571_s4 + $0x374] ss:$24 sps:$4 sm:$0xff]  }
 0x9ea   : > { %7589 = vmatpush1.bf16.msra.mxu1 %v10922_v47 }
 0x9eb   : > { %7590 = vmatprep.subr.bf16.mxu1 %v10927_v39 }
 0x9ee   : > { %7591 = vmatpush1.bf16.msra.mxu1 %v10925_v23 }
 0x9ef   : > { %7673 = vmatprep.subr.bf16.mxu1 %v10930_v16 }
 0x9f1   : > { %7593 = vmatmul.mubr.bf16.vlgmr.msra.gmra.mrb[128].mxu1 %v14447_v28  ;;  %v10937_v28 = vld [vmem:[%s12571_s4 + $0x3a0] ss:$24 sps:$4 sm:$0xff]  }
 0x9f2   : > { %7602 = vmatprep.mubr.bf16.mxu1 %v14479_v30  ;;  %7674 = vmatpush1.bf16.msra.mxu1 %v10928_v34  ;;  %v10942_v30 = vld [vmem:[%s12571_s4 + $0x3d4] ss:$24 sps:$4 sm:$0xff]  }
 0x9f3   : > { %7675 = vmatprep.subr.bf16.mxu1 %v10933_v12 }
 0x9f6   : > { %7676 = vmatpush1.bf16.msra.mxu1 %v10931_v57 }
 0x9f7   : > { %7677 = vmatprep.subr.bf16.mxu1 %v10936_v26 }
 0x9f9   : > { %7603 = vmatmul.mubr.bf16.gmra.mrb[132].mxu1 %v14475_v25  ;;  %v10943_v25 = vld [vmem:[%s12571_s4 + $0x400] ss:$24 sps:$4 sm:$0xff]  }
 0x9fa   : > { %7612 = vmatprep.mubr.bf16.mxu1 %v14507_v63  ;;  %7678 = vmatpush1.bf16.msra.mxu1 %v10934_v5  ;;  %v10948_v63 = vld [vmem:[%s12571_s4 + $0x434] ss:$24 sps:$4 sm:$0xff]  }
 0x9fb   : > { %7679 = vmatprep.subr.bf16.mxu1 %v10939_v41 }
 0x9fe   : > { %7680 = vmatpush1.bf16.msra.mxu1 %v10937_v28 }
 0x9ff   : > { %7681 = vmatprep.subr.bf16.mxu1 %v10942_v30 }
 0xa01   : > { %7613 = vmatmul.mubr.bf16.gmra.mrb[136].mxu1 %v14503_v9  ;;  %v10949_v9 = vld [vmem:[%s12571_s4 + $0x460] ss:$24 sps:$4 sm:$0xff]  }
 0xa02   : > { %7622 = vmatprep.mubr.bf16.mxu1 %v14535_v24  ;;  %7682 = vmatpush1.bf16.msra.mxu1 %v10940_v35  ;;  %v10954_v24 = vld [vmem:[%s12571_s4 + $0x494] ss:$24 sps:$4 sm:$0xff]  }
 0xa03   : > { %7683 = vmatprep.subr.bf16.mxu1 %v10945_v27 }
 0xa06   : > { %7684 = vmatpush1.bf16.msra.mxu1 %v10943_v25 }
 0xa07   : > { %7685 = vmatprep.subr.bf16.mxu1 %v10948_v63 }
 0xa09   : > { %7623 = vmatmul.mubr.bf16.gmra.mrb[140].mxu1 %v14531_v53  ;;  %v10955_v53 = vld [vmem:[%s12571_s4 + $0x4c0] ss:$24 sps:$4 sm:$0xff]  }
 0xa0a   : > { %7632 = vmatprep.mubr.bf16.mxu1 %v14563_v55  ;;  %7686 = vmatpush1.bf16.msra.mxu1 %v10946_v61  ;;  %v10960_v55 = vld [vmem:[%s12571_s4 + $0x4f4] ss:$24 sps:$4 sm:$0xff]  }
 0xa0b   : > { %7687 = vmatprep.subr.bf16.mxu1 %v10951_v17 }
 0xa0e   : > { %7688 = vmatpush1.bf16.msra.mxu1 %v10949_v9 }
 0xa0f   : > { %7689 = vmatprep.subr.bf16.mxu1 %v10954_v24 }
 0xa11   : > { %7633 = vmatmul.mubr.bf16.gmra.mrb[144].mxu1 %v14559_v29  ;;  %v10961_v29 = vld [vmem:[%s12571_s4 + $0x520] ss:$24 sps:$4 sm:$0xff]  }
 0xa12   : > { %7642 = vmatprep.mubr.bf16.mxu1 %v14591_v62  ;;  %7690 = vmatpush1.bf16.msra.mxu1 %v10952_v48  ;;  %v10966_v62 = vld [vmem:[%s12571_s4 + $0x554] ss:$24 sps:$4 sm:$0xff]  }
 0xa13   : > { %7691 = vmatprep.subr.bf16.mxu1 %v10957_v31 }
 0xa16   : > { %7692 = vmatpush1.bf16.msra.mxu1 %v10955_v53 }
 0xa17   : > { %7693 = vmatprep.subr.bf16.mxu1 %v10960_v55 }
 0xa19   : > { %7643 = vmatmul.mubr.bf16.gmra.mrb[148].mxu1 %v14587_v18  ;;  %v10972_v18 = vld [vmem:[%s12571_s4 + $0x5b4] ss:$24 sps:$4 sm:$0xff]  }
 0xa1a   : > { %7652 = vmatprep.mubr.bf16.mxu1 %v14619_v51  ;;  %7694 = vmatpush1.bf16.msra.mxu1 %v10958_v4  ;;  %v10970_v51 = vld [vmem:[%s12571_s4 + $0x5b0] ss:$24 sps:$4 sm:$0xff]  }
 0xa1b   : > { %7695 = vmatprep.subr.bf16.mxu1 %v10963_v58 }
 0xa1e   : > { %7696 = vmatpush1.bf16.msra.mxu1 %v10961_v29 }
 0xa1f   : > { %7697 = vmatprep.subr.bf16.mxu1 %v10966_v62 }
 0xa21   : > { %7653 = vmatmul.mubr.bf16.gmra.mrb[152].mxu1 %v14615_v20 }
 0xa22   : > { %7662 = vmatprep.mubr.bf16.mxu1 %v14647_v40  ;;  %7698 = vmatpush1.bf16.msra.mxu1 %v10964_v49 }
 0xa23   : > { %7699 = vmatprep.subr.bf16.mxu1 %v10969_v22 }
 0xa26   : > { %7700 = vmatpush1.bf16.msra.mxu1 %v10967_v15 }
 0xa27   : > { %7701 = vmatprep.subr.bf16.mxu1 %v10972_v18 }
 0xa29   : > { %7663 = vmatmul.mubr.bf16.gmra.mrb[156].mxu1 %v14643_v43 }
 0xa2a   : > { %7702 = vmatpush1.bf16.msra.mxu1 %v10970_v51  ;;  %7705 = vmatprep.mubr.bf16.mxu1 %v14455_v13 }
 0xa2b   : > { %7703 = vmatprep.subr.bf16.mxu1 %v10975_v60 }
 0xa2e   : > { %7704 = vmatpush1.bf16.msra.mxu1 %v10973_v46 }
 0xa31   : > { %7706 = vmatmul.mubr.bf16.vlgmr.msra.gmra.mrb[128].mxu1 %v14449_v45 }
 0xa32   : > { %7715 = vmatprep.mubr.bf16.mxu1 %v14483_v8  ;;  %v7786_v8 = vld [vmem:[%s778_s3] sm:$0x3] }
 0xa33   : > { %v14800_v13 = vrot.slane %v7786_v8, %v16074_v3 }
 0xa39   : > { %7716 = vmatmul.mubr.bf16.gmra.mrb[132].mxu1 %v14477_v59 }
 0xa3a   : > { %7725 = vmatprep.mubr.bf16.mxu1 %v14511_v21 }
 0xa41   : > { %7726 = vmatmul.mubr.bf16.gmra.mrb[136].mxu1 %v14505_v37 }
 0xa42   : > { %7735 = vmatprep.mubr.bf16.mxu1 %v14539_v14 }
 0xa49   : > { %7736 = vmatmul.mubr.bf16.gmra.mrb[140].mxu1 %v14533_v44 }
 0xa4a   : > { %7745 = vmatprep.mubr.bf16.mxu1 %v14567_v56 }
 0xa51   : > { %7746 = vmatmul.mubr.bf16.gmra.mrb[144].mxu1 %v14561_v2  ;;  %v14804_v2 = vrot.slane %v7786_v8, %v16076_v11 }
 0xa52   : > { %7755 = vmatprep.mubr.bf16.mxu1 %v14595_v6 }
 0xa59   : > { %7756 = vmatmul.mubr.bf16.gmra.mrb[148].mxu1 %v14589_v36 }
 0xa5a   : > { %7765 = vmatprep.mubr.bf16.mxu1 %v14623_v7 }
 0xa61   : > { %7766 = vmatmul.mubr.bf16.gmra.mrb[152].mxu1 %v14617_v38 }
 0xa62   : > { %7775 = vmatprep.mubr.bf16.mxu1 %v14650_v33 }
 0xa69   : > { %7776 = vmatmul.mubr.bf16.gmra.mrb[156].mxu1 %v14645_v0 }
 0xa83   : > { %v14791_v14 = vpop.f32.mrb[96].mxu1 }
 0xa84   : > { %v14793_v21 = vpop.f32.mrb[160].mxu0  ;;  %v14795_v56 = vpop.f32.mrb[97].mxu1  ;;  %v7787_v7 = vrot.slane %v14791_v14, 7 }
 0xa85   : > { %v14797_v45 = vpop.f32.mrb[161].mxu0  ;;  %v7259_v6 = vpop.f32.mrb[98].mxu1  ;;  %v7788_v36 = vrot.slane %v14795_v56, 7 }
 0xa86   : > { %v7789_v59 = vrot.slane %v7259_v6, 7  ;;  %v7485_v37 = vpop.f32.mrb[162].mxu0  ;;  %v7261_v44 = vpop.f32.mrb[99].mxu1 }
 0xa87   : > { %v7790_v20 = vrot.slane %v7261_v44, 7  ;;  %v7487_v38 = vpop.f32.mrb[163].mxu0 }
 0xa88   : > { %v7847_v43 = vsel %vm3702_vm1, %v7787_v7, %v7789_v59 }
 0xa89   : > { %v7896_v0 = vadd.f32 %v14800_v13, %v7847_v43  ;;  %v7848_v40 = vsel %vm3702_vm1, %v7788_v36, %v7790_v20 }
 0xa8a   : > { %v7897_v33 = vadd.f32 %v14804_v2, %v7848_v40 }
 0xa8b   : > { %v14817_v47 = vadd.f32 %v7896_v0, %v7485_v37  ;;  %v7265_v39 = vpop.f32.mrb[100].mxu1 }
 0xa8c   : > { %v14819_v23 = vadd.f32 %v7897_v33, %v7487_v38  ;;  %v7791_v16 = vrot.slane %v7265_v39, 7  ;;  %v7491_v34 = vpop.f32.mrb[164].mxu0  ;;  %v7267_v12 = vpop.f32.mrb[101].mxu1 }
 0xa8d   : > { %v7792_v57 = vrot.slane %v7267_v12, 7  ;;  %v7493_v26 = vpop.f32.mrb[165].mxu0  ;;  %v7269_v5 = vpop.f32.mrb[102].mxu1 }
 0xa8e   : > { %v7845_v41 = vsel %vm3702_vm1, %v7789_v59, %v7791_v16  ;;  %v7793_v28 = vrot.slane %v7269_v5, 7  ;;  %v7495_v30 = vpop.f32.mrb[166].mxu0  ;;  %v7271_v35 = vpop.f32.mrb[103].mxu1 }
 0xa8f   : > { %v7898_v27 = vadd.f32 %v14800_v13, %v7845_v41  ;;  %v7846_v25 = vsel %vm3702_vm1, %v7790_v20, %v7792_v57  ;;  %v7794_v63 = vrot.slane %v7271_v35, 7  ;;  %v7497_v61 = vpop.f32.mrb[167].mxu0 }
 0xa90   : > { %v7899_v17 = vadd.f32 %v14804_v2, %v7846_v25  ;;  %v7843_v9 = vsel %vm3702_vm1, %v7791_v16, %v7793_v28 }
 0xa91   : > { %v14829_v24 = vadd.f32 %v7898_v27, %v7491_v34  ;;  %v7900_v48 = vadd.f32 %v14800_v13, %v7843_v9  ;;  %v7844_v31 = vsel %vm3702_vm1, %v7792_v57, %v7794_v63 }
 0xa92   : > { %v14834_v53 = vadd.f32 %v7899_v17, %v7493_v26  ;;  %v7901_v55 = vadd.f32 %v14804_v2, %v7844_v31 }
 0xa93   : > { %v14837_v4 = vadd.f32 %v7900_v48, %v7495_v30  ;;  %v7275_v58 = vpop.f32.mrb[104].mxu1 }
 0xa94   : > { %v14839_v29 = vadd.f32 %v7901_v55, %v7497_v61  ;;  %v7795_v62 = vrot.slane %v7275_v58, 7  ;;  %v7501_v49 = vpop.f32.mrb[168].mxu0  ;;  %v7277_v22 = vpop.f32.mrb[105].mxu1 }
 0xa95   : > { %v7796_v15 = vrot.slane %v7277_v22, 7  ;;  %v7503_v18 = vpop.f32.mrb[169].mxu0  ;;  %v7279_v51 = vpop.f32.mrb[106].mxu1 }
 0xa96   : > { %v7841_v60 = vsel %vm3702_vm1, %v7793_v28, %v7795_v62  ;;  %v7797_v46 = vrot.slane %v7279_v51, 7  ;;  %v7505_v8 = vpop.f32.mrb[170].mxu0  ;;  %v7281_v6 = vpop.f32.mrb[107].mxu1 }
 0xa97   : > { %v7902_v59 = vadd.f32 %v14800_v13, %v7841_v60  ;;  %v7842_v37 = vsel %vm3702_vm1, %v7794_v63, %v7796_v15  ;;  %v7798_v44 = vrot.slane %v7281_v6, 7  ;;  %v7507_v20 = vpop.f32.mrb[171].mxu0 }
 0xa98   : > { %v7903_v38 = vadd.f32 %v14804_v2, %v7842_v37  ;;  %v7839_v43 = vsel %vm3702_vm1, %v7795_v62, %v7797_v46 }
 0xa99   : > { %v14849_v0 = vadd.f32 %v7902_v59, %v7501_v49  ;;  %v7904_v40 = vadd.f32 %v14800_v13, %v7839_v43  ;;  %v7840_v33 = vsel %vm3702_vm1, %v7796_v15, %v7798_v44 }
 0xa9a   : > { %v14854_v39 = vadd.f32 %v7903_v38, %v7503_v18  ;;  %v7905_v16 = vadd.f32 %v14804_v2, %v7840_v33 }
 0xa9b   : > { %v14857_v34 = vadd.f32 %v7904_v40, %v7505_v8  ;;  %v7285_v12 = vpop.f32.mrb[108].mxu1 }
 0xa9c   : > { %v14859_v57 = vadd.f32 %v7905_v16, %v7507_v20  ;;  %v7799_v26 = vrot.slane %v7285_v12, 7  ;;  %v7511_v5 = vpop.f32.mrb[172].mxu0  ;;  %v7287_v41 = vpop.f32.mrb[109].mxu1 }
 0xa9d   : > { %v7800_v28 = vrot.slane %v7287_v41, 7  ;;  %v7513_v30 = vpop.f32.mrb[173].mxu0  ;;  %v7289_v35 = vpop.f32.mrb[110].mxu1 }
 0xa9e   : > { %v7837_v27 = vsel %vm3702_vm1, %v7797_v46, %v7799_v26  ;;  %v7801_v25 = vrot.slane %v7289_v35, 7  ;;  %v7515_v63 = vpop.f32.mrb[174].mxu0  ;;  %v7291_v61 = vpop.f32.mrb[111].mxu1 }
 0xa9f   : > { %v7906_v17 = vadd.f32 %v14800_v13, %v7837_v27  ;;  %v7838_v9 = vsel %vm3702_vm1, %v7798_v44, %v7800_v28  ;;  %v7802_v48 = vrot.slane %v7291_v61, 7  ;;  %v7517_v31 = vpop.f32.mrb[175].mxu0 }
 0xaa0   : > { %v7907_v55 = vadd.f32 %v14804_v2, %v7838_v9  ;;  %v7835_v58 = vsel %vm3702_vm1, %v7799_v26, %v7801_v25 }
 0xaa1   : > { %v14869_v62 = vadd.f32 %v7906_v17, %v7511_v5  ;;  %v7908_v49 = vadd.f32 %v14800_v13, %v7835_v58  ;;  %v7836_v22 = vsel %vm3702_vm1, %v7800_v28, %v7802_v48 }
 0xaa2   : > { %v14874_v15 = vadd.f32 %v7907_v55, %v7513_v30  ;;  %v7909_v18 = vadd.f32 %v14804_v2, %v7836_v22 }
 0xaa3   : > { %v14877_v51 = vadd.f32 %v7908_v49, %v7515_v63  ;;  %v7295_v60 = vpop.f32.mrb[112].mxu1 }
 0xaa4   : > { %v14879_v46 = vadd.f32 %v7909_v18, %v7517_v31  ;;  %v7803_v8 = vrot.slane %v7295_v60, 7  ;;  %v7521_v6 = vpop.f32.mrb[176].mxu0  ;;  %v7297_v59 = vpop.f32.mrb[113].mxu1 }
 0xaa5   : > { %v7804_v37 = vrot.slane %v7297_v59, 7  ;;  %v7523_v44 = vpop.f32.mrb[177].mxu0  ;;  %v7299_v20 = vpop.f32.mrb[114].mxu1 }
 0xaa6   : > { %v7833_v38 = vsel %vm3702_vm1, %v7801_v25, %v7803_v8  ;;  %v7805_v43 = vrot.slane %v7299_v20, 7  ;;  %v7525_v40 = vpop.f32.mrb[178].mxu0  ;;  %v7301_v33 = vpop.f32.mrb[115].mxu1 }
 0xaa7   : > { %v7910_v16 = vadd.f32 %v14800_v13, %v7833_v38  ;;  %v7834_v12 = vsel %vm3702_vm1, %v7802_v48, %v7804_v37  ;;  %v7806_v26 = vrot.slane %v7301_v33, 7  ;;  %v7527_v5 = vpop.f32.mrb[179].mxu0 }
 0xaa8   : > { %v7911_v41 = vadd.f32 %v14804_v2, %v7834_v12  ;;  %v7831_v28 = vsel %vm3702_vm1, %v7803_v8, %v7805_v43 }
 0xaa9   : > { %v14889_v30 = vadd.f32 %v7910_v16, %v7521_v6  ;;  %v7912_v35 = vadd.f32 %v14800_v13, %v7831_v28  ;;  %v7832_v27 = vsel %vm3702_vm1, %v7804_v37, %v7806_v26 }
 0xaaa   : > { %v14894_v25 = vadd.f32 %v7911_v41, %v7523_v44  ;;  %v7913_v63 = vadd.f32 %v14804_v2, %v7832_v27 }
 0xaab   : > { %v14897_v61 = vadd.f32 %v7912_v35, %v7525_v40  ;;  %v7305_v17 = vpop.f32.mrb[116].mxu1 }
 0xaac   : > { %v14899_v9 = vadd.f32 %v7913_v63, %v7527_v5  ;;  %v7807_v48 = vrot.slane %v7305_v17, 7  ;;  %v7531_v31 = vpop.f32.mrb[180].mxu0  ;;  %v7307_v55 = vpop.f32.mrb[117].mxu1 }
 0xaad   : > { %v7808_v58 = vrot.slane %v7307_v55, 7  ;;  %v7533_v49 = vpop.f32.mrb[181].mxu0  ;;  %v7309_v22 = vpop.f32.mrb[118].mxu1 }
 0xaae   : > { %v7829_v18 = vsel %vm3702_vm1, %v7805_v43, %v7807_v48  ;;  %v7809_v60 = vrot.slane %v7309_v22, 7  ;;  %v7535_v8 = vpop.f32.mrb[182].mxu0  ;;  %v7311_v6 = vpop.f32.mrb[119].mxu1 }
 0xaaf   : > { %v7914_v59 = vadd.f32 %v14800_v13, %v7829_v18  ;;  %v7830_v37 = vsel %vm3702_vm1, %v7806_v26, %v7808_v58  ;;  %v7810_v44 = vrot.slane %v7311_v6, 7  ;;  %v7537_v20 = vpop.f32.mrb[183].mxu0 }
 0xab0   : > { %v7915_v38 = vadd.f32 %v14804_v2, %v7830_v37  ;;  %v7827_v40 = vsel %vm3702_vm1, %v7807_v48, %v7809_v60 }
 0xab1   : > { %v14909_v33 = vadd.f32 %v7914_v59, %v7531_v31  ;;  %v7916_v16 = vadd.f32 %v14800_v13, %v7827_v40  ;;  %v7828_v43 = vsel %vm3702_vm1, %v7808_v58, %v7810_v44 }
 0xab2   : > { %v14914_v12 = vadd.f32 %v7915_v38, %v7533_v49  ;;  %v7917_v5 = vadd.f32 %v14804_v2, %v7828_v43 }
 0xab3   : > { %v14917_v41 = vadd.f32 %v7916_v16, %v7535_v8  ;;  %v7315_v26 = vpop.f32.mrb[120].mxu1 }
 0xab4   : > { %v14919_v28 = vadd.f32 %v7917_v5, %v7537_v20  ;;  %v7811_v35 = vrot.slane %v7315_v26, 7  ;;  %v7541_v27 = vpop.f32.mrb[184].mxu0  ;;  %v7317_v63 = vpop.f32.mrb[121].mxu1 }
 0xab5   : > { %v7812_v17 = vrot.slane %v7317_v63, 7  ;;  %v7543_v48 = vpop.f32.mrb[185].mxu0  ;;  %v7319_v31 = vpop.f32.mrb[122].mxu1 }
 0xab6   : > { %v7825_v55 = vsel %vm3702_vm1, %v7809_v60, %v7811_v35  ;;  %v7813_v22 = vrot.slane %v7319_v31, 7  ;;  %v7545_v58 = vpop.f32.mrb[186].mxu0  ;;  %v7321_v49 = vpop.f32.mrb[123].mxu1 }
 0xab7   : > { %v7918_v18 = vadd.f32 %v14800_v13, %v7825_v55  ;;  %v7826_v8 = vsel %vm3702_vm1, %v7810_v44, %v7812_v17  ;;  %v7814_v6 = vrot.slane %v7321_v49, 7  ;;  %v7547_v59 = vpop.f32.mrb[187].mxu0 }
 0xab8   : > { %v7919_v37 = vadd.f32 %v14804_v2, %v7826_v8  ;;  %v7823_v20 = vsel %vm3702_vm1, %v7811_v35, %v7813_v22 }
 0xab9   : > { %v14929_v38 = vadd.f32 %v7918_v18, %v7541_v27  ;;  %v7920_v40 = vadd.f32 %v14800_v13, %v7823_v20  ;;  %v7824_v60 = vsel %vm3702_vm1, %v7812_v17, %v7814_v6 }
 0xaba   : > { %v14934_v16 = vadd.f32 %v7919_v37, %v7543_v48  ;;  %v7921_v43 = vadd.f32 %v14804_v2, %v7824_v60 }
 0xabb   : > { %v14937_v5 = vadd.f32 %v7920_v40, %v7545_v58  ;;  %v7325_v44 = vpop.f32.mrb[124].mxu1 }
 0xabc   : > { %v14939_v26 = vadd.f32 %v7921_v43, %v7547_v59  ;;  %v7815_v63 = vrot.slane %v7325_v44, 7  ;;  %v7551_v31 = vpop.f32.mrb[188].mxu0  ;;  %v7327_v55 = vpop.f32.mrb[125].mxu1 }
 0xabd   : > { %v7816_v35 = vrot.slane %v7327_v55, 7  ;;  %v7553_v27 = vpop.f32.mrb[189].mxu0  ;;  %v7329_v49 = vpop.f32.mrb[126].mxu1 }
 0xabe   : > { %v7821_v18 = vsel %vm3702_vm1, %v7813_v22, %v7815_v63  ;;  %v7817_v8 = vrot.slane %v7329_v49, 7  ;;  %v7555_v17 = vpop.f32.mrb[190].mxu0  ;;  %v7331_v48 = vpop.f32.mrb[127].mxu1 }
 0xabf   : > { %v7922_v37 = vadd.f32 %v14800_v13, %v7821_v18  ;;  %v7822_v58 = vsel %vm3702_vm1, %v7814_v6, %v7816_v35  ;;  %v7818_v20 = vrot.slane %v7331_v48, 7  ;;  %v7557_v59 = vpop.f32.mrb[191].mxu0 }
 0xac0   : > { %v7923_v40 = vadd.f32 %v14804_v2, %v7822_v58  ;;  %v7849_v60 = vsel %vm3702_vm1, %v7817_v8, %v7787_v7  ;;  %v7819_v22 = vsel %vm3702_vm1, %v7815_v63, %v7817_v8 }
 0xac1   : > { %v14953_v43 = vadd.f32 %v7922_v37, %v7551_v31  ;;  %v7851_v44 = vsel %vm3735_vm2, %v7849_v60, 0.0  ;;  %v7924_v55 = vadd.f32 %v14800_v13, %v7819_v22  ;;  %v7850_v6 = vsel %vm3702_vm1, %v7818_v20, %v7788_v36 }
 0xac2   : > { %v14962_v49 = vadd.f32 %v7923_v40, %v7553_v27  ;;  %v7894_v14 = vadd.f32 %v14800_v13, %v7851_v44  ;;  %v7852_v7 = vsel %vm3735_vm2, %v7850_v6, 0.0  ;;  %v7820_v63 = vsel %vm3702_vm1, %v7816_v35, %v7818_v20 }
 0xac3   : > { %v14969_v31 = vadd.f32 %v7924_v55, %v7555_v17  ;;  %v7895_v18 = vadd.f32 %v14804_v2, %v7852_v7  ;;  %v7925_v8 = vadd.f32 %v14804_v2, %v7820_v63 }
 0xac4   : > { %v7926_v56 = vadd.f32 %v7894_v14, %v14793_v21 }
 0xac5   : > { %v14974_v48 = vadd.f32 %v7925_v8, %v7557_v59  ;;  %v7927_v36 = vadd.f32 %v7895_v18, %v14797_v45 }
 0xb04   : > { %v14977_v27 = vpop.f32.mrb[128].mxu1 }
 0xb05   : > { %v14979_v13 = vpop.f32.mrb[129].mxu1  ;;  %v7958_v58 = vrot.slane %v14977_v27, 1 }
 0xb06   : > { %v7711_v37 = vpop.f32.mrb[130].mxu1  ;;  %v7959_v20 = vrot.slane %v14979_v13, 1 }
 0xb07   : > { %v7960_v35 = vrot.slane %v7711_v37, 1  ;;  %v7713_v17 = vpop.f32.mrb[131].mxu1 }
 0xb08   : > { %v7961_v40 = vrot.slane %v7713_v17, 1 }
 0xb09   : > { %v8018_v21 = vsel %vm3847_vm5, %v7958_v58, %v7960_v35 }
 0xb0a   : > { %v8019_v45 = vsel %vm3847_vm5, %v7959_v20, %v7961_v40  ;;  %v8054_v2 = vadd.f32 %v8018_v21, %v7926_v56 }
 0xb0b   : > { %v8055_v59 = vadd.f32 %v8019_v45, %v7927_v36 }
 0xb0c   : > { %v7717_v60 = vpop.f32.mrb[132].mxu1  ;;  %v14992_v22 = vadd.f32 %v8054_v2, %v16067_v42 }
 0xb0d   : > { %v7962_v44 = vrot.slane %v7717_v60, 1  ;;  %v7719_v55 = vpop.f32.mrb[133].mxu1  ;;  %v14995_v6 = vadd.f32 %v8055_v59, %v13726_v19 }
 0xb0e   : > { %v7963_v14 = vrot.slane %v7719_v55, 1  ;;  %v7721_v7 = vpop.f32.mrb[134].mxu1 }
 0xb0f   : > { %v8016_v63 = vsel %vm3847_vm5, %v7960_v35, %v7962_v44  ;;  %v7964_v18 = vrot.slane %v7721_v7, 1  ;;  %v7723_v8 = vpop.f32.mrb[135].mxu1  ;;  %v8120_v56 = vadd.f32 %v14995_v6, %v14992_v22 }
 0xb10   : > { %v8017_v36 = vsel %vm3847_vm5, %v7961_v40, %v7963_v14  ;;  %v7965_v42 = vrot.slane %v7723_v8, 1  ;;  %v8056_v37 = vadd.f32 %v8016_v63, %v14817_v47 }
 0xb11   : > { %v8014_v19 = vsel %vm3847_vm5, %v7962_v44, %v7964_v18  ;;  %8121 = vadd.xlane.f32.xlu0 %v8120_v56  ;;  %v8057_v17 = vadd.f32 %v8017_v36, %v14819_v23 }
 0xb12   : > { %v8058_v21 = vadd.f32 %v8014_v19, %v14829_v24  ;;  %v8015_v35 = vsel %vm3847_vm5, %v7963_v14, %v7965_v42  ;;  %v15011_v45 = vadd.f32 %v8056_v37, %v16068_v52  ;;  %v16078_v19 = vld [vmem:[#allocation66_spill] sm:$0xff] }
 0xb13   : > { %v8059_v2 = vadd.f32 %v8015_v35, %v14834_v53  ;;  %v15015_v40 = vadd.f32 %v8057_v17, %v16066_v54 }
 0xb14   : > { %v7727_v47 = vpop.f32.mrb[136].mxu1  ;;  %v15018_v59 = vadd.f32 %v8058_v21, %v13736_v10  ;;  %v16079_v21 = vld [vmem:[#allocation68_spill] sm:$0xff] }
 0xb15   : > { %v7966_v60 = vrot.slane %v7727_v47, 1  ;;  %v7729_v44 = vpop.f32.mrb[137].mxu1  ;;  %v8123_v23 = vadd.f32 %v15015_v40, %v15011_v45  ;;  %v15023_v24 = vadd.f32 %v8059_v2, %v13739_v50  ;;  %v16080_v47 = vld [vmem:[#allocation63_spill] sm:$0xff] }
 0xb16   : > { %v7967_v55 = vrot.slane %v7729_v44, 1  ;;  %v7731_v52 = vpop.f32.mrb[138].mxu1 }
 0xb17   : > { %v8012_v53 = vsel %vm3847_vm5, %v7964_v18, %v7966_v60  ;;  %v7968_v14 = vrot.slane %v7731_v52, 1  ;;  %8124 = vadd.xlane.f32.xlu1 %v8123_v23  ;;  %v7733_v54 = vpop.f32.mrb[139].mxu1  ;;  %v8126_v10 = vadd.f32 %v15023_v24, %v15018_v59 }
 0xb18   : > { %v8060_v7 = vadd.f32 %v8012_v53, %v14837_v4  ;;  %v8013_v63 = vsel %vm3847_vm5, %v7965_v42, %v7967_v55  ;;  %v7969_v8 = vrot.slane %v7733_v54, 1 }
 0xb19   : > { %v8061_v50 = vadd.f32 %v8013_v63, %v14839_v29  ;;  %v8010_v56 = vsel %vm3847_vm5, %v7966_v60, %v7968_v14  ;;  %8127 = vadd.xlane.f32.xlu0 %v8126_v10 }
 0xb1a   : > { %v8062_v18 = vadd.f32 %v8010_v56, %v14849_v0  ;;  %v8011_v36 = vsel %vm3847_vm5, %v7967_v55, %v7969_v8  ;;  %v15039_v37 = vadd.f32 %v8060_v7, %v13818_v32  ;;  %v16081_v56 = vld [vmem:[#allocation69_spill] sm:$0xff] }
 0xb1b   : > { %v8063_v4 = vadd.f32 %v8011_v36, %v14854_v39  ;;  %v15043_v17 = vadd.f32 %v8061_v50, %v16078_v19  ;;  %v16082_v36 = vld [vmem:[#allocation67_spill] sm:$0xff]  ;;  %v16083_v19 = vld [vmem:[#allocation74_spill] sm:$0xff] }
 0xb1c   : > { %v7737_v42 = vpop.f32.mrb[140].mxu1  ;;  %v15046_v29 = vadd.f32 %v8062_v18, %v16079_v21 }
 0xb1d   : > { %v7970_v35 = vrot.slane %v7737_v42, 1  ;;  %v7739_v2 = vpop.f32.mrb[141].mxu1  ;;  %v8129_v0 = vadd.f32 %v15043_v17, %v15039_v37  ;;  %v15051_v60 = vadd.f32 %v8063_v4, %v16080_v47 }
 0xb1e   : > { %v7971_v44 = vrot.slane %v7739_v2, 1  ;;  %v7741_v32 = vpop.f32.mrb[142].mxu1 }
 0xb1f   : > { %v8008_v39 = vsel %vm3847_vm5, %v7968_v14, %v7970_v35  ;;  %v7972_v23 = vrot.slane %v7741_v32, 1  ;;  %8130 = vadd.xlane.f32.xlu1 %v8129_v0  ;;  %v7743_v55 = vpop.f32.mrb[143].mxu1  ;;  %v8132_v52 = vadd.f32 %v15051_v60, %v15046_v29 }
 0xb20   : > { %v8064_v53 = vadd.f32 %v8008_v39, %v14857_v34  ;;  %v8009_v54 = vsel %vm3847_vm5, %v7969_v8, %v7971_v44  ;;  %v7973_v10 = vrot.slane %v7743_v55, 1 }
 0xb21   : > { %v8065_v7 = vadd.f32 %v8009_v54, %v14859_v57  ;;  %v8006_v63 = vsel %vm3847_vm5, %v7970_v35, %v7972_v23  ;;  %8133 = vadd.xlane.f32.xlu0 %v8132_v52  ;;  %v16084_v35 = vld [vmem:[#allocation71_spill] sm:$0xff] }
 0xb22   : > { %v8066_v14 = vadd.f32 %v8006_v63, %v14869_v62  ;;  %v8007_v50 = vsel %vm3847_vm5, %v7971_v44, %v7973_v10  ;;  %v15067_v18 = vadd.f32 %v8064_v53, %v16081_v56  ;;  %v16086_v56 = vld [vmem:[#allocation70_spill] sm:$0xff] }
 0xb23   : > { %v8067_v34 = vadd.f32 %v8007_v50, %v14874_v15  ;;  %v15071_v4 = vadd.f32 %v8065_v7, %v16082_v36  ;;  %v16087_v36 = vld [vmem:[#allocation78_spill] sm:$0xff] }
 0xb24   : > { %v7747_v8 = vpop.f32.mrb[144].mxu1  ;;  %v15074_v57 = vadd.f32 %v8066_v14, %v16083_v19  ;;  %v16085_v14 = vld [vmem:[#allocation72_spill] sm:$0xff] }
 0xb25   : > { %v7974_v42 = vrot.slane %v7747_v8, 1  ;;  %v7749_v21 = vpop.f32.mrb[145].mxu1  ;;  %v8135_v62 = vadd.f32 %v15071_v4, %v15067_v18  ;;  %v15079_v2 = vadd.f32 %v8067_v34, %v16084_v35 }
 0xb26   : > { %v7975_v0 = vrot.slane %v7749_v21, 1  ;;  %v7751_v47 = vpop.f32.mrb[146].mxu1 }
 0xb27   : > { %v8004_v15 = vsel %vm3847_vm5, %v7972_v23, %v7974_v42  ;;  %v7976_v44 = vrot.slane %v7751_v47, 1  ;;  %8136 = vadd.xlane.f32.xlu1 %v8135_v62  ;;  %v7753_v32 = vpop.f32.mrb[147].mxu1  ;;  %v8138_v39 = vadd.f32 %v15079_v2, %v15074_v57 }
 0xb28   : > { %v8068_v55 = vadd.f32 %v8004_v15, %v14877_v51  ;;  %v8005_v52 = vsel %vm3847_vm5, %v7973_v10, %v7975_v0  ;;  %v7977_v53 = vrot.slane %v7753_v32, 1 }
 0xb29   : > { %v8069_v54 = vadd.f32 %v8005_v52, %v14879_v46  ;;  %v8002_v7 = vsel %vm3847_vm5, %v7974_v42, %v7976_v44  ;;  %8139 = vadd.xlane.f32.xlu0 %v8138_v39  ;;  %v16088_v42 = vld [vmem:[#allocation75_spill] sm:$0xff] }
 0xb2a   : > { %v8070_v23 = vadd.f32 %v8002_v7, %v14889_v30  ;;  %v8003_v63 = vsel %vm3847_vm5, %v7975_v0, %v7977_v53  ;;  %v15095_v50 = vadd.f32 %v8068_v55, %v16085_v14  ;;  %v16090_v14 = vld [vmem:[#allocation73_spill] sm:$0xff] }
 0xb2b   : > { %v8071_v51 = vadd.f32 %v8003_v63, %v14894_v25  ;;  %v15099_v34 = vadd.f32 %v8069_v54, %v16086_v56  ;;  %v16091_v56 = vld [vmem:[#allocation82_spill] sm:$0xff] }
 0xb2c   : > { %v7757_v10 = vpop.f32.mrb[148].mxu1  ;;  %v15102_v46 = vadd.f32 %v8070_v23, %v16087_v36  ;;  %v16089_v23 = vld [vmem:[#allocation76_spill] sm:$0xff] }
 0xb2d   : > { %v7978_v8 = vrot.slane %v7757_v10, 1  ;;  %v7759_v19 = vpop.f32.mrb[149].mxu1  ;;  %v8141_v30 = vadd.f32 %v15099_v34, %v15095_v50  ;;  %v15107_v21 = vadd.f32 %v8071_v51, %v16088_v42 }
 0xb2e   : > { %v7979_v62 = vrot.slane %v7759_v19, 1  ;;  %v7761_v35 = vpop.f32.mrb[150].mxu1 }
 0xb2f   : > { %v8000_v25 = vsel %vm3847_vm5, %v7976_v44, %v7978_v8  ;;  %v7980_v0 = vrot.slane %v7761_v35, 1  ;;  %8142 = vadd.xlane.f32.xlu1 %v8141_v30  ;;  %v7763_v47 = vpop.f32.mrb[151].mxu1  ;;  %v8144_v15 = vadd.f32 %v15107_v21, %v15102_v46 }
 0xb30   : > { %v8072_v32 = vadd.f32 %v8000_v25, %v14897_v61  ;;  %v8001_v39 = vsel %vm3847_vm5, %v7977_v53, %v7979_v62  ;;  %v7981_v55 = vrot.slane %v7763_v47, 1 }
 0xb31   : > { %v8073_v52 = vadd.f32 %v8001_v39, %v14899_v9  ;;  %v7998_v54 = vsel %vm3847_vm5, %v7978_v8, %v7980_v0  ;;  %8145 = vadd.xlane.f32.xlu0 %v8144_v15  ;;  %v16092_v8 = vld [vmem:[#allocation79_spill] sm:$0xff] }
 0xb32   : > { %v8074_v44 = vadd.f32 %v7998_v54, %v14909_v33  ;;  %v7999_v7 = vsel %vm3847_vm5, %v7979_v62, %v7981_v55  ;;  %v15123_v63 = vadd.f32 %v8072_v32, %v16089_v23  ;;  %v16094_v23 = vld [vmem:[#allocation77_spill] sm:$0xff] }
 0xb33   : > { %v8075_v61 = vadd.f32 %v7999_v7, %v14914_v12  ;;  %v15127_v51 = vadd.f32 %v8073_v52, %v16090_v14  ;;  %v16095_v14 = vld [vmem:[#allocation84_spill] sm:$0xff] }
 0xb34   : > { %v7767_v53 = vpop.f32.mrb[152].mxu1  ;;  %v15130_v9 = vadd.f32 %v8074_v44, %v16091_v56  ;;  %v16093_v44 = vld [vmem:[#allocation80_spill] sm:$0xff] }
 0xb35   : > { %v7982_v10 = vrot.slane %v7767_v53, 1  ;;  %v7769_v36 = vpop.f32.mrb[153].mxu1  ;;  %v8147_v33 = vadd.f32 %v15127_v51, %v15123_v63  ;;  %v15135_v19 = vadd.f32 %v8075_v61, %v16092_v8 }
 0xb36   : > { %v7983_v30 = vrot.slane %v7769_v36, 1  ;;  %v7771_v42 = vpop.f32.mrb[154].mxu1 }
 0xb37   : > { %v7996_v12 = vsel %vm3847_vm5, %v7980_v0, %v7982_v10  ;;  %v7984_v62 = vrot.slane %v7771_v42, 1  ;;  %8148 = vadd.xlane.f32.xlu1 %v8147_v33  ;;  %v7773_v35 = vpop.f32.mrb[155].mxu1  ;;  %v8150_v25 = vadd.f32 %v15135_v19, %v15130_v9 }
 0xb38   : > { %v8076_v47 = vadd.f32 %v7996_v12, %v14917_v41  ;;  %v7997_v15 = vsel %vm3847_vm5, %v7981_v55, %v7983_v30  ;;  %v7985_v32 = vrot.slane %v7773_v35, 1 }
 0xb39   : > { %v8077_v39 = vadd.f32 %v7997_v15, %v14919_v28  ;;  %v7994_v52 = vsel %vm3847_vm5, %v7982_v10, %v7984_v62  ;;  %8151 = vadd.xlane.f32.xlu0 %v8150_v25  ;;  %v16096_v10 = vld [vmem:[#allocation83_spill] sm:$0xff] }
 0xb3a   : > { %v8078_v0 = vadd.f32 %v7994_v52, %v14929_v38  ;;  %v7995_v54 = vsel %vm3847_vm5, %v7983_v30, %v7985_v32  ;;  %v15151_v7 = vadd.f32 %v8076_v47, %v16093_v44  ;;  %v16098_v44 = vld [vmem:[#allocation59_spill] sm:$0xff] }
 0xb3b   : > { %v8079_v41 = vadd.f32 %v7995_v54, %v14934_v16  ;;  %v15155_v61 = vadd.f32 %v8077_v39, %v16094_v23  ;;  %v16099_v23 = vld [vmem:[#allocation81_spill] sm:$0xff] }
 0xb3c   : > { %v7777_v55 = vpop.f32.mrb[156].mxu1  ;;  %v15158_v28 = vadd.f32 %v8078_v0, %v16095_v14  ;;  %v16100_v14 = vld [vmem:[#allocation86_spill] sm:$0xff] }
 0xb3d   : > { %v7986_v53 = vrot.slane %v7777_v55, 1  ;;  %v7779_v56 = vpop.f32.mrb[157].mxu1  ;;  %v8153_v38 = vadd.f32 %v15155_v61, %v15151_v7  ;;  %v15163_v36 = vadd.f32 %v8079_v41, %v16096_v10 }
 0xb3e   : > { %v7987_v33 = vrot.slane %v7779_v56, 1  ;;  %v7781_v8 = vpop.f32.mrb[158].mxu1  ;;  %v16103_v56 = vld [vmem:[#allocation65_spill] sm:$0xff] }
 0xb3f   : > { %v7992_v16 = vsel %vm3847_vm5, %v7984_v62, %v7986_v53  ;;  %v7988_v30 = vrot.slane %v7781_v8, 1  ;;  %8154 = vadd.xlane.f32.xlu1 %v8153_v38  ;;  %v7783_v42 = vpop.f32.mrb[159].mxu1  ;;  %v8156_v12 = vadd.f32 %v15163_v36, %v15158_v28 }
 0xb40   : > { %v8080_v35 = vadd.f32 %v7992_v16, %v14937_v5  ;;  %v7993_v25 = vsel %vm3847_vm5, %v7985_v32, %v7987_v33  ;;  %v7989_v47 = vrot.slane %v7783_v42, 1 }
 0xb41   : > { %v8081_v15 = vadd.f32 %v7993_v25, %v14939_v26  ;;  %v7990_v39 = vsel %vm3847_vm5, %v7986_v53, %v7988_v30  ;;  %v8020_v62 = vsel %vm3847_vm5, %v7988_v30, %v7958_v58  ;;  %8157 = vadd.xlane.f32.xlu0 %v8156_v12 }
 0xb42   : > { %v8052_v0 = vsel %vm3895_vm6, %v8020_v62, 0.0  ;;  %v8082_v5 = vadd.f32 %v7990_v39, %v14953_v43  ;;  %v7991_v32 = vsel %vm3847_vm5, %v7987_v33, %v7989_v47  ;;  %v8021_v26 = vsel %vm3847_vm5, %v7989_v47, %v7959_v20 }
 0xb43   : > { %v8084_v54 = vadd.f32 %v8052_v0, %v14969_v31  ;;  %v8053_v27 = vsel %vm3895_vm6, %v8021_v26, 0.0  ;;  %v8083_v58 = vadd.f32 %v7991_v32, %v14962_v49  ;;  %v15193_v41 = vadd.f32 %v8080_v35, %v16098_v44  ;;  %v16102_v31 = vld [vmem:[#allocation64_spill] sm:$0xff] }
 0xb44   : > { %v8085_v43 = vadd.f32 %v8053_v27, %v14974_v48  ;;  %v15197_v55 = vadd.f32 %v8081_v15, %v16099_v23  ;;  %v15200_v13 = vadd.f32 %v8082_v5, %v16100_v14 }
 0xb45   : > { %v15203_v20 = vadd.f32 %v8083_v58, %v16101_v1  ;;  %v15206_v53 = vadd.f32 %v8084_v54, %v16102_v31 }
 0xb46   : > { %v8159_v49 = vadd.f32 %v15197_v55, %v15193_v41  ;;  %v15211_v38 = vadd.f32 %v8085_v43, %v16103_v56 }
 0xb47   : > { %v8162_v48 = vadd.f32 %v15203_v20, %v15200_v13 }
 0xb48   : > { %8160 = vadd.xlane.f32.xlu1 %v8159_v49  ;;  %v8165_v10 = vadd.f32 %v15211_v38, %v15206_v53 }
 0xb49   : > { %8163 = vadd.xlane.f32.xlu0 %v8162_v48 }
 0xb4c   : > { %8166 = vadd.xlane.f32.xlu1 %v8165_v10 }
 0xb9e   : > { %v8122_v33 = vpop.xlane.xlu0 %8121 }
 0xb9f   : > { %v8168_v8 = vmul.f32 0.00390625, %v8122_v33 }
 0xba1   : > { %v15218_v16 = vsub.f32 %v14992_v22, %v8168_v8  ;;  %v15221_v30 = vsub.f32 %v14995_v6, %v8168_v8 }
 0xba3   : > { %v8216_v42 = vmul.f32 %v15218_v16, %v15218_v16  ;;  %v8217_v12 = vmul.f32 %v15221_v30, %v15221_v30 }
 0xba4   : > { %v8125_v35 = vpop.xlane.xlu1 %8124 }
 0xba5   : > { %v8169_v25 = vmul.f32 0.00390625, %v8125_v35  ;;  %v8248_v47 = vadd.f32 %v8217_v12, %v8216_v42 }
 0xba6   : > { %v8128_v15 = vpop.xlane.xlu0 %8127 }
 0xba7   : > { %v15228_v39 = vsub.f32 %v15011_v45, %v8169_v25  ;;  %v15231_v62 = vsub.f32 %v15015_v40, %v8169_v25  ;;  %v8170_v22 = vmul.f32 0.00390625, %v8128_v15  ;;  %8249 = vadd.xlane.f32.xlu0 %v8248_v47 }
 0xba9   : > { %v8218_v6 = vmul.f32 %v15228_v39, %v15228_v39  ;;  %v8219_v52 = vmul.f32 %v15231_v62, %v15231_v62  ;;  %v15238_v0 = vsub.f32 %v15018_v59, %v8170_v22  ;;  %v15241_v5 = vsub.f32 %v15023_v24, %v8170_v22 }
 0xbab   : > { %v8220_v45 = vmul.f32 %v15238_v0, %v15238_v0  ;;  %v8221_v40 = vmul.f32 %v15241_v5, %v15241_v5  ;;  %v8251_v32 = vadd.f32 %v8219_v52, %v8218_v6 }
 0xbac   : > { %v8131_v26 = vpop.xlane.xlu1 %8130 }
 0xbad   : > { %v8171_v54 = vmul.f32 0.00390625, %v8131_v26  ;;  %8252 = vadd.xlane.f32.xlu1 %v8251_v32  ;;  %v8254_v27 = vadd.f32 %v8221_v40, %v8220_v45 }
 0xbae   : > { %v8134_v58 = vpop.xlane.xlu0 %8133 }
 0xbaf   : > { %v15248_v44 = vsub.f32 %v15039_v37, %v8171_v54  ;;  %v15251_v59 = vsub.f32 %v15043_v17, %v8171_v54  ;;  %v8172_v24 = vmul.f32 0.00390625, %v8134_v58  ;;  %8255 = vadd.xlane.f32.xlu0 %v8254_v27 }
 0xbb1   : > { %v8222_v43 = vmul.f32 %v15248_v44, %v15248_v44  ;;  %v8223_v23 = vmul.f32 %v15251_v59, %v15251_v59  ;;  %v15258_v14 = vsub.f32 %v15046_v29, %v8172_v24  ;;  %v15261_v1 = vsub.f32 %v15051_v60, %v8172_v24 }
 0xbb3   : > { %v8224_v37 = vmul.f32 %v15258_v14, %v15258_v14  ;;  %v8225_v17 = vmul.f32 %v15261_v1, %v15261_v1  ;;  %v8257_v31 = vadd.f32 %v8223_v23, %v8222_v43 }
 0xbb4   : > { %v8137_v49 = vpop.xlane.xlu1 %8136 }
 0xbb5   : > { %v8173_v56 = vmul.f32 0.00390625, %v8137_v49  ;;  %8258 = vadd.xlane.f32.xlu1 %v8257_v31  ;;  %v8260_v48 = vadd.f32 %v8225_v17, %v8224_v37 }
 0xbb6   : > { %v8140_v10 = vpop.xlane.xlu0 %8139 }
 0xbb7   : > { %v15268_v33 = vsub.f32 %v15067_v18, %v8173_v56  ;;  %v15271_v29 = vsub.f32 %v15071_v4, %v8173_v56  ;;  %v8174_v60 = vmul.f32 0.00390625, %v8140_v10  ;;  %8261 = vadd.xlane.f32.xlu0 %v8260_v48 }
 0xbb9   : > { %v8226_v8 = vmul.f32 %v15268_v33, %v15268_v33  ;;  %v8227_v42 = vmul.f32 %v15271_v29, %v15271_v29  ;;  %v15278_v12 = vsub.f32 %v15074_v57, %v8174_v60  ;;  %v15281_v35 = vsub.f32 %v15079_v2, %v8174_v60 }
 0xbbb   : > { %v8228_v18 = vmul.f32 %v15278_v12, %v15278_v12  ;;  %v8229_v4 = vmul.f32 %v15281_v35, %v15281_v35  ;;  %v8263_v25 = vadd.f32 %v8227_v42, %v8226_v8 }
 0xbbc   : > { %v8143_v47 = vpop.xlane.xlu1 %8142 }
 0xbbd   : > { %v8175_v15 = vmul.f32 0.00390625, %v8143_v47  ;;  %8264 = vadd.xlane.f32.xlu1 %v8263_v25  ;;  %v8266_v22 = vadd.f32 %v8229_v4, %v8228_v18 }
 0xbbe   : > { %v8146_v6 = vpop.xlane.xlu0 %8145 }
 0xbbf   : > { %v15288_v52 = vsub.f32 %v15095_v50, %v8175_v15  ;;  %v15291_v57 = vsub.f32 %v15099_v34, %v8175_v15  ;;  %v8176_v2 = vmul.f32 0.00390625, %v8146_v6  ;;  %8267 = vadd.xlane.f32.xlu0 %v8266_v22 }
 0xbc1   : > { %v8230_v45 = vmul.f32 %v15288_v52, %v15288_v52  ;;  %v8231_v40 = vmul.f32 %v15291_v57, %v15291_v57  ;;  %v15298_v32 = vsub.f32 %v15102_v46, %v8176_v2  ;;  %v15301_v26 = vsub.f32 %v15107_v21, %v8176_v2 }
 0xbc3   : > { %v8232_v50 = vmul.f32 %v15298_v32, %v15298_v32  ;;  %v8233_v34 = vmul.f32 %v15301_v26, %v15301_v26  ;;  %v8269_v54 = vadd.f32 %v8231_v40, %v8230_v45 }
 0xbc4   : > { %v8149_v27 = vpop.xlane.xlu1 %8148 }
 0xbc5   : > { %v8177_v58 = vmul.f32 0.00390625, %v8149_v27  ;;  %8270 = vadd.xlane.f32.xlu1 %v8269_v54  ;;  %v8272_v24 = vadd.f32 %v8233_v34, %v8232_v50 }
 0xbc6   : > { %v8152_v43 = vpop.xlane.xlu0 %8151 }
 0xbc7   : > { %v15308_v23 = vsub.f32 %v15123_v63, %v8177_v58  ;;  %v15311_v46 = vsub.f32 %v15127_v51, %v8177_v58  ;;  %v8178_v21 = vmul.f32 0.00390625, %v8152_v43  ;;  %8273 = vadd.xlane.f32.xlu0 %v8272_v24 }
 0xbc9   : > { %v8234_v37 = vmul.f32 %v15308_v23, %v15308_v23  ;;  %v8235_v17 = vmul.f32 %v15311_v46, %v15311_v46  ;;  %v15318_v31 = vsub.f32 %v15130_v9, %v8178_v21  ;;  %v15321_v49 = vsub.f32 %v15135_v19, %v8178_v21 }
 0xbcb   : > { %v8236_v63 = vmul.f32 %v15318_v31, %v15318_v31  ;;  %v8237_v51 = vmul.f32 %v15321_v49, %v15321_v49  ;;  %v8275_v56 = vadd.f32 %v8235_v17, %v8234_v37 }
 0xbcc   : > { %v8155_v48 = vpop.xlane.xlu1 %8154 }
 0xbcd   : > { %v8179_v10 = vmul.f32 0.00390625, %v8155_v48  ;;  %8276 = vadd.xlane.f32.xlu1 %v8275_v56  ;;  %v8278_v60 = vadd.f32 %v8237_v51, %v8236_v63 }
 0xbce   : > { %v8158_v8 = vpop.xlane.xlu0 %8157 }
 0xbcf   : > { %v15328_v42 = vsub.f32 %v15151_v7, %v8179_v10  ;;  %v15331_v9 = vsub.f32 %v15155_v61, %v8179_v10  ;;  %v8180_v19 = vmul.f32 0.00390625, %v8158_v8  ;;  %8279 = vadd.xlane.f32.xlu0 %v8278_v60 }
 0xbd1   : > { %v8238_v18 = vmul.f32 %v15328_v42, %v15328_v42  ;;  %v8239_v4 = vmul.f32 %v15331_v9, %v15331_v9  ;;  %v15338_v25 = vsub.f32 %v15158_v28, %v8180_v19  ;;  %v15341_v47 = vsub.f32 %v15163_v36, %v8180_v19  ;;  %v8118_v19 = vld [vmem:[%s787_s8] sm:$0x3] }
 0xbd3   : > { %v8240_v7 = vmul.f32 %v15338_v25, %v15338_v25  ;;  %v8241_v61 = vmul.f32 %v15341_v47, %v15341_v47  ;;  %v8281_v15 = vadd.f32 %v8239_v4, %v8238_v18  ;;  %v8119_v4 = vld [vmem:[%s796_s5] sm:$0x3] }
 0xbd5   : > { %v8161_v22 = vpop.xlane.xlu1 %8160  ;;  %8282 = vadd.xlane.f32.xlu1 %v8281_v15  ;;  %v8284_v6 = vadd.f32 %v8241_v61, %v8240_v7  ;;  %v15382_v7 = vrot.slane %v8118_v19, %v16074_v3  ;;  %v15385_v61 = vrot.slane %v8118_v19, %v16076_v11 }
 0xbd6   : > { %v8181_v2 = vmul.f32 0.00390625, %v8161_v22  ;;  %v8164_v45 = vpop.xlane.xlu0 %8163 }
 0xbd7   : > { %v8182_v40 = vmul.f32 0.00390625, %v8164_v45  ;;  %8285 = vadd.xlane.f32.xlu0 %v8284_v6  ;;  %v15391_v45 = vrot.slane %v8119_v4, %v16076_v11 }
 0xbd8   : > { %v15348_v28 = vsub.f32 %v15193_v41, %v8181_v2  ;;  %v15351_v36 = vsub.f32 %v15197_v55, %v8181_v2  ;;  %v15388_v2 = vrot.slane %v8119_v4, %v16074_v3 }
 0xbd9   : > { %v15354_v50 = vsub.f32 %v15200_v13, %v8182_v40  ;;  %v15357_v34 = vsub.f32 %v15203_v20, %v8182_v40  ;;  %v8167_v54 = vpop.xlane.xlu1 %8166 }
 0xbda   : > { %v8242_v27 = vmul.f32 %v15348_v28, %v15348_v28  ;;  %v8243_v58 = vmul.f32 %v15351_v36, %v15351_v36  ;;  %v8183_v24 = vmul.f32 0.00390625, %v8167_v54 }
 0xbdb   : > { %v8244_v41 = vmul.f32 %v15354_v50, %v15354_v50  ;;  %v8245_v55 = vmul.f32 %v15357_v34, %v15357_v34 }
 0xbdc   : > { %v15368_v13 = vsub.f32 %v15206_v53, %v8183_v24  ;;  %v15371_v20 = vsub.f32 %v15211_v38, %v8183_v24  ;;  %v8287_v43 = vadd.f32 %v8243_v58, %v8242_v27 }
 0xbdd   : > { %v8290_v21 = vadd.f32 %v8245_v55, %v8244_v41 }
 0xbde   : > { %v8246_v37 = vmul.f32 %v15368_v13, %v15368_v13  ;;  %v8247_v17 = vmul.f32 %v15371_v20, %v15371_v20  ;;  %8288 = vadd.xlane.f32.xlu1 %v8287_v43 }
 0xbdf   : > { %8291 = vadd.xlane.f32.xlu0 %v8290_v21 }
 0xbe0   : > { %v8293_v63 = vadd.f32 %v8247_v17, %v8246_v37 }
 0xbe2   : > { %8294 = vadd.xlane.f32.xlu1 %v8293_v63 }
 0xc34   : > { %v8250_v51 = vpop.xlane.xlu0 %8249 }
 0xc35   : > { %v8296_v53 = vmul.f32 0.00390625, %v8250_v51 }
 0xc37   : > { %v8312_v56 = vadd.f32 1e-05, %v8296_v53 }
 0xc39   : > { %11136 = vrsqrt.f32 %v8312_v56 }
 0xc3a   : > { %v8253_v38 = vpop.xlane.xlu1 %8252 }
 0xc3b   : > { %v8297_v48 = vmul.f32 0.00390625, %v8253_v38 }
 0xc3c   : > { %v8256_v10 = vpop.xlane.xlu0 %8255 }
 0xc3d   : > { %v8313_v60 = vadd.f32 1e-05, %v8297_v48  ;;  %v8298_v8 = vmul.f32 0.00390625, %v8256_v10 }
 0xc3f   : > { %11138 = vrsqrt.f32 %v8313_v60  ;;  %v8314_v18 = vadd.f32 1e-05, %v8298_v8 }
 0xc41   : > { %11140 = vrsqrt.f32 %v8314_v18 }
 0xc42   : > { %v8259_v15 = vpop.xlane.xlu1 %8258 }
 0xc43   : > { %v11137_v22 = vpop.eup %11136  ;;  %v8299_v6 = vmul.f32 0.00390625, %v8259_v15 }
 0xc44   : > { %v8344_v40 = vmul.f32 %v11137_v22, %v15218_v16  ;;  %v8345_v54 = vmul.f32 %v11137_v22, %v15221_v30  ;;  %v8262_v27 = vpop.xlane.xlu0 %8261  ;;  %v16104_v16 = vld [vmem:[#allocation41_spill] sm:$0xff] }
 0xc45   : > { %v8315_v58 = vadd.f32 1e-05, %v8299_v6  ;;  %v8300_v24 = vmul.f32 0.00390625, %v8262_v27  ;;  %v16105_v6 = vld [vmem:[#allocation42_spill] sm:$0xff] }
 0xc46   : > { %v8387_v41 = vmul.f32 %v15382_v7, %v8344_v40  ;;  %v8388_v55 = vmul.f32 %v15385_v61, %v8345_v54 }
 0xc47   : > { %11142 = vrsqrt.f32 %v8315_v58  ;;  %v8316_v43 = vadd.f32 1e-05, %v8300_v24  ;;  %v16106_v58 = vld [vmem:[#allocation43_spill] sm:$0xff] }
 0xc48   : > { %v8430_v3 = vadd.f32 %v15388_v2, %v8387_v41  ;;  %v8431_v11 = vadd.f32 %v15391_v45, %v8388_v55 }
 0xc49   : > { %v11139_v21 = vpop.eup %11138  ;;  %11144 = vrsqrt.f32 %v8316_v43 }
 0xc4a   : > { %v15400_v37 = vmul.f32 %v16104_v16, %v8430_v3  ;;  %v15403_v30 = vmul.f32 %v16104_v16, %v8431_v11  ;;  %v8346_v17 = vmul.f32 %v11139_v21, %v15228_v39  ;;  %v8347_v63 = vmul.f32 %v11139_v21, %v15231_v62  ;;  %v8265_v51 = vpop.xlane.xlu1 %8264 }
 0xc4b   : > { %v11141_v53 = vpop.eup %11140  ;;  %v8301_v56 = vmul.f32 0.00390625, %v8265_v51 }
 0xc4c   : > { %8494 = vst [vmem:[%s12704_s29] sm:$0xff] %v15400_v37  ;;  %8495 = vst [vmem:[%s12704_s29 + $0x8] sm:$0xff] %v15403_v30  ;;  %v8389_v38 = vmul.f32 %v15382_v7, %v8346_v17  ;;  %v8390_v48 = vmul.f32 %v15385_v61, %v8347_v63  ;;  %v8348_v10 = vmul.f32 %v11141_v53, %v15238_v0  ;;  %v8268_v8 = vpop.xlane.xlu0 %8267 }
 0xc4d   : > { %v8349_v60 = vmul.f32 %v11141_v53, %v15241_v5  ;;  %v8317_v39 = vadd.f32 1e-05, %v8301_v56  ;;  %v8302_v62 = vmul.f32 0.00390625, %v8268_v8  ;;  %v16107_v8 = vld [vmem:[#allocation44_spill] sm:$0xff]  ;;  %8530 = vst [vmem:[%s12577_s27] sm:$0xff] (!%p9497_p11), %v15400_v37  ;;  %8531 = vst [vmem:[%s12577_s27 + $0x8] sm:$0xff] (!%p9497_p11), %v15403_v30 }
 0xc4e   : > { %v8432_v19 = vadd.f32 %v15388_v2, %v8389_v38  ;;  %v8433_v18 = vadd.f32 %v15391_v45, %v8390_v48  ;;  %v8391_v4 = vmul.f32 %v15382_v7, %v8348_v10 }
 0xc4f   : > { %v8392_v15 = vmul.f32 %v15385_v61, %v8349_v60  ;;  %11146 = vrsqrt.f32 %v8317_v39  ;;  %v8318_v22 = vadd.f32 1e-05, %v8302_v62 }
 0xc50   : > { %v15420_v0 = vmul.f32 %v16105_v6, %v8432_v19  ;;  %v15423_v5 = vmul.f32 %v16105_v6, %v8433_v18  ;;  %v8434_v40 = vadd.f32 %v15388_v2, %v8391_v4  ;;  %v16108_v18 = vld [vmem:[#allocation45_spill] sm:$0xff] }
 0xc51   : > { %v8435_v54 = vadd.f32 %v15391_v45, %v8392_v15  ;;  %v11143_v27 = vpop.eup %11142  ;;  %11148 = vrsqrt.f32 %v8318_v22 }
 0xc52   : > { %8496 = vst [vmem:[%s12704_s29 + $0x10] sm:$0xff] %v15420_v0  ;;  %8497 = vst [vmem:[%s12704_s29 + $0x18] sm:$0xff] %v15423_v5  ;;  %v15432_v24 = vmul.f32 %v16106_v58, %v8434_v40  ;;  %v8350_v55 = vmul.f32 %v11143_v27, %v15248_v44  ;;  %v8351_v43 = vmul.f32 %v11143_v27, %v15251_v59  ;;  %v8271_v3 = vpop.xlane.xlu1 %8270 }
 0xc53   : > { %v15435_v41 = vmul.f32 %v16106_v58, %v8435_v54  ;;  %v11145_v11 = vpop.eup %11144  ;;  %v8303_v21 = vmul.f32 0.00390625, %v8271_v3  ;;  %8532 = vst [vmem:[%s12577_s27 + $0x10] sm:$0xff] (!%p9497_p11), %v15420_v0  ;;  %8533 = vst [vmem:[%s12577_s27 + $0x18] sm:$0xff] (!%p9497_p11), %v15423_v5 }
 0xc54   : > { %8498 = vst [vmem:[%s12704_s29 + $0x20] sm:$0xff] %v15432_v24  ;;  %v8393_v16 = vmul.f32 %v15382_v7, %v8350_v55  ;;  %v8394_v17 = vmul.f32 %v15385_v61, %v8351_v43  ;;  %v8352_v63 = vmul.f32 %v11145_v11, %v15258_v14  ;;  %v8353_v51 = vmul.f32 %v11145_v11, %v15261_v1  ;;  %v8274_v53 = vpop.xlane.xlu0 %8273 }
 0xc55   : > { %8499 = vst [vmem:[%s12704_s29 + $0x28] sm:$0xff] %v15435_v41  ;;  %v8319_v44 = vadd.f32 1e-05, %v8303_v21  ;;  %v8304_v59 = vmul.f32 0.00390625, %v8274_v53  ;;  %v16109_v53 = vld [vmem:[#allocation46_spill] sm:$0xff]  ;;  %8534 = vst [vmem:[%s12577_s27 + $0x20] sm:$0xff] (!%p9497_p11), %v15432_v24 }
 0xc56   : > { %v8436_v56 = vadd.f32 %v15388_v2, %v8393_v16  ;;  %v8437_v38 = vadd.f32 %v15391_v45, %v8394_v17  ;;  %v8395_v48 = vmul.f32 %v15382_v7, %v8352_v63  ;;  %v8396_v10 = vmul.f32 %v15385_v61, %v8353_v51  ;;  %8535 = vst [vmem:[%s12577_s27 + $0x28] sm:$0xff] (!%p9497_p11), %v15435_v41 }
 0xc57   : > { %11150 = vrsqrt.f32 %v8319_v44  ;;  %v8320_v60 = vadd.f32 1e-05, %v8304_v59 }
 0xc58   : > { %v15452_v14 = vmul.f32 %v16107_v8, %v8436_v56  ;;  %v15455_v1 = vmul.f32 %v16107_v8, %v8437_v38  ;;  %v8438_v39 = vadd.f32 %v15388_v2, %v8395_v48  ;;  %v8439_v62 = vadd.f32 %v15391_v45, %v8396_v10  ;;  %v16110_v38 = vld [vmem:[#allocation47_spill] sm:$0xff] }
 0xc59   : > { %v11147_v19 = vpop.eup %11146  ;;  %11152 = vrsqrt.f32 %v8320_v60 }
 0xc5a   : > { %8500 = vst [vmem:[%s12704_s29 + $0x30] sm:$0xff] %v15452_v14  ;;  %8501 = vst [vmem:[%s12704_s29 + $0x38] sm:$0xff] %v15455_v1  ;;  %v15464_v4 = vmul.f32 %v16108_v18, %v8438_v39  ;;  %v15467_v15 = vmul.f32 %v16108_v18, %v8439_v62  ;;  %v8354_v22 = vmul.f32 %v11147_v19, %v15268_v33  ;;  %v8277_v40 = vpop.xlane.xlu1 %8276 }
 0xc5b   : > { %v8355_v6 = vmul.f32 %v11147_v19, %v15271_v29  ;;  %v11149_v54 = vpop.eup %11148  ;;  %v8305_v27 = vmul.f32 0.00390625, %v8277_v40  ;;  %8536 = vst [vmem:[%s12577_s27 + $0x30] sm:$0xff] (!%p9497_p11), %v15452_v14  ;;  %8537 = vst [vmem:[%s12577_s27 + $0x38] sm:$0xff] (!%p9497_p11), %v15455_v1 }
 0xc5c   : > { %8502 = vst [vmem:[%s12704_s29 + $0x40] sm:$0xff] %v15464_v4  ;;  %8503 = vst [vmem:[%s12704_s29 + $0x48] sm:$0xff] %v15467_v15  ;;  %v8397_v58 = vmul.f32 %v15382_v7, %v8354_v22  ;;  %v8356_v43 = vmul.f32 %v11149_v54, %v15278_v12  ;;  %v8357_v3 = vmul.f32 %v11149_v54, %v15281_v35  ;;  %v8280_v11 = vpop.xlane.xlu0 %8279 }
 0xc5d   : > { %v8398_v55 = vmul.f32 %v15385_v61, %v8355_v6  ;;  %v8321_v33 = vadd.f32 1e-05, %v8305_v27  ;;  %v8306_v29 = vmul.f32 0.00390625, %v8280_v11  ;;  %v16111_v11 = vld [vmem:[#allocation48_spill] sm:$0xff]  ;;  %8538 = vst [vmem:[%s12577_s27 + $0x40] sm:$0xff] (!%p9497_p11), %v15464_v4  ;;  %8539 = vst [vmem:[%s12577_s27 + $0x48] sm:$0xff] (!%p9497_p11), %v15467_v15 }
 0xc5e   : > { %v8440_v21 = vadd.f32 %v15388_v2, %v8397_v58  ;;  %v8399_v17 = vmul.f32 %v15382_v7, %v8356_v43  ;;  %v8400_v63 = vmul.f32 %v15385_v61, %v8357_v3 }
 0xc5f   : > { %v8441_v16 = vadd.f32 %v15391_v45, %v8398_v55  ;;  %11154 = vrsqrt.f32 %v8321_v33  ;;  %v8322_v51 = vadd.f32 1e-05, %v8306_v29 }
 0xc60   : > { %v15484_v12 = vmul.f32 %v16109_v53, %v8440_v21  ;;  %v8442_v44 = vadd.f32 %v15388_v2, %v8399_v17  ;;  %v8443_v59 = vadd.f32 %v15391_v45, %v8400_v63 }
 0xc61   : > { %v15487_v35 = vmul.f32 %v16109_v53, %v8441_v16  ;;  %v11151_v56 = vpop.eup %11150  ;;  %11156 = vrsqrt.f32 %v8322_v51  ;;  %v16112_v16 = vld [vmem:[#allocation49_spill] sm:$0xff] }
 0xc62   : > { %8504 = vst [vmem:[%s12704_s29 + $0x50] sm:$0xff] %v15484_v12  ;;  %v15496_v48 = vmul.f32 %v16110_v38, %v8442_v44  ;;  %v15499_v10 = vmul.f32 %v16110_v38, %v8443_v59  ;;  %v8358_v60 = vmul.f32 %v11151_v56, %v15288_v52  ;;  %v8359_v8 = vmul.f32 %v11151_v56, %v15291_v57  ;;  %v8283_v39 = vpop.xlane.xlu1 %8282 }
 0xc63   : > { %8505 = vst [vmem:[%s12704_s29 + $0x58] sm:$0xff] %v15487_v35  ;;  %v11153_v62 = vpop.eup %11152  ;;  %v8307_v19 = vmul.f32 0.00390625, %v8283_v39  ;;  %8540 = vst [vmem:[%s12577_s27 + $0x50] sm:$0xff] (!%p9497_p11), %v15484_v12 }
 0xc64   : > { %8506 = vst [vmem:[%s12704_s29 + $0x60] sm:$0xff] %v15496_v48  ;;  %8507 = vst [vmem:[%s12704_s29 + $0x68] sm:$0xff] %v15499_v10  ;;  %v8401_v18 = vmul.f32 %v15382_v7, %v8358_v60  ;;  %v8402_v22 = vmul.f32 %v15385_v61, %v8359_v8  ;;  %v8360_v6 = vmul.f32 %v11153_v62, %v15298_v32  ;;  %v8286_v54 = vpop.xlane.xlu0 %8285 }
 0xc65   : > { %v8361_v40 = vmul.f32 %v11153_v62, %v15301_v26  ;;  %v8323_v52 = vadd.f32 1e-05, %v8307_v19  ;;  %v8308_v57 = vmul.f32 0.00390625, %v8286_v54  ;;  %8541 = vst [vmem:[%s12577_s27 + $0x58] sm:$0xff] (!%p9497_p11), %v15487_v35  ;;  %8542 = vst [vmem:[%s12577_s27 + $0x60] sm:$0xff] (!%p9497_p11), %v15496_v48 }
 0xc66   : > { %v8444_v27 = vadd.f32 %v15388_v2, %v8401_v18  ;;  %v8445_v58 = vadd.f32 %v15391_v45, %v8402_v22  ;;  %v8403_v55 = vmul.f32 %v15382_v7, %v8360_v6  ;;  %8543 = vst [vmem:[%s12577_s27 + $0x68] sm:$0xff] (!%p9497_p11), %v15499_v10 }
 0xc67   : > { %v8404_v43 = vmul.f32 %v15385_v61, %v8361_v40  ;;  %11158 = vrsqrt.f32 %v8323_v52  ;;  %v8324_v3 = vadd.f32 1e-05, %v8308_v57  ;;  %v16113_v52 = vld [vmem:[#allocation50_spill] sm:$0xff] }
 0xc68   : > { %v15516_v32 = vmul.f32 %v16111_v11, %v8444_v27  ;;  %v15519_v26 = vmul.f32 %v16111_v11, %v8445_v58  ;;  %v8446_v33 = vadd.f32 %v15388_v2, %v8403_v55 }
 0xc69   : > { %v8447_v29 = vadd.f32 %v15391_v45, %v8404_v43  ;;  %v11155_v21 = vpop.eup %11154  ;;  %11160 = vrsqrt.f32 %v8324_v3  ;;  %v16114_v43 = vld [vmem:[#allocation51_spill] sm:$0xff] }
 0xc6a   : > { %8508 = vst [vmem:[%s12704_s29 + $0x70] sm:$0xff] %v15516_v32  ;;  %8509 = vst [vmem:[%s12704_s29 + $0x78] sm:$0xff] %v15519_v26  ;;  %v15528_v17 = vmul.f32 %v16112_v16, %v8446_v33  ;;  %v8362_v51 = vmul.f32 %v11155_v21, %v15308_v23  ;;  %v8363_v53 = vmul.f32 %v11155_v21, %v15311_v46 }
 0xc6b   : > { %v15531_v63 = vmul.f32 %v16112_v16, %v8447_v29  ;;  %v11157_v44 = vpop.eup %11156  ;;  %v8289_v59 = vpop.xlane.xlu1 %8288  ;;  %8544 = vst [vmem:[%s12577_s27 + $0x70] sm:$0xff] (!%p9497_p11), %v15516_v32  ;;  %8545 = vst [vmem:[%s12577_s27 + $0x78] sm:$0xff] (!%p9497_p11), %v15519_v26 }
 0xc6c   : > { %8510 = vst [vmem:[%s12704_s29 + $0x80] sm:$0xff] %v15528_v17  ;;  %v8405_v56 = vmul.f32 %v15382_v7, %v8362_v51  ;;  %v8406_v38 = vmul.f32 %v15385_v61, %v8363_v53  ;;  %v8364_v60 = vmul.f32 %v11157_v44, %v15318_v31  ;;  %v8365_v8 = vmul.f32 %v11157_v44, %v15321_v49  ;;  %v8292_v39 = vpop.xlane.xlu0 %8291 }
 0xc6d   : > { %8511 = vst [vmem:[%s12704_s29 + $0x88] sm:$0xff] %v15531_v63  ;;  %v8309_v62 = vmul.f32 0.00390625, %v8289_v59  ;;  %v8310_v23 = vmul.f32 0.00390625, %v8292_v39  ;;  %8546 = vst [vmem:[%s12577_s27 + $0x80] sm:$0xff] (!%p9497_p11), %v15528_v17 }
 0xc6e   : > { %v8448_v46 = vadd.f32 %v15388_v2, %v8405_v56  ;;  %v8449_v19 = vadd.f32 %v15391_v45, %v8406_v38  ;;  %v8407_v18 = vmul.f32 %v15382_v7, %v8364_v60  ;;  %v8408_v22 = vmul.f32 %v15385_v61, %v8365_v8  ;;  %v16115_v60 = vld [vmem:[#allocation52_spill] sm:$0xff]  ;;  %8547 = vst [vmem:[%s12577_s27 + $0x88] sm:$0xff] (!%p9497_p11), %v15531_v63 }
 0xc6f   : > { %v8325_v6 = vadd.f32 1e-05, %v8309_v62  ;;  %v8326_v40 = vadd.f32 1e-05, %v8310_v23  ;;  %v8295_v54 = vpop.xlane.xlu1 %8294  ;;  %v16116_v62 = vld [vmem:[#allocation53_spill] sm:$0xff] }
 0xc70   : > { %v15548_v31 = vmul.f32 %v16113_v52, %v8448_v46  ;;  %v15551_v49 = vmul.f32 %v16113_v52, %v8449_v19  ;;  %v8450_v57 = vadd.f32 %v15388_v2, %v8407_v18  ;;  %v8451_v27 = vadd.f32 %v15391_v45, %v8408_v22 }
 0xc71   : > { %v11159_v58 = vpop.eup %11158  ;;  %11162 = vrsqrt.f32 %v8325_v6  ;;  %v8311_v55 = vmul.f32 0.00390625, %v8295_v54 }
 0xc72   : > { %8512 = vst [vmem:[%s12704_s29 + $0x90] sm:$0xff] %v15548_v31  ;;  %8513 = vst [vmem:[%s12704_s29 + $0x98] sm:$0xff] %v15551_v49  ;;  %v15560_v3 = vmul.f32 %v16114_v43, %v8450_v57  ;;  %v15563_v11 = vmul.f32 %v16114_v43, %v8451_v27  ;;  %v8366_v33 = vmul.f32 %v11159_v58, %v15328_v42  ;;  %11164 = vrsqrt.f32 %v8326_v40 }
 0xc73   : > { %v8367_v29 = vmul.f32 %v11159_v58, %v15331_v9  ;;  %v11161_v21 = vpop.eup %11160  ;;  %v8327_v16 = vadd.f32 1e-05, %v8311_v55  ;;  %8548 = vst [vmem:[%s12577_s27 + $0x90] sm:$0xff] (!%p9497_p11), %v15548_v31  ;;  %8549 = vst [vmem:[%s12577_s27 + $0x98] sm:$0xff] (!%p9497_p11), %v15551_v49 }
 0xc74   : > { %8514 = vst [vmem:[%s12704_s29 + $0xa0] sm:$0xff] %v15560_v3  ;;  %8515 = vst [vmem:[%s12704_s29 + $0xa8] sm:$0xff] %v15563_v11  ;;  %v8409_v51 = vmul.f32 %v15382_v7, %v8366_v33  ;;  %v8368_v44 = vmul.f32 %v11161_v21, %v15338_v25  ;;  %v8369_v42 = vmul.f32 %v11161_v21, %v15341_v47 }
 0xc75   : > { %v8410_v53 = vmul.f32 %v15385_v61, %v8367_v29  ;;  %11166 = vrsqrt.f32 %v8327_v16  ;;  %v16117_v29 = vld [vmem:[#allocation54_spill] sm:$0xff]  ;;  %8550 = vst [vmem:[%s12577_s27 + $0xa0] sm:$0xff] (!%p9497_p11), %v15560_v3  ;;  %8551 = vst [vmem:[%s12577_s27 + $0xa8] sm:$0xff] (!%p9497_p11), %v15563_v11 }
 0xc76   : > { %v8452_v9 = vadd.f32 %v15388_v2, %v8409_v51  ;;  %v8411_v56 = vmul.f32 %v15382_v7, %v8368_v44  ;;  %v8412_v38 = vmul.f32 %v15385_v61, %v8369_v42  ;;  %v16118_v44 = vld [vmem:[#allocation55_spill] sm:$0xff] }
 0xc77   : > { %v8453_v59 = vadd.f32 %v15391_v45, %v8410_v53 }
 0xc78   : > { %v15580_v8 = vmul.f32 %v16115_v60, %v8452_v9  ;;  %v8454_v25 = vadd.f32 %v15388_v2, %v8411_v56  ;;  %v8455_v47 = vadd.f32 %v15391_v45, %v8412_v38 }
 0xc79   : > { %v15583_v39 = vmul.f32 %v16115_v60, %v8453_v59  ;;  %v16119_v59 = vld [vmem:[#allocation56_spill] sm:$0xff] }
 0xc7a   : > { %8516 = vst [vmem:[%s12704_s29 + $0xb0] sm:$0xff] %v15580_v8  ;;  %v8486_v23 = vmul.f32 %v16116_v62, %v8454_v25  ;;  %v8487_v46 = vmul.f32 %v16116_v62, %v8455_v47  ;;  %8552 = vst [vmem:[%s12577_s27 + $0xb0] sm:$0xff] (!%p9497_p11), %v15580_v8 }
 0xc7b   : > { %8517 = vst [vmem:[%s12704_s29 + $0xb8] sm:$0xff] %v15583_v39  ;;  %v11163_v19 = vpop.eup %11162  ;;  %8553 = vst [vmem:[%s12577_s27 + $0xb8] sm:$0xff] (!%p9497_p11), %v15583_v39 }
 0xc7c   : > { %8518 = vst [vmem:[%s12704_s29 + $0xc0] sm:$0xff] %v8486_v23  ;;  %8519 = vst [vmem:[%s12704_s29 + $0xc8] sm:$0xff] %v8487_v46  ;;  %v8370_v18 = vmul.f32 %v11163_v19, %v15348_v28  ;;  %v8371_v22 = vmul.f32 %v11163_v19, %v15351_v36  ;;  %v11165_v6 = vpop.eup %11164 }
 0xc7d   : > { %v8372_v52 = vmul.f32 %v11165_v6, %v15354_v50  ;;  %v8373_v57 = vmul.f32 %v11165_v6, %v15357_v34  ;;  %8554 = vst [vmem:[%s12577_s27 + $0xc0] sm:$0xff] (!%p9497_p11), %v8486_v23  ;;  %8555 = vst [vmem:[%s12577_s27 + $0xc8] sm:$0xff] (!%p9497_p11), %v8487_v46 }
 0xc7e   : > { %v8413_v40 = vmul.f32 %v15382_v7, %v8370_v18  ;;  %v8414_v54 = vmul.f32 %v15385_v61, %v8371_v22 }
 0xc7f   : > { %v11167_v27 = vpop.eup %11166  ;;  %v8415_v28 = vmul.f32 %v15382_v7, %v8372_v52  ;;  %v8416_v36 = vmul.f32 %v15385_v61, %v8373_v57 }
 0xc80   : > { %v8456_v58 = vadd.f32 %v15388_v2, %v8413_v40  ;;  %v8457_v55 = vadd.f32 %v15391_v45, %v8414_v54  ;;  %v8374_v43 = vmul.f32 %v11167_v27, %v15368_v13  ;;  %v8375_v33 = vmul.f32 %v11167_v27, %v15371_v20 }
 0xc81   : > { %v8458_v21 = vadd.f32 %v15388_v2, %v8415_v28  ;;  %v8459_v16 = vadd.f32 %v15391_v45, %v8416_v36 }
 0xc82   : > { %v8488_v50 = vmul.f32 %v16117_v29, %v8456_v58  ;;  %v8489_v34 = vmul.f32 %v16117_v29, %v8457_v55  ;;  %v8417_v51 = vmul.f32 %v15382_v7, %v8374_v43  ;;  %v8418_v53 = vmul.f32 %v15385_v61, %v8375_v33  ;;  %8529 = sbr.rel (%p9497_p11) target bundleno = 3210 (0xc8a), region = 132 }
 0xc83   : > { %v8490_v13 = vmul.f32 %v16118_v44, %v8458_v21  ;;  %v8491_v20 = vmul.f32 %v16118_v44, %v8459_v16 }
 0xc84   : > { %8520 = vst [vmem:[%s12704_s29 + $0xd0] sm:$0xff] %v8488_v50  ;;  %8521 = vst [vmem:[%s12704_s29 + $0xd8] sm:$0xff] %v8489_v34  ;;  %v8460_v42 = vadd.f32 %v15388_v2, %v8417_v51  ;;  %v8461_v9 = vadd.f32 %v15391_v45, %v8418_v53 }
 0xc85   : > { %8522 = vst [vmem:[%s12704_s29 + $0xe0] sm:$0xff] %v8490_v13  ;;  %8523 = vst [vmem:[%s12704_s29 + $0xe8] sm:$0xff] %v8491_v20 }
 0xc86   : > { %v8492_v56 = vmul.f32 %v16119_v59, %v8460_v42  ;;  %v8493_v38 = vmul.f32 %v16119_v59, %v8461_v9  ;;  %8556 = vst [vmem:[%s12577_s27 + $0xd0] sm:$0xff] (!%p9497_p11), %v8488_v50  ;;  %8557 = vst [vmem:[%s12577_s27 + $0xd8] sm:$0xff] (!%p9497_p11), %v8489_v34 }
 0xc87   : > { %8558 = vst [vmem:[%s12577_s27 + $0xe0] sm:$0xff] (!%p9497_p11), %v8490_v13  ;;  %8559 = vst [vmem:[%s12577_s27 + $0xe8] sm:$0xff] (!%p9497_p11), %v8491_v20 }
 0xc88   : > { %8524 = vst [vmem:[%s12704_s29 + $0xf0] sm:$0xff] %v8492_v56  ;;  %8525 = vst [vmem:[%s12704_s29 + $0xf8] sm:$0xff] %v8493_v38 }
 0xc89   : > { %8560 = vst [vmem:[%s12577_s27 + $0xf0] sm:$0xff] %v8492_v56  ;;  %8561 = vst [vmem:[%s12577_s27 + $0xf8] sm:$0xff] %v8493_v38 }
 0xc8a PF: > { %s16121_s23 = sld [smem:[#allocation34_spill]]  ;;  %s16122_s10 = sld [smem:[#allocation33_spill]] }
 0xc8b   : > { %s8578_s22 = sshll.u32 %s12577_s27, 4  ;;  %s16124_s12 = sld [smem:[#allocation100_spill]]  ;;  %s15685_s22 = int_to_ptr.vmem [resolvable:$true] %s8578_s22 }
 0xc8c   : > { %s15694_s3 = scalar_lea.sflag [#allocation7], %s891_s11  ;;  %s11598_s8 = scalar_lea.vmem %s15685_s22, 4096 }
 0xc8d   : > { %p11599_p13 = scmp.ne.s32.totalorder %s15685_s22, %s11598_s8  ;;  %p16125_p6 = scmp.ne.s32.totalorder %s15972_s21, 0 }
 0xc8e   : > { %s11778_s5 = smov [#allocation21]  }
 0xc8f   : > { %p11600_p2 = pnand %p11599_p13, %p16125_p6  ;;  %s11602_s27 = sshll.u32 %s11778_s5, 4  ;;  %s11603_s27 = int_to_ptr.vmem [resolvable:$false] %s11602_s27 }
 0xc90   : > { %p8570_p10 = scmp.eq.s32.totalorder %s16121_s23, 1  ;;  %s11604_s16 = scalar_lea.vmem %s11603_s27, 8192 }
 0xc91   : > { %p11601_p1 = pneg %p11600_p2  ;;  %p11605_p0 = scmp.lt.s32.totalorder %s15685_s22, %s11603_s27 }
 0xc92   : > { %s16152_s10 = smov (!%p8570_p10, %s16122_s10), 0  ;;  %p11606_p3 = scmp.lt.s32.totalorder %s11604_s16, %s11598_s8 }
 0xc93   : > { %s9513_s20 = sshll.u32 %s16152_s10, 12 }
 0xc94   : > { %s15690_s4 = scalar_lea.hbm %s16124_s12, %s9513_s20  ;;  %p11607_p9 = por %p11606_p3, %p11605_p0 }
 0xc96   : > { %p11608_p8 = pnand %p11607_p9, %p11601_p1 }
 0xc98   : > { %11611 = shalt.err (!%p11608_p8)
}
 0xc99   : > { %s11612_s11 = scalar_lea.hbm %s15690_s4, 4096  ;;  %s11616_s15 = scalar_lea.hbm %s16124_s12, 8192 }
 0xc9a   : > { %p11613_p5 = scmp.ne.s32.totalorder %s15690_s4, %s11612_s11  ;;  %p11617_p12 = scmp.lt.u32.totalorder %s15690_s4, %s16124_s12 }
 0xc9b   : > { %p11618_p11 = scmp.lt.u32.totalorder %s11616_s15, %s11612_s11  ;;  %p11620_p13 = scmp.lt.u32.totalorder %s11612_s11, %s15690_s4 }
 0xc9c   : > { %p11614_p7 = pnand %p11613_p5, %p16125_p6 }
 0xc9d   : > { %p11619_p10 = por %p11618_p11, %p11617_p12 }
 0xc9e   : > { %p11615_p4 = pneg %p11614_p7 }
 0xc9f   : > { %p11621_p2 = por %p11620_p13, %p11619_p10 }
 0xca1   : > { %p11622_p1 = pnand %p11621_p2, %p11615_p4 }
 0xca3   : > { %11625 = shalt.err (!%p11622_p1)
}
 0xca4   : > { %s11779_s29 = smov 256   ;;  %s11780_s13 = smov 16  }
 0xca5   : > { %10033 = dma.vmem_to_hbm [thread:$0]  (%p16125_p6), %s15685_s22, 4096, %s15690_s4, %s15694_s3, %s11779_s29, %s11779_s29, %s11780_s13  }
 0xca6 PF: > { %s16126_s23 = sld [smem:[#allocation27_spill]]  ;;  %p10083_p0 = scmp.ge.s32.totalorder %s11754_s19, 2 }
 0xca7   : > { %p16127_p3 = scmp.ne.s32.totalorder %s15973_s14, 0 }
 0xca9   : > { %p10077_p9 = pnand %p10083_p0, %p16127_p3 }
 0xcac   : > { %s8593_s10 = sand.u32 1, %s16126_s23  }
 0xcad   : > { %s8594_s24 = scalar_lea.sflag [#allocation7], %s8593_s10 }
 0xcae   : > { %11697 = dma.done.wait (!%p10077_p9), %s8594_s24, 4096  }
 0xcaf   : > { %11699 = vsyncadd (!%p10077_p9), %s8594_s24, 4294963200  ;;  %s35_s19 = sadd.s32 1, %s11754_s19   ;;  %s16129_s23 = sld [smem:[#allocation28_spill]] }
 0xcb0   : > { %p15723_p8 = scmp.ge.s32.totalorder %s35_s19, 6   ;;  %s16130_s26 = sld [smem:[#allocation30_spill]] }
 0xcb1   : > { %s16131_s21 = sld [smem:[#allocation39_spill]]  ;;  %s16132_s22 = sld [smem:[#allocation32_spill]] }
 0xcb2   : > { %s16133_s1 = smov %s11977_s0  ;;  %s16134_s15 = sld [smem:[#allocation35_spill]] }
 0xcb3   : > { %s16135_s16 = sld [smem:[#allocation36_spill]]  ;;  %s16136_s17 = sld [smem:[#allocation37_spill]] }
 0xcb4   : > { %s16137_s18 = sld [smem:[#allocation38_spill]]  ;;  %s16138_s24 = smov %s11710_s25 }
 0xcb5   : > { %s16139_s25 = smov %s11984_s9  ;;  %s16140_s27 = smov %s11722_s28 }
 0xcb6   : > { %s16143_s29 = smov %s11734_s30  ;;  %s16144_s30 = smov %s16133_s1 }
 0xcb7   : > { %s16141_s28 = smov %s16131_s21  ;;  %s16142_s0 = smov %s16132_s22 }
 0xcb8   :  { %34 = sbr.rel (!%p15723_p8) target bundleno = 32 (0x20), region = 252 }
 0xcbf   :  { %8599 = vsyncpa [#allocation6], 1 }
 0xcc0   :  { %8601 = vsyncpa [#allocation6 + $0x1], 1 }
 0xcc1   :  { %8602 = vsyncpa [#allocation9], 1 }
 0xcc2   :  { %8603 = vsyncpa [#allocation7], 1 }
 0xcc3   :  { %8605 = vsyncpa [#allocation7 + $0x1], 1 }

</bundles_post_ra>
